<compile_context>
chip_gen: v5e
topology: v5e:2x2
jax: 0.10.0
libtpu: 0.0.40
codegen_flags: <defaults>
</compile_context>

<pallas_src>
import functools
import math

import jax
import jax.numpy as jnp
from jax.experimental import pallas as pl
from jax.experimental.pallas import tpu as pltpu

INPUT_SIZE = 15
HIDDEN = 10
NUM_LAYERS = 5

SW = 16            # padded state / input width  (>= max(INPUT_SIZE, HIDDEN), multiple of 8)
GB = 128           # per-gate lane block (vreg aligned)
GT = 4 * GB        # total padded gate width


# ----------------------------- fused Pallas kernel ------------------------------


def _fused_lstm_kernel(x_ref, wih_ref, whh_ref, b_ref, wlin_ref, blin_ref,
                       out_ref, xproj_scr, act_scr, *, seq, batch):
    """Whole network in one kernel invocation (no grid).

    x_ref:    (seq*batch, SW)            padded input sequence
    wih_ref:  (NUM_LAYERS, SW, GT)       input->gates weights (per-gate 128-lane blocks)
    whh_ref:  (NUM_LAYERS, SW, GT)       hidden->gates weights
    b_ref:    (NUM_LAYERS, 1, GT)        b_ih + b_hh
    wlin_ref: (SW, 1), blin_ref: (1, 1)  final Linear
    out_ref:  (seq*batch, 1)
    xproj_scr:(seq*batch, GT)  VMEM      hoisted input projection (+bias) for current layer
    act_scr:  (seq*batch, SW)  VMEM      current layer input / output activations
    """
    # Layer-0 input.
    act_scr[...] = x_ref[...]

    for l in range(NUM_LAYERS):
        # ---- hoisted input projection: one matmul per layer, off the recurrent path ----
        xproj_scr[...] = (
            jnp.dot(act_scr[...], wih_ref[l], preferred_element_type=jnp.float32)
            + b_ref[l]
        )

        h = jnp.zeros((batch, SW), jnp.float32)
        c = jnp.zeros((batch, SW), jnp.float32)

        # ---- fully-unrolled recurrence: only h @ W_hh remains on the serial path ----
        for t in range(seq):
            r0 = t * batch
            gates = xproj_scr[pl.ds(r0, batch), :] + jnp.dot(
                h, whh_ref[l], preferred_element_type=jnp.float32
            )  # (batch, GT)

            # vreg-aligned per-gate slices (PyTorch gate order i, f, g, o).
            i_g = jax.nn.sigmoid(gates[:, 0 * GB:0 * GB + SW])
            f_g = jax.nn.sigmoid(gates[:, 1 * GB:1 * GB + SW])
            g_g = jnp.tanh(gates[:, 2 * GB:2 * GB + SW])
            o_g = jax.nn.sigmoid(gates[:, 3 * GB:3 * GB + SW])

            c = f_g * c + i_g * g_g
            h = o_g * jnp.tanh(c)

            # Store this layer's output (input of next layer).  Pad lanes stay exactly 0.
            act_scr[pl.ds(r0, batch), :] = h

    # ---- fused final Linear(10 -> 1), single writeback ----
    out_ref[...] = (
        jnp.dot(act_scr[...], wlin_ref[...], preferred_element_type=jnp.float32)
        + blin_ref[...]
    )


# ------------------------------ JAX wrapper --------------------------------


def _pack_params(params):
    """Pack per-layer PyTorch-layout weights into padded, layer-stacked VMEM-resident arrays."""
    wih = jnp.zeros((NUM_LAYERS, SW, GT), jnp.float32)
    whh = jnp.zeros((NUM_LAYERS, SW, GT), jnp.float32)
    bias = jnp.zeros((NUM_LAYERS, 1, GT), jnp.float32)
    for l in range(NUM_LAYERS):
        p = params["lstm"][l]
        w_ih_t = jnp.asarray(p["w_ih"], jnp.float32).T          # (in_dim, 4H)
        w_hh_t = jnp.asarray(p["w_hh"], jnp.float32).T          # (H, 4H)
        b = jnp.asarray(p["b_ih"], jnp.float32) + jnp.asarray(p["b_hh"], jnp.float32)
        in_dim = w_ih_t.shape[0]
        for g in range(4):
            wih = wih.at[l, :in_dim, g * GB:g * GB + HIDDEN].set(
                w_ih_t[:, g * HIDDEN:(g + 1) * HIDDEN])
            whh = whh.at[l, :HIDDEN, g * GB:g * GB + HIDDEN].set(
                w_hh_t[:, g * HIDDEN:(g + 1) * HIDDEN])
            bias = bias.at[l, 0, g * GB:g * GB + HIDDEN].set(
                b[g * HIDDEN:(g + 1) * HIDDEN])
    wlin = jnp.zeros((SW, 1), jnp.float32).at[:HIDDEN, :].set(
        jnp.asarray(params["linear"]["w"], jnp.float32).T)
    blin = jnp.asarray(params["linear"]["b"], jnp.float32).reshape(1, 1)
    return wih, whh, bias, wlin, blin


@jax.jit
def lstm_forward(params, x):
    """x: (seq, batch, INPUT_SIZE) -> (seq, batch, 1)."""
    seq, batch, in_dim = x.shape
    wih, whh, bias, wlin, blin = _pack_params(params)

    x_pad = jnp.zeros((seq * batch, SW), jnp.float32)
    x_pad = x_pad.at[:, :in_dim].set(jnp.asarray(x, jnp.float32).reshape(seq * batch, in_dim))

    out2 = pl.pallas_call(
        functools.partial(_fused_lstm_kernel, seq=seq, batch=batch),
        out_shape=jax.ShapeDtypeStruct((seq * batch, 1), jnp.float32),
        in_specs=[
            pl.BlockSpec((seq * batch, SW), lambda: (0, 0)),
            pl.BlockSpec((NUM_LAYERS, SW, GT), lambda: (0, 0, 0)),
            pl.BlockSpec((NUM_LAYERS, SW, GT), lambda: (0, 0, 0)),
            pl.BlockSpec((NUM_LAYERS, 1, GT), lambda: (0, 0, 0)),
            pl.BlockSpec((SW, 1), lambda: (0, 0)),
            pl.BlockSpec((1, 1), lambda: (0, 0)),
        ],
        out_specs=pl.BlockSpec((seq * batch, 1), lambda: (0, 0)),
        scratch_shapes=[
            pltpu.VMEM((seq * batch, GT), jnp.float32),   # hoisted x-projection
            pltpu.VMEM((seq * batch, SW), jnp.float32),   # layer activations
        ],
    )(x_pad, wih, whh, bias, wlin, blin)

    return out2.reshape(seq, batch, 1)


# -------------------------- parameter construction --------------------------


def init_params(key):
    """Deterministic init matching PyTorch shapes: U(-1/sqrt(H), 1/sqrt(H))."""
    params = {"lstm": [], "linear": {}}
    k = 1.0 / math.sqrt(HIDDEN)
    for layer in range(NUM_LAYERS):
        in_dim = INPUT_SIZE if layer == 0 else HIDDEN
        key, k1, k2, k3, k4 = jax.random.split(key, 5)
        params["lstm"].append(
            {
                "w_ih": jax.random.uniform(k1, (4 * HIDDEN, in_dim), jnp.float32, -k, k),
                "w_hh": jax.random.uniform(k2, (4 * HIDDEN, HIDDEN), jnp.float32, -k, k),
                "b_ih": jax.random.uniform(k3, (4 * HIDDEN,), jnp.float32, -k, k),
                "b_hh": jax.random.uniform(k4, (4 * HIDDEN,), jnp.float32, -k, k),
            }
        )
    key, k1, k2 = jax.random.split(key, 3)
    kl = 1.0 / math.sqrt(HIDDEN)
    params["linear"]["w"] = jax.random.uniform(k1, (1, HIDDEN), jnp.float32, -kl, kl)
    params["linear"]["b"] = jax.random.uniform(k2, (1,), jnp.float32, -kl, kl)
    return params


# ------------------------------ pure-JAX reference ---------------------------


def _ref_lstm_layer(x, w_ih, w_hh, b_ih, b_hh):
    seq, batch, _ = x.shape
    H = w_hh.shape[1]

    def step(carry, x_t):
        h, c = carry
        gates = x_t @ w_ih.T + h @ w_hh.T + b_ih + b_hh
        i = jax.nn.sigmoid(gates[:, :H])
        f = jax.nn.sigmoid(gates[:, H:2 * H])
        g = jnp.tanh(gates[:, 2 * H:3 * H])
        o = jax.nn.sigmoid(gates[:, 3 * H:])
        c = f * c + i * g
        h = o * jnp.tanh(c)
        return (h, c), h

    init = (jnp.zeros((batch, H), jnp.float32), jnp.zeros((batch, H), jnp.float32))
    _, hs = jax.lax.scan(step, init, x)
    return hs


def _ref_forward(params, x):
    h = x
    for layer in range(NUM_LAYERS):
        p = params["lstm"][layer]
        h = _ref_lstm_layer(h, p["w_ih"], p["w_hh"], p["b_ih"], p["b_hh"])
    return h @ params["linear"]["w"].T + params["linear"]["b"]


# ----------------------------------- main ------------------------------------

if __name__ == "__main__":
    key = jax.random.PRNGKey(0)
    key, pkey, xkey = jax.random.split(key, 3)

    params = init_params(pkey)

    seq_len, batch = 8, 2
    x = jax.random.normal(xkey, (seq_len, batch, INPUT_SIZE), jnp.float32)

    out = jax.block_until_ready(lstm_forward(params, x))
    assert out.shape == (seq_len, batch, 1), out.shape

    ref = jax.block_until_ready(_ref_forward(params, x))
    max_err = float(jnp.max(jnp.abs(out - ref)))
    assert jnp.allclose(out, ref, atol=1e-4, rtol=1e-4), max_err

    print("KERNEL_OK")
</pallas_src>

<mosaic_0001>
module attributes {stable_mosaic.version = 11 : i64} {
  func.func @_fused_lstm_kernel(%arg0: memref<16x16xf32, #tpu.memory_space<vmem>>, %arg1: memref<5x16x512xf32, #tpu.memory_space<vmem>>, %arg2: memref<5x16x512xf32, #tpu.memory_space<vmem>>, %arg3: memref<5x1x512xf32, #tpu.memory_space<vmem>>, %arg4: memref<16x1xf32, #tpu.memory_space<vmem>>, %arg5: memref<1x1xf32, #tpu.memory_space<vmem>>, %arg6: memref<16x1xf32, #tpu.memory_space<vmem>>, %arg7: memref<16x512xf32, #tpu.memory_space<vmem>>, %arg8: memref<16x16xf32, #tpu.memory_space<vmem>>) attributes {dimension_semantics = [], scalar_prefetch = 0 : i64, scratch_operands = 2 : i64, tpu.core_type = #tpu.core_type<tc>} {
    %c0 = arith.constant 0 : index
    %c0_0 = arith.constant 0 : index
    %0 = vector.load %arg0[%c0, %c0_0] : memref<16x16xf32, #tpu.memory_space<vmem>>, vector<16x16xf32>
    %c0_1 = arith.constant 0 : index
    %c0_2 = arith.constant 0 : index
    %1 = vector.load %arg8[%c0_1, %c0_2] : memref<16x16xf32, #tpu.memory_space<vmem>>, vector<16x16xf32>
    tpu.vector_store %arg8[%c0_1, %c0_2], %0 {strides = array<i32>} : memref<16x16xf32, #tpu.memory_space<vmem>>, vector<16x16xf32>,
    %c0_3 = arith.constant 0 : index
    %c0_4 = arith.constant 0 : index
    %2 = vector.load %arg8[%c0_3, %c0_4] : memref<16x16xf32, #tpu.memory_space<vmem>>, vector<16x16xf32>
    %c0_5 = arith.constant 0 : index
    %c0_6 = arith.constant 0 : index
    %c0_7 = arith.constant 0 : index
    %3 = vector.load %arg1[%c0_5, %c0_6, %c0_7] : memref<5x16x512xf32, #tpu.memory_space<vmem>>, vector<1x16x512xf32>
    %4 = vector.shape_cast %3 : vector<1x16x512xf32> to vector<16x512xf32>
    %cst = arith.constant dense<0.000000e+00> : vector<16x512xf32>
    %5 = tpu.matmul %2, %4, %cst {dimension_numbers = #tpu.dot_dimension_numbers<[1], [0], [0], [1], [0, 0, 1, 1], [], []>} : vector<16x16xf32>, vector<16x512xf32>, vector<16x512xf32> -> vector<16x512xf32>
    %c0_8 = arith.constant 0 : index
    %c0_9 = arith.constant 0 : index
    %c0_10 = arith.constant 0 : index
    %6 = vector.load %arg3[%c0_8, %c0_9, %c0_10] : memref<5x1x512xf32, #tpu.memory_space<vmem>>, vector<1x1x512xf32>
    %7 = vector.shape_cast %6 : vector<1x1x512xf32> to vector<1x512xf32>
    %8 = vector.broadcast %7 : vector<1x512xf32> to vector<16x512xf32>
    %9 = arith.addf %5, %8 : vector<16x512xf32>
    %c0_11 = arith.constant 0 : index
    %c0_12 = arith.constant 0 : index
    %10 = vector.load %arg7[%c0_11, %c0_12] : memref<16x512xf32, #tpu.memory_space<vmem>>, vector<16x512xf32>
    tpu.vector_store %arg7[%c0_11, %c0_12], %9 {strides = array<i32>} : memref<16x512xf32, #tpu.memory_space<vmem>>, vector<16x512xf32>,
    %cst_13 = arith.constant 0.000000e+00 : f32
    %11 = vector.broadcast %cst_13 : f32 to vector<2x16xf32>
    %cst_14 = arith.constant 0.000000e+00 : f32
    %12 = vector.broadcast %cst_14 : f32 to vector<2x16xf32>
    %c0_15 = arith.constant 0 : index
    %c0_16 = arith.constant 0 : index
    %13 = vector.load %arg7[%c0_15, %c0_16] : memref<16x512xf32, #tpu.memory_space<vmem>>, vector<2x512xf32>
    %c0_17 = arith.constant 0 : index
    %c0_18 = arith.constant 0 : index
    %c0_19 = arith.constant 0 : index
    %14 = vector.load %arg2[%c0_17, %c0_18, %c0_19] : memref<5x16x512xf32, #tpu.memory_space<vmem>>, vector<1x16x512xf32>
    %15 = vector.shape_cast %14 : vector<1x16x512xf32> to vector<16x512xf32>
    %cst_20 = arith.constant dense<0.000000e+00> : vector<2x512xf32>
    %16 = tpu.matmul %11, %15, %cst_20 {dimension_numbers = #tpu.dot_dimension_numbers<[1], [0], [0], [1], [0, 0, 1, 1], [], []>} : vector<2x16xf32>, vector<16x512xf32>, vector<2x512xf32> -> vector<2x512xf32>
    %17 = arith.addf %13, %16 : vector<2x512xf32>
    %18 = vector.extract_strided_slice %17 {offsets = [0, 0], sizes = [2, 16], strides = [1, 1]} : vector<2x512xf32> to vector<2x16xf32>
    %19 = arith.negf %18 : vector<2x16xf32>
    %20 = math.exp %19 : vector<2x16xf32>
    %cst_21 = arith.constant 1.000000e+00 : f32
    %21 = vector.broadcast %cst_21 : f32 to vector<2x16xf32>
    %22 = arith.addf %21, %20 : vector<2x16xf32>
    %23 = arith.divf %21, %22 : vector<2x16xf32>
    %24 = vector.extract_strided_slice %17 {offsets = [0, 128], sizes = [2, 16], strides = [1, 1]} : vector<2x512xf32> to vector<2x16xf32>
    %25 = arith.negf %24 : vector<2x16xf32>
    %26 = math.exp %25 : vector<2x16xf32>
    %cst_22 = arith.constant 1.000000e+00 : f32
    %27 = vector.broadcast %cst_22 : f32 to vector<2x16xf32>
    %28 = arith.addf %27, %26 : vector<2x16xf32>
    %29 = arith.divf %27, %28 : vector<2x16xf32>
    %30 = vector.extract_strided_slice %17 {offsets = [0, 256], sizes = [2, 16], strides = [1, 1]} : vector<2x512xf32> to vector<2x16xf32>
    %31 = math.tanh %30 : vector<2x16xf32>
    %32 = vector.extract_strided_slice %17 {offsets = [0, 384], sizes = [2, 16], strides = [1, 1]} : vector<2x512xf32> to vector<2x16xf32>
    %33 = arith.negf %32 : vector<2x16xf32>
    %34 = math.exp %33 : vector<2x16xf32>
    %cst_23 = arith.constant 1.000000e+00 : f32
    %35 = vector.broadcast %cst_23 : f32 to vector<2x16xf32>
    %36 = arith.addf %35, %34 : vector<2x16xf32>
    %37 = arith.divf %35, %36 : vector<2x16xf32>
    %38 = arith.mulf %29, %12 : vector<2x16xf32>
    %39 = arith.mulf %23, %31 : vector<2x16xf32>
    %40 = arith.addf %38, %39 : vector<2x16xf32>
    %41 = math.tanh %40 : vector<2x16xf32>
    %42 = arith.mulf %37, %41 : vector<2x16xf32>
    %c0_24 = arith.constant 0 : index
    %c0_25 = arith.constant 0 : index
    %43 = vector.load %arg8[%c0_24, %c0_25] : memref<16x16xf32, #tpu.memory_space<vmem>>, vector<2x16xf32>
    tpu.vector_store %arg8[%c0_24, %c0_25], %42 {strides = array<i32>} : memref<16x16xf32, #tpu.memory_space<vmem>>, vector<2x16xf32>,
    %c2 = arith.constant 2 : index
    %c0_26 = arith.constant 0 : index
    %44 = vector.load %arg7[%c2, %c0_26] : memref<16x512xf32, #tpu.memory_space<vmem>>, vector<2x512xf32>
    %c0_27 = arith.constant 0 : index
    %c0_28 = arith.constant 0 : index
    %c0_29 = arith.constant 0 : index
    %45 = vector.load %arg2[%c0_27, %c0_28, %c0_29] : memref<5x16x512xf32, #tpu.memory_space<vmem>>, vector<1x16x512xf32>
    %46 = vector.shape_cast %45 : vector<1x16x512xf32> to vector<16x512xf32>
    %cst_30 = arith.constant dense<0.000000e+00> : vector<2x512xf32>
    %47 = tpu.matmul %42, %46, %cst_30 {dimension_numbers = #tpu.dot_dimension_numbers<[1], [0], [0], [1], [0, 0, 1, 1], [], []>} : vector<2x16xf32>, vector<16x512xf32>, vector<2x512xf32> -> vector<2x512xf32>
    %48 = arith.addf %44, %47 : vector<2x512xf32>
    %49 = vector.extract_strided_slice %48 {offsets = [0, 0], sizes = [2, 16], strides = [1, 1]} : vector<2x512xf32> to vector<2x16xf32>
    %50 = arith.negf %49 : vector<2x16xf32>
    %51 = math.exp %50 : vector<2x16xf32>
    %cst_31 = arith.constant 1.000000e+00 : f32
    %52 = vector.broadcast %cst_31 : f32 to vector<2x16xf32>
    %53 = arith.addf %52, %51 : vector<2x16xf32>
    %54 = arith.divf %52, %53 : vector<2x16xf32>
    %55 = vector.extract_strided_slice %48 {offsets = [0, 128], sizes = [2, 16], strides = [1, 1]} : vector<2x512xf32> to vector<2x16xf32>
    %56 = arith.negf %55 : vector<2x16xf32>
    %57 = math.exp %56 : vector<2x16xf32>
    %cst_32 = arith.constant 1.000000e+00 : f32
    %58 = vector.broadcast %cst_32 : f32 to vector<2x16xf32>
    %59 = arith.addf %58, %57 : vector<2x16xf32>
    %60 = arith.divf %58, %59 : vector<2x16xf32>
    %61 = vector.extract_strided_slice %48 {offsets = [0, 256], sizes = [2, 16], strides = [1, 1]} : vector<2x512xf32> to vector<2x16xf32>
    %62 = math.tanh %61 : vector<2x16xf32>
    %63 = vector.extract_strided_slice %48 {offsets = [0, 384], sizes = [2, 16], strides = [1, 1]} : vector<2x512xf32> to vector<2x16xf32>
    %64 = arith.negf %63 : vector<2x16xf32>
    %65 = math.exp %64 : vector<2x16xf32>
    %cst_33 = arith.constant 1.000000e+00 : f32
    %66 = vector.broadcast %cst_33 : f32 to vector<2x16xf32>
    %67 = arith.addf %66, %65 : vector<2x16xf32>
    %68 = arith.divf %66, %67 : vector<2x16xf32>
    %69 = arith.mulf %60, %40 : vector<2x16xf32>
    %70 = arith.mulf %54, %62 : vector<2x16xf32>
    %71 = arith.addf %69, %70 : vector<2x16xf32>
    %72 = math.tanh %71 : vector<2x16xf32>
    %73 = arith.mulf %68, %72 : vector<2x16xf32>
    %c2_34 = arith.constant 2 : index
    %c0_35 = arith.constant 0 : index
    %74 = vector.load %arg8[%c2_34, %c0_35] : memref<16x16xf32, #tpu.memory_space<vmem>>, vector<2x16xf32>
    tpu.vector_store %arg8[%c2_34, %c0_35], %73 {strides = array<i32>} : memref<16x16xf32, #tpu.memory_space<vmem>>, vector<2x16xf32>,
    %c4 = arith.constant 4 : index
    %c0_36 = arith.constant 0 : index
    %75 = vector.load %arg7[%c4, %c0_36] : memref<16x512xf32, #tpu.memory_space<vmem>>, vector<2x512xf32>
    %c0_37 = arith.constant 0 : index
    %c0_38 = arith.constant 0 : index
    %c0_39 = arith.constant 0 : index
    %76 = vector.load %arg2[%c0_37, %c0_38, %c0_39] : memref<5x16x512xf32, #tpu.memory_space<vmem>>, vector<1x16x512xf32>
    %77 = vector.shape_cast %76 : vector<1x16x512xf32> to vector<16x512xf32>
    %cst_40 = arith.constant dense<0.000000e+00> : vector<2x512xf32>
    %78 = tpu.matmul %73, %77, %cst_40 {dimension_numbers = #tpu.dot_dimension_numbers<[1], [0], [0], [1], [0, 0, 1, 1], [], []>} : vector<2x16xf32>, vector<16x512xf32>, vector<2x512xf32> -> vector<2x512xf32>
    %79 = arith.addf %75, %78 : vector<2x512xf32>
    %80 = vector.extract_strided_slice %79 {offsets = [0, 0], sizes = [2, 16], strides = [1, 1]} : vector<2x512xf32> to vector<2x16xf32>
    %81 = arith.negf %80 : vector<2x16xf32>
    %82 = math.exp %81 : vector<2x16xf32>
    %cst_41 = arith.constant 1.000000e+00 : f32
    %83 = vector.broadcast %cst_41 : f32 to vector<2x16xf32>
    %84 = arith.addf %83, %82 : vector<2x16xf32>
    %85 = arith.divf %83, %84 : vector<2x16xf32>
    %86 = vector.extract_strided_slice %79 {offsets = [0, 128], sizes = [2, 16], strides = [1, 1]} : vector<2x512xf32> to vector<2x16xf32>
    %87 = arith.negf %86 : vector<2x16xf32>
    %88 = math.exp %87 : vector<2x16xf32>
    %cst_42 = arith.constant 1.000000e+00 : f32
    %89 = vector.broadcast %cst_42 : f32 to vector<2x16xf32>
    %90 = arith.addf %89, %88 : vector<2x16xf32>
    %91 = arith.divf %89, %90 : vector<2x16xf32>
    %92 = vector.extract_strided_slice %79 {offsets = [0, 256], sizes = [2, 16], strides = [1, 1]} : vector<2x512xf32> to vector<2x16xf32>
    %93 = math.tanh %92 : vector<2x16xf32>
    %94 = vector.extract_strided_slice %79 {offsets = [0, 384], sizes = [2, 16], strides = [1, 1]} : vector<2x512xf32> to vector<2x16xf32>
    %95 = arith.negf %94 : vector<2x16xf32>
    %96 = math.exp %95 : vector<2x16xf32>
    %cst_43 = arith.constant 1.000000e+00 : f32
    %97 = vector.broadcast %cst_43 : f32 to vector<2x16xf32>
    %98 = arith.addf %97, %96 : vector<2x16xf32>
    %99 = arith.divf %97, %98 : vector<2x16xf32>
    %100 = arith.mulf %91, %71 : vector<2x16xf32>
    %101 = arith.mulf %85, %93 : vector<2x16xf32>
    %102 = arith.addf %100, %101 : vector<2x16xf32>
    %103 = math.tanh %102 : vector<2x16xf32>
    %104 = arith.mulf %99, %103 : vector<2x16xf32>
    %c4_44 = arith.constant 4 : index
    %c0_45 = arith.constant 0 : index
    %105 = vector.load %arg8[%c4_44, %c0_45] : memref<16x16xf32, #tpu.memory_space<vmem>>, vector<2x16xf32>
    tpu.vector_store %arg8[%c4_44, %c0_45], %104 {strides = array<i32>} : memref<16x16xf32, #tpu.memory_space<vmem>>, vector<2x16xf32>,
    %c6 = arith.constant 6 : index
    %c0_46 = arith.constant 0 : index
    %106 = vector.load %arg7[%c6, %c0_46] : memref<16x512xf32, #tpu.memory_space<vmem>>, vector<2x512xf32>
    %c0_47 = arith.constant 0 : index
    %c0_48 = arith.constant 0 : index
    %c0_49 = arith.constant 0 : index
    %107 = vector.load %arg2[%c0_47, %c0_48, %c0_49] : memref<5x16x512xf32, #tpu.memory_space<vmem>>, vector<1x16x512xf32>
    %108 = vector.shape_cast %107 : vector<1x16x512xf32> to vector<16x512xf32>
    %cst_50 = arith.constant dense<0.000000e+00> : vector<2x512xf32>
    %109 = tpu.matmul %104, %108, %cst_50 {dimension_numbers = #tpu.dot_dimension_numbers<[1], [0], [0], [1], [0, 0, 1, 1], [], []>} : vector<2x16xf32>, vector<16x512xf32>, vector<2x512xf32> -> vector<2x512xf32>
    %110 = arith.addf %106, %109 : vector<2x512xf32>
    %111 = vector.extract_strided_slice %110 {offsets = [0, 0], sizes = [2, 16], strides = [1, 1]} : vector<2x512xf32> to vector<2x16xf32>
    %112 = arith.negf %111 : vector<2x16xf32>
    %113 = math.exp %112 : vector<2x16xf32>
    %cst_51 = arith.constant 1.000000e+00 : f32
    %114 = vector.broadcast %cst_51 : f32 to vector<2x16xf32>
    %115 = arith.addf %114, %113 : vector<2x16xf32>
    %116 = arith.divf %114, %115 : vector<2x16xf32>
    %117 = vector.extract_strided_slice %110 {offsets = [0, 128], sizes = [2, 16], strides = [1, 1]} : vector<2x512xf32> to vector<2x16xf32>
    %118 = arith.negf %117 : vector<2x16xf32>
    %119 = math.exp %118 : vector<2x16xf32>
    %cst_52 = arith.constant 1.000000e+00 : f32
    %120 = vector.broadcast %cst_52 : f32 to vector<2x16xf32>
    %121 = arith.addf %120, %119 : vector<2x16xf32>
    %122 = arith.divf %120, %121 : vector<2x16xf32>
    %123 = vector.extract_strided_slice %110 {offsets = [0, 256], sizes = [2, 16], strides = [1, 1]} : vector<2x512xf32> to vector<2x16xf32>
    %124 = math.tanh %123 : vector<2x16xf32>
    %125 = vector.extract_strided_slice %110 {offsets = [0, 384], sizes = [2, 16], strides = [1, 1]} : vector<2x512xf32> to vector<2x16xf32>
    %126 = arith.negf %125 : vector<2x16xf32>
    %127 = math.exp %126 : vector<2x16xf32>
    %cst_53 = arith.constant 1.000000e+00 : f32
    %128 = vector.broadcast %cst_53 : f32 to vector<2x16xf32>
    %129 = arith.addf %128, %127 : vector<2x16xf32>
    %130 = arith.divf %128, %129 : vector<2x16xf32>
    %131 = arith.mulf %122, %102 : vector<2x16xf32>
    %132 = arith.mulf %116, %124 : vector<2x16xf32>
    %133 = arith.addf %131, %132 : vector<2x16xf32>
    %134 = math.tanh %133 : vector<2x16xf32>
    %135 = arith.mulf %130, %134 : vector<2x16xf32>
    %c6_54 = arith.constant 6 : index
    %c0_55 = arith.constant 0 : index
    %136 = vector.load %arg8[%c6_54, %c0_55] : memref<16x16xf32, #tpu.memory_space<vmem>>, vector<2x16xf32>
    tpu.vector_store %arg8[%c6_54, %c0_55], %135 {strides = array<i32>} : memref<16x16xf32, #tpu.memory_space<vmem>>, vector<2x16xf32>,
    %c8 = arith.constant 8 : index
    %c0_56 = arith.constant 0 : index
    %137 = vector.load %arg7[%c8, %c0_56] : memref<16x512xf32, #tpu.memory_space<vmem>>, vector<2x512xf32>
    %c0_57 = arith.constant 0 : index
    %c0_58 = arith.constant 0 : index
    %c0_59 = arith.constant 0 : index
    %138 = vector.load %arg2[%c0_57, %c0_58, %c0_59] : memref<5x16x512xf32, #tpu.memory_space<vmem>>, vector<1x16x512xf32>
    %139 = vector.shape_cast %138 : vector<1x16x512xf32> to vector<16x512xf32>
    %cst_60 = arith.constant dense<0.000000e+00> : vector<2x512xf32>
    %140 = tpu.matmul %135, %139, %cst_60 {dimension_numbers = #tpu.dot_dimension_numbers<[1], [0], [0], [1], [0, 0, 1, 1], [], []>} : vector<2x16xf32>, vector<16x512xf32>, vector<2x512xf32> -> vector<2x512xf32>
    %141 = arith.addf %137, %140 : vector<2x512xf32>
    %142 = vector.extract_strided_slice %141 {offsets = [0, 0], sizes = [2, 16], strides = [1, 1]} : vector<2x512xf32> to vector<2x16xf32>
    %143 = arith.negf %142 : vector<2x16xf32>
    %144 = math.exp %143 : vector<2x16xf32>
    %cst_61 = arith.constant 1.000000e+00 : f32
    %145 = vector.broadcast %cst_61 : f32 to vector<2x16xf32>
    %146 = arith.addf %145, %144 : vector<2x16xf32>
    %147 = arith.divf %145, %146 : vector<2x16xf32>
    %148 = vector.extract_strided_slice %141 {offsets = [0, 128], sizes = [2, 16], strides = [1, 1]} : vector<2x512xf32> to vector<2x16xf32>
    %149 = arith.negf %148 : vector<2x16xf32>
    %150 = math.exp %149 : vector<2x16xf32>
    %cst_62 = arith.constant 1.000000e+00 : f32
    %151 = vector.broadcast %cst_62 : f32 to vector<2x16xf32>
    %152 = arith.addf %151, %150 : vector<2x16xf32>
    %153 = arith.divf %151, %152 : vector<2x16xf32>
    %154 = vector.extract_strided_slice %141 {offsets = [0, 256], sizes = [2, 16], strides = [1, 1]} : vector<2x512xf32> to vector<2x16xf32>
    %155 = math.tanh %154 : vector<2x16xf32>
    %156 = vector.extract_strided_slice %141 {offsets = [0, 384], sizes = [2, 16], strides = [1, 1]} : vector<2x512xf32> to vector<2x16xf32>
    %157 = arith.negf %156 : vector<2x16xf32>
    %158 = math.exp %157 : vector<2x16xf32>
    %cst_63 = arith.constant 1.000000e+00 : f32
    %159 = vector.broadcast %cst_63 : f32 to vector<2x16xf32>
    %160 = arith.addf %159, %158 : vector<2x16xf32>
    %161 = arith.divf %159, %160 : vector<2x16xf32>
    %162 = arith.mulf %153, %133 : vector<2x16xf32>
    %163 = arith.mulf %147, %155 : vector<2x16xf32>
    %164 = arith.addf %162, %163 : vector<2x16xf32>
    %165 = math.tanh %164 : vector<2x16xf32>
    %166 = arith.mulf %161, %165 : vector<2x16xf32>
    %c8_64 = arith.constant 8 : index
    %c0_65 = arith.constant 0 : index
    %167 = vector.load %arg8[%c8_64, %c0_65] : memref<16x16xf32, #tpu.memory_space<vmem>>, vector<2x16xf32>
    tpu.vector_store %arg8[%c8_64, %c0_65], %166 {strides = array<i32>} : memref<16x16xf32, #tpu.memory_space<vmem>>, vector<2x16xf32>,
    %c10 = arith.constant 10 : index
    %c0_66 = arith.constant 0 : index
    %168 = vector.load %arg7[%c10, %c0_66] : memref<16x512xf32, #tpu.memory_space<vmem>>, vector<2x512xf32>
    %c0_67 = arith.constant 0 : index
    %c0_68 = arith.constant 0 : index
    %c0_69 = arith.constant 0 : index
    %169 = vector.load %arg2[%c0_67, %c0_68, %c0_69] : memref<5x16x512xf32, #tpu.memory_space<vmem>>, vector<1x16x512xf32>
    %170 = vector.shape_cast %169 : vector<1x16x512xf32> to vector<16x512xf32>
    %cst_70 = arith.constant dense<0.000000e+00> : vector<2x512xf32>
    %171 = tpu.matmul %166, %170, %cst_70 {dimension_numbers = #tpu.dot_dimension_numbers<[1], [0], [0], [1], [0, 0, 1, 1], [], []>} : vector<2x16xf32>, vector<16x512xf32>, vector<2x512xf32> -> vector<2x512xf32>
    %172 = arith.addf %168, %171 : vector<2x512xf32>
    %173 = vector.extract_strided_slice %172 {offsets = [0, 0], sizes = [2, 16], strides = [1, 1]} : vector<2x512xf32> to vector<2x16xf32>
    %174 = arith.negf %173 : vector<2x16xf32>
    %175 = math.exp %174 : vector<2x16xf32>
    %cst_71 = arith.constant 1.000000e+00 : f32
    %176 = vector.broadcast %cst_71 : f32 to vector<2x16xf32>
    %177 = arith.addf %176, %175 : vector<2x16xf32>
    %178 = arith.divf %176, %177 : vector<2x16xf32>
    %179 = vector.extract_strided_slice %172 {offsets = [0, 128], sizes = [2, 16], strides = [1, 1]} : vector<2x512xf32> to vector<2x16xf32>
    %180 = arith.negf %179 : vector<2x16xf32>
    %181 = math.exp %180 : vector<2x16xf32>
    %cst_72 = arith.constant 1.000000e+00 : f32
    %182 = vector.broadcast %cst_72 : f32 to vector<2x16xf32>
    %183 = arith.addf %182, %181 : vector<2x16xf32>
    %184 = arith.divf %182, %183 : vector<2x16xf32>
    %185 = vector.extract_strided_slice %172 {offsets = [0, 256], sizes = [2, 16], strides = [1, 1]} : vector<2x512xf32> to vector<2x16xf32>
    %186 = math.tanh %185 : vector<2x16xf32>
    %187 = vector.extract_strided_slice %172 {offsets = [0, 384], sizes = [2, 16], strides = [1, 1]} : vector<2x512xf32> to vector<2x16xf32>
    %188 = arith.negf %187 : vector<2x16xf32>
    %189 = math.exp %188 : vector<2x16xf32>
    %cst_73 = arith.constant 1.000000e+00 : f32
    %190 = vector.broadcast %cst_73 : f32 to vector<2x16xf32>
    %191 = arith.addf %190, %189 : vector<2x16xf32>
    %192 = arith.divf %190, %191 : vector<2x16xf32>
    %193 = arith.mulf %184, %164 : vector<2x16xf32>
    %194 = arith.mulf %178, %186 : vector<2x16xf32>
    %195 = arith.addf %193, %194 : vector<2x16xf32>
    %196 = math.tanh %195 : vector<2x16xf32>
    %197 = arith.mulf %192, %196 : vector<2x16xf32>
    %c10_74 = arith.constant 10 : index
    %c0_75 = arith.constant 0 : index
    %198 = vector.load %arg8[%c10_74, %c0_75] : memref<16x16xf32, #tpu.memory_space<vmem>>, vector<2x16xf32>
    tpu.vector_store %arg8[%c10_74, %c0_75], %197 {strides = array<i32>} : memref<16x16xf32, #tpu.memory_space<vmem>>, vector<2x16xf32>,
    %c12 = arith.constant 12 : index
    %c0_76 = arith.constant 0 : index
    %199 = vector.load %arg7[%c12, %c0_76] : memref<16x512xf32, #tpu.memory_space<vmem>>, vector<2x512xf32>
    %c0_77 = arith.constant 0 : index
    %c0_78 = arith.constant 0 : index
    %c0_79 = arith.constant 0 : index
    %200 = vector.load %arg2[%c0_77, %c0_78, %c0_79] : memref<5x16x512xf32, #tpu.memory_space<vmem>>, vector<1x16x512xf32>
    %201 = vector.shape_cast %200 : vector<1x16x512xf32> to vector<16x512xf32>
    %cst_80 = arith.constant dense<0.000000e+00> : vector<2x512xf32>
    %202 = tpu.matmul %197, %201, %cst_80 {dimension_numbers = #tpu.dot_dimension_numbers<[1], [0], [0], [1], [0, 0, 1, 1], [], []>} : vector<2x16xf32>, vector<16x512xf32>, vector<2x512xf32> -> vector<2x512xf32>
    %203 = arith.addf %199, %202 : vector<2x512xf32>
    %204 = vector.extract_strided_slice %203 {offsets = [0, 0], sizes = [2, 16], strides = [1, 1]} : vector<2x512xf32> to vector<2x16xf32>
    %205 = arith.negf %204 : vector<2x16xf32>
    %206 = math.exp %205 : vector<2x16xf32>
    %cst_81 = arith.constant 1.000000e+00 : f32
    %207 = vector.broadcast %cst_81 : f32 to vector<2x16xf32>
    %208 = arith.addf %207, %206 : vector<2x16xf32>
    %209 = arith.divf %207, %208 : vector<2x16xf32>
    %210 = vector.extract_strided_slice %203 {offsets = [0, 128], sizes = [2, 16], strides = [1, 1]} : vector<2x512xf32> to vector<2x16xf32>
    %211 = arith.negf %210 : vector<2x16xf32>
    %212 = math.exp %211 : vector<2x16xf32>
    %cst_82 = arith.constant 1.000000e+00 : f32
    %213 = vector.broadcast %cst_82 : f32 to vector<2x16xf32>
    %214 = arith.addf %213, %212 : vector<2x16xf32>
    %215 = arith.divf %213, %214 : vector<2x16xf32>
    %216 = vector.extract_strided_slice %203 {offsets = [0, 256], sizes = [2, 16], strides = [1, 1]} : vector<2x512xf32> to vector<2x16xf32>
    %217 = math.tanh %216 : vector<2x16xf32>
    %218 = vector.extract_strided_slice %203 {offsets = [0, 384], sizes = [2, 16], strides = [1, 1]} : vector<2x512xf32> to vector<2x16xf32>
    %219 = arith.negf %218 : vector<2x16xf32>
    %220 = math.exp %219 : vector<2x16xf32>
    %cst_83 = arith.constant 1.000000e+00 : f32
    %221 = vector.broadcast %cst_83 : f32 to vector<2x16xf32>
    %222 = arith.addf %221, %220 : vector<2x16xf32>
    %223 = arith.divf %221, %222 : vector<2x16xf32>
    %224 = arith.mulf %215, %195 : vector<2x16xf32>
    %225 = arith.mulf %209, %217 : vector<2x16xf32>
    %226 = arith.addf %224, %225 : vector<2x16xf32>
    %227 = math.tanh %226 : vector<2x16xf32>
    %228 = arith.mulf %223, %227 : vector<2x16xf32>
    %c12_84 = arith.constant 12 : index
    %c0_85 = arith.constant 0 : index
    %229 = vector.load %arg8[%c12_84, %c0_85] : memref<16x16xf32, #tpu.memory_space<vmem>>, vector<2x16xf32>
    tpu.vector_store %arg8[%c12_84, %c0_85], %228 {strides = array<i32>} : memref<16x16xf32, #tpu.memory_space<vmem>>, vector<2x16xf32>,
    %c14 = arith.constant 14 : index
    %c0_86 = arith.constant 0 : index
    %230 = vector.load %arg7[%c14, %c0_86] : memref<16x512xf32, #tpu.memory_space<vmem>>, vector<2x512xf32>
    %c0_87 = arith.constant 0 : index
    %c0_88 = arith.constant 0 : index
    %c0_89 = arith.constant 0 : index
    %231 = vector.load %arg2[%c0_87, %c0_88, %c0_89] : memref<5x16x512xf32, #tpu.memory_space<vmem>>, vector<1x16x512xf32>
    %232 = vector.shape_cast %231 : vector<1x16x512xf32> to vector<16x512xf32>
    %cst_90 = arith.constant dense<0.000000e+00> : vector<2x512xf32>
    %233 = tpu.matmul %228, %232, %cst_90 {dimension_numbers = #tpu.dot_dimension_numbers<[1], [0], [0], [1], [0, 0, 1, 1], [], []>} : vector<2x16xf32>, vector<16x512xf32>, vector<2x512xf32> -> vector<2x512xf32>
    %234 = arith.addf %230, %233 : vector<2x512xf32>
    %235 = vector.extract_strided_slice %234 {offsets = [0, 0], sizes = [2, 16], strides = [1, 1]} : vector<2x512xf32> to vector<2x16xf32>
    %236 = arith.negf %235 : vector<2x16xf32>
    %237 = math.exp %236 : vector<2x16xf32>
    %cst_91 = arith.constant 1.000000e+00 : f32
    %238 = vector.broadcast %cst_91 : f32 to vector<2x16xf32>
    %239 = arith.addf %238, %237 : vector<2x16xf32>
    %240 = arith.divf %238, %239 : vector<2x16xf32>
    %241 = vector.extract_strided_slice %234 {offsets = [0, 128], sizes = [2, 16], strides = [1, 1]} : vector<2x512xf32> to vector<2x16xf32>
    %242 = arith.negf %241 : vector<2x16xf32>
    %243 = math.exp %242 : vector<2x16xf32>
    %cst_92 = arith.constant 1.000000e+00 : f32
    %244 = vector.broadcast %cst_92 : f32 to vector<2x16xf32>
    %245 = arith.addf %244, %243 : vector<2x16xf32>
    %246 = arith.divf %244, %245 : vector<2x16xf32>
    %247 = vector.extract_strided_slice %234 {offsets = [0, 256], sizes = [2, 16], strides = [1, 1]} : vector<2x512xf32> to vector<2x16xf32>
    %248 = math.tanh %247 : vector<2x16xf32>
    %249 = vector.extract_strided_slice %234 {offsets = [0, 384], sizes = [2, 16], strides = [1, 1]} : vector<2x512xf32> to vector<2x16xf32>
    %250 = arith.negf %249 : vector<2x16xf32>
    %251 = math.exp %250 : vector<2x16xf32>
    %cst_93 = arith.constant 1.000000e+00 : f32
    %252 = vector.broadcast %cst_93 : f32 to vector<2x16xf32>
    %253 = arith.addf %252, %251 : vector<2x16xf32>
    %254 = arith.divf %252, %253 : vector<2x16xf32>
    %255 = arith.mulf %246, %226 : vector<2x16xf32>
    %256 = arith.mulf %240, %248 : vector<2x16xf32>
    %257 = arith.addf %255, %256 : vector<2x16xf32>
    %258 = math.tanh %257 : vector<2x16xf32>
    %259 = arith.mulf %254, %258 : vector<2x16xf32>
    %c14_94 = arith.constant 14 : index
    %c0_95 = arith.constant 0 : index
    %260 = vector.load %arg8[%c14_94, %c0_95] : memref<16x16xf32, #tpu.memory_space<vmem>>, vector<2x16xf32>
    tpu.vector_store %arg8[%c14_94, %c0_95], %259 {strides = array<i32>} : memref<16x16xf32, #tpu.memory_space<vmem>>, vector<2x16xf32>,
    %c0_96 = arith.constant 0 : index
    %c0_97 = arith.constant 0 : index
    %261 = vector.load %arg8[%c0_96, %c0_97] : memref<16x16xf32, #tpu.memory_space<vmem>>, vector<16x16xf32>
    %c1 = arith.constant 1 : index
    %c0_98 = arith.constant 0 : index
    %c0_99 = arith.constant 0 : index
    %262 = vector.load %arg1[%c1, %c0_98, %c0_99] : memref<5x16x512xf32, #tpu.memory_space<vmem>>, vector<1x16x512xf32>
    %263 = vector.shape_cast %262 : vector<1x16x512xf32> to vector<16x512xf32>
    %cst_100 = arith.constant dense<0.000000e+00> : vector<16x512xf32>
    %264 = tpu.matmul %261, %263, %cst_100 {dimension_numbers = #tpu.dot_dimension_numbers<[1], [0], [0], [1], [0, 0, 1, 1], [], []>} : vector<16x16xf32>, vector<16x512xf32>, vector<16x512xf32> -> vector<16x512xf32>
    %c1_101 = arith.constant 1 : index
    %c0_102 = arith.constant 0 : index
    %c0_103 = arith.constant 0 : index
    %265 = vector.load %arg3[%c1_101, %c0_102, %c0_103] : memref<5x1x512xf32, #tpu.memory_space<vmem>>, vector<1x1x512xf32>
    %266 = vector.shape_cast %265 : vector<1x1x512xf32> to vector<1x512xf32>
    %267 = vector.broadcast %266 : vector<1x512xf32> to vector<16x512xf32>
    %268 = arith.addf %264, %267 : vector<16x512xf32>
    %c0_104 = arith.constant 0 : index
    %c0_105 = arith.constant 0 : index
    %269 = vector.load %arg7[%c0_104, %c0_105] : memref<16x512xf32, #tpu.memory_space<vmem>>, vector<16x512xf32>
    tpu.vector_store %arg7[%c0_104, %c0_105], %268 {strides = array<i32>} : memref<16x512xf32, #tpu.memory_space<vmem>>, vector<16x512xf32>,
    %cst_106 = arith.constant 0.000000e+00 : f32
    %270 = vector.broadcast %cst_106 : f32 to vector<2x16xf32>
    %cst_107 = arith.constant 0.000000e+00 : f32
    %271 = vector.broadcast %cst_107 : f32 to vector<2x16xf32>
    %c0_108 = arith.constant 0 : index
    %c0_109 = arith.constant 0 : index
    %272 = vector.load %arg7[%c0_108, %c0_109] : memref<16x512xf32, #tpu.memory_space<vmem>>, vector<2x512xf32>
    %c1_110 = arith.constant 1 : index
    %c0_111 = arith.constant 0 : index
    %c0_112 = arith.constant 0 : index
    %273 = vector.load %arg2[%c1_110, %c0_111, %c0_112] : memref<5x16x512xf32, #tpu.memory_space<vmem>>, vector<1x16x512xf32>
    %274 = vector.shape_cast %273 : vector<1x16x512xf32> to vector<16x512xf32>
    %cst_113 = arith.constant dense<0.000000e+00> : vector<2x512xf32>
    %275 = tpu.matmul %270, %274, %cst_113 {dimension_numbers = #tpu.dot_dimension_numbers<[1], [0], [0], [1], [0, 0, 1, 1], [], []>} : vector<2x16xf32>, vector<16x512xf32>, vector<2x512xf32> -> vector<2x512xf32>
    %276 = arith.addf %272, %275 : vector<2x512xf32>
    %277 = vector.extract_strided_slice %276 {offsets = [0, 0], sizes = [2, 16], strides = [1, 1]} : vector<2x512xf32> to vector<2x16xf32>
    %278 = arith.negf %277 : vector<2x16xf32>
    %279 = math.exp %278 : vector<2x16xf32>
    %cst_114 = arith.constant 1.000000e+00 : f32
    %280 = vector.broadcast %cst_114 : f32 to vector<2x16xf32>
    %281 = arith.addf %280, %279 : vector<2x16xf32>
    %282 = arith.divf %280, %281 : vector<2x16xf32>
    %283 = vector.extract_strided_slice %276 {offsets = [0, 128], sizes = [2, 16], strides = [1, 1]} : vector<2x512xf32> to vector<2x16xf32>
    %284 = arith.negf %283 : vector<2x16xf32>
    %285 = math.exp %284 : vector<2x16xf32>
    %cst_115 = arith.constant 1.000000e+00 : f32
    %286 = vector.broadcast %cst_115 : f32 to vector<2x16xf32>
    %287 = arith.addf %286, %285 : vector<2x16xf32>
    %288 = arith.divf %286, %287 : vector<2x16xf32>
    %289 = vector.extract_strided_slice %276 {offsets = [0, 256], sizes = [2, 16], strides = [1, 1]} : vector<2x512xf32> to vector<2x16xf32>
    %290 = math.tanh %289 : vector<2x16xf32>
    %291 = vector.extract_strided_slice %276 {offsets = [0, 384], sizes = [2, 16], strides = [1, 1]} : vector<2x512xf32> to vector<2x16xf32>
    %292 = arith.negf %291 : vector<2x16xf32>
    %293 = math.exp %292 : vector<2x16xf32>
    %cst_116 = arith.constant 1.000000e+00 : f32
    %294 = vector.broadcast %cst_116 : f32 to vector<2x16xf32>
    %295 = arith.addf %294, %293 : vector<2x16xf32>
    %296 = arith.divf %294, %295 : vector<2x16xf32>
    %297 = arith.mulf %288, %271 : vector<2x16xf32>
    %298 = arith.mulf %282, %290 : vector<2x16xf32>
    %299 = arith.addf %297, %298 : vector<2x16xf32>
    %300 = math.tanh %299 : vector<2x16xf32>
    %301 = arith.mulf %296, %300 : vector<2x16xf32>
    %c0_117 = arith.constant 0 : index
    %c0_118 = arith.constant 0 : index
    %302 = vector.load %arg8[%c0_117, %c0_118] : memref<16x16xf32, #tpu.memory_space<vmem>>, vector<2x16xf32>
    tpu.vector_store %arg8[%c0_117, %c0_118], %301 {strides = array<i32>} : memref<16x16xf32, #tpu.memory_space<vmem>>, vector<2x16xf32>,
    %c2_119 = arith.constant 2 : index
    %c0_120 = arith.constant 0 : index
    %303 = vector.load %arg7[%c2_119, %c0_120] : memref<16x512xf32, #tpu.memory_space<vmem>>, vector<2x512xf32>
    %c1_121 = arith.constant 1 : index
    %c0_122 = arith.constant 0 : index
    %c0_123 = arith.constant 0 : index
    %304 = vector.load %arg2[%c1_121, %c0_122, %c0_123] : memref<5x16x512xf32, #tpu.memory_space<vmem>>, vector<1x16x512xf32>
    %305 = vector.shape_cast %304 : vector<1x16x512xf32> to vector<16x512xf32>
    %cst_124 = arith.constant dense<0.000000e+00> : vector<2x512xf32>
    %306 = tpu.matmul %301, %305, %cst_124 {dimension_numbers = #tpu.dot_dimension_numbers<[1], [0], [0], [1], [0, 0, 1, 1], [], []>} : vector<2x16xf32>, vector<16x512xf32>, vector<2x512xf32> -> vector<2x512xf32>
    %307 = arith.addf %303, %306 : vector<2x512xf32>
    %308 = vector.extract_strided_slice %307 {offsets = [0, 0], sizes = [2, 16], strides = [1, 1]} : vector<2x512xf32> to vector<2x16xf32>
    %309 = arith.negf %308 : vector<2x16xf32>
    %310 = math.exp %309 : vector<2x16xf32>
    %cst_125 = arith.constant 1.000000e+00 : f32
    %311 = vector.broadcast %cst_125 : f32 to vector<2x16xf32>
    %312 = arith.addf %311, %310 : vector<2x16xf32>
    %313 = arith.divf %311, %312 : vector<2x16xf32>
    %314 = vector.extract_strided_slice %307 {offsets = [0, 128], sizes = [2, 16], strides = [1, 1]} : vector<2x512xf32> to vector<2x16xf32>
    %315 = arith.negf %314 : vector<2x16xf32>
    %316 = math.exp %315 : vector<2x16xf32>
    %cst_126 = arith.constant 1.000000e+00 : f32
    %317 = vector.broadcast %cst_126 : f32 to vector<2x16xf32>
    %318 = arith.addf %317, %316 : vector<2x16xf32>
    %319 = arith.divf %317, %318 : vector<2x16xf32>
    %320 = vector.extract_strided_slice %307 {offsets = [0, 256], sizes = [2, 16], strides = [1, 1]} : vector<2x512xf32> to vector<2x16xf32>
    %321 = math.tanh %320 : vector<2x16xf32>
    %322 = vector.extract_strided_slice %307 {offsets = [0, 384], sizes = [2, 16], strides = [1, 1]} : vector<2x512xf32> to vector<2x16xf32>
    %323 = arith.negf %322 : vector<2x16xf32>
    %324 = math.exp %323 : vector<2x16xf32>
    %cst_127 = arith.constant 1.000000e+00 : f32
    %325 = vector.broadcast %cst_127 : f32 to vector<2x16xf32>
    %326 = arith.addf %325, %324 : vector<2x16xf32>
    %327 = arith.divf %325, %326 : vector<2x16xf32>
    %328 = arith.mulf %319, %299 : vector<2x16xf32>
    %329 = arith.mulf %313, %321 : vector<2x16xf32>
    %330 = arith.addf %328, %329 : vector<2x16xf32>
    %331 = math.tanh %330 : vector<2x16xf32>
    %332 = arith.mulf %327, %331 : vector<2x16xf32>
    %c2_128 = arith.constant 2 : index
    %c0_129 = arith.constant 0 : index
    %333 = vector.load %arg8[%c2_128, %c0_129] : memref<16x16xf32, #tpu.memory_space<vmem>>, vector<2x16xf32>
    tpu.vector_store %arg8[%c2_128, %c0_129], %332 {strides = array<i32>} : memref<16x16xf32, #tpu.memory_space<vmem>>, vector<2x16xf32>,
    %c4_130 = arith.constant 4 : index
    %c0_131 = arith.constant 0 : index
    %334 = vector.load %arg7[%c4_130, %c0_131] : memref<16x512xf32, #tpu.memory_space<vmem>>, vector<2x512xf32>
    %c1_132 = arith.constant 1 : index
    %c0_133 = arith.constant 0 : index
    %c0_134 = arith.constant 0 : index
    %335 = vector.load %arg2[%c1_132, %c0_133, %c0_134] : memref<5x16x512xf32, #tpu.memory_space<vmem>>, vector<1x16x512xf32>
    %336 = vector.shape_cast %335 : vector<1x16x512xf32> to vector<16x512xf32>
    %cst_135 = arith.constant dense<0.000000e+00> : vector<2x512xf32>
    %337 = tpu.matmul %332, %336, %cst_135 {dimension_numbers = #tpu.dot_dimension_numbers<[1], [0], [0], [1], [0, 0, 1, 1], [], []>} : vector<2x16xf32>, vector<16x512xf32>, vector<2x512xf32> -> vector<2x512xf32>
    %338 = arith.addf %334, %337 : vector<2x512xf32>
    %339 = vector.extract_strided_slice %338 {offsets = [0, 0], sizes = [2, 16], strides = [1, 1]} : vector<2x512xf32> to vector<2x16xf32>
    %340 = arith.negf %339 : vector<2x16xf32>
    %341 = math.exp %340 : vector<2x16xf32>
    %cst_136 = arith.constant 1.000000e+00 : f32
    %342 = vector.broadcast %cst_136 : f32 to vector<2x16xf32>
    %343 = arith.addf %342, %341 : vector<2x16xf32>
    %344 = arith.divf %342, %343 : vector<2x16xf32>
    %345 = vector.extract_strided_slice %338 {offsets = [0, 128], sizes = [2, 16], strides = [1, 1]} : vector<2x512xf32> to vector<2x16xf32>
    %346 = arith.negf %345 : vector<2x16xf32>
    %347 = math.exp %346 : vector<2x16xf32>
    %cst_137 = arith.constant 1.000000e+00 : f32
    %348 = vector.broadcast %cst_137 : f32 to vector<2x16xf32>
    %349 = arith.addf %348, %347 : vector<2x16xf32>
    %350 = arith.divf %348, %349 : vector<2x16xf32>
    %351 = vector.extract_strided_slice %338 {offsets = [0, 256], sizes = [2, 16], strides = [1, 1]} : vector<2x512xf32> to vector<2x16xf32>
    %352 = math.tanh %351 : vector<2x16xf32>
    %353 = vector.extract_strided_slice %338 {offsets = [0, 384], sizes = [2, 16], strides = [1, 1]} : vector<2x512xf32> to vector<2x16xf32>
    %354 = arith.negf %353 : vector<2x16xf32>
    %355 = math.exp %354 : vector<2x16xf32>
    %cst_138 = arith.constant 1.000000e+00 : f32
    %356 = vector.broadcast %cst_138 : f32 to vector<2x16xf32>
    %357 = arith.addf %356, %355 : vector<2x16xf32>
    %358 = arith.divf %356, %357 : vector<2x16xf32>
    %359 = arith.mulf %350, %330 : vector<2x16xf32>
    %360 = arith.mulf %344, %352 : vector<2x16xf32>
    %361 = arith.addf %359, %360 : vector<2x16xf32>
    %362 = math.tanh %361 : vector<2x16xf32>
    %363 = arith.mulf %358, %362 : vector<2x16xf32>
    %c4_139 = arith.constant 4 : index
    %c0_140 = arith.constant 0 : index
    %364 = vector.load %arg8[%c4_139, %c0_140] : memref<16x16xf32, #tpu.memory_space<vmem>>, vector<2x16xf32>
    tpu.vector_store %arg8[%c4_139, %c0_140], %363 {strides = array<i32>} : memref<16x16xf32, #tpu.memory_space<vmem>>, vector<2x16xf32>,
    %c6_141 = arith.constant 6 : index
    %c0_142 = arith.constant 0 : index
    %365 = vector.load %arg7[%c6_141, %c0_142] : memref<16x512xf32, #tpu.memory_space<vmem>>, vector<2x512xf32>
    %c1_143 = arith.constant 1 : index
    %c0_144 = arith.constant 0 : index
    %c0_145 = arith.constant 0 : index
    %366 = vector.load %arg2[%c1_143, %c0_144, %c0_145] : memref<5x16x512xf32, #tpu.memory_space<vmem>>, vector<1x16x512xf32>
    %367 = vector.shape_cast %366 : vector<1x16x512xf32> to vector<16x512xf32>
    %cst_146 = arith.constant dense<0.000000e+00> : vector<2x512xf32>
    %368 = tpu.matmul %363, %367, %cst_146 {dimension_numbers = #tpu.dot_dimension_numbers<[1], [0], [0], [1], [0, 0, 1, 1], [], []>} : vector<2x16xf32>, vector<16x512xf32>, vector<2x512xf32> -> vector<2x512xf32>
    %369 = arith.addf %365, %368 : vector<2x512xf32>
    %370 = vector.extract_strided_slice %369 {offsets = [0, 0], sizes = [2, 16], strides = [1, 1]} : vector<2x512xf32> to vector<2x16xf32>
    %371 = arith.negf %370 : vector<2x16xf32>
    %372 = math.exp %371 : vector<2x16xf32>
    %cst_147 = arith.constant 1.000000e+00 : f32
    %373 = vector.broadcast %cst_147 : f32 to vector<2x16xf32>
    %374 = arith.addf %373, %372 : vector<2x16xf32>
    %375 = arith.divf %373, %374 : vector<2x16xf32>
    %376 = vector.extract_strided_slice %369 {offsets = [0, 128], sizes = [2, 16], strides = [1, 1]} : vector<2x512xf32> to vector<2x16xf32>
    %377 = arith.negf %376 : vector<2x16xf32>
    %378 = math.exp %377 : vector<2x16xf32>
    %cst_148 = arith.constant 1.000000e+00 : f32
    %379 = vector.broadcast %cst_148 : f32 to vector<2x16xf32>
    %380 = arith.addf %379, %378 : vector<2x16xf32>
    %381 = arith.divf %379, %380 : vector<2x16xf32>
    %382 = vector.extract_strided_slice %369 {offsets = [0, 256], sizes = [2, 16], strides = [1, 1]} : vector<2x512xf32> to vector<2x16xf32>
    %383 = math.tanh %382 : vector<2x16xf32>
    %384 = vector.extract_strided_slice %369 {offsets = [0, 384], sizes = [2, 16], strides = [1, 1]} : vector<2x512xf32> to vector<2x16xf32>
    %385 = arith.negf %384 : vector<2x16xf32>
    %386 = math.exp %385 : vector<2x16xf32>
    %cst_149 = arith.constant 1.000000e+00 : f32
    %387 = vector.broadcast %cst_149 : f32 to vector<2x16xf32>
    %388 = arith.addf %387, %386 : vector<2x16xf32>
    %389 = arith.divf %387, %388 : vector<2x16xf32>
    %390 = arith.mulf %381, %361 : vector<2x16xf32>
    %391 = arith.mulf %375, %383 : vector<2x16xf32>
    %392 = arith.addf %390, %391 : vector<2x16xf32>
    %393 = math.tanh %392 : vector<2x16xf32>
    %394 = arith.mulf %389, %393 : vector<2x16xf32>
    %c6_150 = arith.constant 6 : index
    %c0_151 = arith.constant 0 : index
    %395 = vector.load %arg8[%c6_150, %c0_151] : memref<16x16xf32, #tpu.memory_space<vmem>>, vector<2x16xf32>
    tpu.vector_store %arg8[%c6_150, %c0_151], %394 {strides = array<i32>} : memref<16x16xf32, #tpu.memory_space<vmem>>, vector<2x16xf32>,
    %c8_152 = arith.constant 8 : index
    %c0_153 = arith.constant 0 : index
    %396 = vector.load %arg7[%c8_152, %c0_153] : memref<16x512xf32, #tpu.memory_space<vmem>>, vector<2x512xf32>
    %c1_154 = arith.constant 1 : index
    %c0_155 = arith.constant 0 : index
    %c0_156 = arith.constant 0 : index
    %397 = vector.load %arg2[%c1_154, %c0_155, %c0_156] : memref<5x16x512xf32, #tpu.memory_space<vmem>>, vector<1x16x512xf32>
    %398 = vector.shape_cast %397 : vector<1x16x512xf32> to vector<16x512xf32>
    %cst_157 = arith.constant dense<0.000000e+00> : vector<2x512xf32>
    %399 = tpu.matmul %394, %398, %cst_157 {dimension_numbers = #tpu.dot_dimension_numbers<[1], [0], [0], [1], [0, 0, 1, 1], [], []>} : vector<2x16xf32>, vector<16x512xf32>, vector<2x512xf32> -> vector<2x512xf32>
    %400 = arith.addf %396, %399 : vector<2x512xf32>
    %401 = vector.extract_strided_slice %400 {offsets = [0, 0], sizes = [2, 16], strides = [1, 1]} : vector<2x512xf32> to vector<2x16xf32>
    %402 = arith.negf %401 : vector<2x16xf32>
    %403 = math.exp %402 : vector<2x16xf32>
    %cst_158 = arith.constant 1.000000e+00 : f32
    %404 = vector.broadcast %cst_158 : f32 to vector<2x16xf32>
    %405 = arith.addf %404, %403 : vector<2x16xf32>
    %406 = arith.divf %404, %405 : vector<2x16xf32>
    %407 = vector.extract_strided_slice %400 {offsets = [0, 128], sizes = [2, 16], strides = [1, 1]} : vector<2x512xf32> to vector<2x16xf32>
    %408 = arith.negf %407 : vector<2x16xf32>
    %409 = math.exp %408 : vector<2x16xf32>
    %cst_159 = arith.constant 1.000000e+00 : f32
    %410 = vector.broadcast %cst_159 : f32 to vector<2x16xf32>
    %411 = arith.addf %410, %409 : vector<2x16xf32>
    %412 = arith.divf %410, %411 : vector<2x16xf32>
    %413 = vector.extract_strided_slice %400 {offsets = [0, 256], sizes = [2, 16], strides = [1, 1]} : vector<2x512xf32> to vector<2x16xf32>
    %414 = math.tanh %413 : vector<2x16xf32>
    %415 = vector.extract_strided_slice %400 {offsets = [0, 384], sizes = [2, 16], strides = [1, 1]} : vector<2x512xf32> to vector<2x16xf32>
    %416 = arith.negf %415 : vector<2x16xf32>
    %417 = math.exp %416 : vector<2x16xf32>
    %cst_160 = arith.constant 1.000000e+00 : f32
    %418 = vector.broadcast %cst_160 : f32 to vector<2x16xf32>
    %419 = arith.addf %418, %417 : vector<2x16xf32>
    %420 = arith.divf %418, %419 : vector<2x16xf32>
    %421 = arith.mulf %412, %392 : vector<2x16xf32>
    %422 = arith.mulf %406, %414 : vector<2x16xf32>
    %423 = arith.addf %421, %422 : vector<2x16xf32>
    %424 = math.tanh %423 : vector<2x16xf32>
    %425 = arith.mulf %420, %424 : vector<2x16xf32>
    %c8_161 = arith.constant 8 : index
    %c0_162 = arith.constant 0 : index
    %426 = vector.load %arg8[%c8_161, %c0_162] : memref<16x16xf32, #tpu.memory_space<vmem>>, vector<2x16xf32>
    tpu.vector_store %arg8[%c8_161, %c0_162], %425 {strides = array<i32>} : memref<16x16xf32, #tpu.memory_space<vmem>>, vector<2x16xf32>,
    %c10_163 = arith.constant 10 : index
    %c0_164 = arith.constant 0 : index
    %427 = vector.load %arg7[%c10_163, %c0_164] : memref<16x512xf32, #tpu.memory_space<vmem>>, vector<2x512xf32>
    %c1_165 = arith.constant 1 : index
    %c0_166 = arith.constant 0 : index
    %c0_167 = arith.constant 0 : index
    %428 = vector.load %arg2[%c1_165, %c0_166, %c0_167] : memref<5x16x512xf32, #tpu.memory_space<vmem>>, vector<1x16x512xf32>
    %429 = vector.shape_cast %428 : vector<1x16x512xf32> to vector<16x512xf32>
    %cst_168 = arith.constant dense<0.000000e+00> : vector<2x512xf32>
    %430 = tpu.matmul %425, %429, %cst_168 {dimension_numbers = #tpu.dot_dimension_numbers<[1], [0], [0], [1], [0, 0, 1, 1], [], []>} : vector<2x16xf32>, vector<16x512xf32>, vector<2x512xf32> -> vector<2x512xf32>
    %431 = arith.addf %427, %430 : vector<2x512xf32>
    %432 = vector.extract_strided_slice %431 {offsets = [0, 0], sizes = [2, 16], strides = [1, 1]} : vector<2x512xf32> to vector<2x16xf32>
    %433 = arith.negf %432 : vector<2x16xf32>
    %434 = math.exp %433 : vector<2x16xf32>
    %cst_169 = arith.constant 1.000000e+00 : f32
    %435 = vector.broadcast %cst_169 : f32 to vector<2x16xf32>
    %436 = arith.addf %435, %434 : vector<2x16xf32>
    %437 = arith.divf %435, %436 : vector<2x16xf32>
    %438 = vector.extract_strided_slice %431 {offsets = [0, 128], sizes = [2, 16], strides = [1, 1]} : vector<2x512xf32> to vector<2x16xf32>
    %439 = arith.negf %438 : vector<2x16xf32>
    %440 = math.exp %439 : vector<2x16xf32>
    %cst_170 = arith.constant 1.000000e+00 : f32
    %441 = vector.broadcast %cst_170 : f32 to vector<2x16xf32>
    %442 = arith.addf %441, %440 : vector<2x16xf32>
    %443 = arith.divf %441, %442 : vector<2x16xf32>
    %444 = vector.extract_strided_slice %431 {offsets = [0, 256], sizes = [2, 16], strides = [1, 1]} : vector<2x512xf32> to vector<2x16xf32>
    %445 = math.tanh %444 : vector<2x16xf32>
    %446 = vector.extract_strided_slice %431 {offsets = [0, 384], sizes = [2, 16], strides = [1, 1]} : vector<2x512xf32> to vector<2x16xf32>
    %447 = arith.negf %446 : vector<2x16xf32>
    %448 = math.exp %447 : vector<2x16xf32>
    %cst_171 = arith.constant 1.000000e+00 : f32
    %449 = vector.broadcast %cst_171 : f32 to vector<2x16xf32>
    %450 = arith.addf %449, %448 : vector<2x16xf32>
    %451 = arith.divf %449, %450 : vector<2x16xf32>
    %452 = arith.mulf %443, %423 : vector<2x16xf32>
    %453 = arith.mulf %437, %445 : vector<2x16xf32>
    %454 = arith.addf %452, %453 : vector<2x16xf32>
    %455 = math.tanh %454 : vector<2x16xf32>
    %456 = arith.mulf %451, %455 : vector<2x16xf32>
    %c10_172 = arith.constant 10 : index
    %c0_173 = arith.constant 0 : index
    %457 = vector.load %arg8[%c10_172, %c0_173] : memref<16x16xf32, #tpu.memory_space<vmem>>, vector<2x16xf32>
    tpu.vector_store %arg8[%c10_172, %c0_173], %456 {strides = array<i32>} : memref<16x16xf32, #tpu.memory_space<vmem>>, vector<2x16xf32>,
    %c12_174 = arith.constant 12 : index
    %c0_175 = arith.constant 0 : index
    %458 = vector.load %arg7[%c12_174, %c0_175] : memref<16x512xf32, #tpu.memory_space<vmem>>, vector<2x512xf32>
    %c1_176 = arith.constant 1 : index
    %c0_177 = arith.constant 0 : index
    %c0_178 = arith.constant 0 : index
    %459 = vector.load %arg2[%c1_176, %c0_177, %c0_178] : memref<5x16x512xf32, #tpu.memory_space<vmem>>, vector<1x16x512xf32>
    %460 = vector.shape_cast %459 : vector<1x16x512xf32> to vector<16x512xf32>
    %cst_179 = arith.constant dense<0.000000e+00> : vector<2x512xf32>
    %461 = tpu.matmul %456, %460, %cst_179 {dimension_numbers = #tpu.dot_dimension_numbers<[1], [0], [0], [1], [0, 0, 1, 1], [], []>} : vector<2x16xf32>, vector<16x512xf32>, vector<2x512xf32> -> vector<2x512xf32>
    %462 = arith.addf %458, %461 : vector<2x512xf32>
    %463 = vector.extract_strided_slice %462 {offsets = [0, 0], sizes = [2, 16], strides = [1, 1]} : vector<2x512xf32> to vector<2x16xf32>
    %464 = arith.negf %463 : vector<2x16xf32>
    %465 = math.exp %464 : vector<2x16xf32>
    %cst_180 = arith.constant 1.000000e+00 : f32
    %466 = vector.broadcast %cst_180 : f32 to vector<2x16xf32>
    %467 = arith.addf %466, %465 : vector<2x16xf32>
    %468 = arith.divf %466, %467 : vector<2x16xf32>
    %469 = vector.extract_strided_slice %462 {offsets = [0, 128], sizes = [2, 16], strides = [1, 1]} : vector<2x512xf32> to vector<2x16xf32>
    %470 = arith.negf %469 : vector<2x16xf32>
    %471 = math.exp %470 : vector<2x16xf32>
    %cst_181 = arith.constant 1.000000e+00 : f32
    %472 = vector.broadcast %cst_181 : f32 to vector<2x16xf32>
    %473 = arith.addf %472, %471 : vector<2x16xf32>
    %474 = arith.divf %472, %473 : vector<2x16xf32>
    %475 = vector.extract_strided_slice %462 {offsets = [0, 256], sizes = [2, 16], strides = [1, 1]} : vector<2x512xf32> to vector<2x16xf32>
    %476 = math.tanh %475 : vector<2x16xf32>
    %477 = vector.extract_strided_slice %462 {offsets = [0, 384], sizes = [2, 16], strides = [1, 1]} : vector<2x512xf32> to vector<2x16xf32>
    %478 = arith.negf %477 : vector<2x16xf32>
    %479 = math.exp %478 : vector<2x16xf32>
    %cst_182 = arith.constant 1.000000e+00 : f32
    %480 = vector.broadcast %cst_182 : f32 to vector<2x16xf32>
    %481 = arith.addf %480, %479 : vector<2x16xf32>
    %482 = arith.divf %480, %481 : vector<2x16xf32>
    %483 = arith.mulf %474, %454 : vector<2x16xf32>
    %484 = arith.mulf %468, %476 : vector<2x16xf32>
    %485 = arith.addf %483, %484 : vector<2x16xf32>
    %486 = math.tanh %485 : vector<2x16xf32>
    %487 = arith.mulf %482, %486 : vector<2x16xf32>
    %c12_183 = arith.constant 12 : index
    %c0_184 = arith.constant 0 : index
    %488 = vector.load %arg8[%c12_183, %c0_184] : memref<16x16xf32, #tpu.memory_space<vmem>>, vector<2x16xf32>
    tpu.vector_store %arg8[%c12_183, %c0_184], %487 {strides = array<i32>} : memref<16x16xf32, #tpu.memory_space<vmem>>, vector<2x16xf32>,
    %c14_185 = arith.constant 14 : index
    %c0_186 = arith.constant 0 : index
    %489 = vector.load %arg7[%c14_185, %c0_186] : memref<16x512xf32, #tpu.memory_space<vmem>>, vector<2x512xf32>
    %c1_187 = arith.constant 1 : index
    %c0_188 = arith.constant 0 : index
    %c0_189 = arith.constant 0 : index
    %490 = vector.load %arg2[%c1_187, %c0_188, %c0_189] : memref<5x16x512xf32, #tpu.memory_space<vmem>>, vector<1x16x512xf32>
    %491 = vector.shape_cast %490 : vector<1x16x512xf32> to vector<16x512xf32>
    %cst_190 = arith.constant dense<0.000000e+00> : vector<2x512xf32>
    %492 = tpu.matmul %487, %491, %cst_190 {dimension_numbers = #tpu.dot_dimension_numbers<[1], [0], [0], [1], [0, 0, 1, 1], [], []>} : vector<2x16xf32>, vector<16x512xf32>, vector<2x512xf32> -> vector<2x512xf32>
    %493 = arith.addf %489, %492 : vector<2x512xf32>
    %494 = vector.extract_strided_slice %493 {offsets = [0, 0], sizes = [2, 16], strides = [1, 1]} : vector<2x512xf32> to vector<2x16xf32>
    %495 = arith.negf %494 : vector<2x16xf32>
    %496 = math.exp %495 : vector<2x16xf32>
    %cst_191 = arith.constant 1.000000e+00 : f32
    %497 = vector.broadcast %cst_191 : f32 to vector<2x16xf32>
    %498 = arith.addf %497, %496 : vector<2x16xf32>
    %499 = arith.divf %497, %498 : vector<2x16xf32>
    %500 = vector.extract_strided_slice %493 {offsets = [0, 128], sizes = [2, 16], strides = [1, 1]} : vector<2x512xf32> to vector<2x16xf32>
    %501 = arith.negf %500 : vector<2x16xf32>
    %502 = math.exp %501 : vector<2x16xf32>
    %cst_192 = arith.constant 1.000000e+00 : f32
    %503 = vector.broadcast %cst_192 : f32 to vector<2x16xf32>
    %504 = arith.addf %503, %502 : vector<2x16xf32>
    %505 = arith.divf %503, %504 : vector<2x16xf32>
    %506 = vector.extract_strided_slice %493 {offsets = [0, 256], sizes = [2, 16], strides = [1, 1]} : vector<2x512xf32> to vector<2x16xf32>
    %507 = math.tanh %506 : vector<2x16xf32>
    %508 = vector.extract_strided_slice %493 {offsets = [0, 384], sizes = [2, 16], strides = [1, 1]} : vector<2x512xf32> to vector<2x16xf32>
    %509 = arith.negf %508 : vector<2x16xf32>
    %510 = math.exp %509 : vector<2x16xf32>
    %cst_193 = arith.constant 1.000000e+00 : f32
    %511 = vector.broadcast %cst_193 : f32 to vector<2x16xf32>
    %512 = arith.addf %511, %510 : vector<2x16xf32>
    %513 = arith.divf %511, %512 : vector<2x16xf32>
    %514 = arith.mulf %505, %485 : vector<2x16xf32>
    %515 = arith.mulf %499, %507 : vector<2x16xf32>
    %516 = arith.addf %514, %515 : vector<2x16xf32>
    %517 = math.tanh %516 : vector<2x16xf32>
    %518 = arith.mulf %513, %517 : vector<2x16xf32>
    %c14_194 = arith.constant 14 : index
    %c0_195 = arith.constant 0 : index
    %519 = vector.load %arg8[%c14_194, %c0_195] : memref<16x16xf32, #tpu.memory_space<vmem>>, vector<2x16xf32>
    tpu.vector_store %arg8[%c14_194, %c0_195], %518 {strides = array<i32>} : memref<16x16xf32, #tpu.memory_space<vmem>>, vector<2x16xf32>,
    %c0_196 = arith.constant 0 : index
    %c0_197 = arith.constant 0 : index
    %520 = vector.load %arg8[%c0_196, %c0_197] : memref<16x16xf32, #tpu.memory_space<vmem>>, vector<16x16xf32>
    %c2_198 = arith.constant 2 : index
    %c0_199 = arith.constant 0 : index
    %c0_200 = arith.constant 0 : index
    %521 = vector.load %arg1[%c2_198, %c0_199, %c0_200] : memref<5x16x512xf32, #tpu.memory_space<vmem>>, vector<1x16x512xf32>
    %522 = vector.shape_cast %521 : vector<1x16x512xf32> to vector<16x512xf32>
    %cst_201 = arith.constant dense<0.000000e+00> : vector<16x512xf32>
    %523 = tpu.matmul %520, %522, %cst_201 {dimension_numbers = #tpu.dot_dimension_numbers<[1], [0], [0], [1], [0, 0, 1, 1], [], []>} : vector<16x16xf32>, vector<16x512xf32>, vector<16x512xf32> -> vector<16x512xf32>
    %c2_202 = arith.constant 2 : index
    %c0_203 = arith.constant 0 : index
    %c0_204 = arith.constant 0 : index
    %524 = vector.load %arg3[%c2_202, %c0_203, %c0_204] : memref<5x1x512xf32, #tpu.memory_space<vmem>>, vector<1x1x512xf32>
    %525 = vector.shape_cast %524 : vector<1x1x512xf32> to vector<1x512xf32>
    %526 = vector.broadcast %525 : vector<1x512xf32> to vector<16x512xf32>
    %527 = arith.addf %523, %526 : vector<16x512xf32>
    %c0_205 = arith.constant 0 : index
    %c0_206 = arith.constant 0 : index
    %528 = vector.load %arg7[%c0_205, %c0_206] : memref<16x512xf32, #tpu.memory_space<vmem>>, vector<16x512xf32>
    tpu.vector_store %arg7[%c0_205, %c0_206], %527 {strides = array<i32>} : memref<16x512xf32, #tpu.memory_space<vmem>>, vector<16x512xf32>,
    %cst_207 = arith.constant 0.000000e+00 : f32
    %529 = vector.broadcast %cst_207 : f32 to vector<2x16xf32>
    %cst_208 = arith.constant 0.000000e+00 : f32
    %530 = vector.broadcast %cst_208 : f32 to vector<2x16xf32>
    %c0_209 = arith.constant 0 : index
    %c0_210 = arith.constant 0 : index
    %531 = vector.load %arg7[%c0_209, %c0_210] : memref<16x512xf32, #tpu.memory_space<vmem>>, vector<2x512xf32>
    %c2_211 = arith.constant 2 : index
    %c0_212 = arith.constant 0 : index
    %c0_213 = arith.constant 0 : index
    %532 = vector.load %arg2[%c2_211, %c0_212, %c0_213] : memref<5x16x512xf32, #tpu.memory_space<vmem>>, vector<1x16x512xf32>
    %533 = vector.shape_cast %532 : vector<1x16x512xf32> to vector<16x512xf32>
    %cst_214 = arith.constant dense<0.000000e+00> : vector<2x512xf32>
    %534 = tpu.matmul %529, %533, %cst_214 {dimension_numbers = #tpu.dot_dimension_numbers<[1], [0], [0], [1], [0, 0, 1, 1], [], []>} : vector<2x16xf32>, vector<16x512xf32>, vector<2x512xf32> -> vector<2x512xf32>
    %535 = arith.addf %531, %534 : vector<2x512xf32>
    %536 = vector.extract_strided_slice %535 {offsets = [0, 0], sizes = [2, 16], strides = [1, 1]} : vector<2x512xf32> to vector<2x16xf32>
    %537 = arith.negf %536 : vector<2x16xf32>
    %538 = math.exp %537 : vector<2x16xf32>
    %cst_215 = arith.constant 1.000000e+00 : f32
    %539 = vector.broadcast %cst_215 : f32 to vector<2x16xf32>
    %540 = arith.addf %539, %538 : vector<2x16xf32>
    %541 = arith.divf %539, %540 : vector<2x16xf32>
    %542 = vector.extract_strided_slice %535 {offsets = [0, 128], sizes = [2, 16], strides = [1, 1]} : vector<2x512xf32> to vector<2x16xf32>
    %543 = arith.negf %542 : vector<2x16xf32>
    %544 = math.exp %543 : vector<2x16xf32>
    %cst_216 = arith.constant 1.000000e+00 : f32
    %545 = vector.broadcast %cst_216 : f32 to vector<2x16xf32>
    %546 = arith.addf %545, %544 : vector<2x16xf32>
    %547 = arith.divf %545, %546 : vector<2x16xf32>
    %548 = vector.extract_strided_slice %535 {offsets = [0, 256], sizes = [2, 16], strides = [1, 1]} : vector<2x512xf32> to vector<2x16xf32>
    %549 = math.tanh %548 : vector<2x16xf32>
    %550 = vector.extract_strided_slice %535 {offsets = [0, 384], sizes = [2, 16], strides = [1, 1]} : vector<2x512xf32> to vector<2x16xf32>
    %551 = arith.negf %550 : vector<2x16xf32>
    %552 = math.exp %551 : vector<2x16xf32>
    %cst_217 = arith.constant 1.000000e+00 : f32
    %553 = vector.broadcast %cst_217 : f32 to vector<2x16xf32>
    %554 = arith.addf %553, %552 : vector<2x16xf32>
    %555 = arith.divf %553, %554 : vector<2x16xf32>
    %556 = arith.mulf %547, %530 : vector<2x16xf32>
    %557 = arith.mulf %541, %549 : vector<2x16xf32>
    %558 = arith.addf %556, %557 : vector<2x16xf32>
    %559 = math.tanh %558 : vector<2x16xf32>
    %560 = arith.mulf %555, %559 : vector<2x16xf32>
    %c0_218 = arith.constant 0 : index
    %c0_219 = arith.constant 0 : index
    %561 = vector.load %arg8[%c0_218, %c0_219] : memref<16x16xf32, #tpu.memory_space<vmem>>, vector<2x16xf32>
    tpu.vector_store %arg8[%c0_218, %c0_219], %560 {strides = array<i32>} : memref<16x16xf32, #tpu.memory_space<vmem>>, vector<2x16xf32>,
    %c2_220 = arith.constant 2 : index
    %c0_221 = arith.constant 0 : index
    %562 = vector.load %arg7[%c2_220, %c0_221] : memref<16x512xf32, #tpu.memory_space<vmem>>, vector<2x512xf32>
    %c2_222 = arith.constant 2 : index
    %c0_223 = arith.constant 0 : index
    %c0_224 = arith.constant 0 : index
    %563 = vector.load %arg2[%c2_222, %c0_223, %c0_224] : memref<5x16x512xf32, #tpu.memory_space<vmem>>, vector<1x16x512xf32>
    %564 = vector.shape_cast %563 : vector<1x16x512xf32> to vector<16x512xf32>
    %cst_225 = arith.constant dense<0.000000e+00> : vector<2x512xf32>
    %565 = tpu.matmul %560, %564, %cst_225 {dimension_numbers = #tpu.dot_dimension_numbers<[1], [0], [0], [1], [0, 0, 1, 1], [], []>} : vector<2x16xf32>, vector<16x512xf32>, vector<2x512xf32> -> vector<2x512xf32>
    %566 = arith.addf %562, %565 : vector<2x512xf32>
    %567 = vector.extract_strided_slice %566 {offsets = [0, 0], sizes = [2, 16], strides = [1, 1]} : vector<2x512xf32> to vector<2x16xf32>
    %568 = arith.negf %567 : vector<2x16xf32>
    %569 = math.exp %568 : vector<2x16xf32>
    %cst_226 = arith.constant 1.000000e+00 : f32
    %570 = vector.broadcast %cst_226 : f32 to vector<2x16xf32>
    %571 = arith.addf %570, %569 : vector<2x16xf32>
    %572 = arith.divf %570, %571 : vector<2x16xf32>
    %573 = vector.extract_strided_slice %566 {offsets = [0, 128], sizes = [2, 16], strides = [1, 1]} : vector<2x512xf32> to vector<2x16xf32>
    %574 = arith.negf %573 : vector<2x16xf32>
    %575 = math.exp %574 : vector<2x16xf32>
    %cst_227 = arith.constant 1.000000e+00 : f32
    %576 = vector.broadcast %cst_227 : f32 to vector<2x16xf32>
    %577 = arith.addf %576, %575 : vector<2x16xf32>
    %578 = arith.divf %576, %577 : vector<2x16xf32>
    %579 = vector.extract_strided_slice %566 {offsets = [0, 256], sizes = [2, 16], strides = [1, 1]} : vector<2x512xf32> to vector<2x16xf32>
    %580 = math.tanh %579 : vector<2x16xf32>
    %581 = vector.extract_strided_slice %566 {offsets = [0, 384], sizes = [2, 16], strides = [1, 1]} : vector<2x512xf32> to vector<2x16xf32>
    %582 = arith.negf %581 : vector<2x16xf32>
    %583 = math.exp %582 : vector<2x16xf32>
    %cst_228 = arith.constant 1.000000e+00 : f32
    %584 = vector.broadcast %cst_228 : f32 to vector<2x16xf32>
    %585 = arith.addf %584, %583 : vector<2x16xf32>
    %586 = arith.divf %584, %585 : vector<2x16xf32>
    %587 = arith.mulf %578, %558 : vector<2x16xf32>
    %588 = arith.mulf %572, %580 : vector<2x16xf32>
    %589 = arith.addf %587, %588 : vector<2x16xf32>
    %590 = math.tanh %589 : vector<2x16xf32>
    %591 = arith.mulf %586, %590 : vector<2x16xf32>
    %c2_229 = arith.constant 2 : index
    %c0_230 = arith.constant 0 : index
    %592 = vector.load %arg8[%c2_229, %c0_230] : memref<16x16xf32, #tpu.memory_space<vmem>>, vector<2x16xf32>
    tpu.vector_store %arg8[%c2_229, %c0_230], %591 {strides = array<i32>} : memref<16x16xf32, #tpu.memory_space<vmem>>, vector<2x16xf32>,
    %c4_231 = arith.constant 4 : index
    %c0_232 = arith.constant 0 : index
    %593 = vector.load %arg7[%c4_231, %c0_232] : memref<16x512xf32, #tpu.memory_space<vmem>>, vector<2x512xf32>
    %c2_233 = arith.constant 2 : index
    %c0_234 = arith.constant 0 : index
    %c0_235 = arith.constant 0 : index
    %594 = vector.load %arg2[%c2_233, %c0_234, %c0_235] : memref<5x16x512xf32, #tpu.memory_space<vmem>>, vector<1x16x512xf32>
    %595 = vector.shape_cast %594 : vector<1x16x512xf32> to vector<16x512xf32>
    %cst_236 = arith.constant dense<0.000000e+00> : vector<2x512xf32>
    %596 = tpu.matmul %591, %595, %cst_236 {dimension_numbers = #tpu.dot_dimension_numbers<[1], [0], [0], [1], [0, 0, 1, 1], [], []>} : vector<2x16xf32>, vector<16x512xf32>, vector<2x512xf32> -> vector<2x512xf32>
    %597 = arith.addf %593, %596 : vector<2x512xf32>
    %598 = vector.extract_strided_slice %597 {offsets = [0, 0], sizes = [2, 16], strides = [1, 1]} : vector<2x512xf32> to vector<2x16xf32>
    %599 = arith.negf %598 : vector<2x16xf32>
    %600 = math.exp %599 : vector<2x16xf32>
    %cst_237 = arith.constant 1.000000e+00 : f32
    %601 = vector.broadcast %cst_237 : f32 to vector<2x16xf32>
    %602 = arith.addf %601, %600 : vector<2x16xf32>
    %603 = arith.divf %601, %602 : vector<2x16xf32>
    %604 = vector.extract_strided_slice %597 {offsets = [0, 128], sizes = [2, 16], strides = [1, 1]} : vector<2x512xf32> to vector<2x16xf32>
    %605 = arith.negf %604 : vector<2x16xf32>
    %606 = math.exp %605 : vector<2x16xf32>
    %cst_238 = arith.constant 1.000000e+00 : f32
    %607 = vector.broadcast %cst_238 : f32 to vector<2x16xf32>
    %608 = arith.addf %607, %606 : vector<2x16xf32>
    %609 = arith.divf %607, %608 : vector<2x16xf32>
    %610 = vector.extract_strided_slice %597 {offsets = [0, 256], sizes = [2, 16], strides = [1, 1]} : vector<2x512xf32> to vector<2x16xf32>
    %611 = math.tanh %610 : vector<2x16xf32>
    %612 = vector.extract_strided_slice %597 {offsets = [0, 384], sizes = [2, 16], strides = [1, 1]} : vector<2x512xf32> to vector<2x16xf32>
    %613 = arith.negf %612 : vector<2x16xf32>
    %614 = math.exp %613 : vector<2x16xf32>
    %cst_239 = arith.constant 1.000000e+00 : f32
    %615 = vector.broadcast %cst_239 : f32 to vector<2x16xf32>
    %616 = arith.addf %615, %614 : vector<2x16xf32>
    %617 = arith.divf %615, %616 : vector<2x16xf32>
    %618 = arith.mulf %609, %589 : vector<2x16xf32>
    %619 = arith.mulf %603, %611 : vector<2x16xf32>
    %620 = arith.addf %618, %619 : vector<2x16xf32>
    %621 = math.tanh %620 : vector<2x16xf32>
    %622 = arith.mulf %617, %621 : vector<2x16xf32>
    %c4_240 = arith.constant 4 : index
    %c0_241 = arith.constant 0 : index
    %623 = vector.load %arg8[%c4_240, %c0_241] : memref<16x16xf32, #tpu.memory_space<vmem>>, vector<2x16xf32>
    tpu.vector_store %arg8[%c4_240, %c0_241], %622 {strides = array<i32>} : memref<16x16xf32, #tpu.memory_space<vmem>>, vector<2x16xf32>,
    %c6_242 = arith.constant 6 : index
    %c0_243 = arith.constant 0 : index
    %624 = vector.load %arg7[%c6_242, %c0_243] : memref<16x512xf32, #tpu.memory_space<vmem>>, vector<2x512xf32>
    %c2_244 = arith.constant 2 : index
    %c0_245 = arith.constant 0 : index
    %c0_246 = arith.constant 0 : index
    %625 = vector.load %arg2[%c2_244, %c0_245, %c0_246] : memref<5x16x512xf32, #tpu.memory_space<vmem>>, vector<1x16x512xf32>
    %626 = vector.shape_cast %625 : vector<1x16x512xf32> to vector<16x512xf32>
    %cst_247 = arith.constant dense<0.000000e+00> : vector<2x512xf32>
    %627 = tpu.matmul %622, %626, %cst_247 {dimension_numbers = #tpu.dot_dimension_numbers<[1], [0], [0], [1], [0, 0, 1, 1], [], []>} : vector<2x16xf32>, vector<16x512xf32>, vector<2x512xf32> -> vector<2x512xf32>
    %628 = arith.addf %624, %627 : vector<2x512xf32>
    %629 = vector.extract_strided_slice %628 {offsets = [0, 0], sizes = [2, 16], strides = [1, 1]} : vector<2x512xf32> to vector<2x16xf32>
    %630 = arith.negf %629 : vector<2x16xf32>
    %631 = math.exp %630 : vector<2x16xf32>
    %cst_248 = arith.constant 1.000000e+00 : f32
    %632 = vector.broadcast %cst_248 : f32 to vector<2x16xf32>
    %633 = arith.addf %632, %631 : vector<2x16xf32>
    %634 = arith.divf %632, %633 : vector<2x16xf32>
    %635 = vector.extract_strided_slice %628 {offsets = [0, 128], sizes = [2, 16], strides = [1, 1]} : vector<2x512xf32> to vector<2x16xf32>
    %636 = arith.negf %635 : vector<2x16xf32>
    %637 = math.exp %636 : vector<2x16xf32>
    %cst_249 = arith.constant 1.000000e+00 : f32
    %638 = vector.broadcast %cst_249 : f32 to vector<2x16xf32>
    %639 = arith.addf %638, %637 : vector<2x16xf32>
    %640 = arith.divf %638, %639 : vector<2x16xf32>
    %641 = vector.extract_strided_slice %628 {offsets = [0, 256], sizes = [2, 16], strides = [1, 1]} : vector<2x512xf32> to vector<2x16xf32>
    %642 = math.tanh %641 : vector<2x16xf32>
    %643 = vector.extract_strided_slice %628 {offsets = [0, 384], sizes = [2, 16], strides = [1, 1]} : vector<2x512xf32> to vector<2x16xf32>
    %644 = arith.negf %643 : vector<2x16xf32>
    %645 = math.exp %644 : vector<2x16xf32>
    %cst_250 = arith.constant 1.000000e+00 : f32
    %646 = vector.broadcast %cst_250 : f32 to vector<2x16xf32>
    %647 = arith.addf %646, %645 : vector<2x16xf32>
    %648 = arith.divf %646, %647 : vector<2x16xf32>
    %649 = arith.mulf %640, %620 : vector<2x16xf32>
    %650 = arith.mulf %634, %642 : vector<2x16xf32>
    %651 = arith.addf %649, %650 : vector<2x16xf32>
    %652 = math.tanh %651 : vector<2x16xf32>
    %653 = arith.mulf %648, %652 : vector<2x16xf32>
    %c6_251 = arith.constant 6 : index
    %c0_252 = arith.constant 0 : index
    %654 = vector.load %arg8[%c6_251, %c0_252] : memref<16x16xf32, #tpu.memory_space<vmem>>, vector<2x16xf32>
    tpu.vector_store %arg8[%c6_251, %c0_252], %653 {strides = array<i32>} : memref<16x16xf32, #tpu.memory_space<vmem>>, vector<2x16xf32>,
    %c8_253 = arith.constant 8 : index
    %c0_254 = arith.constant 0 : index
    %655 = vector.load %arg7[%c8_253, %c0_254] : memref<16x512xf32, #tpu.memory_space<vmem>>, vector<2x512xf32>
    %c2_255 = arith.constant 2 : index
    %c0_256 = arith.constant 0 : index
    %c0_257 = arith.constant 0 : index
    %656 = vector.load %arg2[%c2_255, %c0_256, %c0_257] : memref<5x16x512xf32, #tpu.memory_space<vmem>>, vector<1x16x512xf32>
    %657 = vector.shape_cast %656 : vector<1x16x512xf32> to vector<16x512xf32>
    %cst_258 = arith.constant dense<0.000000e+00> : vector<2x512xf32>
    %658 = tpu.matmul %653, %657, %cst_258 {dimension_numbers = #tpu.dot_dimension_numbers<[1], [0], [0], [1], [0, 0, 1, 1], [], []>} : vector<2x16xf32>, vector<16x512xf32>, vector<2x512xf32> -> vector<2x512xf32>
    %659 = arith.addf %655, %658 : vector<2x512xf32>
    %660 = vector.extract_strided_slice %659 {offsets = [0, 0], sizes = [2, 16], strides = [1, 1]} : vector<2x512xf32> to vector<2x16xf32>
    %661 = arith.negf %660 : vector<2x16xf32>
    %662 = math.exp %661 : vector<2x16xf32>
    %cst_259 = arith.constant 1.000000e+00 : f32
    %663 = vector.broadcast %cst_259 : f32 to vector<2x16xf32>
    %664 = arith.addf %663, %662 : vector<2x16xf32>
    %665 = arith.divf %663, %664 : vector<2x16xf32>
    %666 = vector.extract_strided_slice %659 {offsets = [0, 128], sizes = [2, 16], strides = [1, 1]} : vector<2x512xf32> to vector<2x16xf32>
    %667 = arith.negf %666 : vector<2x16xf32>
    %668 = math.exp %667 : vector<2x16xf32>
    %cst_260 = arith.constant 1.000000e+00 : f32
    %669 = vector.broadcast %cst_260 : f32 to vector<2x16xf32>
    %670 = arith.addf %669, %668 : vector<2x16xf32>
    %671 = arith.divf %669, %670 : vector<2x16xf32>
    %672 = vector.extract_strided_slice %659 {offsets = [0, 256], sizes = [2, 16], strides = [1, 1]} : vector<2x512xf32> to vector<2x16xf32>
    %673 = math.tanh %672 : vector<2x16xf32>
    %674 = vector.extract_strided_slice %659 {offsets = [0, 384], sizes = [2, 16], strides = [1, 1]} : vector<2x512xf32> to vector<2x16xf32>
    %675 = arith.negf %674 : vector<2x16xf32>
    %676 = math.exp %675 : vector<2x16xf32>
    %cst_261 = arith.constant 1.000000e+00 : f32
    %677 = vector.broadcast %cst_261 : f32 to vector<2x16xf32>
    %678 = arith.addf %677, %676 : vector<2x16xf32>
    %679 = arith.divf %677, %678 : vector<2x16xf32>
    %680 = arith.mulf %671, %651 : vector<2x16xf32>
    %681 = arith.mulf %665, %673 : vector<2x16xf32>
    %682 = arith.addf %680, %681 : vector<2x16xf32>
    %683 = math.tanh %682 : vector<2x16xf32>
    %684 = arith.mulf %679, %683 : vector<2x16xf32>
    %c8_262 = arith.constant 8 : index
    %c0_263 = arith.constant 0 : index
    %685 = vector.load %arg8[%c8_262, %c0_263] : memref<16x16xf32, #tpu.memory_space<vmem>>, vector<2x16xf32>
    tpu.vector_store %arg8[%c8_262, %c0_263], %684 {strides = array<i32>} : memref<16x16xf32, #tpu.memory_space<vmem>>, vector<2x16xf32>,
    %c10_264 = arith.constant 10 : index
    %c0_265 = arith.constant 0 : index
    %686 = vector.load %arg7[%c10_264, %c0_265] : memref<16x512xf32, #tpu.memory_space<vmem>>, vector<2x512xf32>
    %c2_266 = arith.constant 2 : index
    %c0_267 = arith.constant 0 : index
    %c0_268 = arith.constant 0 : index
    %687 = vector.load %arg2[%c2_266, %c0_267, %c0_268] : memref<5x16x512xf32, #tpu.memory_space<vmem>>, vector<1x16x512xf32>
    %688 = vector.shape_cast %687 : vector<1x16x512xf32> to vector<16x512xf32>
    %cst_269 = arith.constant dense<0.000000e+00> : vector<2x512xf32>
    %689 = tpu.matmul %684, %688, %cst_269 {dimension_numbers = #tpu.dot_dimension_numbers<[1], [0], [0], [1], [0, 0, 1, 1], [], []>} : vector<2x16xf32>, vector<16x512xf32>, vector<2x512xf32> -> vector<2x512xf32>
    %690 = arith.addf %686, %689 : vector<2x512xf32>
    %691 = vector.extract_strided_slice %690 {offsets = [0, 0], sizes = [2, 16], strides = [1, 1]} : vector<2x512xf32> to vector<2x16xf32>
    %692 = arith.negf %691 : vector<2x16xf32>
    %693 = math.exp %692 : vector<2x16xf32>
    %cst_270 = arith.constant 1.000000e+00 : f32
    %694 = vector.broadcast %cst_270 : f32 to vector<2x16xf32>
    %695 = arith.addf %694, %693 : vector<2x16xf32>
    %696 = arith.divf %694, %695 : vector<2x16xf32>
    %697 = vector.extract_strided_slice %690 {offsets = [0, 128], sizes = [2, 16], strides = [1, 1]} : vector<2x512xf32> to vector<2x16xf32>
    %698 = arith.negf %697 : vector<2x16xf32>
    %699 = math.exp %698 : vector<2x16xf32>
    %cst_271 = arith.constant 1.000000e+00 : f32
    %700 = vector.broadcast %cst_271 : f32 to vector<2x16xf32>
    %701 = arith.addf %700, %699 : vector<2x16xf32>
    %702 = arith.divf %700, %701 : vector<2x16xf32>
    %703 = vector.extract_strided_slice %690 {offsets = [0, 256], sizes = [2, 16], strides = [1, 1]} : vector<2x512xf32> to vector<2x16xf32>
    %704 = math.tanh %703 : vector<2x16xf32>
    %705 = vector.extract_strided_slice %690 {offsets = [0, 384], sizes = [2, 16], strides = [1, 1]} : vector<2x512xf32> to vector<2x16xf32>
    %706 = arith.negf %705 : vector<2x16xf32>
    %707 = math.exp %706 : vector<2x16xf32>
    %cst_272 = arith.constant 1.000000e+00 : f32
    %708 = vector.broadcast %cst_272 : f32 to vector<2x16xf32>
    %709 = arith.addf %708, %707 : vector<2x16xf32>
    %710 = arith.divf %708, %709 : vector<2x16xf32>
    %711 = arith.mulf %702, %682 : vector<2x16xf32>
    %712 = arith.mulf %696, %704 : vector<2x16xf32>
    %713 = arith.addf %711, %712 : vector<2x16xf32>
    %714 = math.tanh %713 : vector<2x16xf32>
    %715 = arith.mulf %710, %714 : vector<2x16xf32>
    %c10_273 = arith.constant 10 : index
    %c0_274 = arith.constant 0 : index
    %716 = vector.load %arg8[%c10_273, %c0_274] : memref<16x16xf32, #tpu.memory_space<vmem>>, vector<2x16xf32>
    tpu.vector_store %arg8[%c10_273, %c0_274], %715 {strides = array<i32>} : memref<16x16xf32, #tpu.memory_space<vmem>>, vector<2x16xf32>,
    %c12_275 = arith.constant 12 : index
    %c0_276 = arith.constant 0 : index
    %717 = vector.load %arg7[%c12_275, %c0_276] : memref<16x512xf32, #tpu.memory_space<vmem>>, vector<2x512xf32>
    %c2_277 = arith.constant 2 : index
    %c0_278 = arith.constant 0 : index
    %c0_279 = arith.constant 0 : index
    %718 = vector.load %arg2[%c2_277, %c0_278, %c0_279] : memref<5x16x512xf32, #tpu.memory_space<vmem>>, vector<1x16x512xf32>
    %719 = vector.shape_cast %718 : vector<1x16x512xf32> to vector<16x512xf32>
    %cst_280 = arith.constant dense<0.000000e+00> : vector<2x512xf32>
    %720 = tpu.matmul %715, %719, %cst_280 {dimension_numbers = #tpu.dot_dimension_numbers<[1], [0], [0], [1], [0, 0, 1, 1], [], []>} : vector<2x16xf32>, vector<16x512xf32>, vector<2x512xf32> -> vector<2x512xf32>
    %721 = arith.addf %717, %720 : vector<2x512xf32>
    %722 = vector.extract_strided_slice %721 {offsets = [0, 0], sizes = [2, 16], strides = [1, 1]} : vector<2x512xf32> to vector<2x16xf32>
    %723 = arith.negf %722 : vector<2x16xf32>
    %724 = math.exp %723 : vector<2x16xf32>
    %cst_281 = arith.constant 1.000000e+00 : f32
    %725 = vector.broadcast %cst_281 : f32 to vector<2x16xf32>
    %726 = arith.addf %725, %724 : vector<2x16xf32>
    %727 = arith.divf %725, %726 : vector<2x16xf32>
    %728 = vector.extract_strided_slice %721 {offsets = [0, 128], sizes = [2, 16], strides = [1, 1]} : vector<2x512xf32> to vector<2x16xf32>
    %729 = arith.negf %728 : vector<2x16xf32>
    %730 = math.exp %729 : vector<2x16xf32>
    %cst_282 = arith.constant 1.000000e+00 : f32
    %731 = vector.broadcast %cst_282 : f32 to vector<2x16xf32>
    %732 = arith.addf %731, %730 : vector<2x16xf32>
    %733 = arith.divf %731, %732 : vector<2x16xf32>
    %734 = vector.extract_strided_slice %721 {offsets = [0, 256], sizes = [2, 16], strides = [1, 1]} : vector<2x512xf32> to vector<2x16xf32>
    %735 = math.tanh %734 : vector<2x16xf32>
    %736 = vector.extract_strided_slice %721 {offsets = [0, 384], sizes = [2, 16], strides = [1, 1]} : vector<2x512xf32> to vector<2x16xf32>
    %737 = arith.negf %736 : vector<2x16xf32>
    %738 = math.exp %737 : vector<2x16xf32>
    %cst_283 = arith.constant 1.000000e+00 : f32
    %739 = vector.broadcast %cst_283 : f32 to vector<2x16xf32>
    %740 = arith.addf %739, %738 : vector<2x16xf32>
    %741 = arith.divf %739, %740 : vector<2x16xf32>
    %742 = arith.mulf %733, %713 : vector<2x16xf32>
    %743 = arith.mulf %727, %735 : vector<2x16xf32>
    %744 = arith.addf %742, %743 : vector<2x16xf32>
    %745 = math.tanh %744 : vector<2x16xf32>
    %746 = arith.mulf %741, %745 : vector<2x16xf32>
    %c12_284 = arith.constant 12 : index
    %c0_285 = arith.constant 0 : index
    %747 = vector.load %arg8[%c12_284, %c0_285] : memref<16x16xf32, #tpu.memory_space<vmem>>, vector<2x16xf32>
    tpu.vector_store %arg8[%c12_284, %c0_285], %746 {strides = array<i32>} : memref<16x16xf32, #tpu.memory_space<vmem>>, vector<2x16xf32>,
    %c14_286 = arith.constant 14 : index
    %c0_287 = arith.constant 0 : index
    %748 = vector.load %arg7[%c14_286, %c0_287] : memref<16x512xf32, #tpu.memory_space<vmem>>, vector<2x512xf32>
    %c2_288 = arith.constant 2 : index
    %c0_289 = arith.constant 0 : index
    %c0_290 = arith.constant 0 : index
    %749 = vector.load %arg2[%c2_288, %c0_289, %c0_290] : memref<5x16x512xf32, #tpu.memory_space<vmem>>, vector<1x16x512xf32>
    %750 = vector.shape_cast %749 : vector<1x16x512xf32> to vector<16x512xf32>
    %cst_291 = arith.constant dense<0.000000e+00> : vector<2x512xf32>
    %751 = tpu.matmul %746, %750, %cst_291 {dimension_numbers = #tpu.dot_dimension_numbers<[1], [0], [0], [1], [0, 0, 1, 1], [], []>} : vector<2x16xf32>, vector<16x512xf32>, vector<2x512xf32> -> vector<2x512xf32>
    %752 = arith.addf %748, %751 : vector<2x512xf32>
    %753 = vector.extract_strided_slice %752 {offsets = [0, 0], sizes = [2, 16], strides = [1, 1]} : vector<2x512xf32> to vector<2x16xf32>
    %754 = arith.negf %753 : vector<2x16xf32>
    %755 = math.exp %754 : vector<2x16xf32>
    %cst_292 = arith.constant 1.000000e+00 : f32
    %756 = vector.broadcast %cst_292 : f32 to vector<2x16xf32>
    %757 = arith.addf %756, %755 : vector<2x16xf32>
    %758 = arith.divf %756, %757 : vector<2x16xf32>
    %759 = vector.extract_strided_slice %752 {offsets = [0, 128], sizes = [2, 16], strides = [1, 1]} : vector<2x512xf32> to vector<2x16xf32>
    %760 = arith.negf %759 : vector<2x16xf32>
    %761 = math.exp %760 : vector<2x16xf32>
    %cst_293 = arith.constant 1.000000e+00 : f32
    %762 = vector.broadcast %cst_293 : f32 to vector<2x16xf32>
    %763 = arith.addf %762, %761 : vector<2x16xf32>
    %764 = arith.divf %762, %763 : vector<2x16xf32>
    %765 = vector.extract_strided_slice %752 {offsets = [0, 256], sizes = [2, 16], strides = [1, 1]} : vector<2x512xf32> to vector<2x16xf32>
    %766 = math.tanh %765 : vector<2x16xf32>
    %767 = vector.extract_strided_slice %752 {offsets = [0, 384], sizes = [2, 16], strides = [1, 1]} : vector<2x512xf32> to vector<2x16xf32>
    %768 = arith.negf %767 : vector<2x16xf32>
    %769 = math.exp %768 : vector<2x16xf32>
    %cst_294 = arith.constant 1.000000e+00 : f32
    %770 = vector.broadcast %cst_294 : f32 to vector<2x16xf32>
    %771 = arith.addf %770, %769 : vector<2x16xf32>
    %772 = arith.divf %770, %771 : vector<2x16xf32>
    %773 = arith.mulf %764, %744 : vector<2x16xf32>
    %774 = arith.mulf %758, %766 : vector<2x16xf32>
    %775 = arith.addf %773, %774 : vector<2x16xf32>
    %776 = math.tanh %775 : vector<2x16xf32>
    %777 = arith.mulf %772, %776 : vector<2x16xf32>
    %c14_295 = arith.constant 14 : index
    %c0_296 = arith.constant 0 : index
    %778 = vector.load %arg8[%c14_295, %c0_296] : memref<16x16xf32, #tpu.memory_space<vmem>>, vector<2x16xf32>
    tpu.vector_store %arg8[%c14_295, %c0_296], %777 {strides = array<i32>} : memref<16x16xf32, #tpu.memory_space<vmem>>, vector<2x16xf32>,
    %c0_297 = arith.constant 0 : index
    %c0_298 = arith.constant 0 : index
    %779 = vector.load %arg8[%c0_297, %c0_298] : memref<16x16xf32, #tpu.memory_space<vmem>>, vector<16x16xf32>
    %c3 = arith.constant 3 : index
    %c0_299 = arith.constant 0 : index
    %c0_300 = arith.constant 0 : index
    %780 = vector.load %arg1[%c3, %c0_299, %c0_300] : memref<5x16x512xf32, #tpu.memory_space<vmem>>, vector<1x16x512xf32>
    %781 = vector.shape_cast %780 : vector<1x16x512xf32> to vector<16x512xf32>
    %cst_301 = arith.constant dense<0.000000e+00> : vector<16x512xf32>
    %782 = tpu.matmul %779, %781, %cst_301 {dimension_numbers = #tpu.dot_dimension_numbers<[1], [0], [0], [1], [0, 0, 1, 1], [], []>} : vector<16x16xf32>, vector<16x512xf32>, vector<16x512xf32> -> vector<16x512xf32>
    %c3_302 = arith.constant 3 : index
    %c0_303 = arith.constant 0 : index
    %c0_304 = arith.constant 0 : index
    %783 = vector.load %arg3[%c3_302, %c0_303, %c0_304] : memref<5x1x512xf32, #tpu.memory_space<vmem>>, vector<1x1x512xf32>
    %784 = vector.shape_cast %783 : vector<1x1x512xf32> to vector<1x512xf32>
    %785 = vector.broadcast %784 : vector<1x512xf32> to vector<16x512xf32>
    %786 = arith.addf %782, %785 : vector<16x512xf32>
    %c0_305 = arith.constant 0 : index
    %c0_306 = arith.constant 0 : index
    %787 = vector.load %arg7[%c0_305, %c0_306] : memref<16x512xf32, #tpu.memory_space<vmem>>, vector<16x512xf32>
    tpu.vector_store %arg7[%c0_305, %c0_306], %786 {strides = array<i32>} : memref<16x512xf32, #tpu.memory_space<vmem>>, vector<16x512xf32>,
    %cst_307 = arith.constant 0.000000e+00 : f32
    %788 = vector.broadcast %cst_307 : f32 to vector<2x16xf32>
    %cst_308 = arith.constant 0.000000e+00 : f32
    %789 = vector.broadcast %cst_308 : f32 to vector<2x16xf32>
    %c0_309 = arith.constant 0 : index
    %c0_310 = arith.constant 0 : index
    %790 = vector.load %arg7[%c0_309, %c0_310] : memref<16x512xf32, #tpu.memory_space<vmem>>, vector<2x512xf32>
    %c3_311 = arith.constant 3 : index
    %c0_312 = arith.constant 0 : index
    %c0_313 = arith.constant 0 : index
    %791 = vector.load %arg2[%c3_311, %c0_312, %c0_313] : memref<5x16x512xf32, #tpu.memory_space<vmem>>, vector<1x16x512xf32>
    %792 = vector.shape_cast %791 : vector<1x16x512xf32> to vector<16x512xf32>
    %cst_314 = arith.constant dense<0.000000e+00> : vector<2x512xf32>
    %793 = tpu.matmul %788, %792, %cst_314 {dimension_numbers = #tpu.dot_dimension_numbers<[1], [0], [0], [1], [0, 0, 1, 1], [], []>} : vector<2x16xf32>, vector<16x512xf32>, vector<2x512xf32> -> vector<2x512xf32>
    %794 = arith.addf %790, %793 : vector<2x512xf32>
    %795 = vector.extract_strided_slice %794 {offsets = [0, 0], sizes = [2, 16], strides = [1, 1]} : vector<2x512xf32> to vector<2x16xf32>
    %796 = arith.negf %795 : vector<2x16xf32>
    %797 = math.exp %796 : vector<2x16xf32>
    %cst_315 = arith.constant 1.000000e+00 : f32
    %798 = vector.broadcast %cst_315 : f32 to vector<2x16xf32>
    %799 = arith.addf %798, %797 : vector<2x16xf32>
    %800 = arith.divf %798, %799 : vector<2x16xf32>
    %801 = vector.extract_strided_slice %794 {offsets = [0, 128], sizes = [2, 16], strides = [1, 1]} : vector<2x512xf32> to vector<2x16xf32>
    %802 = arith.negf %801 : vector<2x16xf32>
    %803 = math.exp %802 : vector<2x16xf32>
    %cst_316 = arith.constant 1.000000e+00 : f32
    %804 = vector.broadcast %cst_316 : f32 to vector<2x16xf32>
    %805 = arith.addf %804, %803 : vector<2x16xf32>
    %806 = arith.divf %804, %805 : vector<2x16xf32>
    %807 = vector.extract_strided_slice %794 {offsets = [0, 256], sizes = [2, 16], strides = [1, 1]} : vector<2x512xf32> to vector<2x16xf32>
    %808 = math.tanh %807 : vector<2x16xf32>
    %809 = vector.extract_strided_slice %794 {offsets = [0, 384], sizes = [2, 16], strides = [1, 1]} : vector<2x512xf32> to vector<2x16xf32>
    %810 = arith.negf %809 : vector<2x16xf32>
    %811 = math.exp %810 : vector<2x16xf32>
    %cst_317 = arith.constant 1.000000e+00 : f32
    %812 = vector.broadcast %cst_317 : f32 to vector<2x16xf32>
    %813 = arith.addf %812, %811 : vector<2x16xf32>
    %814 = arith.divf %812, %813 : vector<2x16xf32>
    %815 = arith.mulf %806, %789 : vector<2x16xf32>
    %816 = arith.mulf %800, %808 : vector<2x16xf32>
    %817 = arith.addf %815, %816 : vector<2x16xf32>
    %818 = math.tanh %817 : vector<2x16xf32>
    %819 = arith.mulf %814, %818 : vector<2x16xf32>
    %c0_318 = arith.constant 0 : index
    %c0_319 = arith.constant 0 : index
    %820 = vector.load %arg8[%c0_318, %c0_319] : memref<16x16xf32, #tpu.memory_space<vmem>>, vector<2x16xf32>
    tpu.vector_store %arg8[%c0_318, %c0_319], %819 {strides = array<i32>} : memref<16x16xf32, #tpu.memory_space<vmem>>, vector<2x16xf32>,
    %c2_320 = arith.constant 2 : index
    %c0_321 = arith.constant 0 : index
    %821 = vector.load %arg7[%c2_320, %c0_321] : memref<16x512xf32, #tpu.memory_space<vmem>>, vector<2x512xf32>
    %c3_322 = arith.constant 3 : index
    %c0_323 = arith.constant 0 : index
    %c0_324 = arith.constant 0 : index
    %822 = vector.load %arg2[%c3_322, %c0_323, %c0_324] : memref<5x16x512xf32, #tpu.memory_space<vmem>>, vector<1x16x512xf32>
    %823 = vector.shape_cast %822 : vector<1x16x512xf32> to vector<16x512xf32>
    %cst_325 = arith.constant dense<0.000000e+00> : vector<2x512xf32>
    %824 = tpu.matmul %819, %823, %cst_325 {dimension_numbers = #tpu.dot_dimension_numbers<[1], [0], [0], [1], [0, 0, 1, 1], [], []>} : vector<2x16xf32>, vector<16x512xf32>, vector<2x512xf32> -> vector<2x512xf32>
    %825 = arith.addf %821, %824 : vector<2x512xf32>
    %826 = vector.extract_strided_slice %825 {offsets = [0, 0], sizes = [2, 16], strides = [1, 1]} : vector<2x512xf32> to vector<2x16xf32>
    %827 = arith.negf %826 : vector<2x16xf32>
    %828 = math.exp %827 : vector<2x16xf32>
    %cst_326 = arith.constant 1.000000e+00 : f32
    %829 = vector.broadcast %cst_326 : f32 to vector<2x16xf32>
    %830 = arith.addf %829, %828 : vector<2x16xf32>
    %831 = arith.divf %829, %830 : vector<2x16xf32>
    %832 = vector.extract_strided_slice %825 {offsets = [0, 128], sizes = [2, 16], strides = [1, 1]} : vector<2x512xf32> to vector<2x16xf32>
    %833 = arith.negf %832 : vector<2x16xf32>
    %834 = math.exp %833 : vector<2x16xf32>
    %cst_327 = arith.constant 1.000000e+00 : f32
    %835 = vector.broadcast %cst_327 : f32 to vector<2x16xf32>
    %836 = arith.addf %835, %834 : vector<2x16xf32>
    %837 = arith.divf %835, %836 : vector<2x16xf32>
    %838 = vector.extract_strided_slice %825 {offsets = [0, 256], sizes = [2, 16], strides = [1, 1]} : vector<2x512xf32> to vector<2x16xf32>
    %839 = math.tanh %838 : vector<2x16xf32>
    %840 = vector.extract_strided_slice %825 {offsets = [0, 384], sizes = [2, 16], strides = [1, 1]} : vector<2x512xf32> to vector<2x16xf32>
    %841 = arith.negf %840 : vector<2x16xf32>
    %842 = math.exp %841 : vector<2x16xf32>
    %cst_328 = arith.constant 1.000000e+00 : f32
    %843 = vector.broadcast %cst_328 : f32 to vector<2x16xf32>
    %844 = arith.addf %843, %842 : vector<2x16xf32>
    %845 = arith.divf %843, %844 : vector<2x16xf32>
    %846 = arith.mulf %837, %817 : vector<2x16xf32>
    %847 = arith.mulf %831, %839 : vector<2x16xf32>
    %848 = arith.addf %846, %847 : vector<2x16xf32>
    %849 = math.tanh %848 : vector<2x16xf32>
    %850 = arith.mulf %845, %849 : vector<2x16xf32>
    %c2_329 = arith.constant 2 : index
    %c0_330 = arith.constant 0 : index
    %851 = vector.load %arg8[%c2_329, %c0_330] : memref<16x16xf32, #tpu.memory_space<vmem>>, vector<2x16xf32>
    tpu.vector_store %arg8[%c2_329, %c0_330], %850 {strides = array<i32>} : memref<16x16xf32, #tpu.memory_space<vmem>>, vector<2x16xf32>,
    %c4_331 = arith.constant 4 : index
    %c0_332 = arith.constant 0 : index
    %852 = vector.load %arg7[%c4_331, %c0_332] : memref<16x512xf32, #tpu.memory_space<vmem>>, vector<2x512xf32>
    %c3_333 = arith.constant 3 : index
    %c0_334 = arith.constant 0 : index
    %c0_335 = arith.constant 0 : index
    %853 = vector.load %arg2[%c3_333, %c0_334, %c0_335] : memref<5x16x512xf32, #tpu.memory_space<vmem>>, vector<1x16x512xf32>
    %854 = vector.shape_cast %853 : vector<1x16x512xf32> to vector<16x512xf32>
    %cst_336 = arith.constant dense<0.000000e+00> : vector<2x512xf32>
    %855 = tpu.matmul %850, %854, %cst_336 {dimension_numbers = #tpu.dot_dimension_numbers<[1], [0], [0], [1], [0, 0, 1, 1], [], []>} : vector<2x16xf32>, vector<16x512xf32>, vector<2x512xf32> -> vector<2x512xf32>
    %856 = arith.addf %852, %855 : vector<2x512xf32>
    %857 = vector.extract_strided_slice %856 {offsets = [0, 0], sizes = [2, 16], strides = [1, 1]} : vector<2x512xf32> to vector<2x16xf32>
    %858 = arith.negf %857 : vector<2x16xf32>
    %859 = math.exp %858 : vector<2x16xf32>
    %cst_337 = arith.constant 1.000000e+00 : f32
    %860 = vector.broadcast %cst_337 : f32 to vector<2x16xf32>
    %861 = arith.addf %860, %859 : vector<2x16xf32>
    %862 = arith.divf %860, %861 : vector<2x16xf32>
    %863 = vector.extract_strided_slice %856 {offsets = [0, 128], sizes = [2, 16], strides = [1, 1]} : vector<2x512xf32> to vector<2x16xf32>
    %864 = arith.negf %863 : vector<2x16xf32>
    %865 = math.exp %864 : vector<2x16xf32>
    %cst_338 = arith.constant 1.000000e+00 : f32
    %866 = vector.broadcast %cst_338 : f32 to vector<2x16xf32>
    %867 = arith.addf %866, %865 : vector<2x16xf32>
    %868 = arith.divf %866, %867 : vector<2x16xf32>
    %869 = vector.extract_strided_slice %856 {offsets = [0, 256], sizes = [2, 16], strides = [1, 1]} : vector<2x512xf32> to vector<2x16xf32>
    %870 = math.tanh %869 : vector<2x16xf32>
    %871 = vector.extract_strided_slice %856 {offsets = [0, 384], sizes = [2, 16], strides = [1, 1]} : vector<2x512xf32> to vector<2x16xf32>
    %872 = arith.negf %871 : vector<2x16xf32>
    %873 = math.exp %872 : vector<2x16xf32>
    %cst_339 = arith.constant 1.000000e+00 : f32
    %874 = vector.broadcast %cst_339 : f32 to vector<2x16xf32>
    %875 = arith.addf %874, %873 : vector<2x16xf32>
    %876 = arith.divf %874, %875 : vector<2x16xf32>
    %877 = arith.mulf %868, %848 : vector<2x16xf32>
    %878 = arith.mulf %862, %870 : vector<2x16xf32>
    %879 = arith.addf %877, %878 : vector<2x16xf32>
    %880 = math.tanh %879 : vector<2x16xf32>
    %881 = arith.mulf %876, %880 : vector<2x16xf32>
    %c4_340 = arith.constant 4 : index
    %c0_341 = arith.constant 0 : index
    %882 = vector.load %arg8[%c4_340, %c0_341] : memref<16x16xf32, #tpu.memory_space<vmem>>, vector<2x16xf32>
    tpu.vector_store %arg8[%c4_340, %c0_341], %881 {strides = array<i32>} : memref<16x16xf32, #tpu.memory_space<vmem>>, vector<2x16xf32>,
    %c6_342 = arith.constant 6 : index
    %c0_343 = arith.constant 0 : index
    %883 = vector.load %arg7[%c6_342, %c0_343] : memref<16x512xf32, #tpu.memory_space<vmem>>, vector<2x512xf32>
    %c3_344 = arith.constant 3 : index
    %c0_345 = arith.constant 0 : index
    %c0_346 = arith.constant 0 : index
    %884 = vector.load %arg2[%c3_344, %c0_345, %c0_346] : memref<5x16x512xf32, #tpu.memory_space<vmem>>, vector<1x16x512xf32>
    %885 = vector.shape_cast %884 : vector<1x16x512xf32> to vector<16x512xf32>
    %cst_347 = arith.constant dense<0.000000e+00> : vector<2x512xf32>
    %886 = tpu.matmul %881, %885, %cst_347 {dimension_numbers = #tpu.dot_dimension_numbers<[1], [0], [0], [1], [0, 0, 1, 1], [], []>} : vector<2x16xf32>, vector<16x512xf32>, vector<2x512xf32> -> vector<2x512xf32>
    %887 = arith.addf %883, %886 : vector<2x512xf32>
    %888 = vector.extract_strided_slice %887 {offsets = [0, 0], sizes = [2, 16], strides = [1, 1]} : vector<2x512xf32> to vector<2x16xf32>
    %889 = arith.negf %888 : vector<2x16xf32>
    %890 = math.exp %889 : vector<2x16xf32>
    %cst_348 = arith.constant 1.000000e+00 : f32
    %891 = vector.broadcast %cst_348 : f32 to vector<2x16xf32>
    %892 = arith.addf %891, %890 : vector<2x16xf32>
    %893 = arith.divf %891, %892 : vector<2x16xf32>
    %894 = vector.extract_strided_slice %887 {offsets = [0, 128], sizes = [2, 16], strides = [1, 1]} : vector<2x512xf32> to vector<2x16xf32>
    %895 = arith.negf %894 : vector<2x16xf32>
    %896 = math.exp %895 : vector<2x16xf32>
    %cst_349 = arith.constant 1.000000e+00 : f32
    %897 = vector.broadcast %cst_349 : f32 to vector<2x16xf32>
    %898 = arith.addf %897, %896 : vector<2x16xf32>
    %899 = arith.divf %897, %898 : vector<2x16xf32>
    %900 = vector.extract_strided_slice %887 {offsets = [0, 256], sizes = [2, 16], strides = [1, 1]} : vector<2x512xf32> to vector<2x16xf32>
    %901 = math.tanh %900 : vector<2x16xf32>
    %902 = vector.extract_strided_slice %887 {offsets = [0, 384], sizes = [2, 16], strides = [1, 1]} : vector<2x512xf32> to vector<2x16xf32>
    %903 = arith.negf %902 : vector<2x16xf32>
    %904 = math.exp %903 : vector<2x16xf32>
    %cst_350 = arith.constant 1.000000e+00 : f32
    %905 = vector.broadcast %cst_350 : f32 to vector<2x16xf32>
    %906 = arith.addf %905, %904 : vector<2x16xf32>
    %907 = arith.divf %905, %906 : vector<2x16xf32>
    %908 = arith.mulf %899, %879 : vector<2x16xf32>
    %909 = arith.mulf %893, %901 : vector<2x16xf32>
    %910 = arith.addf %908, %909 : vector<2x16xf32>
    %911 = math.tanh %910 : vector<2x16xf32>
    %912 = arith.mulf %907, %911 : vector<2x16xf32>
    %c6_351 = arith.constant 6 : index
    %c0_352 = arith.constant 0 : index
    %913 = vector.load %arg8[%c6_351, %c0_352] : memref<16x16xf32, #tpu.memory_space<vmem>>, vector<2x16xf32>
    tpu.vector_store %arg8[%c6_351, %c0_352], %912 {strides = array<i32>} : memref<16x16xf32, #tpu.memory_space<vmem>>, vector<2x16xf32>,
    %c8_353 = arith.constant 8 : index
    %c0_354 = arith.constant 0 : index
    %914 = vector.load %arg7[%c8_353, %c0_354] : memref<16x512xf32, #tpu.memory_space<vmem>>, vector<2x512xf32>
    %c3_355 = arith.constant 3 : index
    %c0_356 = arith.constant 0 : index
    %c0_357 = arith.constant 0 : index
    %915 = vector.load %arg2[%c3_355, %c0_356, %c0_357] : memref<5x16x512xf32, #tpu.memory_space<vmem>>, vector<1x16x512xf32>
    %916 = vector.shape_cast %915 : vector<1x16x512xf32> to vector<16x512xf32>
    %cst_358 = arith.constant dense<0.000000e+00> : vector<2x512xf32>
    %917 = tpu.matmul %912, %916, %cst_358 {dimension_numbers = #tpu.dot_dimension_numbers<[1], [0], [0], [1], [0, 0, 1, 1], [], []>} : vector<2x16xf32>, vector<16x512xf32>, vector<2x512xf32> -> vector<2x512xf32>
    %918 = arith.addf %914, %917 : vector<2x512xf32>
    %919 = vector.extract_strided_slice %918 {offsets = [0, 0], sizes = [2, 16], strides = [1, 1]} : vector<2x512xf32> to vector<2x16xf32>
    %920 = arith.negf %919 : vector<2x16xf32>
    %921 = math.exp %920 : vector<2x16xf32>
    %cst_359 = arith.constant 1.000000e+00 : f32
    %922 = vector.broadcast %cst_359 : f32 to vector<2x16xf32>
    %923 = arith.addf %922, %921 : vector<2x16xf32>
    %924 = arith.divf %922, %923 : vector<2x16xf32>
    %925 = vector.extract_strided_slice %918 {offsets = [0, 128], sizes = [2, 16], strides = [1, 1]} : vector<2x512xf32> to vector<2x16xf32>
    %926 = arith.negf %925 : vector<2x16xf32>
    %927 = math.exp %926 : vector<2x16xf32>
    %cst_360 = arith.constant 1.000000e+00 : f32
    %928 = vector.broadcast %cst_360 : f32 to vector<2x16xf32>
    %929 = arith.addf %928, %927 : vector<2x16xf32>
    %930 = arith.divf %928, %929 : vector<2x16xf32>
    %931 = vector.extract_strided_slice %918 {offsets = [0, 256], sizes = [2, 16], strides = [1, 1]} : vector<2x512xf32> to vector<2x16xf32>
    %932 = math.tanh %931 : vector<2x16xf32>
    %933 = vector.extract_strided_slice %918 {offsets = [0, 384], sizes = [2, 16], strides = [1, 1]} : vector<2x512xf32> to vector<2x16xf32>
    %934 = arith.negf %933 : vector<2x16xf32>
    %935 = math.exp %934 : vector<2x16xf32>
    %cst_361 = arith.constant 1.000000e+00 : f32
    %936 = vector.broadcast %cst_361 : f32 to vector<2x16xf32>
    %937 = arith.addf %936, %935 : vector<2x16xf32>
    %938 = arith.divf %936, %937 : vector<2x16xf32>
    %939 = arith.mulf %930, %910 : vector<2x16xf32>
    %940 = arith.mulf %924, %932 : vector<2x16xf32>
    %941 = arith.addf %939, %940 : vector<2x16xf32>
    %942 = math.tanh %941 : vector<2x16xf32>
    %943 = arith.mulf %938, %942 : vector<2x16xf32>
    %c8_362 = arith.constant 8 : index
    %c0_363 = arith.constant 0 : index
    %944 = vector.load %arg8[%c8_362, %c0_363] : memref<16x16xf32, #tpu.memory_space<vmem>>, vector<2x16xf32>
    tpu.vector_store %arg8[%c8_362, %c0_363], %943 {strides = array<i32>} : memref<16x16xf32, #tpu.memory_space<vmem>>, vector<2x16xf32>,
    %c10_364 = arith.constant 10 : index
    %c0_365 = arith.constant 0 : index
    %945 = vector.load %arg7[%c10_364, %c0_365] : memref<16x512xf32, #tpu.memory_space<vmem>>, vector<2x512xf32>
    %c3_366 = arith.constant 3 : index
    %c0_367 = arith.constant 0 : index
    %c0_368 = arith.constant 0 : index
    %946 = vector.load %arg2[%c3_366, %c0_367, %c0_368] : memref<5x16x512xf32, #tpu.memory_space<vmem>>, vector<1x16x512xf32>
    %947 = vector.shape_cast %946 : vector<1x16x512xf32> to vector<16x512xf32>
    %cst_369 = arith.constant dense<0.000000e+00> : vector<2x512xf32>
    %948 = tpu.matmul %943, %947, %cst_369 {dimension_numbers = #tpu.dot_dimension_numbers<[1], [0], [0], [1], [0, 0, 1, 1], [], []>} : vector<2x16xf32>, vector<16x512xf32>, vector<2x512xf32> -> vector<2x512xf32>
    %949 = arith.addf %945, %948 : vector<2x512xf32>
    %950 = vector.extract_strided_slice %949 {offsets = [0, 0], sizes = [2, 16], strides = [1, 1]} : vector<2x512xf32> to vector<2x16xf32>
    %951 = arith.negf %950 : vector<2x16xf32>
    %952 = math.exp %951 : vector<2x16xf32>
    %cst_370 = arith.constant 1.000000e+00 : f32
    %953 = vector.broadcast %cst_370 : f32 to vector<2x16xf32>
    %954 = arith.addf %953, %952 : vector<2x16xf32>
    %955 = arith.divf %953, %954 : vector<2x16xf32>
    %956 = vector.extract_strided_slice %949 {offsets = [0, 128], sizes = [2, 16], strides = [1, 1]} : vector<2x512xf32> to vector<2x16xf32>
    %957 = arith.negf %956 : vector<2x16xf32>
    %958 = math.exp %957 : vector<2x16xf32>
    %cst_371 = arith.constant 1.000000e+00 : f32
    %959 = vector.broadcast %cst_371 : f32 to vector<2x16xf32>
    %960 = arith.addf %959, %958 : vector<2x16xf32>
    %961 = arith.divf %959, %960 : vector<2x16xf32>
    %962 = vector.extract_strided_slice %949 {offsets = [0, 256], sizes = [2, 16], strides = [1, 1]} : vector<2x512xf32> to vector<2x16xf32>
    %963 = math.tanh %962 : vector<2x16xf32>
    %964 = vector.extract_strided_slice %949 {offsets = [0, 384], sizes = [2, 16], strides = [1, 1]} : vector<2x512xf32> to vector<2x16xf32>
    %965 = arith.negf %964 : vector<2x16xf32>
    %966 = math.exp %965 : vector<2x16xf32>
    %cst_372 = arith.constant 1.000000e+00 : f32
    %967 = vector.broadcast %cst_372 : f32 to vector<2x16xf32>
    %968 = arith.addf %967, %966 : vector<2x16xf32>
    %969 = arith.divf %967, %968 : vector<2x16xf32>
    %970 = arith.mulf %961, %941 : vector<2x16xf32>
    %971 = arith.mulf %955, %963 : vector<2x16xf32>
    %972 = arith.addf %970, %971 : vector<2x16xf32>
    %973 = math.tanh %972 : vector<2x16xf32>
    %974 = arith.mulf %969, %973 : vector<2x16xf32>
    %c10_373 = arith.constant 10 : index
    %c0_374 = arith.constant 0 : index
    %975 = vector.load %arg8[%c10_373, %c0_374] : memref<16x16xf32, #tpu.memory_space<vmem>>, vector<2x16xf32>
    tpu.vector_store %arg8[%c10_373, %c0_374], %974 {strides = array<i32>} : memref<16x16xf32, #tpu.memory_space<vmem>>, vector<2x16xf32>,
    %c12_375 = arith.constant 12 : index
    %c0_376 = arith.constant 0 : index
    %976 = vector.load %arg7[%c12_375, %c0_376] : memref<16x512xf32, #tpu.memory_space<vmem>>, vector<2x512xf32>
    %c3_377 = arith.constant 3 : index
    %c0_378 = arith.constant 0 : index
    %c0_379 = arith.constant 0 : index
    %977 = vector.load %arg2[%c3_377, %c0_378, %c0_379] : memref<5x16x512xf32, #tpu.memory_space<vmem>>, vector<1x16x512xf32>
    %978 = vector.shape_cast %977 : vector<1x16x512xf32> to vector<16x512xf32>
    %cst_380 = arith.constant dense<0.000000e+00> : vector<2x512xf32>
    %979 = tpu.matmul %974, %978, %cst_380 {dimension_numbers = #tpu.dot_dimension_numbers<[1], [0], [0], [1], [0, 0, 1, 1], [], []>} : vector<2x16xf32>, vector<16x512xf32>, vector<2x512xf32> -> vector<2x512xf32>
    %980 = arith.addf %976, %979 : vector<2x512xf32>
    %981 = vector.extract_strided_slice %980 {offsets = [0, 0], sizes = [2, 16], strides = [1, 1]} : vector<2x512xf32> to vector<2x16xf32>
    %982 = arith.negf %981 : vector<2x16xf32>
    %983 = math.exp %982 : vector<2x16xf32>
    %cst_381 = arith.constant 1.000000e+00 : f32
    %984 = vector.broadcast %cst_381 : f32 to vector<2x16xf32>
    %985 = arith.addf %984, %983 : vector<2x16xf32>
    %986 = arith.divf %984, %985 : vector<2x16xf32>
    %987 = vector.extract_strided_slice %980 {offsets = [0, 128], sizes = [2, 16], strides = [1, 1]} : vector<2x512xf32> to vector<2x16xf32>
    %988 = arith.negf %987 : vector<2x16xf32>
    %989 = math.exp %988 : vector<2x16xf32>
    %cst_382 = arith.constant 1.000000e+00 : f32
    %990 = vector.broadcast %cst_382 : f32 to vector<2x16xf32>
    %991 = arith.addf %990, %989 : vector<2x16xf32>
    %992 = arith.divf %990, %991 : vector<2x16xf32>
    %993 = vector.extract_strided_slice %980 {offsets = [0, 256], sizes = [2, 16], strides = [1, 1]} : vector<2x512xf32> to vector<2x16xf32>
    %994 = math.tanh %993 : vector<2x16xf32>
    %995 = vector.extract_strided_slice %980 {offsets = [0, 384], sizes = [2, 16], strides = [1, 1]} : vector<2x512xf32> to vector<2x16xf32>
    %996 = arith.negf %995 : vector<2x16xf32>
    %997 = math.exp %996 : vector<2x16xf32>
    %cst_383 = arith.constant 1.000000e+00 : f32
    %998 = vector.broadcast %cst_383 : f32 to vector<2x16xf32>
    %999 = arith.addf %998, %997 : vector<2x16xf32>
    %1000 = arith.divf %998, %999 : vector<2x16xf32>
    %1001 = arith.mulf %992, %972 : vector<2x16xf32>
    %1002 = arith.mulf %986, %994 : vector<2x16xf32>
    %1003 = arith.addf %1001, %1002 : vector<2x16xf32>
    %1004 = math.tanh %1003 : vector<2x16xf32>
    %1005 = arith.mulf %1000, %1004 : vector<2x16xf32>
    %c12_384 = arith.constant 12 : index
    %c0_385 = arith.constant 0 : index
    %1006 = vector.load %arg8[%c12_384, %c0_385] : memref<16x16xf32, #tpu.memory_space<vmem>>, vector<2x16xf32>
    tpu.vector_store %arg8[%c12_384, %c0_385], %1005 {strides = array<i32>} : memref<16x16xf32, #tpu.memory_space<vmem>>, vector<2x16xf32>,
    %c14_386 = arith.constant 14 : index
    %c0_387 = arith.constant 0 : index
    %1007 = vector.load %arg7[%c14_386, %c0_387] : memref<16x512xf32, #tpu.memory_space<vmem>>, vector<2x512xf32>
    %c3_388 = arith.constant 3 : index
    %c0_389 = arith.constant 0 : index
    %c0_390 = arith.constant 0 : index
    %1008 = vector.load %arg2[%c3_388, %c0_389, %c0_390] : memref<5x16x512xf32, #tpu.memory_space<vmem>>, vector<1x16x512xf32>
    %1009 = vector.shape_cast %1008 : vector<1x16x512xf32> to vector<16x512xf32>
    %cst_391 = arith.constant dense<0.000000e+00> : vector<2x512xf32>
    %1010 = tpu.matmul %1005, %1009, %cst_391 {dimension_numbers = #tpu.dot_dimension_numbers<[1], [0], [0], [1], [0, 0, 1, 1], [], []>} : vector<2x16xf32>, vector<16x512xf32>, vector<2x512xf32> -> vector<2x512xf32>
    %1011 = arith.addf %1007, %1010 : vector<2x512xf32>
    %1012 = vector.extract_strided_slice %1011 {offsets = [0, 0], sizes = [2, 16], strides = [1, 1]} : vector<2x512xf32> to vector<2x16xf32>
    %1013 = arith.negf %1012 : vector<2x16xf32>
    %1014 = math.exp %1013 : vector<2x16xf32>
    %cst_392 = arith.constant 1.000000e+00 : f32
    %1015 = vector.broadcast %cst_392 : f32 to vector<2x16xf32>
    %1016 = arith.addf %1015, %1014 : vector<2x16xf32>
    %1017 = arith.divf %1015, %1016 : vector<2x16xf32>
    %1018 = vector.extract_strided_slice %1011 {offsets = [0, 128], sizes = [2, 16], strides = [1, 1]} : vector<2x512xf32> to vector<2x16xf32>
    %1019 = arith.negf %1018 : vector<2x16xf32>
    %1020 = math.exp %1019 : vector<2x16xf32>
    %cst_393 = arith.constant 1.000000e+00 : f32
    %1021 = vector.broadcast %cst_393 : f32 to vector<2x16xf32>
    %1022 = arith.addf %1021, %1020 : vector<2x16xf32>
    %1023 = arith.divf %1021, %1022 : vector<2x16xf32>
    %1024 = vector.extract_strided_slice %1011 {offsets = [0, 256], sizes = [2, 16], strides = [1, 1]} : vector<2x512xf32> to vector<2x16xf32>
    %1025 = math.tanh %1024 : vector<2x16xf32>
    %1026 = vector.extract_strided_slice %1011 {offsets = [0, 384], sizes = [2, 16], strides = [1, 1]} : vector<2x512xf32> to vector<2x16xf32>
    %1027 = arith.negf %1026 : vector<2x16xf32>
    %1028 = math.exp %1027 : vector<2x16xf32>
    %cst_394 = arith.constant 1.000000e+00 : f32
    %1029 = vector.broadcast %cst_394 : f32 to vector<2x16xf32>
    %1030 = arith.addf %1029, %1028 : vector<2x16xf32>
    %1031 = arith.divf %1029, %1030 : vector<2x16xf32>
    %1032 = arith.mulf %1023, %1003 : vector<2x16xf32>
    %1033 = arith.mulf %1017, %1025 : vector<2x16xf32>
    %1034 = arith.addf %1032, %1033 : vector<2x16xf32>
    %1035 = math.tanh %1034 : vector<2x16xf32>
    %1036 = arith.mulf %1031, %1035 : vector<2x16xf32>
    %c14_395 = arith.constant 14 : index
    %c0_396 = arith.constant 0 : index
    %1037 = vector.load %arg8[%c14_395, %c0_396] : memref<16x16xf32, #tpu.memory_space<vmem>>, vector<2x16xf32>
    tpu.vector_store %arg8[%c14_395, %c0_396], %1036 {strides = array<i32>} : memref<16x16xf32, #tpu.memory_space<vmem>>, vector<2x16xf32>,
    %c0_397 = arith.constant 0 : index
    %c0_398 = arith.constant 0 : index
    %1038 = vector.load %arg8[%c0_397, %c0_398] : memref<16x16xf32, #tpu.memory_space<vmem>>, vector<16x16xf32>
    %c4_399 = arith.constant 4 : index
    %c0_400 = arith.constant 0 : index
    %c0_401 = arith.constant 0 : index
    %1039 = vector.load %arg1[%c4_399, %c0_400, %c0_401] : memref<5x16x512xf32, #tpu.memory_space<vmem>>, vector<1x16x512xf32>
    %1040 = vector.shape_cast %1039 : vector<1x16x512xf32> to vector<16x512xf32>
    %cst_402 = arith.constant dense<0.000000e+00> : vector<16x512xf32>
    %1041 = tpu.matmul %1038, %1040, %cst_402 {dimension_numbers = #tpu.dot_dimension_numbers<[1], [0], [0], [1], [0, 0, 1, 1], [], []>} : vector<16x16xf32>, vector<16x512xf32>, vector<16x512xf32> -> vector<16x512xf32>
    %c4_403 = arith.constant 4 : index
    %c0_404 = arith.constant 0 : index
    %c0_405 = arith.constant 0 : index
    %1042 = vector.load %arg3[%c4_403, %c0_404, %c0_405] : memref<5x1x512xf32, #tpu.memory_space<vmem>>, vector<1x1x512xf32>
    %1043 = vector.shape_cast %1042 : vector<1x1x512xf32> to vector<1x512xf32>
    %1044 = vector.broadcast %1043 : vector<1x512xf32> to vector<16x512xf32>
    %1045 = arith.addf %1041, %1044 : vector<16x512xf32>
    %c0_406 = arith.constant 0 : index
    %c0_407 = arith.constant 0 : index
    %1046 = vector.load %arg7[%c0_406, %c0_407] : memref<16x512xf32, #tpu.memory_space<vmem>>, vector<16x512xf32>
    tpu.vector_store %arg7[%c0_406, %c0_407], %1045 {strides = array<i32>} : memref<16x512xf32, #tpu.memory_space<vmem>>, vector<16x512xf32>,
    %cst_408 = arith.constant 0.000000e+00 : f32
    %1047 = vector.broadcast %cst_408 : f32 to vector<2x16xf32>
    %cst_409 = arith.constant 0.000000e+00 : f32
    %1048 = vector.broadcast %cst_409 : f32 to vector<2x16xf32>
    %c0_410 = arith.constant 0 : index
    %c0_411 = arith.constant 0 : index
    %1049 = vector.load %arg7[%c0_410, %c0_411] : memref<16x512xf32, #tpu.memory_space<vmem>>, vector<2x512xf32>
    %c4_412 = arith.constant 4 : index
    %c0_413 = arith.constant 0 : index
    %c0_414 = arith.constant 0 : index
    %1050 = vector.load %arg2[%c4_412, %c0_413, %c0_414] : memref<5x16x512xf32, #tpu.memory_space<vmem>>, vector<1x16x512xf32>
    %1051 = vector.shape_cast %1050 : vector<1x16x512xf32> to vector<16x512xf32>
    %cst_415 = arith.constant dense<0.000000e+00> : vector<2x512xf32>
    %1052 = tpu.matmul %1047, %1051, %cst_415 {dimension_numbers = #tpu.dot_dimension_numbers<[1], [0], [0], [1], [0, 0, 1, 1], [], []>} : vector<2x16xf32>, vector<16x512xf32>, vector<2x512xf32> -> vector<2x512xf32>
    %1053 = arith.addf %1049, %1052 : vector<2x512xf32>
    %1054 = vector.extract_strided_slice %1053 {offsets = [0, 0], sizes = [2, 16], strides = [1, 1]} : vector<2x512xf32> to vector<2x16xf32>
    %1055 = arith.negf %1054 : vector<2x16xf32>
    %1056 = math.exp %1055 : vector<2x16xf32>
    %cst_416 = arith.constant 1.000000e+00 : f32
    %1057 = vector.broadcast %cst_416 : f32 to vector<2x16xf32>
    %1058 = arith.addf %1057, %1056 : vector<2x16xf32>
    %1059 = arith.divf %1057, %1058 : vector<2x16xf32>
    %1060 = vector.extract_strided_slice %1053 {offsets = [0, 128], sizes = [2, 16], strides = [1, 1]} : vector<2x512xf32> to vector<2x16xf32>
    %1061 = arith.negf %1060 : vector<2x16xf32>
    %1062 = math.exp %1061 : vector<2x16xf32>
    %cst_417 = arith.constant 1.000000e+00 : f32
    %1063 = vector.broadcast %cst_417 : f32 to vector<2x16xf32>
    %1064 = arith.addf %1063, %1062 : vector<2x16xf32>
    %1065 = arith.divf %1063, %1064 : vector<2x16xf32>
    %1066 = vector.extract_strided_slice %1053 {offsets = [0, 256], sizes = [2, 16], strides = [1, 1]} : vector<2x512xf32> to vector<2x16xf32>
    %1067 = math.tanh %1066 : vector<2x16xf32>
    %1068 = vector.extract_strided_slice %1053 {offsets = [0, 384], sizes = [2, 16], strides = [1, 1]} : vector<2x512xf32> to vector<2x16xf32>
    %1069 = arith.negf %1068 : vector<2x16xf32>
    %1070 = math.exp %1069 : vector<2x16xf32>
    %cst_418 = arith.constant 1.000000e+00 : f32
    %1071 = vector.broadcast %cst_418 : f32 to vector<2x16xf32>
    %1072 = arith.addf %1071, %1070 : vector<2x16xf32>
    %1073 = arith.divf %1071, %1072 : vector<2x16xf32>
    %1074 = arith.mulf %1065, %1048 : vector<2x16xf32>
    %1075 = arith.mulf %1059, %1067 : vector<2x16xf32>
    %1076 = arith.addf %1074, %1075 : vector<2x16xf32>
    %1077 = math.tanh %1076 : vector<2x16xf32>
    %1078 = arith.mulf %1073, %1077 : vector<2x16xf32>
    %c0_419 = arith.constant 0 : index
    %c0_420 = arith.constant 0 : index
    %1079 = vector.load %arg8[%c0_419, %c0_420] : memref<16x16xf32, #tpu.memory_space<vmem>>, vector<2x16xf32>
    tpu.vector_store %arg8[%c0_419, %c0_420], %1078 {strides = array<i32>} : memref<16x16xf32, #tpu.memory_space<vmem>>, vector<2x16xf32>,
    %c2_421 = arith.constant 2 : index
    %c0_422 = arith.constant 0 : index
    %1080 = vector.load %arg7[%c2_421, %c0_422] : memref<16x512xf32, #tpu.memory_space<vmem>>, vector<2x512xf32>
    %c4_423 = arith.constant 4 : index
    %c0_424 = arith.constant 0 : index
    %c0_425 = arith.constant 0 : index
    %1081 = vector.load %arg2[%c4_423, %c0_424, %c0_425] : memref<5x16x512xf32, #tpu.memory_space<vmem>>, vector<1x16x512xf32>
    %1082 = vector.shape_cast %1081 : vector<1x16x512xf32> to vector<16x512xf32>
    %cst_426 = arith.constant dense<0.000000e+00> : vector<2x512xf32>
    %1083 = tpu.matmul %1078, %1082, %cst_426 {dimension_numbers = #tpu.dot_dimension_numbers<[1], [0], [0], [1], [0, 0, 1, 1], [], []>} : vector<2x16xf32>, vector<16x512xf32>, vector<2x512xf32> -> vector<2x512xf32>
    %1084 = arith.addf %1080, %1083 : vector<2x512xf32>
    %1085 = vector.extract_strided_slice %1084 {offsets = [0, 0], sizes = [2, 16], strides = [1, 1]} : vector<2x512xf32> to vector<2x16xf32>
    %1086 = arith.negf %1085 : vector<2x16xf32>
    %1087 = math.exp %1086 : vector<2x16xf32>
    %cst_427 = arith.constant 1.000000e+00 : f32
    %1088 = vector.broadcast %cst_427 : f32 to vector<2x16xf32>
    %1089 = arith.addf %1088, %1087 : vector<2x16xf32>
    %1090 = arith.divf %1088, %1089 : vector<2x16xf32>
    %1091 = vector.extract_strided_slice %1084 {offsets = [0, 128], sizes = [2, 16], strides = [1, 1]} : vector<2x512xf32> to vector<2x16xf32>
    %1092 = arith.negf %1091 : vector<2x16xf32>
    %1093 = math.exp %1092 : vector<2x16xf32>
    %cst_428 = arith.constant 1.000000e+00 : f32
    %1094 = vector.broadcast %cst_428 : f32 to vector<2x16xf32>
    %1095 = arith.addf %1094, %1093 : vector<2x16xf32>
    %1096 = arith.divf %1094, %1095 : vector<2x16xf32>
    %1097 = vector.extract_strided_slice %1084 {offsets = [0, 256], sizes = [2, 16], strides = [1, 1]} : vector<2x512xf32> to vector<2x16xf32>
    %1098 = math.tanh %1097 : vector<2x16xf32>
    %1099 = vector.extract_strided_slice %1084 {offsets = [0, 384], sizes = [2, 16], strides = [1, 1]} : vector<2x512xf32> to vector<2x16xf32>
    %1100 = arith.negf %1099 : vector<2x16xf32>
    %1101 = math.exp %1100 : vector<2x16xf32>
    %cst_429 = arith.constant 1.000000e+00 : f32
    %1102 = vector.broadcast %cst_429 : f32 to vector<2x16xf32>
    %1103 = arith.addf %1102, %1101 : vector<2x16xf32>
    %1104 = arith.divf %1102, %1103 : vector<2x16xf32>
    %1105 = arith.mulf %1096, %1076 : vector<2x16xf32>
    %1106 = arith.mulf %1090, %1098 : vector<2x16xf32>
    %1107 = arith.addf %1105, %1106 : vector<2x16xf32>
    %1108 = math.tanh %1107 : vector<2x16xf32>
    %1109 = arith.mulf %1104, %1108 : vector<2x16xf32>
    %c2_430 = arith.constant 2 : index
    %c0_431 = arith.constant 0 : index
    %1110 = vector.load %arg8[%c2_430, %c0_431] : memref<16x16xf32, #tpu.memory_space<vmem>>, vector<2x16xf32>
    tpu.vector_store %arg8[%c2_430, %c0_431], %1109 {strides = array<i32>} : memref<16x16xf32, #tpu.memory_space<vmem>>, vector<2x16xf32>,
    %c4_432 = arith.constant 4 : index
    %c0_433 = arith.constant 0 : index
    %1111 = vector.load %arg7[%c4_432, %c0_433] : memref<16x512xf32, #tpu.memory_space<vmem>>, vector<2x512xf32>
    %c4_434 = arith.constant 4 : index
    %c0_435 = arith.constant 0 : index
    %c0_436 = arith.constant 0 : index
    %1112 = vector.load %arg2[%c4_434, %c0_435, %c0_436] : memref<5x16x512xf32, #tpu.memory_space<vmem>>, vector<1x16x512xf32>
    %1113 = vector.shape_cast %1112 : vector<1x16x512xf32> to vector<16x512xf32>
    %cst_437 = arith.constant dense<0.000000e+00> : vector<2x512xf32>
    %1114 = tpu.matmul %1109, %1113, %cst_437 {dimension_numbers = #tpu.dot_dimension_numbers<[1], [0], [0], [1], [0, 0, 1, 1], [], []>} : vector<2x16xf32>, vector<16x512xf32>, vector<2x512xf32> -> vector<2x512xf32>
    %1115 = arith.addf %1111, %1114 : vector<2x512xf32>
    %1116 = vector.extract_strided_slice %1115 {offsets = [0, 0], sizes = [2, 16], strides = [1, 1]} : vector<2x512xf32> to vector<2x16xf32>
    %1117 = arith.negf %1116 : vector<2x16xf32>
    %1118 = math.exp %1117 : vector<2x16xf32>
    %cst_438 = arith.constant 1.000000e+00 : f32
    %1119 = vector.broadcast %cst_438 : f32 to vector<2x16xf32>
    %1120 = arith.addf %1119, %1118 : vector<2x16xf32>
    %1121 = arith.divf %1119, %1120 : vector<2x16xf32>
    %1122 = vector.extract_strided_slice %1115 {offsets = [0, 128], sizes = [2, 16], strides = [1, 1]} : vector<2x512xf32> to vector<2x16xf32>
    %1123 = arith.negf %1122 : vector<2x16xf32>
    %1124 = math.exp %1123 : vector<2x16xf32>
    %cst_439 = arith.constant 1.000000e+00 : f32
    %1125 = vector.broadcast %cst_439 : f32 to vector<2x16xf32>
    %1126 = arith.addf %1125, %1124 : vector<2x16xf32>
    %1127 = arith.divf %1125, %1126 : vector<2x16xf32>
    %1128 = vector.extract_strided_slice %1115 {offsets = [0, 256], sizes = [2, 16], strides = [1, 1]} : vector<2x512xf32> to vector<2x16xf32>
    %1129 = math.tanh %1128 : vector<2x16xf32>
    %1130 = vector.extract_strided_slice %1115 {offsets = [0, 384], sizes = [2, 16], strides = [1, 1]} : vector<2x512xf32> to vector<2x16xf32>
    %1131 = arith.negf %1130 : vector<2x16xf32>
    %1132 = math.exp %1131 : vector<2x16xf32>
    %cst_440 = arith.constant 1.000000e+00 : f32
    %1133 = vector.broadcast %cst_440 : f32 to vector<2x16xf32>
    %1134 = arith.addf %1133, %1132 : vector<2x16xf32>
    %1135 = arith.divf %1133, %1134 : vector<2x16xf32>
    %1136 = arith.mulf %1127, %1107 : vector<2x16xf32>
    %1137 = arith.mulf %1121, %1129 : vector<2x16xf32>
    %1138 = arith.addf %1136, %1137 : vector<2x16xf32>
    %1139 = math.tanh %1138 : vector<2x16xf32>
    %1140 = arith.mulf %1135, %1139 : vector<2x16xf32>
    %c4_441 = arith.constant 4 : index
    %c0_442 = arith.constant 0 : index
    %1141 = vector.load %arg8[%c4_441, %c0_442] : memref<16x16xf32, #tpu.memory_space<vmem>>, vector<2x16xf32>
    tpu.vector_store %arg8[%c4_441, %c0_442], %1140 {strides = array<i32>} : memref<16x16xf32, #tpu.memory_space<vmem>>, vector<2x16xf32>,
    %c6_443 = arith.constant 6 : index
    %c0_444 = arith.constant 0 : index
    %1142 = vector.load %arg7[%c6_443, %c0_444] : memref<16x512xf32, #tpu.memory_space<vmem>>, vector<2x512xf32>
    %c4_445 = arith.constant 4 : index
    %c0_446 = arith.constant 0 : index
    %c0_447 = arith.constant 0 : index
    %1143 = vector.load %arg2[%c4_445, %c0_446, %c0_447] : memref<5x16x512xf32, #tpu.memory_space<vmem>>, vector<1x16x512xf32>
    %1144 = vector.shape_cast %1143 : vector<1x16x512xf32> to vector<16x512xf32>
    %cst_448 = arith.constant dense<0.000000e+00> : vector<2x512xf32>
    %1145 = tpu.matmul %1140, %1144, %cst_448 {dimension_numbers = #tpu.dot_dimension_numbers<[1], [0], [0], [1], [0, 0, 1, 1], [], []>} : vector<2x16xf32>, vector<16x512xf32>, vector<2x512xf32> -> vector<2x512xf32>
    %1146 = arith.addf %1142, %1145 : vector<2x512xf32>
    %1147 = vector.extract_strided_slice %1146 {offsets = [0, 0], sizes = [2, 16], strides = [1, 1]} : vector<2x512xf32> to vector<2x16xf32>
    %1148 = arith.negf %1147 : vector<2x16xf32>
    %1149 = math.exp %1148 : vector<2x16xf32>
    %cst_449 = arith.constant 1.000000e+00 : f32
    %1150 = vector.broadcast %cst_449 : f32 to vector<2x16xf32>
    %1151 = arith.addf %1150, %1149 : vector<2x16xf32>
    %1152 = arith.divf %1150, %1151 : vector<2x16xf32>
    %1153 = vector.extract_strided_slice %1146 {offsets = [0, 128], sizes = [2, 16], strides = [1, 1]} : vector<2x512xf32> to vector<2x16xf32>
    %1154 = arith.negf %1153 : vector<2x16xf32>
    %1155 = math.exp %1154 : vector<2x16xf32>
    %cst_450 = arith.constant 1.000000e+00 : f32
    %1156 = vector.broadcast %cst_450 : f32 to vector<2x16xf32>
    %1157 = arith.addf %1156, %1155 : vector<2x16xf32>
    %1158 = arith.divf %1156, %1157 : vector<2x16xf32>
    %1159 = vector.extract_strided_slice %1146 {offsets = [0, 256], sizes = [2, 16], strides = [1, 1]} : vector<2x512xf32> to vector<2x16xf32>
    %1160 = math.tanh %1159 : vector<2x16xf32>
    %1161 = vector.extract_strided_slice %1146 {offsets = [0, 384], sizes = [2, 16], strides = [1, 1]} : vector<2x512xf32> to vector<2x16xf32>
    %1162 = arith.negf %1161 : vector<2x16xf32>
    %1163 = math.exp %1162 : vector<2x16xf32>
    %cst_451 = arith.constant 1.000000e+00 : f32
    %1164 = vector.broadcast %cst_451 : f32 to vector<2x16xf32>
    %1165 = arith.addf %1164, %1163 : vector<2x16xf32>
    %1166 = arith.divf %1164, %1165 : vector<2x16xf32>
    %1167 = arith.mulf %1158, %1138 : vector<2x16xf32>
    %1168 = arith.mulf %1152, %1160 : vector<2x16xf32>
    %1169 = arith.addf %1167, %1168 : vector<2x16xf32>
    %1170 = math.tanh %1169 : vector<2x16xf32>
    %1171 = arith.mulf %1166, %1170 : vector<2x16xf32>
    %c6_452 = arith.constant 6 : index
    %c0_453 = arith.constant 0 : index
    %1172 = vector.load %arg8[%c6_452, %c0_453] : memref<16x16xf32, #tpu.memory_space<vmem>>, vector<2x16xf32>
    tpu.vector_store %arg8[%c6_452, %c0_453], %1171 {strides = array<i32>} : memref<16x16xf32, #tpu.memory_space<vmem>>, vector<2x16xf32>,
    %c8_454 = arith.constant 8 : index
    %c0_455 = arith.constant 0 : index
    %1173 = vector.load %arg7[%c8_454, %c0_455] : memref<16x512xf32, #tpu.memory_space<vmem>>, vector<2x512xf32>
    %c4_456 = arith.constant 4 : index
    %c0_457 = arith.constant 0 : index
    %c0_458 = arith.constant 0 : index
    %1174 = vector.load %arg2[%c4_456, %c0_457, %c0_458] : memref<5x16x512xf32, #tpu.memory_space<vmem>>, vector<1x16x512xf32>
    %1175 = vector.shape_cast %1174 : vector<1x16x512xf32> to vector<16x512xf32>
    %cst_459 = arith.constant dense<0.000000e+00> : vector<2x512xf32>
    %1176 = tpu.matmul %1171, %1175, %cst_459 {dimension_numbers = #tpu.dot_dimension_numbers<[1], [0], [0], [1], [0, 0, 1, 1], [], []>} : vector<2x16xf32>, vector<16x512xf32>, vector<2x512xf32> -> vector<2x512xf32>
    %1177 = arith.addf %1173, %1176 : vector<2x512xf32>
    %1178 = vector.extract_strided_slice %1177 {offsets = [0, 0], sizes = [2, 16], strides = [1, 1]} : vector<2x512xf32> to vector<2x16xf32>
    %1179 = arith.negf %1178 : vector<2x16xf32>
    %1180 = math.exp %1179 : vector<2x16xf32>
    %cst_460 = arith.constant 1.000000e+00 : f32
    %1181 = vector.broadcast %cst_460 : f32 to vector<2x16xf32>
    %1182 = arith.addf %1181, %1180 : vector<2x16xf32>
    %1183 = arith.divf %1181, %1182 : vector<2x16xf32>
    %1184 = vector.extract_strided_slice %1177 {offsets = [0, 128], sizes = [2, 16], strides = [1, 1]} : vector<2x512xf32> to vector<2x16xf32>
    %1185 = arith.negf %1184 : vector<2x16xf32>
    %1186 = math.exp %1185 : vector<2x16xf32>
    %cst_461 = arith.constant 1.000000e+00 : f32
    %1187 = vector.broadcast %cst_461 : f32 to vector<2x16xf32>
    %1188 = arith.addf %1187, %1186 : vector<2x16xf32>
    %1189 = arith.divf %1187, %1188 : vector<2x16xf32>
    %1190 = vector.extract_strided_slice %1177 {offsets = [0, 256], sizes = [2, 16], strides = [1, 1]} : vector<2x512xf32> to vector<2x16xf32>
    %1191 = math.tanh %1190 : vector<2x16xf32>
    %1192 = vector.extract_strided_slice %1177 {offsets = [0, 384], sizes = [2, 16], strides = [1, 1]} : vector<2x512xf32> to vector<2x16xf32>
    %1193 = arith.negf %1192 : vector<2x16xf32>
    %1194 = math.exp %1193 : vector<2x16xf32>
    %cst_462 = arith.constant 1.000000e+00 : f32
    %1195 = vector.broadcast %cst_462 : f32 to vector<2x16xf32>
    %1196 = arith.addf %1195, %1194 : vector<2x16xf32>
    %1197 = arith.divf %1195, %1196 : vector<2x16xf32>
    %1198 = arith.mulf %1189, %1169 : vector<2x16xf32>
    %1199 = arith.mulf %1183, %1191 : vector<2x16xf32>
    %1200 = arith.addf %1198, %1199 : vector<2x16xf32>
    %1201 = math.tanh %1200 : vector<2x16xf32>
    %1202 = arith.mulf %1197, %1201 : vector<2x16xf32>
    %c8_463 = arith.constant 8 : index
    %c0_464 = arith.constant 0 : index
    %1203 = vector.load %arg8[%c8_463, %c0_464] : memref<16x16xf32, #tpu.memory_space<vmem>>, vector<2x16xf32>
    tpu.vector_store %arg8[%c8_463, %c0_464], %1202 {strides = array<i32>} : memref<16x16xf32, #tpu.memory_space<vmem>>, vector<2x16xf32>,
    %c10_465 = arith.constant 10 : index
    %c0_466 = arith.constant 0 : index
    %1204 = vector.load %arg7[%c10_465, %c0_466] : memref<16x512xf32, #tpu.memory_space<vmem>>, vector<2x512xf32>
    %c4_467 = arith.constant 4 : index
    %c0_468 = arith.constant 0 : index
    %c0_469 = arith.constant 0 : index
    %1205 = vector.load %arg2[%c4_467, %c0_468, %c0_469] : memref<5x16x512xf32, #tpu.memory_space<vmem>>, vector<1x16x512xf32>
    %1206 = vector.shape_cast %1205 : vector<1x16x512xf32> to vector<16x512xf32>
    %cst_470 = arith.constant dense<0.000000e+00> : vector<2x512xf32>
    %1207 = tpu.matmul %1202, %1206, %cst_470 {dimension_numbers = #tpu.dot_dimension_numbers<[1], [0], [0], [1], [0, 0, 1, 1], [], []>} : vector<2x16xf32>, vector<16x512xf32>, vector<2x512xf32> -> vector<2x512xf32>
    %1208 = arith.addf %1204, %1207 : vector<2x512xf32>
    %1209 = vector.extract_strided_slice %1208 {offsets = [0, 0], sizes = [2, 16], strides = [1, 1]} : vector<2x512xf32> to vector<2x16xf32>
    %1210 = arith.negf %1209 : vector<2x16xf32>
    %1211 = math.exp %1210 : vector<2x16xf32>
    %cst_471 = arith.constant 1.000000e+00 : f32
    %1212 = vector.broadcast %cst_471 : f32 to vector<2x16xf32>
    %1213 = arith.addf %1212, %1211 : vector<2x16xf32>
    %1214 = arith.divf %1212, %1213 : vector<2x16xf32>
    %1215 = vector.extract_strided_slice %1208 {offsets = [0, 128], sizes = [2, 16], strides = [1, 1]} : vector<2x512xf32> to vector<2x16xf32>
    %1216 = arith.negf %1215 : vector<2x16xf32>
    %1217 = math.exp %1216 : vector<2x16xf32>
    %cst_472 = arith.constant 1.000000e+00 : f32
    %1218 = vector.broadcast %cst_472 : f32 to vector<2x16xf32>
    %1219 = arith.addf %1218, %1217 : vector<2x16xf32>
    %1220 = arith.divf %1218, %1219 : vector<2x16xf32>
    %1221 = vector.extract_strided_slice %1208 {offsets = [0, 256], sizes = [2, 16], strides = [1, 1]} : vector<2x512xf32> to vector<2x16xf32>
    %1222 = math.tanh %1221 : vector<2x16xf32>
    %1223 = vector.extract_strided_slice %1208 {offsets = [0, 384], sizes = [2, 16], strides = [1, 1]} : vector<2x512xf32> to vector<2x16xf32>
    %1224 = arith.negf %1223 : vector<2x16xf32>
    %1225 = math.exp %1224 : vector<2x16xf32>
    %cst_473 = arith.constant 1.000000e+00 : f32
    %1226 = vector.broadcast %cst_473 : f32 to vector<2x16xf32>
    %1227 = arith.addf %1226, %1225 : vector<2x16xf32>
    %1228 = arith.divf %1226, %1227 : vector<2x16xf32>
    %1229 = arith.mulf %1220, %1200 : vector<2x16xf32>
    %1230 = arith.mulf %1214, %1222 : vector<2x16xf32>
    %1231 = arith.addf %1229, %1230 : vector<2x16xf32>
    %1232 = math.tanh %1231 : vector<2x16xf32>
    %1233 = arith.mulf %1228, %1232 : vector<2x16xf32>
    %c10_474 = arith.constant 10 : index
    %c0_475 = arith.constant 0 : index
    %1234 = vector.load %arg8[%c10_474, %c0_475] : memref<16x16xf32, #tpu.memory_space<vmem>>, vector<2x16xf32>
    tpu.vector_store %arg8[%c10_474, %c0_475], %1233 {strides = array<i32>} : memref<16x16xf32, #tpu.memory_space<vmem>>, vector<2x16xf32>,
    %c12_476 = arith.constant 12 : index
    %c0_477 = arith.constant 0 : index
    %1235 = vector.load %arg7[%c12_476, %c0_477] : memref<16x512xf32, #tpu.memory_space<vmem>>, vector<2x512xf32>
    %c4_478 = arith.constant 4 : index
    %c0_479 = arith.constant 0 : index
    %c0_480 = arith.constant 0 : index
    %1236 = vector.load %arg2[%c4_478, %c0_479, %c0_480] : memref<5x16x512xf32, #tpu.memory_space<vmem>>, vector<1x16x512xf32>
    %1237 = vector.shape_cast %1236 : vector<1x16x512xf32> to vector<16x512xf32>
    %cst_481 = arith.constant dense<0.000000e+00> : vector<2x512xf32>
    %1238 = tpu.matmul %1233, %1237, %cst_481 {dimension_numbers = #tpu.dot_dimension_numbers<[1], [0], [0], [1], [0, 0, 1, 1], [], []>} : vector<2x16xf32>, vector<16x512xf32>, vector<2x512xf32> -> vector<2x512xf32>
    %1239 = arith.addf %1235, %1238 : vector<2x512xf32>
    %1240 = vector.extract_strided_slice %1239 {offsets = [0, 0], sizes = [2, 16], strides = [1, 1]} : vector<2x512xf32> to vector<2x16xf32>
    %1241 = arith.negf %1240 : vector<2x16xf32>
    %1242 = math.exp %1241 : vector<2x16xf32>
    %cst_482 = arith.constant 1.000000e+00 : f32
    %1243 = vector.broadcast %cst_482 : f32 to vector<2x16xf32>
    %1244 = arith.addf %1243, %1242 : vector<2x16xf32>
    %1245 = arith.divf %1243, %1244 : vector<2x16xf32>
    %1246 = vector.extract_strided_slice %1239 {offsets = [0, 128], sizes = [2, 16], strides = [1, 1]} : vector<2x512xf32> to vector<2x16xf32>
    %1247 = arith.negf %1246 : vector<2x16xf32>
    %1248 = math.exp %1247 : vector<2x16xf32>
    %cst_483 = arith.constant 1.000000e+00 : f32
    %1249 = vector.broadcast %cst_483 : f32 to vector<2x16xf32>
    %1250 = arith.addf %1249, %1248 : vector<2x16xf32>
    %1251 = arith.divf %1249, %1250 : vector<2x16xf32>
    %1252 = vector.extract_strided_slice %1239 {offsets = [0, 256], sizes = [2, 16], strides = [1, 1]} : vector<2x512xf32> to vector<2x16xf32>
    %1253 = math.tanh %1252 : vector<2x16xf32>
    %1254 = vector.extract_strided_slice %1239 {offsets = [0, 384], sizes = [2, 16], strides = [1, 1]} : vector<2x512xf32> to vector<2x16xf32>
    %1255 = arith.negf %1254 : vector<2x16xf32>
    %1256 = math.exp %1255 : vector<2x16xf32>
    %cst_484 = arith.constant 1.000000e+00 : f32
    %1257 = vector.broadcast %cst_484 : f32 to vector<2x16xf32>
    %1258 = arith.addf %1257, %1256 : vector<2x16xf32>
    %1259 = arith.divf %1257, %1258 : vector<2x16xf32>
    %1260 = arith.mulf %1251, %1231 : vector<2x16xf32>
    %1261 = arith.mulf %1245, %1253 : vector<2x16xf32>
    %1262 = arith.addf %1260, %1261 : vector<2x16xf32>
    %1263 = math.tanh %1262 : vector<2x16xf32>
    %1264 = arith.mulf %1259, %1263 : vector<2x16xf32>
    %c12_485 = arith.constant 12 : index
    %c0_486 = arith.constant 0 : index
    %1265 = vector.load %arg8[%c12_485, %c0_486] : memref<16x16xf32, #tpu.memory_space<vmem>>, vector<2x16xf32>
    tpu.vector_store %arg8[%c12_485, %c0_486], %1264 {strides = array<i32>} : memref<16x16xf32, #tpu.memory_space<vmem>>, vector<2x16xf32>,
    %c14_487 = arith.constant 14 : index
    %c0_488 = arith.constant 0 : index
    %1266 = vector.load %arg7[%c14_487, %c0_488] : memref<16x512xf32, #tpu.memory_space<vmem>>, vector<2x512xf32>
    %c4_489 = arith.constant 4 : index
    %c0_490 = arith.constant 0 : index
    %c0_491 = arith.constant 0 : index
    %1267 = vector.load %arg2[%c4_489, %c0_490, %c0_491] : memref<5x16x512xf32, #tpu.memory_space<vmem>>, vector<1x16x512xf32>
    %1268 = vector.shape_cast %1267 : vector<1x16x512xf32> to vector<16x512xf32>
    %cst_492 = arith.constant dense<0.000000e+00> : vector<2x512xf32>
    %1269 = tpu.matmul %1264, %1268, %cst_492 {dimension_numbers = #tpu.dot_dimension_numbers<[1], [0], [0], [1], [0, 0, 1, 1], [], []>} : vector<2x16xf32>, vector<16x512xf32>, vector<2x512xf32> -> vector<2x512xf32>
    %1270 = arith.addf %1266, %1269 : vector<2x512xf32>
    %1271 = vector.extract_strided_slice %1270 {offsets = [0, 0], sizes = [2, 16], strides = [1, 1]} : vector<2x512xf32> to vector<2x16xf32>
    %1272 = arith.negf %1271 : vector<2x16xf32>
    %1273 = math.exp %1272 : vector<2x16xf32>
    %cst_493 = arith.constant 1.000000e+00 : f32
    %1274 = vector.broadcast %cst_493 : f32 to vector<2x16xf32>
    %1275 = arith.addf %1274, %1273 : vector<2x16xf32>
    %1276 = arith.divf %1274, %1275 : vector<2x16xf32>
    %1277 = vector.extract_strided_slice %1270 {offsets = [0, 128], sizes = [2, 16], strides = [1, 1]} : vector<2x512xf32> to vector<2x16xf32>
    %1278 = arith.negf %1277 : vector<2x16xf32>
    %1279 = math.exp %1278 : vector<2x16xf32>
    %cst_494 = arith.constant 1.000000e+00 : f32
    %1280 = vector.broadcast %cst_494 : f32 to vector<2x16xf32>
    %1281 = arith.addf %1280, %1279 : vector<2x16xf32>
    %1282 = arith.divf %1280, %1281 : vector<2x16xf32>
    %1283 = vector.extract_strided_slice %1270 {offsets = [0, 256], sizes = [2, 16], strides = [1, 1]} : vector<2x512xf32> to vector<2x16xf32>
    %1284 = math.tanh %1283 : vector<2x16xf32>
    %1285 = vector.extract_strided_slice %1270 {offsets = [0, 384], sizes = [2, 16], strides = [1, 1]} : vector<2x512xf32> to vector<2x16xf32>
    %1286 = arith.negf %1285 : vector<2x16xf32>
    %1287 = math.exp %1286 : vector<2x16xf32>
    %cst_495 = arith.constant 1.000000e+00 : f32
    %1288 = vector.broadcast %cst_495 : f32 to vector<2x16xf32>
    %1289 = arith.addf %1288, %1287 : vector<2x16xf32>
    %1290 = arith.divf %1288, %1289 : vector<2x16xf32>
    %1291 = arith.mulf %1282, %1262 : vector<2x16xf32>
    %1292 = arith.mulf %1276, %1284 : vector<2x16xf32>
    %1293 = arith.addf %1291, %1292 : vector<2x16xf32>
    %1294 = math.tanh %1293 : vector<2x16xf32>
    %1295 = arith.mulf %1290, %1294 : vector<2x16xf32>
    %c14_496 = arith.constant 14 : index
    %c0_497 = arith.constant 0 : index
    %1296 = vector.load %arg8[%c14_496, %c0_497] : memref<16x16xf32, #tpu.memory_space<vmem>>, vector<2x16xf32>
    tpu.vector_store %arg8[%c14_496, %c0_497], %1295 {strides = array<i32>} : memref<16x16xf32, #tpu.memory_space<vmem>>, vector<2x16xf32>,
    %c0_498 = arith.constant 0 : index
    %c0_499 = arith.constant 0 : index
    %1297 = vector.load %arg8[%c0_498, %c0_499] : memref<16x16xf32, #tpu.memory_space<vmem>>, vector<16x16xf32>
    %c0_500 = arith.constant 0 : index
    %c0_501 = arith.constant 0 : index
    %1298 = vector.load %arg4[%c0_500, %c0_501] : memref<16x1xf32, #tpu.memory_space<vmem>>, vector<16x1xf32>
    %cst_502 = arith.constant dense<0.000000e+00> : vector<16x1xf32>
    %1299 = tpu.matmul %1297, %1298, %cst_502 {dimension_numbers = #tpu.dot_dimension_numbers<[1], [0], [0], [1], [0, 0, 1, 1], [], []>} : vector<16x16xf32>, vector<16x1xf32>, vector<16x1xf32> -> vector<16x1xf32>
    %c0_503 = arith.constant 0 : index
    %c0_504 = arith.constant 0 : index
    %1300 = vector.load %arg5[%c0_503, %c0_504] : memref<1x1xf32, #tpu.memory_space<vmem>>, vector<1x1xf32>
    %1301 = vector.broadcast %1300 : vector<1x1xf32> to vector<16x1xf32>
    %1302 = arith.addf %1299, %1301 : vector<16x1xf32>
    %c0_505 = arith.constant 0 : index
    %c0_506 = arith.constant 0 : index
    %1303 = vector.load %arg6[%c0_505, %c0_506] : memref<16x1xf32, #tpu.memory_space<vmem>>, vector<16x1xf32>
    tpu.vector_store %arg6[%c0_505, %c0_506], %1302 {strides = array<i32>} : memref<16x1xf32, #tpu.memory_space<vmem>>, vector<16x1xf32>,
    return
  }
}

</mosaic_0001>

<bundles_post_ra>
// kernel: lstm_forward.1
= control target key start
LH: loop header
LB: loop body
LE: loop exit
PB: predicated region body
PF: predicated region fallthrough
CT: control target
= control target key end

     0   :  { %vm27_vm0 = vcmask 130048   ;;  %v8956_v20 = vmov 0.0   ;;  %vm318_vm13 = vcmask 123904   ;;  %s10284_s1 = inlined_call_operand.vmem [shape: f32[5,16,512], index: 1, kind: input, shape index: {}]   ;;  %s10285_s0 = inlined_call_operand.vmem [shape: f32[16,16], index: 0, kind: input, shape index: {}]   ;;  %s10286_s2 = inlined_call_operand.vmem [shape: f32[5,16,512], index: 2, kind: input, shape index: {}]   ;;  %s10287_s3 = inlined_call_operand.vmem [shape: f32[5,1,512], index: 3, kind: input, shape index: {}]   ;;  %s10288_s4 = inlined_call_operand.vmem [shape: f32[16,1], index: 4, kind: input, shape index: {}]   ;;  %s10289_s5 = inlined_call_operand.<no memory space> [shape: f32[1,1], index: 5, kind: input, shape index: {}]   ;;  %s10290_s6 = inlined_call_operand.vmem [shape: f32[16,1], index: 6, kind: output, shape index: {}]  }
   0x1   :  { %v36_v0 = vld [vmem:[%s10284_s1 + $0x20] sm:$0xff]  ;;  %v39_v1 = vld [vmem:[%s10284_s1 + $0x38] sm:$0xff]  ;;  %v26_v4 = vld [vmem:[%s10285_s0 + $0x8] sm:$0xff] }
   0x2   :  { %v32_v2 = vld [vmem:[%s10284_s1] sm:$0xff]  ;;  %8312 = vmatpush.msra.mxu1 %v36_v0  ;;  %139 = vmatpush.msra.mxu3 %v39_v1  ;;  %v35_v3 = vld [vmem:[%s10284_s1 + $0x18] sm:$0xff]  ;;  %v37_v5 = vld [vmem:[%s10284_s1 + $0x28] sm:$0xff]  ;;  %29 = vst.msk [vmem:[#allocation3 + $0x8] sm:$0xff] %vm27_vm0, %v26_v4 }
   0x3   :  { %70 = vmatpush.msra.mxu0 %v36_v0  ;;  %v25_v6 = vld [vmem:[%s10285_s0] sm:$0xff]  ;;  %v38_v7 = vld [vmem:[%s10284_s1 + $0x30] sm:$0xff]  ;;  %v33_v8 = vld [vmem:[%s10284_s1 + $0x8] sm:$0xff] }
   0x4   :  { %8313 = vmatpush.msra.mxu1 %v32_v2  ;;  %140 = vmatpush.msra.mxu3 %v35_v3  ;;  %28 = vst.msk [vmem:[#allocation3] sm:$0xff] %vm27_vm0, %v25_v6  ;;  %v9024_v9 = vld [vmem:[%s10286_s2 + $0x20] sm:$0xff]  ;;  %v34_v10 = vld [vmem:[%s10284_s1 + $0x10] sm:$0xff]  ;;  %v9037_v12 = vld [vmem:[%s10286_s2 + $0x38] sm:$0xff] }
   0x5   :  { %71 = vmatpush.msra.mxu0 %v32_v2  ;;  %v9032_v11 = vld [vmem:[%s10286_s2] sm:$0xff]  ;;  %116 = vmatpush.msra.mxu2 %v38_v7  ;;  %v9043_v13 = vld [vmem:[%s10286_s2 + $0x18] sm:$0xff]  ;;  %v9048_v14 = vld [vmem:[%s10286_s2 + $0x30] sm:$0xff] }
   0x6   :  { %93 = vmatpush.msrb.mxu1 %v37_v5  ;;  %245 = vmatpush.msrb.mxu3 %v9037_v12  ;;  %v9055_v15 = vld [vmem:[%s10286_s2 + $0x10] sm:$0xff]  ;;  %v9062_v17 = vld [vmem:[%s10286_s2 + $0x28] sm:$0xff]  ;;  %v40_v21 = vld [vmem:[%s10287_s3] sm:$0xf] }
   0x7   :  { %185 = vmatpush.msrb.mxu0 %v9024_v9  ;;  %117 = vmatpush.msra.mxu2 %v34_v10  ;;  %v9071_v19 = vld [vmem:[%s10286_s2 + $0x8] sm:$0xff]  ;;  %v42_v22 = vperm.slane %v40_v21, 0  ;;  %v45_v27 = vperm.slane %v40_v21, 3  ;;  %v43_v28 = vperm.slane %v40_v21, 1  ;;  %v44_v29 = vperm.slane %v40_v21, 2 }
   0x8   :  { %94 = vmatpush.msrb.mxu1 %v33_v8  ;;  %246 = vmatpush.msrb.mxu3 %v9043_v13 }
   0x9   :  { %186 = vmatpush.msrb.mxu0 %v9032_v11  ;;  %225 = vmatpush.msrb.mxu2 %v9048_v14  ;;  %v31_v16 = vld [vmem:[#allocation3 + $0x8] sm:$0xff] }
   0xa   :  { %7719 = vmatmul.msk.f32.vlgmr.msra.gmra.mxu1 %vm27_vm0, %v31_v16 }
   0xb   :  { %v30_v18 = vld [vmem:[#allocation3] sm:$0xff]  ;;  %226 = vmatpush.msrb.mxu2 %v9055_v15  ;;  %205 = vmatpush.msra.mxu1 %v9062_v17 }
   0xc   :  { %7724 = vmatmul.msk.f32.vlgmr.msra.gmra.mxu3 %vm27_vm0, %v30_v18  ;;  %7718 = vmatmul.msk.f32.vlgmr.msra.gmra.mxu0 %vm27_vm0, %v30_v18 }
   0xd   :  { %7722 = vmatmul.msk.f32.vlgmr.msra.gmra.mxu2 %vm27_vm0, %v30_v18  ;;  %349 = vmatpush.msra.mxu0 %v9024_v9 }
   0xe   :  { %389 = vmatpush.msra.mxu2 %v9048_v14  ;;  %206 = vmatpush.msra.mxu1 %v9071_v19 }
   0xf   :  { %409 = vmatpush.msra.mxu3 %v9037_v12  ;;  %350 = vmatpush.msra.mxu0 %v9032_v11 }
  0x10   :  { %390 = vmatpush.msra.mxu2 %v9055_v15 }
  0x11   :  { %410 = vmatpush.msra.mxu3 %v9043_v13 }
  0x12   :  { %7720 = vmatmul.msk.f32.vlgmr.msrb.gmra.mxu1 %vm27_vm0, %v30_v18 }
  0x13   :  { %369 = vmatpush.msrb.mxu1 %v9062_v17 }
  0x14   :  { %7725 = vmatmul.msk.f32.gmra.mxu3 %vm27_vm0, %v31_v16  ;;  %187 = vmatmul.f32.vlgmr.msrb.gmra.mxu0 %v8956_v20 }
  0x15   :  { %7723 = vmatmul.msk.f32.gmra.mxu2 %vm27_vm0, %v31_v16  ;;  %529 = vmatpush.msrb.mxu0 %v9024_v9 }
  0x16   :  { %370 = vmatpush.msrb.mxu1 %v9071_v19 }
  0x17   :  { %530 = vmatpush.msrb.mxu0 %v9032_v11 }
  0x1a   :  { %7721 = vmatmul.msk.f32.gmra.mxu1 %vm27_vm0, %v31_v16 }
  0x1c   :  { %247 = vmatmul.f32.vlgmr.msrb.gmra.mxu3 %v8956_v20 }
  0x1d   :  { %227 = vmatmul.f32.vlgmr.msrb.gmra.mxu2 %v8956_v20  ;;  %589 = vmatpush.msrb.mxu3 %v9037_v12 }
  0x1e   :  { %569 = vmatpush.msrb.mxu2 %v9048_v14 }
  0x1f   :  { %590 = vmatpush.msrb.mxu3 %v9043_v13 }
  0x20   :  { %570 = vmatpush.msrb.mxu2 %v9055_v15 }
  0x22   :  { %207 = vmatmul.f32.vlgmr.msra.gmra.mxu1 %v8956_v20 }
  0x23   :  { %549 = vmatpush.msra.mxu1 %v9062_v17 }
  0x25   :  { %550 = vmatpush.msra.mxu1 %v9071_v19 }
  0x87   :  { %v76_v23 = vpop.f32.mrf.mxu1 }
  0x88   :  { %v77_v24 = vadd.f32 %v76_v23, %v42_v22 }
  0x89   :  { %v73_v25 = vpop.f32.mrf.mxu0 }
  0x8a   :  { %v74_v26 = vadd.f32 %v73_v25, %v42_v22  ;;  %152 = vst [vmem:[#allocation2 + $0x8] sm:$0xff] %v77_v24 }
  0x8c   :  { %148 = vst [vmem:[#allocation2 + $0x30] sm:$0xff] %v74_v26 }
  0x8f   :  { %v142_v30 = vpop.f32.mrf.mxu3  ;;  %v96_v32 = vpop.f32.mrf.mxu1 }
  0x90   :  { %v143_v31 = vadd.f32 %v142_v30, %v45_v27  ;;  %v119_v33 = vpop.f32.mrf.mxu2  ;;  %v97_v34 = vadd.f32 %v96_v32, %v43_v28 }
  0x91   :  { %v188_v35 = vpop.f32.mrf.mxu0  ;;  %v120_v36 = vadd.f32 %v119_v33, %v44_v29 }
  0x92   :  { %151 = vst [vmem:[#allocation2 + $0x10] sm:$0xff] %v143_v31 }
  0x93   :  { %149 = vst [vmem:[#allocation2] sm:$0xff] %v97_v34  ;;  %v156_v37 = vld [vmem:[#allocation2 + $0x30] sm:$0x3] }
  0x94   :  { %v251_v38 = vadd.f32 %v188_v35, %v156_v37  ;;  %150 = vst [vmem:[#allocation2 + $0x18] sm:$0xff] %v120_v36 }
  0x96   :  { %v7726_v39 = vmul.f32 -1.442695, %v251_v38 }
  0x97   :  { %v145_v40 = vpop.f32.mrf.mxu3  ;;  %v99_v42 = vpop.f32.mrf.mxu1 }
  0x98   :  { %8316 = vpow2.f32 %v7726_v39  ;;  %v146_v41 = vadd.f32 %v145_v40, %v45_v27  ;;  %v122_v43 = vpop.f32.mrf.mxu2  ;;  %v100_v44 = vadd.f32 %v99_v42, %v43_v28 }
  0x99   :  { %v123_v45 = vadd.f32 %v122_v43, %v44_v29  ;;  %v159_v46 = vld [vmem:[#allocation2 + $0x10] sm:$0x3] }
  0x9a   :  { %155 = vst [vmem:[#allocation2 + $0x38] sm:$0xff] %v146_v41  ;;  %v157_v51 = vld [vmem:[#allocation2] sm:$0x3] }
  0x9b   :  { %153 = vst [vmem:[#allocation2 + $0x20] sm:$0xff] %v100_v44  ;;  %v158_v63 = vld [vmem:[#allocation2 + $0x18] sm:$0x3] }
  0x9c   :  { %154 = vst [vmem:[#allocation2 + $0x28] sm:$0xff] %v123_v45 }
  0x9e   :  { %v8317_v47 = vpop.eup %8316 }
  0x9f   :  { %v258_v48 = vadd.f32 1.0, %v8317_v47  ;;  %v248_v49 = vpop.f32.mrf.mxu3  ;;  %v208_v52 = vpop.f32.mrf.mxu1 }
  0xa0   :  { %v254_v50 = vadd.f32 %v248_v49, %v159_v46  ;;  %v252_v53 = vadd.f32 %v208_v52, %v157_v51  ;;  %v228_v0 = vpop.f32.mrf.mxu2  ;;  %v320_v49 = vld [vmem:[#allocation2 + $0x30] sm:$0xc] }
  0xa1   :  { %8318 = vrcp.f32 %v258_v48  ;;  %v253_v2 = vadd.f32 %v228_v0, %v158_v63  ;;  %vm264_vm1 = vweird.f32 %v258_v48  ;;  %v268_v5 = vand.u32 2147483647, %v258_v48 }
  0xa2   :  { %v7728_v54 = vmul.f32 -1.442695, %v254_v50  ;;  %v7727_v55 = vmul.f32 -1.442695, %v252_v53  ;;  %v270_v6 = vand.u32 2147483648, %v258_v48 }
  0xa3   :  { %vm269_vm4 = vcmp.eq.f32.partialorder %v268_v5, 8.507059e+37  ;;  %v321_v50 = vld [vmem:[#allocation2] sm:$0xc] }
  0xa4   :  { %8320 = vpow2.f32 %v7728_v54  ;;  %v271_v22 = vor.u32 1.1754944e-38, %v270_v6 }
  0xa5   :  { %8322 = vpow2.f32 %v7727_v55 }
  0xa7   :  { %v8319_v56 = vpop.eup %8318 }
  0xa8   :  { %v260_v57 = vmul.f32 %v8319_v56, %v258_v48  ;;  %vm265_vm2 = vweird.f32 %v8319_v56 }
  0xa9   :  { %vm9103_vm3 = vmor %vm264_vm1, %vm265_vm2 }
  0xaa   :  { %v8321_v58 = vpop.eup %8320  ;;  %v261_v62 = vsub.f32 1.0, %v260_v57  ;;  %v323_v57 = vld [vmem:[#allocation2 + $0x10] sm:$0xc] }
  0xab   :  { %v8323_v59 = vpop.eup %8322  ;;  %v297_v60 = vadd.f32 1.0, %v8321_v58 }
  0xac   :  { %v277_v61 = vadd.f32 1.0, %v8323_v59  ;;  %v262_v1 = vmul.f32 %v8319_v56, %v261_v62 }
  0xad   :  { %8324 = vrcp.f32 %v297_v60  ;;  %vm303_vm9 = vweird.f32 %v297_v60  ;;  %v309_v38 = vand.u32 2147483648, %v297_v60  ;;  %v307_v39 = vand.u32 2147483647, %v297_v60 }
  0xae   :  { %8326 = vrcp.f32 %v277_v61  ;;  %v263_v8 = vadd.f32 %v8319_v56, %v262_v1  ;;  %v289_v21 = vand.u32 2147483648, %v277_v61  ;;  %v287_v25 = vand.u32 2147483647, %v277_v61 }
  0xaf   :  { %8328 = vtanh.f32 %v253_v2  ;;  %vm283_vm6 = vweird.f32 %v277_v61  ;;  %v310_v41 = vor.u32 1.1754944e-38, %v309_v38  ;;  %vm308_vm12 = vcmp.eq.f32.partialorder %v307_v39, 8.507059e+37 }
  0xb0   :  { %v267_v24 = vsel %vm9103_vm3, %v8319_v56, %v263_v8  ;;  %v290_v29 = vor.u32 1.1754944e-38, %v289_v21  ;;  %vm288_vm8 = vcmp.eq.f32.partialorder %v287_v25, 8.507059e+37 }
  0xb1   :  { %v272_v30 = vsel %vm269_vm4, %v271_v22, %v267_v24 }
  0xb3   :  { %v8325_v3 = vpop.eup %8324 }
  0xb4   :  { %v8327_v4 = vpop.eup %8326  ;;  %v299_v10 = vmul.f32 %v8325_v3, %v297_v60  ;;  %vm304_vm10 = vweird.f32 %v8325_v3 }
  0xb5   :  { %v279_v7 = vmul.f32 %v8327_v4, %v277_v61  ;;  %vm284_vm5 = vweird.f32 %v8327_v4  ;;  %v8329_v28 = vpop.eup %8328  ;;  %vm305_vm11 = vmor %vm303_vm9, %vm304_vm10 }
  0xb6   :  { %v300_v26 = vsub.f32 1.0, %v299_v10  ;;  %vm285_vm7 = vmor %vm283_vm6, %vm284_vm5  ;;  %v314_v35 = vmul.f32 %v8329_v28, %v272_v30 }
  0xb7   :  { %v280_v18 = vsub.f32 1.0, %v279_v7 }
  0xb8   :  { %v301_v32 = vmul.f32 %v8325_v3, %v300_v26 }
  0xb9   :  { %v281_v23 = vmul.f32 %v8327_v4, %v280_v18 }
  0xba   :  { %v302_v37 = vadd.f32 %v8325_v3, %v301_v32 }
  0xbb   :  { %v282_v27 = vadd.f32 %v8327_v4, %v281_v23 }
  0xbc   :  { %v306_v40 = vsel %vm305_vm11, %v8325_v3, %v302_v37  ;;  %v322_v3 = vld [vmem:[#allocation2 + $0x18] sm:$0xc]  ;;  %vm497_vm11 = vcmask 125954  }
  0xbd   :  { %v286_v31 = vsel %vm285_vm7, %v8327_v4, %v282_v27  ;;  %v311_v43 = vsel %vm308_vm12, %v310_v41, %v306_v40 }
  0xbe   :  { %v291_v33 = vsel %vm288_vm8, %v290_v29, %v286_v31 }
  0xbf   :  { %v313_v34 = vmul.f32 0.0, %v291_v33 }
  0xc1   :  { %v9109_v36 = vadd.f32 %v314_v35, %v313_v34 }
  0xc3   :  { %8330 = vtanh.f32 %v9109_v36  ;;  %v490_v32 = vrot.slane %v9109_v36, 6 }
  0xc9   :  { %v8331_v42 = vpop.eup %8330 }
  0xca   :  { %v317_v44 = vmul.f32 %v8331_v42, %v311_v43 }
  0xcc   :  { %319 = vst.msk [vmem:[#allocation3] sm:$0x3] %vm318_vm13, %v317_v44  ;;  %7729 = vmatmul.msk.f32.vlgmr.msra.gmra.mxu0 %vm27_vm0, %v317_v44  ;;  %7730 = vmatmul.msk.f32.vlgmr.msrb.gmra.mxu1 %vm27_vm0, %v317_v44 }
  0xcd   :  { %7731 = vmatmul.msk.f32.vlgmr.msra.gmra.mxu2 %vm27_vm0, %v317_v44  ;;  %7732 = vmatmul.msk.f32.vlgmr.msra.gmra.mxu3 %vm27_vm0, %v317_v44 }
  0xce   :  { %709 = vmatpush.msra.mxu0 %v9024_v9  ;;  %729 = vmatpush.msrb.mxu1 %v9062_v17 }
  0xcf   :  { %749 = vmatpush.msra.mxu2 %v9048_v14  ;;  %769 = vmatpush.msra.mxu3 %v9037_v12 }
  0xd0   :  { %710 = vmatpush.msra.mxu0 %v9032_v11  ;;  %730 = vmatpush.msrb.mxu1 %v9071_v19 }
  0xd1   :  { %750 = vmatpush.msra.mxu2 %v9055_v15  ;;  %770 = vmatpush.msra.mxu3 %v9043_v13 }
 0x149   :  { %v352_v45 = vpop.f32.mrf.mxu0  ;;  %v372_v46 = vpop.f32.mrf.mxu1 }
 0x14a   :  { %v419_v47 = vrot.slane %v352_v45, 6  ;;  %v420_v48 = vrot.slane %v372_v46, 6 }
 0x14c   :  { %v427_v51 = vadd.f32 %v419_v47, %v320_v49  ;;  %v428_v52 = vadd.f32 %v420_v48, %v321_v50 }
 0x14e   :  { %v7733_v53 = vmul.f32 -1.442695, %v427_v51  ;;  %v7734_v54 = vmul.f32 -1.442695, %v428_v52 }
 0x150   :  { %8332 = vpow2.f32 %v7733_v53  ;;  %v412_v55 = vpop.f32.mrf.mxu3  ;;  %v392_v0 = vpop.f32.mrf.mxu2 }
 0x151   :  { %8334 = vpow2.f32 %v7734_v54  ;;  %v422_v56 = vrot.slane %v412_v55, 6  ;;  %v421_v1 = vrot.slane %v392_v0, 6 }
 0x153   :  { %v430_v58 = vadd.f32 %v422_v56, %v323_v57  ;;  %v429_v6 = vadd.f32 %v421_v1, %v322_v3  ;;  %v499_v57 = vld [vmem:[#allocation2 + $0x30] sm:$0x30] }
 0x154   :  { %v502_v1 = vld [vmem:[#allocation2 + $0x10] sm:$0x30] }
 0x155   :  { %v7735_v59 = vmul.f32 -1.442695, %v430_v58  ;;  %v500_v58 = vld [vmem:[#allocation2] sm:$0x30] }
 0x156   :  { %v8333_v60 = vpop.eup %8332 }
 0x157   :  { %v8335_v61 = vpop.eup %8334  ;;  %v434_v62 = vadd.f32 1.0, %v8333_v60  ;;  %8336 = vpow2.f32 %v7735_v59 }
 0x158   :  { %v453_v63 = vadd.f32 1.0, %v8335_v61 }
 0x159   :  { %8338 = vrcp.f32 %v434_v62  ;;  %v446_v21 = vand.u32 2147483648, %v434_v62  ;;  %v444_v24 = vand.u32 2147483647, %v434_v62  ;;  %vm440_vm1 = vweird.f32 %v434_v62 }
 0x15a   :  { %8340 = vrcp.f32 %v453_v63  ;;  %v465_v22 = vand.u32 2147483648, %v453_v63  ;;  %v463_v26 = vand.u32 2147483647, %v453_v63  ;;  %vm459_vm2 = vweird.f32 %v453_v63 }
 0x15b   :  { %v447_v29 = vor.u32 1.1754944e-38, %v446_v21  ;;  %vm445_vm5 = vcmp.eq.f32.partialorder %v444_v24, 8.507059e+37 }
 0x15c   :  { %v466_v33 = vor.u32 1.1754944e-38, %v465_v22  ;;  %vm464_vm6 = vcmp.eq.f32.partialorder %v463_v26, 8.507059e+37 }
 0x15d   :  { %v8337_v2 = vpop.eup %8336 }
 0x15e   :  { %v473_v4 = vadd.f32 1.0, %v8337_v2 }
 0x15f   :  { %v8339_v5 = vpop.eup %8338 }
 0x160   :  { %v8341_v7 = vpop.eup %8340  ;;  %v436_v8 = vmul.f32 %v8339_v5, %v434_v62  ;;  %8342 = vrcp.f32 %v473_v4  ;;  %vm441_vm14 = vweird.f32 %v8339_v5  ;;  %v485_v36 = vand.u32 2147483648, %v473_v4 }
 0x161   :  { %v455_v10 = vmul.f32 %v8341_v7, %v453_v63  ;;  %8344 = vtanh.f32 %v429_v6  ;;  %vm460_vm15 = vweird.f32 %v8341_v7  ;;  %vm442_vm3 = vmor %vm440_vm1, %vm441_vm14  ;;  %vm479_vm8 = vweird.f32 %v473_v4 }
 0x162   :  { %v437_v16 = vsub.f32 1.0, %v436_v8  ;;  %vm461_vm4 = vmor %vm459_vm2, %vm460_vm15  ;;  %v483_v46 = vand.u32 2147483647, %v473_v4  ;;  %v486_v48 = vor.u32 1.1754944e-38, %v485_v36 }
 0x163   :  { %v456_v18 = vsub.f32 1.0, %v455_v10 }
 0x164   :  { %v438_v23 = vmul.f32 %v8339_v5, %v437_v16  ;;  %vm484_vm10 = vcmp.eq.f32.partialorder %v483_v46, 8.507059e+37 }
 0x165   :  { %v457_v25 = vmul.f32 %v8341_v7, %v456_v18  ;;  %v501_v18 = vld [vmem:[#allocation2 + $0x18] sm:$0x30] }
 0x166   :  { %v8343_v27 = vpop.eup %8342  ;;  %v439_v28 = vadd.f32 %v8339_v5, %v438_v23 }
 0x167   :  { %v458_v30 = vadd.f32 %v8341_v7, %v457_v25  ;;  %v475_v31 = vmul.f32 %v8343_v27, %v473_v4  ;;  %v8345_v35 = vpop.eup %8344  ;;  %vm480_vm7 = vweird.f32 %v8343_v27 }
 0x168   :  { %v443_v34 = vsel %vm442_vm3, %v8339_v5, %v439_v28  ;;  %vm481_vm9 = vmor %vm479_vm8, %vm480_vm7 }
 0x169   :  { %v448_v37 = vsel %vm445_vm5, %v447_v29, %v443_v34  ;;  %v462_v38 = vsel %vm461_vm4, %v8341_v7, %v458_v30  ;;  %v476_v39 = vsub.f32 1.0, %v475_v31 }
 0x16a   :  { %v467_v40 = vsel %vm464_vm6, %v466_v33, %v462_v38  ;;  %v493_v41 = vmul.f32 %v8345_v35, %v448_v37 }
 0x16b   :  { %v492_v42 = vmul.f32 %v490_v32, %v467_v40  ;;  %v477_v43 = vmul.f32 %v8343_v27, %v476_v39 }
 0x16d   :  { %v9126_v44 = vadd.f32 %v493_v41, %v492_v42  ;;  %v478_v45 = vadd.f32 %v8343_v27, %v477_v43 }
 0x16f   :  { %8346 = vtanh.f32 %v9126_v44  ;;  %v482_v47 = vsel %vm481_vm9, %v8343_v27, %v478_v45  ;;  %v670_v41 = vrot.slane %v9126_v44, 6 }
 0x170   :  { %v487_v50 = vsel %vm484_vm10, %v486_v48, %v482_v47  ;;  %vm677_vm10 = vcmask 128004  }
 0x175   :  { %v8347_v49 = vpop.eup %8346 }
 0x176   :  { %v496_v51 = vmul.f32 %v8347_v49, %v487_v50 }
 0x178   :  { %498 = vst.msk [vmem:[#allocation3] sm:$0xc] %vm497_vm11, %v496_v51  ;;  %v512_v52 = vrot.slane %v496_v51, 2 }
 0x17a   :  { %7736 = vmatmul.msk.f32.vlgmr.msrb.gmra.mxu0 %vm27_vm0, %v512_v52  ;;  %7737 = vmatmul.msk.f32.vlgmr.msra.gmra.mxu1 %vm27_vm0, %v512_v52 }
 0x17b   :  { %7738 = vmatmul.msk.f32.vlgmr.msrb.gmra.mxu2 %vm27_vm0, %v512_v52  ;;  %7739 = vmatmul.msk.f32.vlgmr.msrb.gmra.mxu3 %vm27_vm0, %v512_v52 }
 0x17c   :  { %889 = vmatpush.msrb.mxu0 %v9024_v9  ;;  %909 = vmatpush.msra.mxu1 %v9062_v17 }
 0x17d   :  { %929 = vmatpush.msrb.mxu2 %v9048_v14  ;;  %949 = vmatpush.msrb.mxu3 %v9037_v12 }
 0x17e   :  { %890 = vmatpush.msrb.mxu0 %v9032_v11  ;;  %910 = vmatpush.msra.mxu1 %v9071_v19 }
 0x17f   :  { %930 = vmatpush.msrb.mxu2 %v9055_v15  ;;  %950 = vmatpush.msrb.mxu3 %v9043_v13 }
 0x1f7   :  { %v532_v53 = vpop.f32.mrf.mxu0  ;;  %v552_v54 = vpop.f32.mrf.mxu1 }
 0x1f8   :  { %v599_v55 = vrot.slane %v532_v53, 4  ;;  %v600_v56 = vrot.slane %v552_v54, 4 }
 0x1fa   :  { %v607_v59 = vadd.f32 %v599_v55, %v499_v57  ;;  %v608_v60 = vadd.f32 %v600_v56, %v500_v58 }
 0x1fc   :  { %v7740_v61 = vmul.f32 -1.442695, %v607_v59  ;;  %v7741_v62 = vmul.f32 -1.442695, %v608_v60 }
 0x1fe   :  { %8348 = vpow2.f32 %v7740_v61  ;;  %v592_v63 = vpop.f32.mrf.mxu3  ;;  %v572_v8 = vpop.f32.mrf.mxu2 }
 0x1ff   :  { %8350 = vpow2.f32 %v7741_v62  ;;  %v602_v0 = vrot.slane %v592_v63, 4  ;;  %v601_v10 = vrot.slane %v572_v8, 4 }
 0x201   :  { %v610_v2 = vadd.f32 %v602_v0, %v502_v1  ;;  %v609_v23 = vadd.f32 %v601_v10, %v501_v18  ;;  %v679_v1 = vld [vmem:[#allocation2 + $0x30] sm:$0xc0]  ;;  %v681_v18 = vld [vmem:[#allocation2 + $0x18] sm:$0xc0] }
 0x203   :  { %v7742_v3 = vmul.f32 -1.442695, %v610_v2 }
 0x204   :  { %v8349_v4 = vpop.eup %8348 }
 0x205   :  { %v8351_v5 = vpop.eup %8350  ;;  %v614_v6 = vadd.f32 1.0, %v8349_v4  ;;  %8352 = vpow2.f32 %v7742_v3  ;;  %v682_v4 = vld [vmem:[#allocation2 + $0x10] sm:$0xc0] }
 0x206   :  { %v633_v7 = vadd.f32 1.0, %v8351_v5 }
 0x207   :  { %8354 = vrcp.f32 %v614_v6  ;;  %v626_v29 = vand.u32 2147483648, %v614_v6  ;;  %v624_v32 = vand.u32 2147483647, %v614_v6  ;;  %vm620_vm15 = vweird.f32 %v614_v6 }
 0x208   :  { %8356 = vrcp.f32 %v633_v7  ;;  %v645_v30 = vand.u32 2147483648, %v633_v7  ;;  %v643_v34 = vand.u32 2147483647, %v633_v7  ;;  %vm639_vm1 = vweird.f32 %v633_v7 }
 0x209   :  { %v627_v38 = vor.u32 1.1754944e-38, %v626_v29  ;;  %vm625_vm4 = vcmp.eq.f32.partialorder %v624_v32, 8.507059e+37 }
 0x20a   :  { %v646_v42 = vor.u32 1.1754944e-38, %v645_v30  ;;  %vm644_vm5 = vcmp.eq.f32.partialorder %v643_v34, 8.507059e+37 }
 0x20b   :  { %v8353_v16 = vpop.eup %8352 }
 0x20c   :  { %v653_v21 = vadd.f32 1.0, %v8353_v16 }
 0x20d   :  { %v8355_v22 = vpop.eup %8354 }
 0x20e   :  { %v8357_v24 = vpop.eup %8356  ;;  %v616_v25 = vmul.f32 %v8355_v22, %v614_v6  ;;  %8358 = vrcp.f32 %v653_v21  ;;  %vm621_vm12 = vweird.f32 %v8355_v22  ;;  %v665_v44 = vand.u32 2147483648, %v653_v21 }
 0x20f   :  { %v635_v26 = vmul.f32 %v8357_v24, %v633_v7  ;;  %8360 = vtanh.f32 %v609_v23  ;;  %vm640_vm14 = vweird.f32 %v8357_v24  ;;  %vm622_vm2 = vmor %vm620_vm15, %vm621_vm12  ;;  %vm659_vm7 = vweird.f32 %v653_v21 }
 0x210   :  { %v617_v27 = vsub.f32 1.0, %v616_v25  ;;  %vm641_vm3 = vmor %vm639_vm1, %vm640_vm14  ;;  %v663_v54 = vand.u32 2147483647, %v653_v21  ;;  %v666_v56 = vor.u32 1.1754944e-38, %v665_v44 }
 0x211   :  { %v636_v28 = vsub.f32 1.0, %v635_v26 }
 0x212   :  { %v618_v31 = vmul.f32 %v8355_v22, %v617_v27  ;;  %vm664_vm9 = vcmp.eq.f32.partialorder %v663_v54, 8.507059e+37 }
 0x213   :  { %v637_v33 = vmul.f32 %v8357_v24, %v636_v28 }
 0x214   :  { %v8359_v35 = vpop.eup %8358  ;;  %v619_v37 = vadd.f32 %v8355_v22, %v618_v31 }
 0x215   :  { %v638_v39 = vadd.f32 %v8357_v24, %v637_v33  ;;  %v655_v40 = vmul.f32 %v8359_v35, %v653_v21  ;;  %v8361_v45 = vpop.eup %8360  ;;  %vm660_vm6 = vweird.f32 %v8359_v35 }
 0x216   :  { %v623_v43 = vsel %vm622_vm2, %v8355_v22, %v619_v37  ;;  %vm661_vm8 = vmor %vm659_vm7, %vm660_vm6 }
 0x217   :  { %v628_v36 = vsel %vm625_vm4, %v627_v38, %v623_v43  ;;  %v642_v46 = vsel %vm641_vm3, %v8357_v24, %v638_v39  ;;  %v656_v47 = vsub.f32 1.0, %v655_v40 }
 0x218   :  { %v647_v48 = vsel %vm644_vm5, %v646_v42, %v642_v46  ;;  %v673_v49 = vmul.f32 %v8361_v45, %v628_v36 }
 0x219   :  { %v672_v50 = vmul.f32 %v670_v41, %v647_v48  ;;  %v657_v51 = vmul.f32 %v8359_v35, %v656_v47 }
 0x21b   :  { %v9143_v52 = vadd.f32 %v673_v49, %v672_v50  ;;  %v658_v53 = vadd.f32 %v8359_v35, %v657_v51 }
 0x21d   :  { %8362 = vtanh.f32 %v9143_v52  ;;  %v662_v55 = vsel %vm661_vm8, %v8359_v35, %v658_v53  ;;  %v850_v41 = vrot.slane %v9143_v52, 6 }
 0x21e   :  { %v667_v58 = vsel %vm664_vm9, %v666_v56, %v662_v55 }
 0x223   :  { %v8363_v57 = vpop.eup %8362 }
 0x224   :  { %v676_v59 = vmul.f32 %v8363_v57, %v667_v58 }
 0x226   :  { %678 = vst.msk [vmem:[#allocation3] sm:$0x30] %vm677_vm10, %v676_v59  ;;  %v692_v60 = vrot.slane %v676_v59, 4 }
 0x228   :  { %7743 = vmatmul.msk.f32.vlgmr.msra.gmra.mxu0 %vm27_vm0, %v692_v60  ;;  %7744 = vmatmul.msk.f32.vlgmr.msrb.gmra.mxu1 %vm27_vm0, %v692_v60 }
 0x229   :  { %7745 = vmatmul.msk.f32.vlgmr.msra.gmra.mxu2 %vm27_vm0, %v692_v60  ;;  %7746 = vmatmul.msk.f32.vlgmr.msra.gmra.mxu3 %vm27_vm0, %v692_v60 }
 0x22a   :  { %1055 = vmatpush.msra.mxu0 %v9024_v9  ;;  %1075 = vmatpush.msrb.mxu1 %v9062_v17  ;;  %v680_v9 = vld [vmem:[#allocation2] sm:$0xc0] }
 0x22b   :  { %1095 = vmatpush.msra.mxu2 %v9048_v14  ;;  %1115 = vmatpush.msra.mxu3 %v9037_v12 }
 0x22c   :  { %1056 = vmatpush.msra.mxu0 %v9032_v11  ;;  %1076 = vmatpush.msrb.mxu1 %v9071_v19 }
 0x22d   :  { %1096 = vmatpush.msra.mxu2 %v9055_v15  ;;  %1116 = vmatpush.msra.mxu3 %v9043_v13 }
 0x2a5   :  { %v712_v61 = vpop.f32.mrf.mxu0  ;;  %v732_v62 = vpop.f32.mrf.mxu1 }
 0x2a6   :  { %v779_v63 = vrot.slane %v712_v61, 2  ;;  %v780_v0 = vrot.slane %v732_v62, 2  ;;  %v859_v61 = vld [vmem:[#allocation2 + $0x8] sm:$0x3] }
 0x2a8   :  { %v787_v2 = vadd.f32 %v779_v63, %v679_v1  ;;  %v788_v17 = vadd.f32 %v780_v0, %v680_v9  ;;  %v860_v63 = vld [vmem:[#allocation2 + $0x20] sm:$0x3] }
 0x2aa   :  { %v7747_v3 = vmul.f32 -1.442695, %v787_v2  ;;  %v7748_v14 = vmul.f32 -1.442695, %v788_v17 }
 0x2ac   :  { %8364 = vpow2.f32 %v7747_v3  ;;  %v772_v12 = vpop.f32.mrf.mxu3  ;;  %v752_v8 = vpop.f32.mrf.mxu2  ;;  %v862_v3 = vld [vmem:[#allocation2 + $0x38] sm:$0x3] }
 0x2ad   :  { %8366 = vpow2.f32 %v7748_v14  ;;  %v782_v11 = vrot.slane %v772_v12, 2  ;;  %v781_v10 = vrot.slane %v752_v8, 2 }
 0x2af   :  { %v790_v19 = vadd.f32 %v782_v11, %v682_v4  ;;  %v789_v23 = vadd.f32 %v781_v10, %v681_v18 }
 0x2b1   :  { %v7749_v5 = vmul.f32 -1.442695, %v790_v19 }
 0x2b2   :  { %v8365_v15 = vpop.eup %8364 }
 0x2b3   :  { %v8367_v6 = vpop.eup %8366  ;;  %v794_v13 = vadd.f32 1.0, %v8365_v15  ;;  %8368 = vpow2.f32 %v7749_v5 }
 0x2b4   :  { %v813_v7 = vadd.f32 1.0, %v8367_v6 }
 0x2b5   :  { %8370 = vrcp.f32 %v794_v13  ;;  %v806_v29 = vand.u32 2147483648, %v794_v13  ;;  %v804_v32 = vand.u32 2147483647, %v794_v13  ;;  %vm800_vm15 = vweird.f32 %v794_v13 }
 0x2b6   :  { %8372 = vrcp.f32 %v813_v7  ;;  %v825_v30 = vand.u32 2147483648, %v813_v7  ;;  %v823_v34 = vand.u32 2147483647, %v813_v7  ;;  %vm819_vm1 = vweird.f32 %v813_v7 }
 0x2b7   :  { %v807_v38 = vor.u32 1.1754944e-38, %v806_v29  ;;  %vm805_vm4 = vcmp.eq.f32.partialorder %v804_v32, 8.507059e+37 }
 0x2b8   :  { %v826_v42 = vor.u32 1.1754944e-38, %v825_v30  ;;  %vm824_vm5 = vcmp.eq.f32.partialorder %v823_v34, 8.507059e+37 }
 0x2b9   :  { %v8369_v16 = vpop.eup %8368 }
 0x2ba   :  { %v833_v21 = vadd.f32 1.0, %v8369_v16 }
 0x2bb   :  { %v8371_v22 = vpop.eup %8370 }
 0x2bc   :  { %v8373_v24 = vpop.eup %8372  ;;  %v796_v25 = vmul.f32 %v8371_v22, %v794_v13  ;;  %8374 = vrcp.f32 %v833_v21  ;;  %vm801_vm12 = vweird.f32 %v8371_v22  ;;  %v845_v52 = vand.u32 2147483648, %v833_v21 }
 0x2bd   :  { %v815_v26 = vmul.f32 %v8373_v24, %v813_v7  ;;  %8376 = vtanh.f32 %v789_v23  ;;  %vm820_vm14 = vweird.f32 %v8373_v24  ;;  %vm802_vm2 = vmor %vm800_vm15, %vm801_vm12  ;;  %vm839_vm7 = vweird.f32 %v833_v21  ;;  %v861_v7 = vld [vmem:[#allocation2 + $0x28] sm:$0x3] }
 0x2be   :  { %v797_v27 = vsub.f32 1.0, %v796_v25  ;;  %vm821_vm3 = vmor %vm819_vm1, %vm820_vm14  ;;  %v843_v54 = vand.u32 2147483647, %v833_v21  ;;  %v846_v56 = vor.u32 1.1754944e-38, %v845_v52  ;;  %vm857_vm12 = vcmask 130054  }
 0x2bf   :  { %v816_v28 = vsub.f32 1.0, %v815_v26 }
 0x2c0   :  { %v798_v31 = vmul.f32 %v8371_v22, %v797_v27  ;;  %vm844_vm9 = vcmp.eq.f32.partialorder %v843_v54, 8.507059e+37 }
 0x2c1   :  { %v817_v33 = vmul.f32 %v8373_v24, %v816_v28 }
 0x2c2   :  { %v8375_v35 = vpop.eup %8374  ;;  %v799_v37 = vadd.f32 %v8371_v22, %v798_v31 }
 0x2c3   :  { %v818_v39 = vadd.f32 %v8373_v24, %v817_v33  ;;  %v835_v40 = vmul.f32 %v8375_v35, %v833_v21  ;;  %v8377_v45 = vpop.eup %8376  ;;  %vm840_vm6 = vweird.f32 %v8375_v35 }
 0x2c4   :  { %v803_v43 = vsel %vm802_vm2, %v8371_v22, %v799_v37  ;;  %vm841_vm8 = vmor %vm839_vm7, %vm840_vm6 }
 0x2c5   :  { %v808_v36 = vsel %vm805_vm4, %v807_v38, %v803_v43  ;;  %v822_v46 = vsel %vm821_vm3, %v8373_v24, %v818_v39  ;;  %v836_v47 = vsub.f32 1.0, %v835_v40 }
 0x2c6   :  { %v827_v48 = vsel %vm824_vm5, %v826_v42, %v822_v46  ;;  %v853_v49 = vmul.f32 %v8377_v45, %v808_v36 }
 0x2c7   :  { %v852_v50 = vmul.f32 %v850_v41, %v827_v48  ;;  %v837_v51 = vmul.f32 %v8375_v35, %v836_v47 }
 0x2c9   :  { %v9160_v53 = vadd.f32 %v853_v49, %v852_v50  ;;  %v838_v44 = vadd.f32 %v8375_v35, %v837_v51 }
 0x2cb   :  { %8378 = vtanh.f32 %v9160_v53  ;;  %v842_v55 = vsel %vm841_vm8, %v8375_v35, %v838_v44  ;;  %v1018_v39 = vrot.slane %v9160_v53, 6 }
 0x2cc   :  { %v847_v58 = vsel %vm844_vm9, %v846_v56, %v842_v55 }
 0x2d1   :  { %v8379_v57 = vpop.eup %8378 }
 0x2d2   :  { %v856_v59 = vmul.f32 %v8379_v57, %v847_v58 }
 0x2d4   :  { %858 = vst.msk [vmem:[#allocation3] sm:$0xc0] %vm857_vm12, %v856_v59  ;;  %v872_v60 = vrot.slane %v856_v59, 6 }
 0x2d6   :  { %7750 = vmatmul.msk.f32.vlgmr.msrb.gmra.mxu0 %vm27_vm0, %v872_v60  ;;  %7751 = vmatmul.msk.f32.vlgmr.msra.gmra.mxu1 %vm27_vm0, %v872_v60 }
 0x2d7   :  { %7752 = vmatmul.msk.f32.vlgmr.msrb.gmra.mxu2 %vm27_vm0, %v872_v60  ;;  %7753 = vmatmul.msk.f32.vlgmr.msrb.gmra.mxu3 %vm27_vm0, %v872_v60  ;;  %v1026_v60 = vld [vmem:[#allocation2 + $0x8] sm:$0xc] }
 0x353   :  { %v892_v62 = vpop.f32.mrf.mxu0  ;;  %v912_v0 = vpop.f32.mrf.mxu1 }
 0x354   :  { %v955_v1 = vadd.f32 %v892_v62, %v859_v61  ;;  %v956_v9 = vadd.f32 %v912_v0, %v860_v63  ;;  %v1027_v61 = vld [vmem:[#allocation2 + $0x20] sm:$0xc] }
 0x356   :  { %v7754_v2 = vmul.f32 -1.442695, %v955_v1  ;;  %v7755_v17 = vmul.f32 -1.442695, %v956_v9  ;;  %v1212_v9 = vld [vmem:[%s10286_s2 + $0x20] sm:$0xff] }
 0x357   :  { %1234 = vmatpush.msrb.mxu0 %v1212_v9 }
 0x358   :  { %8380 = vpow2.f32 %v7754_v2  ;;  %v1213_v2 = vld [vmem:[%s10286_s2 + $0x28] sm:$0xff] }
 0x359   :  { %8382 = vpow2.f32 %v7755_v17  ;;  %v1208_v17 = vld [vmem:[%s10286_s2] sm:$0xff]  ;;  %1254 = vmatpush.msra.mxu1 %v1213_v2 }
 0x35a   :  { %v952_v14 = vpop.f32.mrf.mxu3  ;;  %v932_v6 = vpop.f32.mrf.mxu2  ;;  %1235 = vmatpush.msrb.mxu0 %v1208_v17 }
 0x35b   :  { %v958_v12 = vadd.f32 %v952_v14, %v862_v3  ;;  %v957_v16 = vadd.f32 %v932_v6, %v861_v7  ;;  %v1209_v14 = vld [vmem:[%s10286_s2 + $0x8] sm:$0xff] }
 0x35c   :  { %1255 = vmatpush.msra.mxu1 %v1209_v14 }
 0x35d   :  { %v7756_v11 = vmul.f32 -1.442695, %v958_v12  ;;  %v1214_v12 = vld [vmem:[%s10286_s2 + $0x30] sm:$0xff] }
 0x35e   :  { %v8381_v4 = vpop.eup %8380  ;;  %1274 = vmatpush.msrb.mxu2 %v1214_v12 }
 0x35f   :  { %v8383_v19 = vpop.eup %8382  ;;  %v962_v5 = vadd.f32 1.0, %v8381_v4  ;;  %8384 = vpow2.f32 %v7756_v11  ;;  %v1215_v11 = vld [vmem:[%s10286_s2 + $0x38] sm:$0xff] }
 0x360   :  { %v981_v15 = vadd.f32 1.0, %v8383_v19  ;;  %1294 = vmatpush.msrb.mxu3 %v1215_v11  ;;  %v1210_v19 = vld [vmem:[%s10286_s2 + $0x10] sm:$0xff] }
 0x361   :  { %8386 = vrcp.f32 %v962_v5  ;;  %v974_v25 = vand.u32 2147483648, %v962_v5  ;;  %v972_v28 = vand.u32 2147483647, %v962_v5  ;;  %vm968_vm1 = vweird.f32 %v962_v5  ;;  %1275 = vmatpush.msrb.mxu2 %v1210_v19 }
 0x362   :  { %8388 = vrcp.f32 %v981_v15  ;;  %v993_v26 = vand.u32 2147483648, %v981_v15  ;;  %v991_v30 = vand.u32 2147483647, %v981_v15  ;;  %vm987_vm2 = vweird.f32 %v981_v15 }
 0x363   :  { %v975_v33 = vor.u32 1.1754944e-38, %v974_v25  ;;  %vm973_vm5 = vcmp.eq.f32.partialorder %v972_v28, 8.507059e+37 }
 0x364   :  { %v994_v37 = vor.u32 1.1754944e-38, %v993_v26  ;;  %vm992_vm6 = vcmp.eq.f32.partialorder %v991_v30, 8.507059e+37 }
 0x365   :  { %v8385_v13 = vpop.eup %8384 }
 0x366   :  { %v1001_v8 = vadd.f32 1.0, %v8385_v13 }
 0x367   :  { %v8387_v10 = vpop.eup %8386 }
 0x368   :  { %v8389_v18 = vpop.eup %8388  ;;  %v964_v21 = vmul.f32 %v8387_v10, %v962_v5  ;;  %8390 = vrcp.f32 %v1001_v8  ;;  %vm969_vm14 = vweird.f32 %v8387_v10  ;;  %v1013_v50 = vand.u32 2147483648, %v1001_v8  ;;  %v1211_v5 = vld [vmem:[%s10286_s2 + $0x18] sm:$0xff] }
 0x369   :  { %v983_v22 = vmul.f32 %v8389_v18, %v981_v15  ;;  %8392 = vtanh.f32 %v957_v16  ;;  %vm988_vm15 = vweird.f32 %v8389_v18  ;;  %vm970_vm3 = vmor %vm968_vm1, %vm969_vm14  ;;  %vm1007_vm8 = vweird.f32 %v1001_v8  ;;  %v1029_v15 = vld [vmem:[#allocation2 + $0x38] sm:$0xc]  ;;  %1295 = vmatpush.msrb.mxu3 %v1211_v5 }
 0x36a   :  { %v965_v23 = vsub.f32 1.0, %v964_v21  ;;  %vm989_vm4 = vmor %vm987_vm2, %vm988_vm15  ;;  %v1011_v51 = vand.u32 2147483647, %v1001_v8  ;;  %v1014_v44 = vor.u32 1.1754944e-38, %v1013_v50 }
 0x36b   :  { %v984_v24 = vsub.f32 1.0, %v983_v22 }
 0x36c   :  { %v966_v27 = vmul.f32 %v8387_v10, %v965_v23  ;;  %vm1012_vm14 = vcmp.eq.f32.partialorder %v1011_v51, 8.507059e+37  ;;  %v1028_v23 = vld [vmem:[#allocation2 + $0x28] sm:$0xc] }
 0x36d   :  { %v985_v29 = vmul.f32 %v8389_v18, %v984_v24 }
 0x36e   :  { %v8391_v31 = vpop.eup %8390  ;;  %v967_v32 = vadd.f32 %v8387_v10, %v966_v27 }
 0x36f   :  { %v986_v34 = vadd.f32 %v8389_v18, %v985_v29  ;;  %v1003_v35 = vmul.f32 %v8391_v31, %v1001_v8  ;;  %v8393_v40 = vpop.eup %8392  ;;  %vm1008_vm7 = vweird.f32 %v8391_v31 }
 0x370   :  { %v971_v38 = vsel %vm970_vm3, %v8387_v10, %v967_v32  ;;  %vm1009_vm9 = vmor %vm1007_vm8, %vm1008_vm7 }
 0x371   :  { %v976_v41 = vsel %vm973_vm5, %v975_v33, %v971_v38  ;;  %v990_v42 = vsel %vm989_vm4, %v8389_v18, %v986_v34  ;;  %v1004_v43 = vsub.f32 1.0, %v1003_v35 }
 0x372   :  { %v995_v45 = vsel %vm992_vm6, %v994_v37, %v990_v42  ;;  %v1021_v36 = vmul.f32 %v8393_v40, %v976_v41 }
 0x373   :  { %v1020_v46 = vmul.f32 %v1018_v39, %v995_v45  ;;  %v1005_v47 = vmul.f32 %v8391_v31, %v1004_v43 }
 0x375   :  { %v9169_v48 = vadd.f32 %v1021_v36, %v1020_v46  ;;  %v1006_v49 = vadd.f32 %v8391_v31, %v1005_v47 }
 0x377   :  { %8394 = vtanh.f32 %v9169_v48  ;;  %v1010_v53 = vsel %vm1009_vm9, %v8391_v31, %v1006_v49  ;;  %v1196_v45 = vrot.slane %v9169_v48, 6 }
 0x378   :  { %v1015_v54 = vsel %vm1012_vm14, %v1014_v44, %v1010_v53 }
 0x37d   :  { %v8395_v52 = vpop.eup %8394 }
 0x37e   :  { %v1024_v55 = vmul.f32 %v8395_v52, %v1015_v54 }
 0x380   :  { %1025 = vst.msk [vmem:[#allocation3 + $0x8] sm:$0x3] %vm318_vm13, %v1024_v55  ;;  %7757 = vmatmul.msk.f32.vlgmr.msra.gmra.mxu0 %vm27_vm0, %v1024_v55  ;;  %7758 = vmatmul.msk.f32.vlgmr.msrb.gmra.mxu1 %vm27_vm0, %v1024_v55 }
 0x381   :  { %7759 = vmatmul.msk.f32.vlgmr.msra.gmra.mxu2 %vm27_vm0, %v1024_v55  ;;  %7760 = vmatmul.msk.f32.vlgmr.msra.gmra.mxu3 %vm27_vm0, %v1024_v55 }
 0x382   :  { %1413 = vmatpush.msra.mxu0 %v1212_v9  ;;  %1433 = vmatpush.msrb.mxu1 %v1213_v2 }
 0x383   :  { %1453 = vmatpush.msra.mxu2 %v1214_v12  ;;  %1473 = vmatpush.msra.mxu3 %v1215_v11 }
 0x384   :  { %1414 = vmatpush.msra.mxu0 %v1208_v17  ;;  %1434 = vmatpush.msrb.mxu1 %v1209_v14  ;;  %v1204_v17 = vld [vmem:[#allocation2 + $0x8] sm:$0x30] }
 0x385   :  { %1454 = vmatpush.msra.mxu2 %v1210_v19  ;;  %1474 = vmatpush.msra.mxu3 %v1211_v5 }
 0x3fd   :  { %v1058_v56 = vpop.f32.mrf.mxu0  ;;  %v1078_v57 = vpop.f32.mrf.mxu1 }
 0x3fe   :  { %v1125_v58 = vrot.slane %v1058_v56, 6  ;;  %v1126_v59 = vrot.slane %v1078_v57, 6 }
 0x400   :  { %v1133_v62 = vadd.f32 %v1125_v58, %v1026_v60  ;;  %v1134_v63 = vadd.f32 %v1126_v59, %v1027_v61 }
 0x402   :  { %v7761_v0 = vmul.f32 -1.442695, %v1133_v62  ;;  %v7762_v1 = vmul.f32 -1.442695, %v1134_v63 }
 0x404   :  { %8396 = vpow2.f32 %v7761_v0  ;;  %v1118_v3 = vpop.f32.mrf.mxu3  ;;  %v1098_v18 = vpop.f32.mrf.mxu2 }
 0x405   :  { %8398 = vpow2.f32 %v7762_v1  ;;  %v1128_v4 = vrot.slane %v1118_v3, 6  ;;  %v1127_v21 = vrot.slane %v1098_v18, 6  ;;  %v1205_v3 = vld [vmem:[#allocation2 + $0x20] sm:$0x30] }
 0x407   :  { %v1136_v6 = vadd.f32 %v1128_v4, %v1029_v15  ;;  %v1135_v26 = vadd.f32 %v1127_v21, %v1028_v23  ;;  %v1207_v15 = vld [vmem:[#allocation2 + $0x38] sm:$0x30]  ;;  %v7783_v23 = vld [vmem:[%s10284_s1 + $0x68] sm:$0xff] }
 0x409   :  { %v7763_v13 = vmul.f32 -1.442695, %v1136_v6 }
 0x40a   :  { %v8397_v7 = vpop.eup %8396 }
 0x40b   :  { %v8399_v8 = vpop.eup %8398  ;;  %v1140_v10 = vadd.f32 1.0, %v8397_v7  ;;  %8400 = vpow2.f32 %v7763_v13 }
 0x40c   :  { %v1159_v16 = vadd.f32 1.0, %v8399_v8 }
 0x40d   :  { %8402 = vrcp.f32 %v1140_v10  ;;  %v1152_v32 = vand.u32 2147483648, %v1140_v10  ;;  %v1150_v35 = vand.u32 2147483647, %v1140_v10  ;;  %vm1146_vm2 = vweird.f32 %v1140_v10 }
 0x40e   :  { %8404 = vrcp.f32 %v1159_v16  ;;  %v1171_v33 = vand.u32 2147483648, %v1159_v16  ;;  %v1169_v38 = vand.u32 2147483647, %v1159_v16  ;;  %vm1165_vm3 = vweird.f32 %v1159_v16 }
 0x40f   :  { %v1153_v41 = vor.u32 1.1754944e-38, %v1152_v32  ;;  %vm1151_vm6 = vcmp.eq.f32.partialorder %v1150_v35, 8.507059e+37 }
 0x410   :  { %v1172_v36 = vor.u32 1.1754944e-38, %v1171_v33  ;;  %vm1170_vm7 = vcmp.eq.f32.partialorder %v1169_v38, 8.507059e+37 }
 0x411   :  { %v8401_v22 = vpop.eup %8400 }
 0x412   :  { %v1179_v24 = vadd.f32 1.0, %v8401_v22  ;;  %v7782_v22 = vld [vmem:[%s10284_s1 + $0x60] sm:$0xff] }
 0x413   :  { %v8403_v25 = vpop.eup %8402 }
 0x414   :  { %v8405_v27 = vpop.eup %8404  ;;  %v1142_v28 = vmul.f32 %v8403_v25, %v1140_v10  ;;  %8406 = vrcp.f32 %v1179_v24  ;;  %vm1147_vm15 = vweird.f32 %v8403_v25  ;;  %v1191_v48 = vand.u32 2147483648, %v1179_v24 }
 0x415   :  { %v1161_v29 = vmul.f32 %v8405_v27, %v1159_v16  ;;  %8408 = vtanh.f32 %v1135_v26  ;;  %vm1166_vm1 = vweird.f32 %v8405_v27  ;;  %vm1148_vm4 = vmor %vm1146_vm2, %vm1147_vm15  ;;  %vm1185_vm9 = vweird.f32 %v1179_v24  ;;  %v7778_v26 = vld [vmem:[%s10284_s1 + $0x40] sm:$0xff] }
 0x416   :  { %v1143_v30 = vsub.f32 1.0, %v1142_v28  ;;  %vm1167_vm5 = vmor %vm1165_vm3, %vm1166_vm1  ;;  %v1189_v57 = vand.u32 2147483647, %v1179_v24  ;;  %v1192_v59 = vor.u32 1.1754944e-38, %v1191_v48 }
 0x417   :  { %v1162_v31 = vsub.f32 1.0, %v1161_v29  ;;  %v7780_v29 = vld [vmem:[%s10284_s1 + $0x50] sm:$0xff] }
 0x418   :  { %v1144_v34 = vmul.f32 %v8403_v25, %v1143_v30  ;;  %vm1190_vm15 = vcmp.eq.f32.partialorder %v1189_v57, 8.507059e+37  ;;  %v7781_v30 = vld [vmem:[%s10284_s1 + $0x58] sm:$0xff] }
 0x419   :  { %v1163_v37 = vmul.f32 %v8405_v27, %v1162_v31  ;;  %v1206_v31 = vld [vmem:[#allocation2 + $0x28] sm:$0x30] }
 0x41a   :  { %v8407_v39 = vpop.eup %8406  ;;  %v1145_v40 = vadd.f32 %v8403_v25, %v1144_v34 }
 0x41b   :  { %v1164_v42 = vadd.f32 %v8405_v27, %v1163_v37  ;;  %v1181_v43 = vmul.f32 %v8407_v39, %v1179_v24  ;;  %v8409_v47 = vpop.eup %8408  ;;  %vm1186_vm8 = vweird.f32 %v8407_v39  ;;  %v7784_v24 = vld [vmem:[%s10284_s1 + $0x70] sm:$0xff] }
 0x41c   :  { %v1149_v46 = vsel %vm1148_vm4, %v8403_v25, %v1145_v40  ;;  %vm1187_vm14 = vmor %vm1185_vm9, %vm1186_vm8  ;;  %v7785_v25 = vld [vmem:[%s10284_s1 + $0x78] sm:$0xff] }
 0x41d   :  { %v1154_v49 = vsel %vm1151_vm6, %v1153_v41, %v1149_v46  ;;  %v1168_v50 = vsel %vm1167_vm5, %v8405_v27, %v1164_v42  ;;  %v1182_v51 = vsub.f32 1.0, %v1181_v43  ;;  %v7779_v27 = vld [vmem:[%s10284_s1 + $0x48] sm:$0xff] }
 0x41e   :  { %v1173_v53 = vsel %vm1170_vm7, %v1172_v36, %v1168_v50  ;;  %v1199_v44 = vmul.f32 %v8409_v47, %v1154_v49 }
 0x41f   :  { %v1198_v52 = vmul.f32 %v1196_v45, %v1173_v53  ;;  %v1183_v54 = vmul.f32 %v8407_v39, %v1182_v51 }
 0x421   :  { %v9202_v55 = vadd.f32 %v1199_v44, %v1198_v52  ;;  %v1184_v56 = vadd.f32 %v8407_v39, %v1183_v54 }
 0x423   :  { %8410 = vtanh.f32 %v9202_v55  ;;  %v1188_v58 = vsel %vm1187_vm14, %v8407_v39, %v1184_v56  ;;  %v1375_v44 = vrot.slane %v9202_v55, 6 }
 0x424   :  { %v1193_v61 = vsel %vm1190_vm15, %v1192_v59, %v1188_v58 }
 0x429   :  { %v8411_v60 = vpop.eup %8410 }
 0x42a   :  { %v1202_v62 = vmul.f32 %v8411_v60, %v1193_v61 }
 0x42c   :  { %1203 = vst.msk [vmem:[#allocation3 + $0x8] sm:$0xc] %vm497_vm11, %v1202_v62  ;;  %v1217_v63 = vrot.slane %v1202_v62, 2 }
 0x42e   :  { %7764 = vmatmul.msk.f32.vlgmr.msrb.gmra.mxu0 %vm27_vm0, %v1217_v63  ;;  %7765 = vmatmul.msk.f32.vlgmr.msra.gmra.mxu1 %vm27_vm0, %v1217_v63 }
 0x42f   :  { %7766 = vmatmul.msk.f32.vlgmr.msrb.gmra.mxu2 %vm27_vm0, %v1217_v63  ;;  %7767 = vmatmul.msk.f32.vlgmr.msrb.gmra.mxu3 %vm27_vm0, %v1217_v63 }
 0x430   :  { %1604 = vmatpush.msrb.mxu0 %v7782_v22  ;;  %1627 = vmatpush.msra.mxu1 %v7783_v23 }
 0x431   :  { %1650 = vmatpush.msrb.mxu2 %v7784_v24  ;;  %1673 = vmatpush.msrb.mxu3 %v7785_v25 }
 0x432   :  { %1605 = vmatpush.msrb.mxu0 %v7778_v26  ;;  %1628 = vmatpush.msra.mxu1 %v7779_v27 }
 0x433   :  { %1651 = vmatpush.msrb.mxu2 %v7780_v29  ;;  %1674 = vmatpush.msrb.mxu3 %v7781_v30 }
 0x4ab   :  { %v1237_v0 = vpop.f32.mrf.mxu0  ;;  %v1257_v1 = vpop.f32.mrf.mxu1 }
 0x4ac   :  { %v1304_v9 = vrot.slane %v1237_v0, 4  ;;  %v1305_v2 = vrot.slane %v1257_v1, 4 }
 0x4ae   :  { %v1312_v14 = vadd.f32 %v1304_v9, %v1204_v17  ;;  %v1313_v12 = vadd.f32 %v1305_v2, %v1205_v3 }
 0x4b0   :  { %v7768_v11 = vmul.f32 -1.442695, %v1312_v14  ;;  %v7769_v4 = vmul.f32 -1.442695, %v1313_v12 }
 0x4b2   :  { %8412 = vpow2.f32 %v7768_v11  ;;  %v1297_v19 = vpop.f32.mrf.mxu3  ;;  %v1277_v18 = vpop.f32.mrf.mxu2  ;;  %v1562_v11 = vld [vmem:[#allocation3] sm:$0xff] }
 0x4b3   :  { %8414 = vpow2.f32 %v7769_v4  ;;  %v1307_v5 = vrot.slane %v1297_v19, 4  ;;  %v1306_v21 = vrot.slane %v1277_v18, 4 }
 0x4b5   :  { %v1315_v6 = vadd.f32 %v1307_v5, %v1207_v15  ;;  %v1314_v34 = vadd.f32 %v1306_v21, %v1206_v31 }
 0x4b7   :  { %v7770_v13 = vmul.f32 -1.442695, %v1315_v6  ;;  %v1383_v6 = vld [vmem:[#allocation2 + $0x8] sm:$0xc0] }
 0x4b8   :  { %v8413_v7 = vpop.eup %8412 }
 0x4b9   :  { %v8415_v8 = vpop.eup %8414  ;;  %v1319_v10 = vadd.f32 1.0, %v8413_v7  ;;  %8416 = vpow2.f32 %v7770_v13  ;;  %v1384_v13 = vld [vmem:[#allocation2 + $0x20] sm:$0xc0] }
 0x4ba   :  { %v1338_v16 = vadd.f32 1.0, %v8415_v8  ;;  %v9250_v7 = vld [vmem:[%s10287_s3 + $0x4] sm:$0xf] }
 0x4bb   :  { %8418 = vrcp.f32 %v1319_v10  ;;  %v1331_v41 = vand.u32 2147483648, %v1319_v10  ;;  %v1329_v45 = vand.u32 2147483647, %v1319_v10  ;;  %vm1325_vm3 = vweird.f32 %v1319_v10 }
 0x4bc   :  { %8420 = vrcp.f32 %v1338_v16  ;;  %v1350_v42 = vand.u32 2147483648, %v1338_v16  ;;  %v1348_v46 = vand.u32 2147483647, %v1338_v16  ;;  %vm1344_vm4 = vweird.f32 %v1338_v16 }
 0x4bd   :  { %v1332_v50 = vor.u32 1.1754944e-38, %v1331_v41  ;;  %vm1330_vm7 = vcmp.eq.f32.partialorder %v1329_v45, 8.507059e+37  ;;  %v1576_v21 = vperm.slane %v9250_v7, 0  ;;  %v1577_v22 = vperm.slane %v9250_v7, 1 }
 0x4be   :  { %v1351_v52 = vor.u32 1.1754944e-38, %v1350_v42  ;;  %vm1349_vm8 = vcmp.eq.f32.partialorder %v1348_v46, 8.507059e+37  ;;  %v1385_v46 = vld [vmem:[#allocation2 + $0x28] sm:$0xc0] }
 0x4bf   :  { %v8417_v28 = vpop.eup %8416 }
 0x4c0   :  { %v1358_v32 = vadd.f32 1.0, %v8417_v28  ;;  %v1386_v28 = vld [vmem:[#allocation2 + $0x38] sm:$0xc0] }
 0x4c1   :  { %v8419_v33 = vpop.eup %8418 }
 0x4c2   :  { %v8421_v35 = vpop.eup %8420  ;;  %v1321_v37 = vmul.f32 %v8419_v33, %v1319_v10  ;;  %8422 = vrcp.f32 %v1358_v32  ;;  %vm1326_vm1 = vweird.f32 %v8419_v33  ;;  %v1370_v55 = vand.u32 2147483648, %v1358_v32 }
 0x4c3   :  { %v1340_v38 = vmul.f32 %v8421_v35, %v1338_v16  ;;  %8424 = vtanh.f32 %v1314_v34  ;;  %vm1345_vm2 = vweird.f32 %v8421_v35  ;;  %vm1327_vm5 = vmor %vm1325_vm3, %vm1326_vm1  ;;  %vm1364_vm14 = vweird.f32 %v1358_v32 }
 0x4c4   :  { %v1322_v39 = vsub.f32 1.0, %v1321_v37  ;;  %vm1346_vm6 = vmor %vm1344_vm4, %vm1345_vm2  ;;  %v1368_v1 = vand.u32 2147483647, %v1358_v32  ;;  %v1371_v2 = vor.u32 1.1754944e-38, %v1370_v55  ;;  %v1578_v37 = vperm.slane %v9250_v7, 2 }
 0x4c5   :  { %v1341_v40 = vsub.f32 1.0, %v1340_v38  ;;  %v1579_v38 = vperm.slane %v9250_v7, 3 }
 0x4c6   :  { %v1323_v43 = vmul.f32 %v8419_v33, %v1322_v39  ;;  %vm1369_vm1 = vcmp.eq.f32.partialorder %v1368_v1, 8.507059e+37 }
 0x4c7   :  { %v1342_v36 = vmul.f32 %v8421_v35, %v1341_v40 }
 0x4c8   :  { %v8423_v47 = vpop.eup %8422  ;;  %v1324_v49 = vadd.f32 %v8419_v33, %v1323_v43 }
 0x4c9   :  { %v1343_v51 = vadd.f32 %v8421_v35, %v1342_v36  ;;  %v1360_v53 = vmul.f32 %v8423_v47, %v1358_v32  ;;  %v8425_v56 = vpop.eup %8424  ;;  %vm1365_vm9 = vweird.f32 %v8423_v47 }
 0x4ca   :  { %v1328_v54 = vsel %vm1327_vm5, %v8419_v33, %v1324_v49  ;;  %vm1366_vm15 = vmor %vm1364_vm14, %vm1365_vm9 }
 0x4cb   :  { %v1333_v48 = vsel %vm1330_vm7, %v1332_v50, %v1328_v54  ;;  %v1347_v57 = vsel %vm1346_vm6, %v8421_v35, %v1343_v51  ;;  %v1361_v58 = vsub.f32 1.0, %v1360_v53  ;;  %v9275_v51 = vld [vmem:[%s10286_s2 + $0x60] sm:$0xff]  ;;  %v9280_v53 = vld [vmem:[%s10286_s2 + $0x68] sm:$0xff] }
 0x4cc   :  { %v1352_v59 = vsel %vm1349_vm8, %v1351_v52, %v1347_v57  ;;  %v1378_v60 = vmul.f32 %v8425_v56, %v1333_v48  ;;  %v9296_v48 = vld [vmem:[%s10286_s2 + $0x40] sm:$0xff]  ;;  %v9301_v57 = vld [vmem:[%s10286_s2 + $0x48] sm:$0xff] }
 0x4cd   :  { %v1377_v61 = vmul.f32 %v1375_v44, %v1352_v59  ;;  %v1362_v62 = vmul.f32 %v8423_v47, %v1361_v58  ;;  %v9285_v44 = vld [vmem:[%s10286_s2 + $0x78] sm:$0xff]  ;;  %v9308_v59 = vld [vmem:[%s10286_s2 + $0x70] sm:$0xff] }
 0x4cf   :  { %v9235_v63 = vadd.f32 %v1378_v60, %v1377_v61  ;;  %v1363_v0 = vadd.f32 %v8423_v47, %v1362_v62  ;;  %v9313_v60 = vld [vmem:[%s10286_s2 + $0x58] sm:$0xff] }
 0x4d1   :  { %8426 = vtanh.f32 %v9235_v63  ;;  %v1367_v9 = vsel %vm1366_vm15, %v8423_v47, %v1363_v0  ;;  %v9321_v0 = vld [vmem:[%s10286_s2 + $0x50] sm:$0xff] }
 0x4d2   :  { %v1372_v3 = vsel %vm1369_vm1, %v1371_v2, %v1367_v9 }
 0x4d7   :  { %v8427_v17 = vpop.eup %8426 }
 0x4d8   :  { %v1381_v14 = vmul.f32 %v8427_v17, %v1372_v3 }
 0x4da   :  { %1382 = vst.msk [vmem:[#allocation3 + $0x8] sm:$0x30] %vm677_vm10, %v1381_v14  ;;  %v1396_v12 = vrot.slane %v1381_v14, 4 }
 0x4dc   :  { %7771 = vmatmul.msk.f32.vlgmr.msra.gmra.mxu0 %vm27_vm0, %v1396_v12  ;;  %7772 = vmatmul.msk.f32.vlgmr.msrb.gmra.mxu1 %vm27_vm0, %v1396_v12 }
 0x4dd   :  { %7773 = vmatmul.msk.f32.vlgmr.msra.gmra.mxu2 %vm27_vm0, %v1396_v12  ;;  %7774 = vmatmul.msk.f32.vlgmr.msra.gmra.mxu3 %vm27_vm0, %v1396_v12 }
 0x4de   :  { %1717 = vmatpush.msra.mxu0 %v9275_v51  ;;  %1737 = vmatpush.msrb.mxu1 %v9280_v53 }
 0x4df   :  { %1777 = vmatpush.msra.mxu3 %v9285_v44  ;;  %1757 = vmatpush.msra.mxu2 %v9308_v59 }
 0x4e0   :  { %1718 = vmatpush.msra.mxu0 %v9296_v48  ;;  %1738 = vmatpush.msrb.mxu1 %v9301_v57 }
 0x4e1   :  { %1778 = vmatpush.msra.mxu3 %v9313_v60  ;;  %1758 = vmatpush.msra.mxu2 %v9321_v0 }
 0x4e4   :  { %7787 = vmatmul.msk.f32.vlgmr.msrb.gmra.mxu0 %vm27_vm0, %v1562_v11  ;;  %7789 = vmatmul.msk.f32.vlgmr.msra.gmra.mxu1 %vm27_vm0, %v1562_v11 }
 0x4e5   :  { %7791 = vmatmul.msk.f32.vlgmr.msrb.gmra.mxu2 %vm27_vm0, %v1562_v11  ;;  %7793 = vmatmul.msk.f32.vlgmr.msrb.gmra.mxu3 %vm27_vm0, %v1562_v11 }
 0x4e6   :  { %1880 = vmatpush.msrb.mxu0 %v9275_v51  ;;  %1900 = vmatpush.msra.mxu1 %v9280_v53 }
 0x4e7   :  { %1940 = vmatpush.msrb.mxu3 %v9285_v44  ;;  %1920 = vmatpush.msrb.mxu2 %v9308_v59 }
 0x4e8   :  { %1881 = vmatpush.msrb.mxu0 %v9296_v48  ;;  %1901 = vmatpush.msra.mxu1 %v9301_v57 }
 0x4e9   :  { %1941 = vmatpush.msrb.mxu3 %v9313_v60  ;;  %1921 = vmatpush.msrb.mxu2 %v9321_v0 }
 0x559   :  { %v1416_v4 = vpop.f32.mrf.mxu0  ;;  %v1436_v19 = vpop.f32.mrf.mxu1 }
 0x55a   :  { %v1483_v5 = vrot.slane %v1416_v4, 2  ;;  %v1484_v15 = vrot.slane %v1436_v19, 2  ;;  %v1554_v19 = vrot.slane %v9235_v63, 6 }
 0x55c   :  { %v1491_v8 = vadd.f32 %v1483_v5, %v1383_v6  ;;  %v1492_v10 = vadd.f32 %v1484_v15, %v1384_v13 }
 0x55e   :  { %v7775_v16 = vmul.f32 -1.442695, %v1491_v8  ;;  %v7776_v18 = vmul.f32 -1.442695, %v1492_v10 }
 0x560   :  { %8428 = vpow2.f32 %v7775_v16  ;;  %v1456_v23 = vpop.f32.mrf.mxu2  ;;  %v1476_v24 = vpop.f32.mrf.mxu3 }
 0x561   :  { %8430 = vpow2.f32 %v7776_v18  ;;  %v1486_v25 = vrot.slane %v1476_v24, 2  ;;  %v1607_v26 = vpop.f32.mrf.mxu0  ;;  %v1630_v27 = vpop.f32.mrf.mxu1  ;;  %v1485_v42 = vrot.slane %v1456_v23, 2 }
 0x562   :  { %v1608_v29 = vadd.f32 %v1607_v26, %v1576_v21  ;;  %v1631_v30 = vadd.f32 %v1630_v27, %v1577_v22 }
 0x563   :  { %v1494_v31 = vadd.f32 %v1486_v25, %v1386_v28  ;;  %v1493_v50 = vadd.f32 %v1485_v42, %v1385_v46 }
 0x564   :  { %1682 = vst [vmem:[#allocation2 + $0x30] sm:$0xff] %v1608_v29 }
 0x565   :  { %v7777_v32 = vmul.f32 -1.442695, %v1494_v31  ;;  %1683 = vst [vmem:[#allocation2] sm:$0xff] %v1631_v30 }
 0x566   :  { %v8429_v33 = vpop.eup %8428 }
 0x567   :  { %v8431_v34 = vpop.eup %8430  ;;  %v9258_v35 = vadd.f32 1.0, %v8429_v33  ;;  %8432 = vpow2.f32 %v7777_v32 }
 0x568   :  { %v9262_v39 = vadd.f32 1.0, %v8431_v34  ;;  %v1653_v40 = vpop.f32.mrf.mxu2  ;;  %v1676_v41 = vpop.f32.mrf.mxu3 }
 0x569   :  { %8434 = vrcp.f32 %v9258_v35  ;;  %v1654_v43 = vadd.f32 %v1653_v40, %v1578_v37  ;;  %v1677_v45 = vadd.f32 %v1676_v41, %v1579_v38  ;;  %v1510_v62 = vand.u32 2147483648, %v9258_v35 }
 0x56a   :  { %8436 = vrcp.f32 %v9262_v39  ;;  %v1529_v55 = vand.u32 2147483648, %v9262_v39  ;;  %v1508_v9 = vand.u32 2147483647, %v9258_v35  ;;  %v1527_v17 = vand.u32 2147483647, %v9262_v39 }
 0x56b   :  { %1684 = vst [vmem:[#allocation2 + $0x18] sm:$0xff] %v1654_v43  ;;  %vm1504_vm4 = vweird.f32 %v9258_v35  ;;  %vm1523_vm5 = vweird.f32 %v9262_v39  ;;  %v1511_v12 = vor.u32 1.1754944e-38, %v1510_v62 }
 0x56c   :  { %1685 = vst [vmem:[#allocation2 + $0x10] sm:$0xff] %v1677_v45  ;;  %v1530_v5 = vor.u32 1.1754944e-38, %v1529_v55  ;;  %vm1509_vm8 = vcmp.eq.f32.partialorder %v1508_v9, 8.507059e+37  ;;  %vm1528_vm9 = vcmp.eq.f32.partialorder %v1527_v17, 8.507059e+37 }
 0x56d   :  { %v8433_v36 = vpop.eup %8432 }
 0x56e   :  { %v9270_v47 = vadd.f32 1.0, %v8433_v36  ;;  %v1690_v36 = vld [vmem:[#allocation2 + $0x30] sm:$0x3] }
 0x56f   :  { %v8435_v49 = vpop.eup %8434 }
 0x570   :  { %v8437_v52 = vpop.eup %8436  ;;  %v1500_v54 = vmul.f32 %v8435_v49, %v9258_v35  ;;  %8438 = vrcp.f32 %v9270_v47  ;;  %vm1505_vm2 = vweird.f32 %v8435_v49  ;;  %v1549_v63 = vand.u32 2147483648, %v9270_v47 }
 0x571   :  { %v1519_v56 = vmul.f32 %v8437_v52, %v9262_v39  ;;  %8440 = vtanh.f32 %v1493_v50  ;;  %vm1524_vm3 = vweird.f32 %v8437_v52  ;;  %vm1506_vm6 = vmor %vm1504_vm4, %vm1505_vm2  ;;  %vm1543_vm15 = vweird.f32 %v9270_v47 }
 0x572   :  { %v1501_v58 = vsub.f32 1.0, %v1500_v54  ;;  %vm1525_vm7 = vmor %vm1523_vm5, %vm1524_vm3  ;;  %v1547_v27 = vand.u32 2147483647, %v9270_v47  ;;  %v1550_v29 = vor.u32 1.1754944e-38, %v1549_v63  ;;  %v1692_v9 = vld [vmem:[#allocation2 + $0x18] sm:$0x3] }
 0x573   :  { %v1520_v61 = vsub.f32 1.0, %v1519_v56  ;;  %v1693_v54 = vld [vmem:[#allocation2 + $0x10] sm:$0x3] }
 0x574   :  { %v1502_v1 = vmul.f32 %v8435_v49, %v1501_v58  ;;  %vm1548_vm2 = vcmp.eq.f32.partialorder %v1547_v27, 8.507059e+37 }
 0x575   :  { %v1521_v2 = vmul.f32 %v8437_v52, %v1520_v61 }
 0x576   :  { %v8439_v3 = vpop.eup %8438  ;;  %v1503_v14 = vadd.f32 %v8435_v49, %v1502_v1 }
 0x577   :  { %v1522_v11 = vadd.f32 %v8437_v52, %v1521_v2  ;;  %v1539_v4 = vmul.f32 %v8439_v3, %v9270_v47  ;;  %v8441_v6 = vpop.eup %8440  ;;  %vm1544_vm14 = vweird.f32 %v8439_v3  ;;  %v1691_v47 = vld [vmem:[#allocation2] sm:$0x3] }
 0x578   :  { %v1507_v15 = vsel %vm1506_vm6, %v8435_v49, %v1503_v14  ;;  %vm1545_vm1 = vmor %vm1543_vm15, %vm1544_vm14 }
 0x579   :  { %v1512_v13 = vsel %vm1509_vm8, %v1511_v12, %v1507_v15  ;;  %v1526_v8 = vsel %vm1525_vm7, %v8437_v52, %v1522_v11  ;;  %v1540_v10 = vsub.f32 1.0, %v1539_v4 }
 0x57a   :  { %v1531_v16 = vsel %vm1528_vm9, %v1530_v5, %v1526_v8  ;;  %v1557_v18 = vmul.f32 %v8441_v6, %v1512_v13 }
 0x57b   :  { %v1556_v23 = vmul.f32 %v1554_v19, %v1531_v16  ;;  %v1541_v24 = vmul.f32 %v8439_v3, %v1540_v10 }
 0x57d   :  { %v1558_v25 = vadd.f32 %v1557_v18, %v1556_v23  ;;  %v1542_v26 = vadd.f32 %v8439_v3, %v1541_v24 }
 0x57f   :  { %8442 = vtanh.f32 %v1558_v25  ;;  %v1546_v28 = vsel %vm1545_vm1, %v8439_v3, %v1542_v26 }
 0x580   :  { %v1551_v31 = vsel %vm1548_vm2, %v1550_v29, %v1546_v28 }
 0x585   :  { %v8443_v30 = vpop.eup %8442 }
 0x586   :  { %v1560_v32 = vmul.f32 %v8443_v30, %v1551_v31 }
 0x588   :  { %1561 = vst.msk [vmem:[#allocation3 + $0x8] sm:$0xc0] %vm857_vm12, %v1560_v32 }
 0x58f   :  { %v1563_v33 = vld [vmem:[#allocation3 + $0x8] sm:$0xff] }
 0x590   :  { %7788 = vmatmul.msk.f32.gmra.mxu0 %vm27_vm0, %v1563_v33  ;;  %7790 = vmatmul.msk.f32.gmra.mxu1 %vm27_vm0, %v1563_v33 }
 0x591   :  { %7792 = vmatmul.msk.f32.gmra.mxu2 %vm27_vm0, %v1563_v33  ;;  %7794 = vmatmul.msk.f32.gmra.mxu3 %vm27_vm0, %v1563_v33 }
 0x598   :  { %1719 = vmatmul.f32.vlgmr.msra.gmra.mxu0 %v8956_v20  ;;  %1739 = vmatmul.f32.vlgmr.msrb.gmra.mxu1 %v8956_v20 }
 0x599   :  { %1759 = vmatmul.f32.vlgmr.msra.gmra.mxu2 %v8956_v20  ;;  %1779 = vmatmul.f32.vlgmr.msra.gmra.mxu3 %v8956_v20 }
 0x59a   :  { %2059 = vmatpush.msra.mxu0 %v9275_v51  ;;  %2079 = vmatpush.msrb.mxu1 %v9280_v53 }
 0x59b   :  { %2099 = vmatpush.msra.mxu2 %v9308_v59  ;;  %2119 = vmatpush.msra.mxu3 %v9285_v44 }
 0x59c   :  { %2060 = vmatpush.msra.mxu0 %v9296_v48  ;;  %2080 = vmatpush.msrb.mxu1 %v9301_v57 }
 0x59d   :  { %2100 = vmatpush.msra.mxu2 %v9321_v0  ;;  %2120 = vmatpush.msra.mxu3 %v9313_v60 }
 0x60d   :  { %v1610_v34 = vpop.f32.mrf.mxu0  ;;  %v1633_v35 = vpop.f32.mrf.mxu1 }
 0x60e   :  { %v1611_v39 = vadd.f32 %v1610_v34, %v1576_v21  ;;  %v1634_v40 = vadd.f32 %v1633_v35, %v1577_v22 }
 0x610   :  { %1686 = vst [vmem:[#allocation2 + $0x8] sm:$0xff] %v1611_v39 }
 0x611   :  { %1687 = vst [vmem:[#allocation2 + $0x20] sm:$0xff] %v1634_v40 }
 0x614   :  { %v1656_v41 = vpop.f32.mrf.mxu2  ;;  %v1679_v42 = vpop.f32.mrf.mxu3 }
 0x615   :  { %v1657_v43 = vadd.f32 %v1656_v41, %v1578_v37  ;;  %v1680_v45 = vadd.f32 %v1679_v42, %v1579_v38  ;;  %v1720_v46 = vpop.f32.mrf.mxu0  ;;  %v1740_v49 = vpop.f32.mrf.mxu1 }
 0x616   :  { %v1783_v50 = vadd.f32 %v1720_v46, %v1690_v36  ;;  %v1784_v52 = vadd.f32 %v1740_v49, %v1691_v47 }
 0x617   :  { %1688 = vst [vmem:[#allocation2 + $0x28] sm:$0xff] %v1657_v43 }
 0x618   :  { %1689 = vst [vmem:[#allocation2 + $0x38] sm:$0xff] %v1680_v45  ;;  %v7803_v21 = vmul.f32 -1.442695, %v1783_v50  ;;  %v7804_v22 = vmul.f32 -1.442695, %v1784_v52 }
 0x61a   :  { %8444 = vpow2.f32 %v7803_v21  ;;  %v1851_v21 = vld [vmem:[#allocation2 + $0x30] sm:$0xc] }
 0x61b   :  { %8446 = vpow2.f32 %v7804_v22  ;;  %v1852_v22 = vld [vmem:[#allocation2] sm:$0xc] }
 0x61c   :  { %v1780_v56 = vpop.f32.mrf.mxu3  ;;  %v1760_v55 = vpop.f32.mrf.mxu2 }
 0x61d   :  { %v1786_v58 = vadd.f32 %v1780_v56, %v1693_v54  ;;  %v1785_v3 = vadd.f32 %v1760_v55, %v1692_v9 }
 0x61f   :  { %v7805_v61 = vmul.f32 -1.442695, %v1786_v58 }
 0x620   :  { %v8445_v37 = vpop.eup %8444 }
 0x621   :  { %v8447_v62 = vpop.eup %8446  ;;  %v1790_v7 = vadd.f32 1.0, %v8445_v37  ;;  %8448 = vpow2.f32 %v7805_v61 }
 0x622   :  { %v1809_v38 = vadd.f32 1.0, %v8447_v62 }
 0x623   :  { %8450 = vrcp.f32 %v1790_v7  ;;  %v1802_v5 = vand.u32 2147483648, %v1790_v7  ;;  %v1800_v13 = vand.u32 2147483647, %v1790_v7  ;;  %vm1796_vm5 = vweird.f32 %v1790_v7 }
 0x624   :  { %8452 = vrcp.f32 %v1809_v38  ;;  %v1821_v15 = vand.u32 2147483648, %v1809_v38  ;;  %v1819_v10 = vand.u32 2147483647, %v1809_v38  ;;  %vm1815_vm6 = vweird.f32 %v1809_v38 }
 0x625   :  { %v1803_v23 = vor.u32 1.1754944e-38, %v1802_v5  ;;  %vm1801_vm8 = vcmp.eq.f32.partialorder %v1800_v13, 8.507059e+37 }
 0x626   :  { %v1822_v26 = vor.u32 1.1754944e-38, %v1821_v15  ;;  %vm1820_vm14 = vcmp.eq.f32.partialorder %v1819_v10, 8.507059e+37 }
 0x627   :  { %v8449_v1 = vpop.eup %8448 }
 0x628   :  { %v1829_v2 = vadd.f32 1.0, %v8449_v1 }
 0x629   :  { %v8451_v17 = vpop.eup %8450 }
 0x62a   :  { %v8453_v14 = vpop.eup %8452  ;;  %v1792_v12 = vmul.f32 %v8451_v17, %v1790_v7  ;;  %8454 = vrcp.f32 %v1829_v2  ;;  %vm1797_vm3 = vweird.f32 %v8451_v17  ;;  %v1841_v40 = vand.u32 2147483648, %v1829_v2  ;;  %v1854_v7 = vld [vmem:[#allocation2 + $0x10] sm:$0xc] }
 0x62b   :  { %v1811_v11 = vmul.f32 %v8453_v14, %v1809_v38  ;;  %8456 = vtanh.f32 %v1785_v3  ;;  %vm1816_vm4 = vweird.f32 %v8453_v14  ;;  %vm1798_vm7 = vmor %vm1796_vm5, %vm1797_vm3  ;;  %vm1835_vm1 = vweird.f32 %v1829_v2 }
 0x62c   :  { %v1793_v4 = vsub.f32 1.0, %v1792_v12  ;;  %vm1817_vm9 = vmor %vm1815_vm6, %vm1816_vm4  ;;  %v1839_v41 = vand.u32 2147483647, %v1829_v2  ;;  %v1842_v43 = vor.u32 1.1754944e-38, %v1841_v40 }
 0x62d   :  { %v1812_v19 = vsub.f32 1.0, %v1811_v11  ;;  %v1853_v11 = vld [vmem:[#allocation2 + $0x18] sm:$0xc] }
 0x62e   :  { %v1794_v6 = vmul.f32 %v8451_v17, %v1793_v4  ;;  %vm1840_vm3 = vcmp.eq.f32.partialorder %v1839_v41, 8.507059e+37 }
 0x62f   :  { %v1813_v8 = vmul.f32 %v8453_v14, %v1812_v19 }
 0x630   :  { %v8455_v16 = vpop.eup %8454  ;;  %v1795_v18 = vadd.f32 %v8451_v17, %v1794_v6 }
 0x631   :  { %v1814_v24 = vadd.f32 %v8453_v14, %v1813_v8  ;;  %v1831_v25 = vmul.f32 %v8455_v16, %v1829_v2  ;;  %v8457_v27 = vpop.eup %8456  ;;  %vm1836_vm15 = vweird.f32 %v8455_v16 }
 0x632   :  { %v1799_v63 = vsel %vm1798_vm7, %v8451_v17, %v1795_v18  ;;  %vm1837_vm2 = vmor %vm1835_vm1, %vm1836_vm15 }
 0x633   :  { %v1804_v28 = vsel %vm1801_vm8, %v1803_v23, %v1799_v63  ;;  %v1818_v29 = vsel %vm1817_vm9, %v8453_v14, %v1814_v24  ;;  %v1832_v30 = vsub.f32 1.0, %v1831_v25 }
 0x634   :  { %v1823_v31 = vsel %vm1820_vm14, %v1822_v26, %v1818_v29  ;;  %v1846_v32 = vmul.f32 %v8457_v27, %v1804_v28 }
 0x635   :  { %v1845_v33 = vmul.f32 0.0, %v1823_v31  ;;  %v1833_v34 = vmul.f32 %v8455_v16, %v1832_v30 }
 0x637   :  { %v9369_v35 = vadd.f32 %v1846_v32, %v1845_v33  ;;  %v1834_v39 = vadd.f32 %v8455_v16, %v1833_v34 }
 0x639   :  { %8458 = vtanh.f32 %v9369_v35  ;;  %v1838_v42 = vsel %vm1837_vm2, %v8455_v16, %v1834_v39  ;;  %v2021_v31 = vrot.slane %v9369_v35, 6 }
 0x63a   :  { %v1843_v36 = vsel %vm1840_vm3, %v1842_v43, %v1838_v42 }
 0x63f   :  { %v8459_v45 = vpop.eup %8458 }
 0x640   :  { %v1849_v46 = vmul.f32 %v8459_v45, %v1843_v36 }
 0x642   :  { %1850 = vst.msk [vmem:[#allocation3] sm:$0x3] %vm318_vm13, %v1849_v46  ;;  %7814 = vmatmul.msk.f32.vlgmr.msrb.gmra.mxu0 %vm27_vm0, %v1849_v46  ;;  %7815 = vmatmul.msk.f32.vlgmr.msra.gmra.mxu1 %vm27_vm0, %v1849_v46 }
 0x643   :  { %7816 = vmatmul.msk.f32.vlgmr.msrb.gmra.mxu2 %vm27_vm0, %v1849_v46  ;;  %7817 = vmatmul.msk.f32.vlgmr.msrb.gmra.mxu3 %vm27_vm0, %v1849_v46 }
 0x644   :  { %2238 = vmatpush.msrb.mxu0 %v9275_v51  ;;  %2258 = vmatpush.msra.mxu1 %v9280_v53 }
 0x645   :  { %2278 = vmatpush.msrb.mxu2 %v9308_v59  ;;  %2298 = vmatpush.msrb.mxu3 %v9285_v44 }
 0x646   :  { %2239 = vmatpush.msrb.mxu0 %v9296_v48  ;;  %2259 = vmatpush.msra.mxu1 %v9301_v57 }
 0x647   :  { %2279 = vmatpush.msrb.mxu2 %v9321_v0  ;;  %2299 = vmatpush.msrb.mxu3 %v9313_v60 }
 0x6bf   :  { %v1883_v47 = vpop.f32.mrf.mxu0  ;;  %v1903_v49 = vpop.f32.mrf.mxu1 }
 0x6c0   :  { %v1950_v50 = vrot.slane %v1883_v47, 6  ;;  %v1951_v52 = vrot.slane %v1903_v49, 6 }
 0x6c2   :  { %v1958_v54 = vadd.f32 %v1950_v50, %v1851_v21  ;;  %v1959_v56 = vadd.f32 %v1951_v52, %v1852_v22 }
 0x6c4   :  { %v7818_v58 = vmul.f32 -1.442695, %v1958_v54  ;;  %v7819_v61 = vmul.f32 -1.442695, %v1959_v56 }
 0x6c6   :  { %8460 = vpow2.f32 %v7818_v58  ;;  %v1943_v37 = vpop.f32.mrf.mxu3  ;;  %v1923_v3 = vpop.f32.mrf.mxu2 }
 0x6c7   :  { %8462 = vpow2.f32 %v7819_v61  ;;  %v1953_v62 = vrot.slane %v1943_v37, 6  ;;  %v1952_v14 = vrot.slane %v1923_v3, 6 }
 0x6c9   :  { %v1961_v38 = vadd.f32 %v1953_v62, %v1854_v7  ;;  %v1960_v5 = vadd.f32 %v1952_v14, %v1853_v11  ;;  %v2029_v7 = vld [vmem:[#allocation2 + $0x30] sm:$0x30] }
 0x6ca   :  { %v2032_v14 = vld [vmem:[#allocation2 + $0x10] sm:$0x30] }
 0x6cb   :  { %v7820_v55 = vmul.f32 -1.442695, %v1961_v38  ;;  %v2030_v38 = vld [vmem:[#allocation2] sm:$0x30] }
 0x6cc   :  { %v8461_v1 = vpop.eup %8460 }
 0x6cd   :  { %v8463_v9 = vpop.eup %8462  ;;  %v1965_v2 = vadd.f32 1.0, %v8461_v1  ;;  %8464 = vpow2.f32 %v7820_v55 }
 0x6ce   :  { %v1984_v17 = vadd.f32 1.0, %v8463_v9 }
 0x6cf   :  { %8466 = vrcp.f32 %v1965_v2  ;;  %v1977_v16 = vand.u32 2147483648, %v1965_v2  ;;  %v1975_v24 = vand.u32 2147483647, %v1965_v2  ;;  %vm1971_vm6 = vweird.f32 %v1965_v2 }
 0x6d0   :  { %8468 = vrcp.f32 %v1984_v17  ;;  %v1996_v18 = vand.u32 2147483648, %v1984_v17  ;;  %v1994_v26 = vand.u32 2147483647, %v1984_v17  ;;  %vm1990_vm7 = vweird.f32 %v1984_v17 }
 0x6d1   :  { %v1978_v28 = vor.u32 1.1754944e-38, %v1977_v16  ;;  %vm1976_vm14 = vcmp.eq.f32.partialorder %v1975_v24, 8.507059e+37 }
 0x6d2   :  { %v1997_v32 = vor.u32 1.1754944e-38, %v1996_v18  ;;  %vm1995_vm15 = vcmp.eq.f32.partialorder %v1994_v26, 8.507059e+37 }
 0x6d3   :  { %v8465_v12 = vpop.eup %8464 }
 0x6d4   :  { %v2004_v4 = vadd.f32 1.0, %v8465_v12 }
 0x6d5   :  { %v8467_v19 = vpop.eup %8466 }
 0x6d6   :  { %v8469_v15 = vpop.eup %8468  ;;  %v1967_v6 = vmul.f32 %v8467_v19, %v1965_v2  ;;  %8470 = vrcp.f32 %v2004_v4  ;;  %vm1972_vm4 = vweird.f32 %v8467_v19  ;;  %v2016_v35 = vand.u32 2147483648, %v2004_v4 }
 0x6d7   :  { %v1986_v13 = vmul.f32 %v8469_v15, %v1984_v17  ;;  %8472 = vtanh.f32 %v1960_v5  ;;  %vm1991_vm5 = vweird.f32 %v8469_v15  ;;  %vm1973_vm8 = vmor %vm1971_vm6, %vm1972_vm4  ;;  %vm2010_vm2 = vweird.f32 %v2004_v4 }
 0x6d8   :  { %v1968_v8 = vsub.f32 1.0, %v1967_v6  ;;  %vm1992_vm9 = vmor %vm1990_vm7, %vm1991_vm5  ;;  %v2014_v49 = vand.u32 2147483647, %v2004_v4  ;;  %v2017_v52 = vor.u32 1.1754944e-38, %v2016_v35 }
 0x6d9   :  { %v1987_v10 = vsub.f32 1.0, %v1986_v13 }
 0x6da   :  { %v1969_v23 = vmul.f32 %v8467_v19, %v1968_v8  ;;  %vm2015_vm4 = vcmp.eq.f32.partialorder %v2014_v49, 8.507059e+37 }
 0x6db   :  { %v1988_v25 = vmul.f32 %v8469_v15, %v1987_v10  ;;  %v2031_v10 = vld [vmem:[#allocation2 + $0x18] sm:$0x30] }
 0x6dc   :  { %v8471_v63 = vpop.eup %8470  ;;  %v1970_v27 = vadd.f32 %v8467_v19, %v1969_v23 }
 0x6dd   :  { %v1989_v29 = vadd.f32 %v8469_v15, %v1988_v25  ;;  %v2006_v30 = vmul.f32 %v8471_v63, %v2004_v4  ;;  %v8473_v34 = vpop.eup %8472  ;;  %vm2011_vm1 = vweird.f32 %v8471_v63 }
 0x6de   :  { %v1974_v33 = vsel %vm1973_vm8, %v8467_v19, %v1970_v27  ;;  %vm2012_vm3 = vmor %vm2010_vm2, %vm2011_vm1 }
 0x6df   :  { %v1979_v39 = vsel %vm1976_vm14, %v1978_v28, %v1974_v33  ;;  %v1993_v40 = vsel %vm1992_vm9, %v8469_v15, %v1989_v29  ;;  %v2007_v41 = vsub.f32 1.0, %v2006_v30 }
 0x6e0   :  { %v1998_v42 = vsel %vm1995_vm15, %v1997_v32, %v1993_v40  ;;  %v2024_v43 = vmul.f32 %v8473_v34, %v1979_v39 }
 0x6e1   :  { %v2023_v45 = vmul.f32 %v2021_v31, %v1998_v42  ;;  %v2008_v36 = vmul.f32 %v8471_v63, %v2007_v41 }
 0x6e3   :  { %v9386_v46 = vadd.f32 %v2024_v43, %v2023_v45  ;;  %v2009_v47 = vadd.f32 %v8471_v63, %v2008_v36 }
 0x6e5   :  { %8474 = vtanh.f32 %v9386_v46  ;;  %v2013_v50 = vsel %vm2012_vm3, %v8471_v63, %v2009_v47  ;;  %v2200_v43 = vrot.slane %v9386_v46, 6 }
 0x6e6   :  { %v2018_v22 = vsel %vm2015_vm4, %v2017_v52, %v2013_v50 }
 0x6eb   :  { %v8475_v21 = vpop.eup %8474 }
 0x6ec   :  { %v2027_v54 = vmul.f32 %v8475_v21, %v2018_v22 }
 0x6ee   :  { %2028 = vst.msk [vmem:[#allocation3] sm:$0xc] %vm497_vm11, %v2027_v54  ;;  %v2042_v56 = vrot.slane %v2027_v54, 2 }
 0x6f0   :  { %7829 = vmatmul.msk.f32.vlgmr.msra.gmra.mxu0 %vm27_vm0, %v2042_v56  ;;  %7830 = vmatmul.msk.f32.vlgmr.msrb.gmra.mxu1 %vm27_vm0, %v2042_v56 }
 0x6f1   :  { %7831 = vmatmul.msk.f32.vlgmr.msra.gmra.mxu2 %vm27_vm0, %v2042_v56  ;;  %7832 = vmatmul.msk.f32.vlgmr.msra.gmra.mxu3 %vm27_vm0, %v2042_v56 }
 0x6f2   :  { %2417 = vmatpush.msra.mxu0 %v9275_v51  ;;  %2437 = vmatpush.msrb.mxu1 %v9280_v53 }
 0x6f3   :  { %2457 = vmatpush.msra.mxu2 %v9308_v59  ;;  %2477 = vmatpush.msra.mxu3 %v9285_v44 }
 0x6f4   :  { %2418 = vmatpush.msra.mxu0 %v9296_v48  ;;  %2438 = vmatpush.msrb.mxu1 %v9301_v57 }
 0x6f5   :  { %2458 = vmatpush.msra.mxu2 %v9321_v0  ;;  %2478 = vmatpush.msra.mxu3 %v9313_v60 }
 0x76d   :  { %v2062_v58 = vpop.f32.mrf.mxu0  ;;  %v2082_v61 = vpop.f32.mrf.mxu1 }
 0x76e   :  { %v2129_v37 = vrot.slane %v2062_v58, 4  ;;  %v2130_v62 = vrot.slane %v2082_v61, 4 }
 0x770   :  { %v2137_v55 = vadd.f32 %v2129_v37, %v2029_v7  ;;  %v2138_v1 = vadd.f32 %v2130_v62, %v2030_v38 }
 0x772   :  { %v7833_v9 = vmul.f32 -1.442695, %v2137_v55  ;;  %v7834_v2 = vmul.f32 -1.442695, %v2138_v1 }
 0x774   :  { %8476 = vpow2.f32 %v7833_v9  ;;  %v2122_v17 = vpop.f32.mrf.mxu3  ;;  %v2102_v6 = vpop.f32.mrf.mxu2 }
 0x775   :  { %8478 = vpow2.f32 %v7834_v2  ;;  %v2132_v3 = vrot.slane %v2122_v17, 4  ;;  %v2131_v13 = vrot.slane %v2102_v6, 4 }
 0x777   :  { %v2140_v12 = vadd.f32 %v2132_v3, %v2032_v14  ;;  %v2139_v23 = vadd.f32 %v2131_v13, %v2031_v10  ;;  %v2208_v14 = vld [vmem:[#allocation2 + $0x30] sm:$0xc0]  ;;  %v2210_v10 = vld [vmem:[#allocation2 + $0x18] sm:$0xc0] }
 0x779   :  { %v7835_v11 = vmul.f32 -1.442695, %v2140_v12 }
 0x77a   :  { %v8477_v4 = vpop.eup %8476 }
 0x77b   :  { %v8479_v19 = vpop.eup %8478  ;;  %v2144_v5 = vadd.f32 1.0, %v8477_v4  ;;  %8480 = vpow2.f32 %v7835_v11  ;;  %v2211_v4 = vld [vmem:[#allocation2 + $0x10] sm:$0xc0] }
 0x77c   :  { %v2163_v15 = vadd.f32 1.0, %v8479_v19 }
 0x77d   :  { %8482 = vrcp.f32 %v2144_v5  ;;  %v2156_v28 = vand.u32 2147483648, %v2144_v5  ;;  %v2154_v31 = vand.u32 2147483647, %v2144_v5  ;;  %vm2150_vm7 = vweird.f32 %v2144_v5 }
 0x77e   :  { %8484 = vrcp.f32 %v2163_v15  ;;  %v2175_v29 = vand.u32 2147483648, %v2163_v15  ;;  %v2173_v33 = vand.u32 2147483647, %v2163_v15  ;;  %vm2169_vm8 = vweird.f32 %v2163_v15 }
 0x77f   :  { %v2157_v40 = vor.u32 1.1754944e-38, %v2156_v28  ;;  %vm2155_vm15 = vcmp.eq.f32.partialorder %v2154_v31, 8.507059e+37 }
 0x780   :  { %v2176_v45 = vor.u32 1.1754944e-38, %v2175_v29  ;;  %vm2174_vm1 = vcmp.eq.f32.partialorder %v2173_v33, 8.507059e+37 }
 0x781   :  { %v8481_v8 = vpop.eup %8480 }
 0x782   :  { %v2183_v16 = vadd.f32 1.0, %v8481_v8 }
 0x783   :  { %v8483_v18 = vpop.eup %8482 }
 0x784   :  { %v8485_v24 = vpop.eup %8484  ;;  %v2146_v25 = vmul.f32 %v8483_v18, %v2144_v5  ;;  %8486 = vrcp.f32 %v2183_v16  ;;  %vm2151_vm5 = vweird.f32 %v8483_v18  ;;  %v2195_v46 = vand.u32 2147483648, %v2183_v16 }
 0x785   :  { %v2165_v26 = vmul.f32 %v8485_v24, %v2163_v15  ;;  %8488 = vtanh.f32 %v2139_v23  ;;  %vm2170_vm6 = vweird.f32 %v8485_v24  ;;  %vm2152_vm9 = vmor %vm2150_vm7, %vm2151_vm5  ;;  %vm2189_vm3 = vweird.f32 %v2183_v16 }
 0x786   :  { %v2147_v63 = vsub.f32 1.0, %v2146_v25  ;;  %vm2171_vm14 = vmor %vm2169_vm8, %vm2170_vm6  ;;  %v2193_v61 = vand.u32 2147483647, %v2183_v16  ;;  %v2196_v62 = vor.u32 1.1754944e-38, %v2195_v46 }
 0x787   :  { %v2166_v27 = vsub.f32 1.0, %v2165_v26 }
 0x788   :  { %v2148_v30 = vmul.f32 %v8483_v18, %v2147_v63  ;;  %vm2194_vm5 = vcmp.eq.f32.partialorder %v2193_v61, 8.507059e+37 }
 0x789   :  { %v2167_v32 = vmul.f32 %v8485_v24, %v2166_v27 }
 0x78a   :  { %v8487_v34 = vpop.eup %8486  ;;  %v2149_v39 = vadd.f32 %v8483_v18, %v2148_v30 }
 0x78b   :  { %v2168_v41 = vadd.f32 %v8485_v24, %v2167_v32  ;;  %v2185_v42 = vmul.f32 %v8487_v34, %v2183_v16  ;;  %v8489_v47 = vpop.eup %8488  ;;  %vm2190_vm2 = vweird.f32 %v8487_v34 }
 0x78c   :  { %v2153_v36 = vsel %vm2152_vm9, %v8483_v18, %v2149_v39  ;;  %vm2191_vm4 = vmor %vm2189_vm3, %vm2190_vm2 }
 0x78d   :  { %v2158_v35 = vsel %vm2155_vm15, %v2157_v40, %v2153_v36  ;;  %v2172_v49 = vsel %vm2171_vm14, %v8485_v24, %v2168_v41  ;;  %v2186_v50 = vsub.f32 1.0, %v2185_v42 }
 0x78e   :  { %v2177_v52 = vsel %vm2174_vm1, %v2176_v45, %v2172_v49  ;;  %v2203_v21 = vmul.f32 %v8489_v47, %v2158_v35 }
 0x78f   :  { %v2202_v22 = vmul.f32 %v2200_v43, %v2177_v52  ;;  %v2187_v54 = vmul.f32 %v8487_v34, %v2186_v50 }
 0x791   :  { %v9403_v56 = vadd.f32 %v2203_v21, %v2202_v22  ;;  %v2188_v58 = vadd.f32 %v8487_v34, %v2187_v54 }
 0x793   :  { %8490 = vtanh.f32 %v9403_v56  ;;  %v2192_v37 = vsel %vm2191_vm4, %v8487_v34, %v2188_v58  ;;  %v2379_v43 = vrot.slane %v9403_v56, 6 }
 0x794   :  { %v2197_v38 = vsel %vm2194_vm5, %v2196_v62, %v2192_v37 }
 0x799   :  { %v8491_v7 = vpop.eup %8490 }
 0x79a   :  { %v2206_v55 = vmul.f32 %v8491_v7, %v2197_v38 }
 0x79c   :  { %2207 = vst.msk [vmem:[#allocation3] sm:$0x30] %vm677_vm10, %v2206_v55  ;;  %v2221_v1 = vrot.slane %v2206_v55, 4 }
 0x79e   :  { %7844 = vmatmul.msk.f32.vlgmr.msrb.gmra.mxu0 %vm27_vm0, %v2221_v1  ;;  %7845 = vmatmul.msk.f32.vlgmr.msra.gmra.mxu1 %vm27_vm0, %v2221_v1 }
 0x79f   :  { %7846 = vmatmul.msk.f32.vlgmr.msrb.gmra.mxu2 %vm27_vm0, %v2221_v1  ;;  %7847 = vmatmul.msk.f32.vlgmr.msrb.gmra.mxu3 %vm27_vm0, %v2221_v1 }
 0x7a0   :  { %2583 = vmatpush.msrb.mxu0 %v9275_v51  ;;  %2603 = vmatpush.msra.mxu1 %v9280_v53  ;;  %v2209_v51 = vld [vmem:[#allocation2] sm:$0xc0] }
 0x7a1   :  { %2623 = vmatpush.msrb.mxu2 %v9308_v59  ;;  %2643 = vmatpush.msrb.mxu3 %v9285_v44 }
 0x7a2   :  { %2584 = vmatpush.msrb.mxu0 %v9296_v48  ;;  %2604 = vmatpush.msra.mxu1 %v9301_v57 }
 0x7a3   :  { %2624 = vmatpush.msrb.mxu2 %v9321_v0  ;;  %2644 = vmatpush.msrb.mxu3 %v9313_v60 }
 0x81b   :  { %v2241_v9 = vpop.f32.mrf.mxu0  ;;  %v2261_v2 = vpop.f32.mrf.mxu1 }
 0x81c   :  { %v2308_v17 = vrot.slane %v2241_v9, 2  ;;  %v2309_v3 = vrot.slane %v2261_v2, 2  ;;  %v2387_v9 = vld [vmem:[#allocation2 + $0x8] sm:$0x3] }
 0x81e   :  { %v2316_v12 = vadd.f32 %v2308_v17, %v2208_v14  ;;  %v2317_v53 = vadd.f32 %v2309_v3, %v2209_v51  ;;  %v2388_v17 = vld [vmem:[#allocation2 + $0x20] sm:$0x3] }
 0x820   :  { %v7848_v11 = vmul.f32 -1.442695, %v2316_v12  ;;  %v7849_v59 = vmul.f32 -1.442695, %v2317_v53 }
 0x822   :  { %8492 = vpow2.f32 %v7848_v11  ;;  %v2301_v44 = vpop.f32.mrf.mxu3  ;;  %v2281_v6 = vpop.f32.mrf.mxu2  ;;  %v2390_v11 = vld [vmem:[#allocation2 + $0x38] sm:$0x3] }
 0x823   :  { %8494 = vpow2.f32 %v7849_v59  ;;  %v2311_v48 = vrot.slane %v2301_v44, 2  ;;  %v2310_v13 = vrot.slane %v2281_v6, 2 }
 0x825   :  { %v2319_v57 = vadd.f32 %v2311_v48, %v2211_v4  ;;  %v2318_v23 = vadd.f32 %v2310_v13, %v2210_v10 }
 0x827   :  { %v7850_v19 = vmul.f32 -1.442695, %v2319_v57 }
 0x828   :  { %v8493_v0 = vpop.eup %8492 }
 0x829   :  { %v8495_v5 = vpop.eup %8494  ;;  %v2323_v60 = vadd.f32 1.0, %v8493_v0  ;;  %8496 = vpow2.f32 %v7850_v19 }
 0x82a   :  { %v2342_v15 = vadd.f32 1.0, %v8495_v5 }
 0x82b   :  { %8498 = vrcp.f32 %v2323_v60  ;;  %v2335_v28 = vand.u32 2147483648, %v2323_v60  ;;  %v2333_v31 = vand.u32 2147483647, %v2323_v60  ;;  %vm2329_vm8 = vweird.f32 %v2323_v60 }
 0x82c   :  { %8500 = vrcp.f32 %v2342_v15  ;;  %v2354_v29 = vand.u32 2147483648, %v2342_v15  ;;  %v2352_v33 = vand.u32 2147483647, %v2342_v15  ;;  %vm2348_vm9 = vweird.f32 %v2342_v15 }
 0x82d   :  { %v2336_v40 = vor.u32 1.1754944e-38, %v2335_v28  ;;  %vm2334_vm1 = vcmp.eq.f32.partialorder %v2333_v31, 8.507059e+37 }
 0x82e   :  { %v2355_v45 = vor.u32 1.1754944e-38, %v2354_v29  ;;  %vm2353_vm2 = vcmp.eq.f32.partialorder %v2352_v33, 8.507059e+37 }
 0x82f   :  { %v8497_v8 = vpop.eup %8496 }
 0x830   :  { %v2362_v16 = vadd.f32 1.0, %v8497_v8 }
 0x831   :  { %v8499_v18 = vpop.eup %8498 }
 0x832   :  { %v8501_v24 = vpop.eup %8500  ;;  %v2325_v25 = vmul.f32 %v8499_v18, %v2323_v60  ;;  %8502 = vrcp.f32 %v2362_v16  ;;  %vm2330_vm6 = vweird.f32 %v8499_v18  ;;  %v2374_v56 = vand.u32 2147483648, %v2362_v16 }
 0x833   :  { %v2344_v26 = vmul.f32 %v8501_v24, %v2342_v15  ;;  %8504 = vtanh.f32 %v2318_v23  ;;  %vm2349_vm7 = vweird.f32 %v8501_v24  ;;  %vm2331_vm14 = vmor %vm2329_vm8, %vm2330_vm6  ;;  %vm2368_vm4 = vweird.f32 %v2362_v16  ;;  %v2389_v15 = vld [vmem:[#allocation2 + $0x28] sm:$0x3] }
 0x834   :  { %v2326_v63 = vsub.f32 1.0, %v2325_v25  ;;  %vm2350_vm15 = vmor %vm2348_vm9, %vm2349_vm7  ;;  %v2372_v61 = vand.u32 2147483647, %v2362_v16  ;;  %v2375_v62 = vor.u32 1.1754944e-38, %v2374_v56 }
 0x835   :  { %v2345_v27 = vsub.f32 1.0, %v2344_v26 }
 0x836   :  { %v2327_v30 = vmul.f32 %v8499_v18, %v2326_v63  ;;  %vm2373_vm6 = vcmp.eq.f32.partialorder %v2372_v61, 8.507059e+37 }
 0x837   :  { %v2346_v32 = vmul.f32 %v8501_v24, %v2345_v27 }
 0x838   :  { %v8503_v34 = vpop.eup %8502  ;;  %v2328_v39 = vadd.f32 %v8499_v18, %v2327_v30 }
 0x839   :  { %v2347_v41 = vadd.f32 %v8501_v24, %v2346_v32  ;;  %v2364_v42 = vmul.f32 %v8503_v34, %v2362_v16  ;;  %v8505_v47 = vpop.eup %8504  ;;  %vm2369_vm3 = vweird.f32 %v8503_v34 }
 0x83a   :  { %v2332_v36 = vsel %vm2331_vm14, %v8499_v18, %v2328_v39  ;;  %vm2370_vm5 = vmor %vm2368_vm4, %vm2369_vm3 }
 0x83b   :  { %v2337_v35 = vsel %vm2334_vm1, %v2336_v40, %v2332_v36  ;;  %v2351_v49 = vsel %vm2350_vm15, %v8501_v24, %v2347_v41  ;;  %v2365_v50 = vsub.f32 1.0, %v2364_v42 }
 0x83c   :  { %v2356_v52 = vsel %vm2353_vm2, %v2355_v45, %v2351_v49  ;;  %v2382_v21 = vmul.f32 %v8505_v47, %v2337_v35 }
 0x83d   :  { %v2381_v22 = vmul.f32 %v2379_v43, %v2356_v52  ;;  %v2366_v54 = vmul.f32 %v8503_v34, %v2365_v50 }
 0x83f   :  { %v9420_v58 = vadd.f32 %v2382_v21, %v2381_v22  ;;  %v2367_v46 = vadd.f32 %v8503_v34, %v2366_v54 }
 0x841   :  { %8506 = vtanh.f32 %v9420_v58  ;;  %v2371_v37 = vsel %vm2370_vm5, %v8503_v34, %v2367_v46  ;;  %v2546_v41 = vrot.slane %v9420_v58, 6 }
 0x842   :  { %v2376_v38 = vsel %vm2373_vm6, %v2375_v62, %v2371_v37 }
 0x847   :  { %v8507_v7 = vpop.eup %8506 }
 0x848   :  { %v2385_v55 = vmul.f32 %v8507_v7, %v2376_v38 }
 0x84a   :  { %2386 = vst.msk [vmem:[#allocation3] sm:$0xc0] %vm857_vm12, %v2385_v55  ;;  %v2400_v1 = vrot.slane %v2385_v55, 6 }
 0x84c   :  { %7859 = vmatmul.msk.f32.vlgmr.msra.gmra.mxu0 %vm27_vm0, %v2400_v1  ;;  %7860 = vmatmul.msk.f32.vlgmr.msrb.gmra.mxu1 %vm27_vm0, %v2400_v1 }
 0x84d   :  { %7861 = vmatmul.msk.f32.vlgmr.msra.gmra.mxu2 %vm27_vm0, %v2400_v1  ;;  %7862 = vmatmul.msk.f32.vlgmr.msra.gmra.mxu3 %vm27_vm0, %v2400_v1  ;;  %v2554_v1 = vld [vmem:[#allocation2 + $0x8] sm:$0xc] }
 0x8c9   :  { %v2420_v2 = vpop.f32.mrf.mxu0  ;;  %v2440_v3 = vpop.f32.mrf.mxu1 }
 0x8ca   :  { %v2483_v14 = vadd.f32 %v2420_v2, %v2387_v9  ;;  %v2484_v51 = vadd.f32 %v2440_v3, %v2388_v17  ;;  %v2555_v9 = vld [vmem:[#allocation2 + $0x20] sm:$0xc] }
 0x8cc   :  { %v7863_v12 = vmul.f32 -1.442695, %v2483_v14  ;;  %v7864_v53 = vmul.f32 -1.442695, %v2484_v51  ;;  %v7885_v51 = vld [vmem:[%s10286_s2 + $0x60] sm:$0xff] }
 0x8cd   :  { %2762 = vmatpush.msra.mxu0 %v7885_v51 }
 0x8ce   :  { %8508 = vpow2.f32 %v7863_v12  ;;  %v7886_v12 = vld [vmem:[%s10286_s2 + $0x68] sm:$0xff] }
 0x8cf   :  { %8510 = vpow2.f32 %v7864_v53  ;;  %v7881_v53 = vld [vmem:[%s10286_s2 + $0x40] sm:$0xff]  ;;  %2782 = vmatpush.msrb.mxu1 %v7886_v12 }
 0x8d0   :  { %v2480_v59 = vpop.f32.mrf.mxu3  ;;  %v2460_v5 = vpop.f32.mrf.mxu2  ;;  %2763 = vmatpush.msra.mxu0 %v7881_v53 }
 0x8d1   :  { %v2486_v44 = vadd.f32 %v2480_v59, %v2390_v11  ;;  %v2485_v8 = vadd.f32 %v2460_v5, %v2389_v15  ;;  %v7882_v59 = vld [vmem:[%s10286_s2 + $0x48] sm:$0xff] }
 0x8d2   :  { %2783 = vmatpush.msrb.mxu1 %v7882_v59 }
 0x8d3   :  { %v7865_v48 = vmul.f32 -1.442695, %v2486_v44  ;;  %v7887_v44 = vld [vmem:[%s10286_s2 + $0x70] sm:$0xff] }
 0x8d4   :  { %v8509_v4 = vpop.eup %8508  ;;  %2802 = vmatpush.msra.mxu2 %v7887_v44 }
 0x8d5   :  { %v8511_v57 = vpop.eup %8510  ;;  %v2490_v19 = vadd.f32 1.0, %v8509_v4  ;;  %8512 = vpow2.f32 %v7865_v48  ;;  %v7888_v48 = vld [vmem:[%s10286_s2 + $0x78] sm:$0xff] }
 0x8d6   :  { %v2509_v0 = vadd.f32 1.0, %v8511_v57  ;;  %2822 = vmatpush.msra.mxu3 %v7888_v48  ;;  %v7883_v57 = vld [vmem:[%s10286_s2 + $0x50] sm:$0xff] }
 0x8d7   :  { %8514 = vrcp.f32 %v2490_v19  ;;  %v2502_v25 = vand.u32 2147483648, %v2490_v19  ;;  %v2500_v27 = vand.u32 2147483647, %v2490_v19  ;;  %vm2496_vm9 = vweird.f32 %v2490_v19  ;;  %2803 = vmatpush.msra.mxu2 %v7883_v57 }
 0x8d8   :  { %8516 = vrcp.f32 %v2509_v0  ;;  %v2521_v26 = vand.u32 2147483648, %v2509_v0  ;;  %v2519_v29 = vand.u32 2147483647, %v2509_v0  ;;  %vm2515_vm14 = vweird.f32 %v2509_v0 }
 0x8d9   :  { %v2503_v32 = vor.u32 1.1754944e-38, %v2502_v25  ;;  %vm2501_vm2 = vcmp.eq.f32.partialorder %v2500_v27, 8.507059e+37 }
 0x8da   :  { %v2522_v39 = vor.u32 1.1754944e-38, %v2521_v26  ;;  %vm2520_vm3 = vcmp.eq.f32.partialorder %v2519_v29, 8.507059e+37 }
 0x8db   :  { %v8513_v60 = vpop.eup %8512 }
 0x8dc   :  { %v2529_v6 = vadd.f32 1.0, %v8513_v60 }
 0x8dd   :  { %v8515_v13 = vpop.eup %8514 }
 0x8de   :  { %v8517_v10 = vpop.eup %8516  ;;  %v2492_v16 = vmul.f32 %v8515_v13, %v2490_v19  ;;  %8518 = vrcp.f32 %v2529_v6  ;;  %vm2497_vm7 = vweird.f32 %v8515_v13  ;;  %v2541_v22 = vand.u32 2147483648, %v2529_v6  ;;  %v7884_v19 = vld [vmem:[%s10286_s2 + $0x58] sm:$0xff] }
 0x8df   :  { %v2511_v18 = vmul.f32 %v8517_v10, %v2509_v0  ;;  %8520 = vtanh.f32 %v2485_v8  ;;  %vm2516_vm8 = vweird.f32 %v8517_v10  ;;  %vm2498_vm15 = vmor %vm2496_vm9, %vm2497_vm7  ;;  %vm2535_vm5 = vweird.f32 %v2529_v6  ;;  %v2557_v0 = vld [vmem:[#allocation2 + $0x38] sm:$0xc]  ;;  %2823 = vmatpush.msra.mxu3 %v7884_v19 }
 0x8e0   :  { %v2493_v23 = vsub.f32 1.0, %v2492_v16  ;;  %vm2517_vm1 = vmor %vm2515_vm14, %vm2516_vm8  ;;  %v2539_v54 = vand.u32 2147483647, %v2529_v6  ;;  %v2542_v46 = vor.u32 1.1754944e-38, %v2541_v22 }
 0x8e1   :  { %v2512_v24 = vsub.f32 1.0, %v2511_v18 }
 0x8e2   :  { %v2494_v63 = vmul.f32 %v8515_v13, %v2493_v23  ;;  %vm2540_vm7 = vcmp.eq.f32.partialorder %v2539_v54, 8.507059e+37  ;;  %v2556_v23 = vld [vmem:[#allocation2 + $0x28] sm:$0xc] }
 0x8e3   :  { %v2513_v28 = vmul.f32 %v8517_v10, %v2512_v24 }
 0x8e4   :  { %v8519_v30 = vpop.eup %8518  ;;  %v2495_v31 = vadd.f32 %v8515_v13, %v2494_v63 }
 0x8e5   :  { %v2514_v33 = vadd.f32 %v8517_v10, %v2513_v28  ;;  %v2531_v34 = vmul.f32 %v8519_v30, %v2529_v6  ;;  %v8521_v42 = vpop.eup %8520  ;;  %vm2536_vm4 = vweird.f32 %v8519_v30 }
 0x8e6   :  { %v2499_v40 = vsel %vm2498_vm15, %v8515_v13, %v2495_v31  ;;  %vm2537_vm6 = vmor %vm2535_vm5, %vm2536_vm4 }
 0x8e7   :  { %v2504_v43 = vsel %vm2501_vm2, %v2503_v32, %v2499_v40  ;;  %v2518_v45 = vsel %vm2517_vm1, %v8517_v10, %v2514_v33  ;;  %v2532_v36 = vsub.f32 1.0, %v2531_v34 }
 0x8e8   :  { %v2523_v47 = vsel %vm2520_vm3, %v2522_v39, %v2518_v45  ;;  %v2549_v35 = vmul.f32 %v8521_v42, %v2504_v43 }
 0x8e9   :  { %v2548_v49 = vmul.f32 %v2546_v41, %v2523_v47  ;;  %v2533_v50 = vmul.f32 %v8519_v30, %v2532_v36 }
 0x8eb   :  { %v9429_v52 = vadd.f32 %v2549_v35, %v2548_v49  ;;  %v2534_v21 = vadd.f32 %v8519_v30, %v2533_v50 }
 0x8ed   :  { %8522 = vtanh.f32 %v9429_v52  ;;  %v2538_v58 = vsel %vm2537_vm6, %v8519_v30, %v2534_v21  ;;  %v2724_v47 = vrot.slane %v9429_v52, 6 }
 0x8ee   :  { %v2543_v61 = vsel %vm2540_vm7, %v2542_v46, %v2538_v58 }
 0x8f3   :  { %v8523_v56 = vpop.eup %8522 }
 0x8f4   :  { %v2552_v37 = vmul.f32 %v8523_v56, %v2543_v61 }
 0x8f6   :  { %2553 = vst.msk [vmem:[#allocation3 + $0x8] sm:$0x3] %vm318_vm13, %v2552_v37  ;;  %7874 = vmatmul.msk.f32.vlgmr.msrb.gmra.mxu0 %vm27_vm0, %v2552_v37  ;;  %7875 = vmatmul.msk.f32.vlgmr.msra.gmra.mxu1 %vm27_vm0, %v2552_v37 }
 0x8f7   :  { %7876 = vmatmul.msk.f32.vlgmr.msrb.gmra.mxu2 %vm27_vm0, %v2552_v37  ;;  %7877 = vmatmul.msk.f32.vlgmr.msrb.gmra.mxu3 %vm27_vm0, %v2552_v37 }
 0x8f8   :  { %2941 = vmatpush.msrb.mxu0 %v7885_v51  ;;  %2961 = vmatpush.msra.mxu1 %v7886_v12 }
 0x8f9   :  { %2981 = vmatpush.msrb.mxu2 %v7887_v44  ;;  %3001 = vmatpush.msrb.mxu3 %v7888_v48 }
 0x8fa   :  { %2942 = vmatpush.msrb.mxu0 %v7881_v53  ;;  %2962 = vmatpush.msra.mxu1 %v7882_v59  ;;  %v2732_v53 = vld [vmem:[#allocation2 + $0x8] sm:$0x30] }
 0x8fb   :  { %2982 = vmatpush.msrb.mxu2 %v7883_v57  ;;  %3002 = vmatpush.msrb.mxu3 %v7884_v19 }
 0x973   :  { %v2586_v62 = vpop.f32.mrf.mxu0  ;;  %v2606_v7 = vpop.f32.mrf.mxu1 }
 0x974   :  { %v2653_v38 = vrot.slane %v2586_v62, 6  ;;  %v2654_v55 = vrot.slane %v2606_v7, 6 }
 0x976   :  { %v2661_v2 = vadd.f32 %v2653_v38, %v2554_v1  ;;  %v2662_v17 = vadd.f32 %v2654_v55, %v2555_v9 }
 0x978   :  { %v7878_v3 = vmul.f32 -1.442695, %v2661_v2  ;;  %v7879_v14 = vmul.f32 -1.442695, %v2662_v17 }
 0x97a   :  { %8524 = vpow2.f32 %v7878_v3  ;;  %v2646_v11 = vpop.f32.mrf.mxu3  ;;  %v2626_v10 = vpop.f32.mrf.mxu2 }
 0x97b   :  { %8526 = vpow2.f32 %v7879_v14  ;;  %v2656_v4 = vrot.slane %v2646_v11, 6  ;;  %v2655_v16 = vrot.slane %v2626_v10, 6  ;;  %v2733_v11 = vld [vmem:[#allocation2 + $0x20] sm:$0x30] }
 0x97d   :  { %v2664_v5 = vadd.f32 %v2656_v4, %v2557_v0  ;;  %v2663_v26 = vadd.f32 %v2655_v16, %v2556_v23  ;;  %v2735_v0 = vld [vmem:[#allocation2 + $0x38] sm:$0x30]  ;;  %v7916_v23 = vld [vmem:[%s10284_s1 + $0xa8] sm:$0xff] }
 0x97f   :  { %v7880_v60 = vmul.f32 -1.442695, %v2664_v5 }
 0x980   :  { %v8525_v15 = vpop.eup %8524 }
 0x981   :  { %v8527_v6 = vpop.eup %8526  ;;  %v2668_v13 = vadd.f32 1.0, %v8525_v15  ;;  %8528 = vpow2.f32 %v7880_v60 }
 0x982   :  { %v2687_v8 = vadd.f32 1.0, %v8527_v6 }
 0x983   :  { %8530 = vrcp.f32 %v2668_v13  ;;  %v2680_v31 = vand.u32 2147483648, %v2668_v13  ;;  %v2678_v34 = vand.u32 2147483647, %v2668_v13  ;;  %vm2674_vm14 = vweird.f32 %v2668_v13 }
 0x984   :  { %8532 = vrcp.f32 %v2687_v8  ;;  %v2699_v32 = vand.u32 2147483648, %v2687_v8  ;;  %v2697_v40 = vand.u32 2147483647, %v2687_v8  ;;  %vm2693_vm15 = vweird.f32 %v2687_v8 }
 0x985   :  { %v2681_v43 = vor.u32 1.1754944e-38, %v2680_v31  ;;  %vm2679_vm3 = vcmp.eq.f32.partialorder %v2678_v34, 8.507059e+37 }
 0x986   :  { %v2700_v35 = vor.u32 1.1754944e-38, %v2699_v32  ;;  %vm2698_vm4 = vcmp.eq.f32.partialorder %v2697_v40, 8.507059e+37 }
 0x987   :  { %v8529_v18 = vpop.eup %8528 }
 0x988   :  { %v2707_v24 = vadd.f32 1.0, %v8529_v18  ;;  %v7915_v18 = vld [vmem:[%s10284_s1 + $0xa0] sm:$0xff] }
 0x989   :  { %v8531_v25 = vpop.eup %8530 }
 0x98a   :  { %v8533_v63 = vpop.eup %8532  ;;  %v2670_v27 = vmul.f32 %v8531_v25, %v2668_v13  ;;  %8534 = vrcp.f32 %v2707_v24  ;;  %vm2675_vm8 = vweird.f32 %v8531_v25  ;;  %v2719_v52 = vand.u32 2147483648, %v2707_v24 }
 0x98b   :  { %v2689_v28 = vmul.f32 %v8533_v63, %v2687_v8  ;;  %8536 = vtanh.f32 %v2663_v26  ;;  %vm2694_vm9 = vweird.f32 %v8533_v63  ;;  %vm2676_vm1 = vmor %vm2674_vm14, %vm2675_vm8  ;;  %vm2713_vm6 = vweird.f32 %v2707_v24  ;;  %v7911_v26 = vld [vmem:[%s10284_s1 + $0x80] sm:$0xff] }
 0x98c   :  { %v2671_v29 = vsub.f32 1.0, %v2670_v27  ;;  %vm2695_vm2 = vmor %vm2693_vm15, %vm2694_vm9  ;;  %v2717_v7 = vand.u32 2147483647, %v2707_v24  ;;  %v2720_v55 = vor.u32 1.1754944e-38, %v2719_v52 }
 0x98d   :  { %v2690_v30 = vsub.f32 1.0, %v2689_v28  ;;  %v7913_v28 = vld [vmem:[%s10284_s1 + $0x90] sm:$0xff] }
 0x98e   :  { %v2672_v33 = vmul.f32 %v8531_v25, %v2671_v29  ;;  %vm2718_vm8 = vcmp.eq.f32.partialorder %v2717_v7, 8.507059e+37  ;;  %v7914_v29 = vld [vmem:[%s10284_s1 + $0x98] sm:$0xff] }
 0x98f   :  { %v2691_v39 = vmul.f32 %v8533_v63, %v2690_v30  ;;  %v2734_v30 = vld [vmem:[#allocation2 + $0x28] sm:$0x30] }
 0x990   :  { %v8535_v41 = vpop.eup %8534  ;;  %v2673_v42 = vadd.f32 %v8531_v25, %v2672_v33 }
 0x991   :  { %v2692_v45 = vadd.f32 %v8533_v63, %v2691_v39  ;;  %v2709_v36 = vmul.f32 %v8535_v41, %v2707_v24  ;;  %v8537_v50 = vpop.eup %8536  ;;  %vm2714_vm5 = vweird.f32 %v8535_v41  ;;  %v7917_v24 = vld [vmem:[%s10284_s1 + $0xb0] sm:$0xff] }
 0x992   :  { %v2677_v49 = vsel %vm2676_vm1, %v8531_v25, %v2673_v42  ;;  %vm2715_vm7 = vmor %vm2713_vm6, %vm2714_vm5  ;;  %v7918_v25 = vld [vmem:[%s10284_s1 + $0xb8] sm:$0xff] }
 0x993   :  { %v2682_v21 = vsel %vm2679_vm3, %v2681_v43, %v2677_v49  ;;  %v2696_v22 = vsel %vm2695_vm2, %v8533_v63, %v2692_v45  ;;  %v2710_v54 = vsub.f32 1.0, %v2709_v36  ;;  %v7912_v63 = vld [vmem:[%s10284_s1 + $0x88] sm:$0xff] }
 0x994   :  { %v2701_v58 = vsel %vm2698_vm4, %v2700_v35, %v2696_v22  ;;  %v2727_v46 = vmul.f32 %v8537_v50, %v2682_v21 }
 0x995   :  { %v2726_v56 = vmul.f32 %v2724_v47, %v2701_v58  ;;  %v2711_v61 = vmul.f32 %v8535_v41, %v2710_v54 }
 0x997   :  { %v9462_v37 = vadd.f32 %v2727_v46, %v2726_v56  ;;  %v2712_v62 = vadd.f32 %v8535_v41, %v2711_v61 }
 0x999   :  { %8538 = vtanh.f32 %v9462_v37  ;;  %v2716_v38 = vsel %vm2715_vm7, %v8535_v41, %v2712_v62  ;;  %v2903_v46 = vrot.slane %v9462_v37, 6 }
 0x99a   :  { %v2721_v9 = vsel %vm2718_vm8, %v2720_v55, %v2716_v38 }
 0x99f   :  { %v8539_v1 = vpop.eup %8538 }
 0x9a0   :  { %v2730_v2 = vmul.f32 %v8539_v1, %v2721_v9 }
 0x9a2   :  { %2731 = vst.msk [vmem:[#allocation3 + $0x8] sm:$0xc] %vm497_vm11, %v2730_v2  ;;  %v2745_v17 = vrot.slane %v2730_v2, 2 }
 0x9a4   :  { %7889 = vmatmul.msk.f32.vlgmr.msra.gmra.mxu0 %vm27_vm0, %v2745_v17  ;;  %7890 = vmatmul.msk.f32.vlgmr.msrb.gmra.mxu1 %vm27_vm0, %v2745_v17 }
 0x9a5   :  { %7891 = vmatmul.msk.f32.vlgmr.msra.gmra.mxu2 %vm27_vm0, %v2745_v17  ;;  %7892 = vmatmul.msk.f32.vlgmr.msra.gmra.mxu3 %vm27_vm0, %v2745_v17 }
 0x9a6   :  { %3132 = vmatpush.msra.mxu0 %v7915_v18  ;;  %3155 = vmatpush.msrb.mxu1 %v7916_v23 }
 0x9a7   :  { %3178 = vmatpush.msra.mxu2 %v7917_v24  ;;  %3201 = vmatpush.msra.mxu3 %v7918_v25 }
 0x9a8   :  { %3133 = vmatpush.msra.mxu0 %v7911_v26  ;;  %3156 = vmatpush.msrb.mxu1 %v7912_v63 }
 0x9a9   :  { %3179 = vmatpush.msra.mxu2 %v7913_v28  ;;  %3202 = vmatpush.msra.mxu3 %v7914_v29 }
 0xa21   :  { %v2765_v3 = vpop.f32.mrf.mxu0  ;;  %v2785_v14 = vpop.f32.mrf.mxu1 }
 0xa22   :  { %v2832_v51 = vrot.slane %v2765_v3, 4  ;;  %v2833_v12 = vrot.slane %v2785_v14, 4 }
 0xa24   :  { %v2840_v59 = vadd.f32 %v2832_v51, %v2732_v53  ;;  %v2841_v44 = vadd.f32 %v2833_v12, %v2733_v11 }
 0xa26   :  { %v7893_v48 = vmul.f32 -1.442695, %v2840_v59  ;;  %v7894_v4 = vmul.f32 -1.442695, %v2841_v44 }
 0xa28   :  { %8540 = vpow2.f32 %v7893_v48  ;;  %v2825_v57 = vpop.f32.mrf.mxu3  ;;  %v2805_v10 = vpop.f32.mrf.mxu2  ;;  %v3090_v48 = vld [vmem:[#allocation3] sm:$0xff] }
 0xa29   :  { %8542 = vpow2.f32 %v7894_v4  ;;  %v2835_v19 = vrot.slane %v2825_v57, 4  ;;  %v2834_v16 = vrot.slane %v2805_v10, 4 }
 0xa2b   :  { %v2843_v5 = vadd.f32 %v2835_v19, %v2735_v0  ;;  %v2842_v33 = vadd.f32 %v2834_v16, %v2734_v30 }
 0xa2d   :  { %v7895_v60 = vmul.f32 -1.442695, %v2843_v5  ;;  %v2911_v5 = vld [vmem:[#allocation2 + $0x8] sm:$0xc0] }
 0xa2e   :  { %v8541_v15 = vpop.eup %8540 }
 0xa2f   :  { %v8543_v6 = vpop.eup %8542  ;;  %v2847_v13 = vadd.f32 1.0, %v8541_v15  ;;  %8544 = vpow2.f32 %v7895_v60  ;;  %v2912_v60 = vld [vmem:[#allocation2 + $0x20] sm:$0xc0]  ;;  %v9510_v15 = vld [vmem:[%s10287_s3 + $0x8] sm:$0xf] }
 0xa30   :  { %v2866_v8 = vadd.f32 1.0, %v8543_v6  ;;  %v3104_v16 = vperm.slane %v9510_v15, 0  ;;  %v3105_v18 = vperm.slane %v9510_v15, 1 }
 0xa31   :  { %8546 = vrcp.f32 %v2847_v13  ;;  %v2859_v43 = vand.u32 2147483648, %v2847_v13  ;;  %v2857_v47 = vand.u32 2147483647, %v2847_v13  ;;  %vm2853_vm15 = vweird.f32 %v2847_v13 }
 0xa32   :  { %8548 = vrcp.f32 %v2866_v8  ;;  %v2878_v45 = vand.u32 2147483648, %v2866_v8  ;;  %v2876_v49 = vand.u32 2147483647, %v2866_v8  ;;  %vm2872_vm1 = vweird.f32 %v2866_v8 }
 0xa33   :  { %v2860_v22 = vor.u32 1.1754944e-38, %v2859_v43  ;;  %vm2858_vm4 = vcmp.eq.f32.partialorder %v2857_v47, 8.507059e+37  ;;  %v9537_v47 = vld [vmem:[%s10286_s2 + $0xb8] sm:$0xff] }
 0xa34   :  { %v2879_v56 = vor.u32 1.1754944e-38, %v2878_v45  ;;  %vm2877_vm5 = vcmp.eq.f32.partialorder %v2876_v49, 8.507059e+37  ;;  %v9527_v45 = vld [vmem:[%s10286_s2 + $0xa0] sm:$0xff] }
 0xa35   :  { %v8545_v27 = vpop.eup %8544 }
 0xa36   :  { %v2886_v31 = vadd.f32 1.0, %v8545_v27  ;;  %v2914_v27 = vld [vmem:[#allocation2 + $0x38] sm:$0xc0] }
 0xa37   :  { %v8547_v32 = vpop.eup %8546 }
 0xa38   :  { %v8549_v34 = vpop.eup %8548  ;;  %v2849_v39 = vmul.f32 %v8547_v32, %v2847_v13  ;;  %8550 = vrcp.f32 %v2886_v31  ;;  %vm2854_vm9 = vweird.f32 %v8547_v32  ;;  %v2898_v37 = vand.u32 2147483648, %v2886_v31 }
 0xa39   :  { %v2868_v40 = vmul.f32 %v8549_v34, %v2866_v8  ;;  %8552 = vtanh.f32 %v2842_v33  ;;  %vm2873_vm14 = vweird.f32 %v8549_v34  ;;  %vm2855_vm2 = vmor %vm2853_vm15, %vm2854_vm9  ;;  %vm2892_vm7 = vweird.f32 %v2886_v31 }
 0xa3a   :  { %v2850_v41 = vsub.f32 1.0, %v2849_v39  ;;  %vm2874_vm3 = vmor %vm2872_vm1, %vm2873_vm14  ;;  %v2896_v14 = vand.u32 2147483647, %v2886_v31  ;;  %v2899_v12 = vor.u32 1.1754944e-38, %v2898_v37  ;;  %v3106_v39 = vperm.slane %v9510_v15, 2 }
 0xa3b   :  { %v2869_v42 = vsub.f32 1.0, %v2868_v40  ;;  %v3107_v40 = vperm.slane %v9510_v15, 3 }
 0xa3c   :  { %v2851_v36 = vmul.f32 %v8547_v32, %v2850_v41  ;;  %vm2897_vm9 = vcmp.eq.f32.partialorder %v2896_v14, 8.507059e+37 }
 0xa3d   :  { %v2870_v35 = vmul.f32 %v8549_v34, %v2869_v42 }
 0xa3e   :  { %v8551_v50 = vpop.eup %8550  ;;  %v2852_v21 = vadd.f32 %v8547_v32, %v2851_v36  ;;  %v9532_v36 = vld [vmem:[%s10286_s2 + $0xa8] sm:$0xff] }
 0xa3f   :  { %v2871_v54 = vadd.f32 %v8549_v34, %v2870_v35  ;;  %v2888_v58 = vmul.f32 %v8551_v50, %v2886_v31  ;;  %v8553_v62 = vpop.eup %8552  ;;  %vm2893_vm6 = vweird.f32 %v8551_v50 }
 0xa40   :  { %v2856_v61 = vsel %vm2855_vm2, %v8547_v32, %v2852_v21  ;;  %vm2894_vm8 = vmor %vm2892_vm7, %vm2893_vm6 }
 0xa41   :  { %v2861_v52 = vsel %vm2858_vm4, %v2860_v22, %v2856_v61  ;;  %v2875_v7 = vsel %vm2874_vm3, %v8549_v34, %v2871_v54  ;;  %v2889_v38 = vsub.f32 1.0, %v2888_v58  ;;  %v2913_v22 = vld [vmem:[#allocation2 + $0x28] sm:$0xc0] }
 0xa42   :  { %v2880_v55 = vsel %vm2877_vm5, %v2879_v56, %v2875_v7  ;;  %v2906_v1 = vmul.f32 %v8553_v62, %v2861_v52  ;;  %v9556_v52 = vld [vmem:[%s10286_s2 + $0x80] sm:$0xff]  ;;  %v9561_v7 = vld [vmem:[%s10286_s2 + $0x88] sm:$0xff] }
 0xa43   :  { %v2905_v9 = vmul.f32 %v2903_v46, %v2880_v55  ;;  %v2890_v2 = vmul.f32 %v8551_v50, %v2889_v38  ;;  %v9568_v55 = vld [vmem:[%s10286_s2 + $0xb0] sm:$0xff] }
 0xa45   :  { %v9495_v17 = vadd.f32 %v2906_v1, %v2905_v9  ;;  %v2891_v3 = vadd.f32 %v8551_v50, %v2890_v2  ;;  %v9573_v1 = vld [vmem:[%s10286_s2 + $0x98] sm:$0xff] }
 0xa47   :  { %8554 = vtanh.f32 %v9495_v17  ;;  %v2895_v51 = vsel %vm2894_vm8, %v8551_v50, %v2891_v3  ;;  %v9581_v3 = vld [vmem:[%s10286_s2 + $0x90] sm:$0xff] }
 0xa48   :  { %v2900_v11 = vsel %vm2897_vm9, %v2899_v12, %v2895_v51 }
 0xa4d   :  { %v8555_v53 = vpop.eup %8554 }
 0xa4e   :  { %v2909_v59 = vmul.f32 %v8555_v53, %v2900_v11 }
 0xa50   :  { %2910 = vst.msk [vmem:[#allocation3 + $0x8] sm:$0x30] %vm677_vm10, %v2909_v59  ;;  %v2924_v44 = vrot.slane %v2909_v59, 4 }
 0xa52   :  { %7904 = vmatmul.msk.f32.vlgmr.msrb.gmra.mxu0 %vm27_vm0, %v2924_v44  ;;  %7905 = vmatmul.msk.f32.vlgmr.msra.gmra.mxu1 %vm27_vm0, %v2924_v44 }
 0xa53   :  { %7906 = vmatmul.msk.f32.vlgmr.msrb.gmra.mxu2 %vm27_vm0, %v2924_v44  ;;  %7907 = vmatmul.msk.f32.vlgmr.msrb.gmra.mxu3 %vm27_vm0, %v2924_v44 }
 0xa54   :  { %3245 = vmatpush.msrb.mxu0 %v9527_v45  ;;  %3265 = vmatpush.msra.mxu1 %v9532_v36 }
 0xa55   :  { %3305 = vmatpush.msrb.mxu3 %v9537_v47  ;;  %3285 = vmatpush.msrb.mxu2 %v9568_v55 }
 0xa56   :  { %3246 = vmatpush.msrb.mxu0 %v9556_v52  ;;  %3266 = vmatpush.msra.mxu1 %v9561_v7 }
 0xa57   :  { %3306 = vmatpush.msrb.mxu3 %v9573_v1  ;;  %3286 = vmatpush.msrb.mxu2 %v9581_v3 }
 0xa5a   :  { %7920 = vmatmul.msk.f32.vlgmr.msra.gmra.mxu0 %vm27_vm0, %v3090_v48  ;;  %7922 = vmatmul.msk.f32.vlgmr.msrb.gmra.mxu1 %vm27_vm0, %v3090_v48 }
 0xa5b   :  { %7924 = vmatmul.msk.f32.vlgmr.msra.gmra.mxu2 %vm27_vm0, %v3090_v48  ;;  %7926 = vmatmul.msk.f32.vlgmr.msra.gmra.mxu3 %vm27_vm0, %v3090_v48 }
 0xa5c   :  { %3408 = vmatpush.msra.mxu0 %v9527_v45  ;;  %3428 = vmatpush.msrb.mxu1 %v9532_v36 }
 0xa5d   :  { %3468 = vmatpush.msra.mxu3 %v9537_v47  ;;  %3448 = vmatpush.msra.mxu2 %v9568_v55 }
 0xa5e   :  { %3409 = vmatpush.msra.mxu0 %v9556_v52  ;;  %3429 = vmatpush.msrb.mxu1 %v9561_v7 }
 0xa5f   :  { %3469 = vmatpush.msra.mxu3 %v9573_v1  ;;  %3449 = vmatpush.msra.mxu2 %v9581_v3 }
 0xacf   :  { %v2944_v4 = vpop.f32.mrf.mxu0  ;;  %v2964_v57 = vpop.f32.mrf.mxu1 }
 0xad0   :  { %v3011_v19 = vrot.slane %v2944_v4, 2  ;;  %v3012_v0 = vrot.slane %v2964_v57, 2  ;;  %v3082_v57 = vrot.slane %v9495_v17, 6 }
 0xad2   :  { %v3019_v6 = vadd.f32 %v3011_v19, %v2911_v5  ;;  %v3020_v13 = vadd.f32 %v3012_v0, %v2912_v60 }
 0xad4   :  { %v7908_v8 = vmul.f32 -1.442695, %v3019_v6  ;;  %v7909_v10 = vmul.f32 -1.442695, %v3020_v13 }
 0xad6   :  { %8556 = vpow2.f32 %v7908_v8  ;;  %v2984_v23 = vpop.f32.mrf.mxu2  ;;  %v3004_v24 = vpop.f32.mrf.mxu3 }
 0xad7   :  { %8558 = vpow2.f32 %v7909_v10  ;;  %v3014_v25 = vrot.slane %v3004_v24, 2  ;;  %v3135_v26 = vpop.f32.mrf.mxu0  ;;  %v3158_v63 = vpop.f32.mrf.mxu1  ;;  %v3013_v35 = vrot.slane %v2984_v23, 2 }
 0xad8   :  { %v3136_v28 = vadd.f32 %v3135_v26, %v3104_v16  ;;  %v3159_v29 = vadd.f32 %v3158_v63, %v3105_v18 }
 0xad9   :  { %v3022_v30 = vadd.f32 %v3014_v25, %v2914_v27  ;;  %v3021_v46 = vadd.f32 %v3013_v35, %v2913_v22 }
 0xada   :  { %3210 = vst [vmem:[#allocation2 + $0x30] sm:$0xff] %v3136_v28 }
 0xadb   :  { %v7910_v31 = vmul.f32 -1.442695, %v3022_v30  ;;  %3211 = vst [vmem:[#allocation2] sm:$0xff] %v3159_v29 }
 0xadc   :  { %v8557_v32 = vpop.eup %8556 }
 0xadd   :  { %v8559_v33 = vpop.eup %8558  ;;  %v9518_v34 = vadd.f32 1.0, %v8557_v32  ;;  %8560 = vpow2.f32 %v7910_v31 }
 0xade   :  { %v9522_v41 = vadd.f32 1.0, %v8559_v33  ;;  %v3181_v42 = vpop.f32.mrf.mxu2  ;;  %v3204_v43 = vpop.f32.mrf.mxu3 }
 0xadf   :  { %8562 = vrcp.f32 %v9518_v34  ;;  %v3182_v49 = vadd.f32 %v3181_v42, %v3106_v39  ;;  %v3205_v50 = vadd.f32 %v3204_v43, %v3107_v40  ;;  %v3038_v2 = vand.u32 2147483648, %v9518_v34 }
 0xae0   :  { %8564 = vrcp.f32 %v9522_v41  ;;  %v3057_v37 = vand.u32 2147483648, %v9522_v41  ;;  %v3036_v51 = vand.u32 2147483647, %v9518_v34  ;;  %v3055_v53 = vand.u32 2147483647, %v9522_v41 }
 0xae1   :  { %3212 = vst [vmem:[#allocation2 + $0x18] sm:$0xff] %v3182_v49  ;;  %vm3032_vm1 = vweird.f32 %v9518_v34  ;;  %vm3051_vm2 = vweird.f32 %v9522_v41  ;;  %v3039_v44 = vor.u32 1.1754944e-38, %v3038_v2 }
 0xae2   :  { %3213 = vst [vmem:[#allocation2 + $0x10] sm:$0xff] %v3205_v50  ;;  %v3058_v19 = vor.u32 1.1754944e-38, %v3057_v37  ;;  %vm3037_vm5 = vcmp.eq.f32.partialorder %v3036_v51, 8.507059e+37  ;;  %vm3056_vm6 = vcmp.eq.f32.partialorder %v3055_v53, 8.507059e+37 }
 0xae3   :  { %v8561_v21 = vpop.eup %8560 }
 0xae4   :  { %v9548_v54 = vadd.f32 1.0, %v8561_v21  ;;  %v3218_v21 = vld [vmem:[#allocation2 + $0x30] sm:$0x3] }
 0xae5   :  { %v8563_v58 = vpop.eup %8562 }
 0xae6   :  { %v8565_v56 = vpop.eup %8564  ;;  %v3028_v61 = vmul.f32 %v8563_v58, %v9518_v34  ;;  %8566 = vrcp.f32 %v9548_v54  ;;  %vm3033_vm14 = vweird.f32 %v8563_v58  ;;  %v3077_v17 = vand.u32 2147483648, %v9548_v54 }
 0xae7   :  { %v3047_v62 = vmul.f32 %v8565_v56, %v9522_v41  ;;  %8568 = vtanh.f32 %v3021_v46  ;;  %vm3052_vm15 = vweird.f32 %v8565_v56  ;;  %vm3034_vm3 = vmor %vm3032_vm1, %vm3033_vm14  ;;  %vm3071_vm8 = vweird.f32 %v9548_v54 }
 0xae8   :  { %v3029_v38 = vsub.f32 1.0, %v3028_v61  ;;  %vm3053_vm4 = vmor %vm3051_vm2, %vm3052_vm15  ;;  %v3075_v63 = vand.u32 2147483647, %v9548_v54  ;;  %v3078_v28 = vor.u32 1.1754944e-38, %v3077_v17  ;;  %v3220_v51 = vld [vmem:[#allocation2 + $0x18] sm:$0x3] }
 0xae9   :  { %v3048_v9 = vsub.f32 1.0, %v3047_v62  ;;  %v3221_v61 = vld [vmem:[#allocation2 + $0x10] sm:$0x3] }
 0xaea   :  { %v3030_v14 = vmul.f32 %v8563_v58, %v3029_v38  ;;  %vm3076_vm14 = vcmp.eq.f32.partialorder %v3075_v63, 8.507059e+37 }
 0xaeb   :  { %v3049_v12 = vmul.f32 %v8565_v56, %v3048_v9 }
 0xaec   :  { %v8567_v11 = vpop.eup %8566  ;;  %v3031_v59 = vadd.f32 %v8563_v58, %v3030_v14 }
 0xaed   :  { %v3050_v48 = vadd.f32 %v8565_v56, %v3049_v12  ;;  %v3067_v4 = vmul.f32 %v8567_v11, %v9548_v54  ;;  %v8569_v5 = vpop.eup %8568  ;;  %vm3072_vm7 = vweird.f32 %v8567_v11  ;;  %v3219_v54 = vld [vmem:[#allocation2] sm:$0x3] }
 0xaee   :  { %v3035_v0 = vsel %vm3034_vm3, %v8563_v58, %v3031_v59  ;;  %vm3073_vm9 = vmor %vm3071_vm8, %vm3072_vm7 }
 0xaef   :  { %v3040_v60 = vsel %vm3037_vm5, %v3039_v44, %v3035_v0  ;;  %v3054_v6 = vsel %vm3053_vm4, %v8565_v56, %v3050_v48  ;;  %v3068_v13 = vsub.f32 1.0, %v3067_v4 }
 0xaf0   :  { %v3059_v8 = vsel %vm3056_vm6, %v3058_v19, %v3054_v6  ;;  %v3085_v10 = vmul.f32 %v8569_v5, %v3040_v60 }
 0xaf1   :  { %v3084_v23 = vmul.f32 %v3082_v57, %v3059_v8  ;;  %v3069_v24 = vmul.f32 %v8567_v11, %v3068_v13 }
 0xaf3   :  { %v3086_v25 = vadd.f32 %v3085_v10, %v3084_v23  ;;  %v3070_v26 = vadd.f32 %v8567_v11, %v3069_v24 }
 0xaf5   :  { %8570 = vtanh.f32 %v3086_v25  ;;  %v3074_v27 = vsel %vm3073_vm9, %v8567_v11, %v3070_v26 }
 0xaf6   :  { %v3079_v30 = vsel %vm3076_vm14, %v3078_v28, %v3074_v27 }
 0xafb   :  { %v8571_v29 = vpop.eup %8570 }
 0xafc   :  { %v3088_v31 = vmul.f32 %v8571_v29, %v3079_v30 }
 0xafe   :  { %3089 = vst.msk [vmem:[#allocation3 + $0x8] sm:$0xc0] %vm857_vm12, %v3088_v31 }
 0xb05   :  { %v3091_v32 = vld [vmem:[#allocation3 + $0x8] sm:$0xff] }
 0xb06   :  { %7921 = vmatmul.msk.f32.gmra.mxu0 %vm27_vm0, %v3091_v32  ;;  %7923 = vmatmul.msk.f32.gmra.mxu1 %vm27_vm0, %v3091_v32 }
 0xb07   :  { %7925 = vmatmul.msk.f32.gmra.mxu2 %vm27_vm0, %v3091_v32  ;;  %7927 = vmatmul.msk.f32.gmra.mxu3 %vm27_vm0, %v3091_v32 }
 0xb0e   :  { %3247 = vmatmul.f32.vlgmr.msrb.gmra.mxu0 %v8956_v20  ;;  %3267 = vmatmul.f32.vlgmr.msra.gmra.mxu1 %v8956_v20 }
 0xb0f   :  { %3287 = vmatmul.f32.vlgmr.msrb.gmra.mxu2 %v8956_v20  ;;  %3307 = vmatmul.f32.vlgmr.msrb.gmra.mxu3 %v8956_v20 }
 0xb10   :  { %3587 = vmatpush.msrb.mxu0 %v9527_v45  ;;  %3607 = vmatpush.msra.mxu1 %v9532_v36 }
 0xb11   :  { %3627 = vmatpush.msrb.mxu2 %v9568_v55  ;;  %3647 = vmatpush.msrb.mxu3 %v9537_v47 }
 0xb12   :  { %3588 = vmatpush.msrb.mxu0 %v9556_v52  ;;  %3608 = vmatpush.msra.mxu1 %v9561_v7 }
 0xb13   :  { %3628 = vmatpush.msrb.mxu2 %v9581_v3  ;;  %3648 = vmatpush.msrb.mxu3 %v9573_v1 }
 0xb83   :  { %v3138_v33 = vpop.f32.mrf.mxu0  ;;  %v3161_v34 = vpop.f32.mrf.mxu1 }
 0xb84   :  { %v3139_v41 = vadd.f32 %v3138_v33, %v3104_v16  ;;  %v3162_v42 = vadd.f32 %v3161_v34, %v3105_v18 }
 0xb86   :  { %3214 = vst [vmem:[#allocation2 + $0x8] sm:$0xff] %v3139_v41 }
 0xb87   :  { %3215 = vst [vmem:[#allocation2 + $0x20] sm:$0xff] %v3162_v42 }
 0xb8a   :  { %v3184_v43 = vpop.f32.mrf.mxu2  ;;  %v3207_v35 = vpop.f32.mrf.mxu3 }
 0xb8b   :  { %v3185_v49 = vadd.f32 %v3184_v43, %v3106_v39  ;;  %v3208_v50 = vadd.f32 %v3207_v35, %v3107_v40  ;;  %v3248_v22 = vpop.f32.mrf.mxu0  ;;  %v3268_v58 = vpop.f32.mrf.mxu1 }
 0xb8c   :  { %v3311_v46 = vadd.f32 %v3248_v22, %v3218_v21  ;;  %v3312_v56 = vadd.f32 %v3268_v58, %v3219_v54 }
 0xb8d   :  { %3216 = vst [vmem:[#allocation2 + $0x28] sm:$0xff] %v3185_v49 }
 0xb8e   :  { %3217 = vst [vmem:[#allocation2 + $0x38] sm:$0xff] %v3208_v50  ;;  %v7936_v16 = vmul.f32 -1.442695, %v3311_v46  ;;  %v7937_v18 = vmul.f32 -1.442695, %v3312_v56 }
 0xb90   :  { %8572 = vpow2.f32 %v7936_v16  ;;  %v3379_v16 = vld [vmem:[#allocation2 + $0x30] sm:$0xc] }
 0xb91   :  { %8574 = vpow2.f32 %v7937_v18  ;;  %v3380_v18 = vld [vmem:[#allocation2] sm:$0xc] }
 0xb92   :  { %v3308_v62 = vpop.f32.mrf.mxu3  ;;  %v3288_v37 = vpop.f32.mrf.mxu2 }
 0xb93   :  { %v3314_v38 = vadd.f32 %v3308_v62, %v3221_v61  ;;  %v3313_v11 = vadd.f32 %v3288_v37, %v3220_v51 }
 0xb95   :  { %v7938_v9 = vmul.f32 -1.442695, %v3314_v38 }
 0xb96   :  { %v8573_v39 = vpop.eup %8572 }
 0xb97   :  { %v8575_v2 = vpop.eup %8574  ;;  %v3318_v15 = vadd.f32 1.0, %v8573_v39  ;;  %8576 = vpow2.f32 %v7938_v9 }
 0xb98   :  { %v3337_v40 = vadd.f32 1.0, %v8575_v2 }
 0xb99   :  { %8578 = vrcp.f32 %v3318_v15  ;;  %v3330_v19 = vand.u32 2147483648, %v3318_v15  ;;  %v3328_v60 = vand.u32 2147483647, %v3318_v15  ;;  %vm3324_vm2 = vweird.f32 %v3318_v15 }
 0xb9a   :  { %8580 = vrcp.f32 %v3337_v40  ;;  %v3349_v0 = vand.u32 2147483648, %v3337_v40  ;;  %v3347_v13 = vand.u32 2147483647, %v3337_v40  ;;  %vm3343_vm3 = vweird.f32 %v3337_v40 }
 0xb9b   :  { %v3331_v23 = vor.u32 1.1754944e-38, %v3330_v19  ;;  %vm3329_vm5 = vcmp.eq.f32.partialorder %v3328_v60, 8.507059e+37 }
 0xb9c   :  { %v3350_v26 = vor.u32 1.1754944e-38, %v3349_v0  ;;  %vm3348_vm7 = vcmp.eq.f32.partialorder %v3347_v13, 8.507059e+37 }
 0xb9d   :  { %v8577_v14 = vpop.eup %8576 }
 0xb9e   :  { %v3357_v12 = vadd.f32 1.0, %v8577_v14 }
 0xb9f   :  { %v8579_v53 = vpop.eup %8578 }
 0xba0   :  { %v8581_v59 = vpop.eup %8580  ;;  %v3320_v44 = vmul.f32 %v8579_v53, %v3318_v15  ;;  %8582 = vrcp.f32 %v3357_v12  ;;  %vm3325_vm15 = vweird.f32 %v8579_v53  ;;  %v3369_v42 = vand.u32 2147483648, %v3357_v12  ;;  %v3382_v15 = vld [vmem:[#allocation2 + $0x10] sm:$0xc] }
 0xba1   :  { %v3339_v48 = vmul.f32 %v8581_v59, %v3337_v40  ;;  %8584 = vtanh.f32 %v3313_v11  ;;  %vm3344_vm1 = vweird.f32 %v8581_v59  ;;  %vm3326_vm4 = vmor %vm3324_vm2, %vm3325_vm15  ;;  %vm3363_vm9 = vweird.f32 %v3357_v12 }
 0xba2   :  { %v3321_v4 = vsub.f32 1.0, %v3320_v44  ;;  %vm3345_vm6 = vmor %vm3343_vm3, %vm3344_vm1  ;;  %v3367_v43 = vand.u32 2147483647, %v3357_v12  ;;  %v3370_v49 = vor.u32 1.1754944e-38, %v3369_v42 }
 0xba3   :  { %v3340_v57 = vsub.f32 1.0, %v3339_v48  ;;  %v3381_v48 = vld [vmem:[#allocation2 + $0x18] sm:$0xc] }
 0xba4   :  { %v3322_v5 = vmul.f32 %v8579_v53, %v3321_v4  ;;  %vm3368_vm15 = vcmp.eq.f32.partialorder %v3367_v43, 8.507059e+37 }
 0xba5   :  { %v3341_v6 = vmul.f32 %v8581_v59, %v3340_v57 }
 0xba6   :  { %v8583_v8 = vpop.eup %8582  ;;  %v3323_v10 = vadd.f32 %v8579_v53, %v3322_v5 }
 0xba7   :  { %v3342_v24 = vadd.f32 %v8581_v59, %v3341_v6  ;;  %v3359_v25 = vmul.f32 %v8583_v8, %v3357_v12  ;;  %v8585_v63 = vpop.eup %8584  ;;  %vm3364_vm8 = vweird.f32 %v8583_v8 }
 0xba8   :  { %v3327_v17 = vsel %vm3326_vm4, %v8579_v53, %v3323_v10  ;;  %vm3365_vm14 = vmor %vm3363_vm9, %vm3364_vm8 }
 0xba9   :  { %v3332_v27 = vsel %vm3329_vm5, %v3331_v23, %v3327_v17  ;;  %v3346_v28 = vsel %vm3345_vm6, %v8581_v59, %v3342_v24  ;;  %v3360_v29 = vsub.f32 1.0, %v3359_v25 }
 0xbaa   :  { %v3351_v30 = vsel %vm3348_vm7, %v3350_v26, %v3346_v28  ;;  %v3374_v31 = vmul.f32 %v8585_v63, %v3332_v27 }
 0xbab   :  { %v3373_v32 = vmul.f32 0.0, %v3351_v30  ;;  %v3361_v33 = vmul.f32 %v8583_v8, %v3360_v29 }
 0xbad   :  { %v9629_v34 = vadd.f32 %v3374_v31, %v3373_v32  ;;  %v3362_v41 = vadd.f32 %v8583_v8, %v3361_v33 }
 0xbaf   :  { %8586 = vtanh.f32 %v9629_v34  ;;  %v3366_v35 = vsel %vm3365_vm14, %v8583_v8, %v3362_v41  ;;  %v3549_v30 = vrot.slane %v9629_v34, 6 }
 0xbb0   :  { %v3371_v21 = vsel %vm3368_vm15, %v3370_v49, %v3366_v35 }
 0xbb5   :  { %v8587_v50 = vpop.eup %8586 }
 0xbb6   :  { %v3377_v22 = vmul.f32 %v8587_v50, %v3371_v21 }
 0xbb8   :  { %3378 = vst.msk [vmem:[#allocation3] sm:$0x3] %vm318_vm13, %v3377_v22  ;;  %7947 = vmatmul.msk.f32.vlgmr.msra.gmra.mxu0 %vm27_vm0, %v3377_v22  ;;  %7948 = vmatmul.msk.f32.vlgmr.msrb.gmra.mxu1 %vm27_vm0, %v3377_v22 }
 0xbb9   :  { %7949 = vmatmul.msk.f32.vlgmr.msra.gmra.mxu2 %vm27_vm0, %v3377_v22  ;;  %7950 = vmatmul.msk.f32.vlgmr.msra.gmra.mxu3 %vm27_vm0, %v3377_v22 }
 0xbba   :  { %3766 = vmatpush.msra.mxu0 %v9527_v45  ;;  %3786 = vmatpush.msrb.mxu1 %v9532_v36 }
 0xbbb   :  { %3806 = vmatpush.msra.mxu2 %v9568_v55  ;;  %3826 = vmatpush.msra.mxu3 %v9537_v47 }
 0xbbc   :  { %3767 = vmatpush.msra.mxu0 %v9556_v52  ;;  %3787 = vmatpush.msrb.mxu1 %v9561_v7 }
 0xbbd   :  { %3807 = vmatpush.msra.mxu2 %v9581_v3  ;;  %3827 = vmatpush.msra.mxu3 %v9573_v1 }
 0xc35   :  { %v3411_v54 = vpop.f32.mrf.mxu0  ;;  %v3431_v58 = vpop.f32.mrf.mxu1 }
 0xc36   :  { %v3478_v46 = vrot.slane %v3411_v54, 6  ;;  %v3479_v56 = vrot.slane %v3431_v58, 6 }
 0xc38   :  { %v3486_v61 = vadd.f32 %v3478_v46, %v3379_v16  ;;  %v3487_v62 = vadd.f32 %v3479_v56, %v3380_v18 }
 0xc3a   :  { %v7951_v38 = vmul.f32 -1.442695, %v3486_v61  ;;  %v7952_v9 = vmul.f32 -1.442695, %v3487_v62 }
 0xc3c   :  { %8588 = vpow2.f32 %v7951_v38  ;;  %v3471_v39 = vpop.f32.mrf.mxu3  ;;  %v3451_v11 = vpop.f32.mrf.mxu2 }
 0xc3d   :  { %8590 = vpow2.f32 %v7952_v9  ;;  %v3481_v2 = vrot.slane %v3471_v39, 6  ;;  %v3480_v59 = vrot.slane %v3451_v11, 6 }
 0xc3f   :  { %v3489_v40 = vadd.f32 %v3481_v2, %v3382_v15  ;;  %v3488_v19 = vadd.f32 %v3480_v59, %v3381_v48  ;;  %v3557_v15 = vld [vmem:[#allocation2 + $0x30] sm:$0x30] }
 0xc40   :  { %v3560_v59 = vld [vmem:[#allocation2 + $0x10] sm:$0x30] }
 0xc41   :  { %v7953_v37 = vmul.f32 -1.442695, %v3489_v40  ;;  %v3558_v40 = vld [vmem:[#allocation2] sm:$0x30] }
 0xc42   :  { %v8589_v14 = vpop.eup %8588 }
 0xc43   :  { %v8591_v51 = vpop.eup %8590  ;;  %v3493_v12 = vadd.f32 1.0, %v8589_v14  ;;  %8592 = vpow2.f32 %v7953_v37 }
 0xc44   :  { %v3512_v53 = vadd.f32 1.0, %v8591_v51 }
 0xc45   :  { %8594 = vrcp.f32 %v3493_v12  ;;  %v3505_v8 = vand.u32 2147483648, %v3493_v12  ;;  %v3503_v24 = vand.u32 2147483647, %v3493_v12  ;;  %vm3499_vm3 = vweird.f32 %v3493_v12 }
 0xc46   :  { %8596 = vrcp.f32 %v3512_v53  ;;  %v3524_v10 = vand.u32 2147483648, %v3512_v53  ;;  %v3522_v26 = vand.u32 2147483647, %v3512_v53  ;;  %vm3518_vm4 = vweird.f32 %v3512_v53 }
 0xc47   :  { %v3506_v27 = vor.u32 1.1754944e-38, %v3505_v8  ;;  %vm3504_vm7 = vcmp.eq.f32.partialorder %v3503_v24, 8.507059e+37 }
 0xc48   :  { %v3525_v31 = vor.u32 1.1754944e-38, %v3524_v10  ;;  %vm3523_vm8 = vcmp.eq.f32.partialorder %v3522_v26, 8.507059e+37 }
 0xc49   :  { %v8593_v44 = vpop.eup %8592 }
 0xc4a   :  { %v3532_v4 = vadd.f32 1.0, %v8593_v44 }
 0xc4b   :  { %v8595_v57 = vpop.eup %8594 }
 0xc4c   :  { %v8597_v0 = vpop.eup %8596  ;;  %v3495_v5 = vmul.f32 %v8595_v57, %v3493_v12  ;;  %8598 = vrcp.f32 %v3532_v4  ;;  %vm3500_vm1 = vweird.f32 %v8595_v57  ;;  %v3544_v34 = vand.u32 2147483648, %v3532_v4 }
 0xc4d   :  { %v3514_v60 = vmul.f32 %v8597_v0, %v3512_v53  ;;  %8600 = vtanh.f32 %v3488_v19  ;;  %vm3519_vm2 = vweird.f32 %v8597_v0  ;;  %vm3501_vm5 = vmor %vm3499_vm3, %vm3500_vm1  ;;  %vm3538_vm14 = vweird.f32 %v3532_v4 }
 0xc4e   :  { %v3496_v6 = vsub.f32 1.0, %v3495_v5  ;;  %vm3520_vm6 = vmor %vm3518_vm4, %vm3519_vm2  ;;  %v3542_v58 = vand.u32 2147483647, %v3532_v4  ;;  %v3545_v56 = vor.u32 1.1754944e-38, %v3544_v34 }
 0xc4f   :  { %v3515_v13 = vsub.f32 1.0, %v3514_v60 }
 0xc50   :  { %v3497_v23 = vmul.f32 %v8595_v57, %v3496_v6  ;;  %vm3543_vm1 = vcmp.eq.f32.partialorder %v3542_v58, 8.507059e+37 }
 0xc51   :  { %v3516_v25 = vmul.f32 %v8597_v0, %v3515_v13  ;;  %v3559_v13 = vld [vmem:[#allocation2 + $0x18] sm:$0x30] }
 0xc52   :  { %v8599_v17 = vpop.eup %8598  ;;  %v3498_v63 = vadd.f32 %v8595_v57, %v3497_v23 }
 0xc53   :  { %v3517_v28 = vadd.f32 %v8597_v0, %v3516_v25  ;;  %v3534_v29 = vmul.f32 %v8599_v17, %v3532_v4  ;;  %v8601_v33 = vpop.eup %8600  ;;  %vm3539_vm9 = vweird.f32 %v8599_v17 }
 0xc54   :  { %v3502_v32 = vsel %vm3501_vm5, %v8595_v57, %v3498_v63  ;;  %vm3540_vm15 = vmor %vm3538_vm14, %vm3539_vm9 }
 0xc55   :  { %v3507_v41 = vsel %vm3504_vm7, %v3506_v27, %v3502_v32  ;;  %v3521_v42 = vsel %vm3520_vm6, %v8597_v0, %v3517_v28  ;;  %v3535_v43 = vsub.f32 1.0, %v3534_v29 }
 0xc56   :  { %v3526_v35 = vsel %vm3523_vm8, %v3525_v31, %v3521_v42  ;;  %v3552_v49 = vmul.f32 %v8601_v33, %v3507_v41 }
 0xc57   :  { %v3551_v50 = vmul.f32 %v3549_v30, %v3526_v35  ;;  %v3536_v21 = vmul.f32 %v8599_v17, %v3535_v43 }
 0xc59   :  { %v9646_v22 = vadd.f32 %v3552_v49, %v3551_v50  ;;  %v3537_v54 = vadd.f32 %v8599_v17, %v3536_v21 }
 0xc5b   :  { %8602 = vtanh.f32 %v9646_v22  ;;  %v3541_v46 = vsel %vm3540_vm15, %v8599_v17, %v3537_v54  ;;  %v3728_v49 = vrot.slane %v9646_v22, 6 }
 0xc5c   :  { %v3546_v18 = vsel %vm3543_vm1, %v3545_v56, %v3541_v46 }
 0xc61   :  { %v8603_v16 = vpop.eup %8602 }
 0xc62   :  { %v3555_v61 = vmul.f32 %v8603_v16, %v3546_v18 }
 0xc64   :  { %3556 = vst.msk [vmem:[#allocation3] sm:$0xc] %vm497_vm11, %v3555_v61  ;;  %v3570_v62 = vrot.slane %v3555_v61, 2 }
 0xc66   :  { %7962 = vmatmul.msk.f32.vlgmr.msrb.gmra.mxu0 %vm27_vm0, %v3570_v62  ;;  %7963 = vmatmul.msk.f32.vlgmr.msra.gmra.mxu1 %vm27_vm0, %v3570_v62 }
 0xc67   :  { %7964 = vmatmul.msk.f32.vlgmr.msrb.gmra.mxu2 %vm27_vm0, %v3570_v62  ;;  %7965 = vmatmul.msk.f32.vlgmr.msrb.gmra.mxu3 %vm27_vm0, %v3570_v62 }
 0xc68   :  { %3945 = vmatpush.msrb.mxu0 %v9527_v45  ;;  %3965 = vmatpush.msra.mxu1 %v9532_v36 }
 0xc69   :  { %3985 = vmatpush.msrb.mxu2 %v9568_v55  ;;  %4005 = vmatpush.msrb.mxu3 %v9537_v47 }
 0xc6a   :  { %3946 = vmatpush.msrb.mxu0 %v9556_v52  ;;  %3966 = vmatpush.msra.mxu1 %v9561_v7 }
 0xc6b   :  { %3986 = vmatpush.msrb.mxu2 %v9581_v3  ;;  %4006 = vmatpush.msrb.mxu3 %v9573_v1 }
 0xce3   :  { %v3590_v38 = vpop.f32.mrf.mxu0  ;;  %v3610_v9 = vpop.f32.mrf.mxu1 }
 0xce4   :  { %v3657_v39 = vrot.slane %v3590_v38, 4  ;;  %v3658_v2 = vrot.slane %v3610_v9, 4 }
 0xce6   :  { %v3665_v37 = vadd.f32 %v3657_v39, %v3557_v15  ;;  %v3666_v14 = vadd.f32 %v3658_v2, %v3558_v40 }
 0xce8   :  { %v7966_v51 = vmul.f32 -1.442695, %v3665_v37  ;;  %v7967_v12 = vmul.f32 -1.442695, %v3666_v14 }
 0xcea   :  { %8604 = vpow2.f32 %v7966_v51  ;;  %v3650_v53 = vpop.f32.mrf.mxu3  ;;  %v3630_v5 = vpop.f32.mrf.mxu2 }
 0xceb   :  { %8606 = vpow2.f32 %v7967_v12  ;;  %v3660_v11 = vrot.slane %v3650_v53, 4  ;;  %v3659_v60 = vrot.slane %v3630_v5, 4 }
 0xced   :  { %v3668_v44 = vadd.f32 %v3660_v11, %v3560_v59  ;;  %v3667_v23 = vadd.f32 %v3659_v60, %v3559_v13  ;;  %v3736_v59 = vld [vmem:[#allocation2 + $0x30] sm:$0xc0]  ;;  %v3738_v13 = vld [vmem:[#allocation2 + $0x18] sm:$0xc0] }
 0xcef   :  { %v7968_v48 = vmul.f32 -1.442695, %v3668_v44 }
 0xcf0   :  { %v8605_v4 = vpop.eup %8604 }
 0xcf1   :  { %v8607_v57 = vpop.eup %8606  ;;  %v3672_v19 = vadd.f32 1.0, %v8605_v4  ;;  %8608 = vpow2.f32 %v7968_v48  ;;  %v3739_v4 = vld [vmem:[#allocation2 + $0x10] sm:$0xc0] }
 0xcf2   :  { %v3691_v0 = vadd.f32 1.0, %v8607_v57 }
 0xcf3   :  { %8610 = vrcp.f32 %v3672_v19  ;;  %v3684_v27 = vand.u32 2147483648, %v3672_v19  ;;  %v3682_v30 = vand.u32 2147483647, %v3672_v19  ;;  %vm3678_vm4 = vweird.f32 %v3672_v19 }
 0xcf4   :  { %8612 = vrcp.f32 %v3691_v0  ;;  %v3703_v28 = vand.u32 2147483648, %v3691_v0  ;;  %v3701_v32 = vand.u32 2147483647, %v3691_v0  ;;  %vm3697_vm5 = vweird.f32 %v3691_v0 }
 0xcf5   :  { %v3685_v42 = vor.u32 1.1754944e-38, %v3684_v27  ;;  %vm3683_vm8 = vcmp.eq.f32.partialorder %v3682_v30, 8.507059e+37 }
 0xcf6   :  { %v3704_v50 = vor.u32 1.1754944e-38, %v3703_v28  ;;  %vm3702_vm9 = vcmp.eq.f32.partialorder %v3701_v32, 8.507059e+37 }
 0xcf7   :  { %v8609_v6 = vpop.eup %8608 }
 0xcf8   :  { %v3711_v8 = vadd.f32 1.0, %v8609_v6 }
 0xcf9   :  { %v8611_v10 = vpop.eup %8610 }
 0xcfa   :  { %v8613_v24 = vpop.eup %8612  ;;  %v3674_v25 = vmul.f32 %v8611_v10, %v3672_v19  ;;  %8614 = vrcp.f32 %v3711_v8  ;;  %vm3679_vm2 = vweird.f32 %v8611_v10  ;;  %v3723_v22 = vand.u32 2147483648, %v3711_v8 }
 0xcfb   :  { %v3693_v26 = vmul.f32 %v8613_v24, %v3691_v0  ;;  %8616 = vtanh.f32 %v3667_v23  ;;  %vm3698_vm3 = vweird.f32 %v8613_v24  ;;  %vm3680_vm6 = vmor %vm3678_vm4, %vm3679_vm2  ;;  %vm3717_vm15 = vweird.f32 %v3711_v8 }
 0xcfc   :  { %v3675_v17 = vsub.f32 1.0, %v3674_v25  ;;  %vm3699_vm7 = vmor %vm3697_vm5, %vm3698_vm3  ;;  %v3721_v9 = vand.u32 2147483647, %v3711_v8  ;;  %v3724_v2 = vor.u32 1.1754944e-38, %v3723_v22 }
 0xcfd   :  { %v3694_v63 = vsub.f32 1.0, %v3693_v26 }
 0xcfe   :  { %v3676_v29 = vmul.f32 %v8611_v10, %v3675_v17  ;;  %vm3722_vm2 = vcmp.eq.f32.partialorder %v3721_v9, 8.507059e+37 }
 0xcff   :  { %v3695_v31 = vmul.f32 %v8613_v24, %v3694_v63 }
 0xd00   :  { %v8615_v33 = vpop.eup %8614  ;;  %v3677_v41 = vadd.f32 %v8611_v10, %v3676_v29 }
 0xd01   :  { %v3696_v43 = vadd.f32 %v8613_v24, %v3695_v31  ;;  %v3713_v35 = vmul.f32 %v8615_v33, %v3711_v8  ;;  %v8617_v54 = vpop.eup %8616  ;;  %vm3718_vm14 = vweird.f32 %v8615_v33 }
 0xd02   :  { %v3681_v21 = vsel %vm3680_vm6, %v8611_v10, %v3677_v41  ;;  %vm3719_vm1 = vmor %vm3717_vm15, %vm3718_vm14 }
 0xd03   :  { %v3686_v34 = vsel %vm3683_vm8, %v3685_v42, %v3681_v21  ;;  %v3700_v58 = vsel %vm3699_vm7, %v8613_v24, %v3696_v43  ;;  %v3714_v46 = vsub.f32 1.0, %v3713_v35 }
 0xd04   :  { %v3705_v56 = vsel %vm3702_vm9, %v3704_v50, %v3700_v58  ;;  %v3731_v16 = vmul.f32 %v8617_v54, %v3686_v34 }
 0xd05   :  { %v3730_v18 = vmul.f32 %v3728_v49, %v3705_v56  ;;  %v3715_v61 = vmul.f32 %v8615_v33, %v3714_v46 }
 0xd07   :  { %v9663_v62 = vadd.f32 %v3731_v16, %v3730_v18  ;;  %v3716_v38 = vadd.f32 %v8615_v33, %v3715_v61 }
 0xd09   :  { %8618 = vtanh.f32 %v9663_v62  ;;  %v3720_v39 = vsel %vm3719_vm1, %v8615_v33, %v3716_v38  ;;  %v3907_v49 = vrot.slane %v9663_v62, 6 }
 0xd0a   :  { %v3725_v40 = vsel %vm3722_vm2, %v3724_v2, %v3720_v39 }
 0xd0f   :  { %v8619_v15 = vpop.eup %8618 }
 0xd10   :  { %v3734_v37 = vmul.f32 %v8619_v15, %v3725_v40 }
 0xd12   :  { %3735 = vst.msk [vmem:[#allocation3] sm:$0x30] %vm677_vm10, %v3734_v37  ;;  %v3749_v14 = vrot.slane %v3734_v37, 4 }
 0xd14   :  { %7977 = vmatmul.msk.f32.vlgmr.msra.gmra.mxu0 %vm27_vm0, %v3749_v14  ;;  %7978 = vmatmul.msk.f32.vlgmr.msrb.gmra.mxu1 %vm27_vm0, %v3749_v14 }
 0xd15   :  { %7979 = vmatmul.msk.f32.vlgmr.msra.gmra.mxu2 %vm27_vm0, %v3749_v14  ;;  %7980 = vmatmul.msk.f32.vlgmr.msra.gmra.mxu3 %vm27_vm0, %v3749_v14 }
 0xd16   :  { %4111 = vmatpush.msra.mxu0 %v9527_v45  ;;  %4131 = vmatpush.msrb.mxu1 %v9532_v36  ;;  %v3737_v45 = vld [vmem:[#allocation2] sm:$0xc0] }
 0xd17   :  { %4151 = vmatpush.msra.mxu2 %v9568_v55  ;;  %4171 = vmatpush.msra.mxu3 %v9537_v47 }
 0xd18   :  { %4112 = vmatpush.msra.mxu0 %v9556_v52  ;;  %4132 = vmatpush.msrb.mxu1 %v9561_v7 }
 0xd19   :  { %4152 = vmatpush.msra.mxu2 %v9581_v3  ;;  %4172 = vmatpush.msra.mxu3 %v9573_v1 }
 0xd91   :  { %v3769_v51 = vpop.f32.mrf.mxu0  ;;  %v3789_v12 = vpop.f32.mrf.mxu1 }
 0xd92   :  { %v3836_v53 = vrot.slane %v3769_v51, 2  ;;  %v3837_v11 = vrot.slane %v3789_v12, 2  ;;  %v3915_v51 = vld [vmem:[#allocation2 + $0x8] sm:$0x3] }
 0xd94   :  { %v3844_v44 = vadd.f32 %v3836_v53, %v3736_v59  ;;  %v3845_v36 = vadd.f32 %v3837_v11, %v3737_v45  ;;  %v3916_v53 = vld [vmem:[#allocation2 + $0x20] sm:$0x3] }
 0xd96   :  { %v7981_v48 = vmul.f32 -1.442695, %v3844_v44  ;;  %v7982_v55 = vmul.f32 -1.442695, %v3845_v36 }
 0xd98   :  { %8620 = vpow2.f32 %v7981_v48  ;;  %v3829_v47 = vpop.f32.mrf.mxu3  ;;  %v3809_v5 = vpop.f32.mrf.mxu2  ;;  %v3918_v48 = vld [vmem:[#allocation2 + $0x38] sm:$0x3] }
 0xd99   :  { %8622 = vpow2.f32 %v7982_v55  ;;  %v3839_v52 = vrot.slane %v3829_v47, 2  ;;  %v3838_v60 = vrot.slane %v3809_v5, 2 }
 0xd9b   :  { %v3847_v7 = vadd.f32 %v3839_v52, %v3739_v4  ;;  %v3846_v23 = vadd.f32 %v3838_v60, %v3738_v13 }
 0xd9d   :  { %v7983_v57 = vmul.f32 -1.442695, %v3847_v7 }
 0xd9e   :  { %v8621_v3 = vpop.eup %8620 }
 0xd9f   :  { %v8623_v19 = vpop.eup %8622  ;;  %v3851_v1 = vadd.f32 1.0, %v8621_v3  ;;  %8624 = vpow2.f32 %v7983_v57 }
 0xda0   :  { %v3870_v0 = vadd.f32 1.0, %v8623_v19 }
 0xda1   :  { %8626 = vrcp.f32 %v3851_v1  ;;  %v3863_v27 = vand.u32 2147483648, %v3851_v1  ;;  %v3861_v30 = vand.u32 2147483647, %v3851_v1  ;;  %vm3857_vm5 = vweird.f32 %v3851_v1 }
 0xda2   :  { %8628 = vrcp.f32 %v3870_v0  ;;  %v3882_v28 = vand.u32 2147483648, %v3870_v0  ;;  %v3880_v32 = vand.u32 2147483647, %v3870_v0  ;;  %vm3876_vm6 = vweird.f32 %v3870_v0 }
 0xda3   :  { %v3864_v42 = vor.u32 1.1754944e-38, %v3863_v27  ;;  %vm3862_vm9 = vcmp.eq.f32.partialorder %v3861_v30, 8.507059e+37 }
 0xda4   :  { %v3883_v50 = vor.u32 1.1754944e-38, %v3882_v28  ;;  %vm3881_vm14 = vcmp.eq.f32.partialorder %v3880_v32, 8.507059e+37 }
 0xda5   :  { %v8625_v6 = vpop.eup %8624 }
 0xda6   :  { %v3890_v8 = vadd.f32 1.0, %v8625_v6 }
 0xda7   :  { %v8627_v10 = vpop.eup %8626 }
 0xda8   :  { %v8629_v24 = vpop.eup %8628  ;;  %v3853_v25 = vmul.f32 %v8627_v10, %v3851_v1  ;;  %8630 = vrcp.f32 %v3890_v8  ;;  %vm3858_vm3 = vweird.f32 %v8627_v10  ;;  %v3902_v62 = vand.u32 2147483648, %v3890_v8 }
 0xda9   :  { %v3872_v26 = vmul.f32 %v8629_v24, %v3870_v0  ;;  %8632 = vtanh.f32 %v3846_v23  ;;  %vm3877_vm4 = vweird.f32 %v8629_v24  ;;  %vm3859_vm7 = vmor %vm3857_vm5, %vm3858_vm3  ;;  %vm3896_vm1 = vweird.f32 %v3890_v8  ;;  %v3917_v0 = vld [vmem:[#allocation2 + $0x28] sm:$0x3] }
 0xdaa   :  { %v3854_v17 = vsub.f32 1.0, %v3853_v25  ;;  %vm3878_vm8 = vmor %vm3876_vm6, %vm3877_vm4  ;;  %v3900_v9 = vand.u32 2147483647, %v3890_v8  ;;  %v3903_v2 = vor.u32 1.1754944e-38, %v3902_v62 }
 0xdab   :  { %v3873_v63 = vsub.f32 1.0, %v3872_v26 }
 0xdac   :  { %v3855_v29 = vmul.f32 %v8627_v10, %v3854_v17  ;;  %vm3901_vm3 = vcmp.eq.f32.partialorder %v3900_v9, 8.507059e+37 }
 0xdad   :  { %v3874_v31 = vmul.f32 %v8629_v24, %v3873_v63 }
 0xdae   :  { %v8631_v33 = vpop.eup %8630  ;;  %v3856_v41 = vadd.f32 %v8627_v10, %v3855_v29 }
 0xdaf   :  { %v3875_v43 = vadd.f32 %v8629_v24, %v3874_v31  ;;  %v3892_v35 = vmul.f32 %v8631_v33, %v3890_v8  ;;  %v8633_v54 = vpop.eup %8632  ;;  %vm3897_vm15 = vweird.f32 %v8631_v33 }
 0xdb0   :  { %v3860_v21 = vsel %vm3859_vm7, %v8627_v10, %v3856_v41  ;;  %vm3898_vm2 = vmor %vm3896_vm1, %vm3897_vm15 }
 0xdb1   :  { %v3865_v34 = vsel %vm3862_vm9, %v3864_v42, %v3860_v21  ;;  %v3879_v58 = vsel %vm3878_vm8, %v8629_v24, %v3875_v43  ;;  %v3893_v46 = vsub.f32 1.0, %v3892_v35 }
 0xdb2   :  { %v3884_v56 = vsel %vm3881_vm14, %v3883_v50, %v3879_v58  ;;  %v3910_v16 = vmul.f32 %v8633_v54, %v3865_v34 }
 0xdb3   :  { %v3909_v18 = vmul.f32 %v3907_v49, %v3884_v56  ;;  %v3894_v61 = vmul.f32 %v8631_v33, %v3893_v46 }
 0xdb5   :  { %v9680_v38 = vadd.f32 %v3910_v16, %v3909_v18  ;;  %v3895_v22 = vadd.f32 %v8631_v33, %v3894_v61 }
 0xdb7   :  { %8634 = vtanh.f32 %v9680_v38  ;;  %v3899_v39 = vsel %vm3898_vm2, %v8631_v33, %v3895_v22  ;;  %v4074_v43 = vrot.slane %v9680_v38, 6 }
 0xdb8   :  { %v3904_v40 = vsel %vm3901_vm3, %v3903_v2, %v3899_v39 }
 0xdbd   :  { %v8635_v15 = vpop.eup %8634 }
 0xdbe   :  { %v3913_v37 = vmul.f32 %v8635_v15, %v3904_v40 }
 0xdc0   :  { %3914 = vst.msk [vmem:[#allocation3] sm:$0xc0] %vm857_vm12, %v3913_v37  ;;  %v3928_v14 = vrot.slane %v3913_v37, 6 }
 0xdc2   :  { %7992 = vmatmul.msk.f32.vlgmr.msrb.gmra.mxu0 %vm27_vm0, %v3928_v14  ;;  %7993 = vmatmul.msk.f32.vlgmr.msra.gmra.mxu1 %vm27_vm0, %v3928_v14 }
 0xdc3   :  { %7994 = vmatmul.msk.f32.vlgmr.msrb.gmra.mxu2 %vm27_vm0, %v3928_v14  ;;  %7995 = vmatmul.msk.f32.vlgmr.msrb.gmra.mxu3 %vm27_vm0, %v3928_v14  ;;  %v4082_v14 = vld [vmem:[#allocation2 + $0x8] sm:$0xc] }
 0xe3f   :  { %v3948_v12 = vpop.f32.mrf.mxu0  ;;  %v3968_v11 = vpop.f32.mrf.mxu1 }
 0xe40   :  { %v4011_v59 = vadd.f32 %v3948_v12, %v3915_v51  ;;  %v4012_v45 = vadd.f32 %v3968_v11, %v3916_v53  ;;  %v4083_v51 = vld [vmem:[#allocation2 + $0x20] sm:$0xc] }
 0xe42   :  { %v7996_v44 = vmul.f32 -1.442695, %v4011_v59  ;;  %v7997_v36 = vmul.f32 -1.442695, %v4012_v45  ;;  %v8018_v45 = vld [vmem:[%s10286_s2 + $0xa0] sm:$0xff] }
 0xe43   :  { %4290 = vmatpush.msrb.mxu0 %v8018_v45 }
 0xe44   :  { %8636 = vpow2.f32 %v7996_v44  ;;  %v8019_v44 = vld [vmem:[%s10286_s2 + $0xa8] sm:$0xff] }
 0xe45   :  { %8638 = vpow2.f32 %v7997_v36  ;;  %v8014_v36 = vld [vmem:[%s10286_s2 + $0x80] sm:$0xff]  ;;  %4310 = vmatpush.msra.mxu1 %v8019_v44 }
 0xe46   :  { %v4008_v55 = vpop.f32.mrf.mxu3  ;;  %v3988_v19 = vpop.f32.mrf.mxu2  ;;  %4291 = vmatpush.msrb.mxu0 %v8014_v36 }
 0xe47   :  { %v4014_v47 = vadd.f32 %v4008_v55, %v3918_v48  ;;  %v4013_v6 = vadd.f32 %v3988_v19, %v3917_v0  ;;  %v8015_v55 = vld [vmem:[%s10286_s2 + $0x88] sm:$0xff] }
 0xe48   :  { %4311 = vmatpush.msra.mxu1 %v8015_v55 }
 0xe49   :  { %v7998_v52 = vmul.f32 -1.442695, %v4014_v47  ;;  %v8020_v47 = vld [vmem:[%s10286_s2 + $0xb0] sm:$0xff] }
 0xe4a   :  { %v8637_v4 = vpop.eup %8636  ;;  %4330 = vmatpush.msrb.mxu2 %v8020_v47 }
 0xe4b   :  { %v8639_v7 = vpop.eup %8638  ;;  %v4018_v57 = vadd.f32 1.0, %v8637_v4  ;;  %8640 = vpow2.f32 %v7998_v52  ;;  %v8021_v52 = vld [vmem:[%s10286_s2 + $0xb8] sm:$0xff] }
 0xe4c   :  { %v4037_v3 = vadd.f32 1.0, %v8639_v7  ;;  %4350 = vmatpush.msrb.mxu3 %v8021_v52  ;;  %v8016_v7 = vld [vmem:[%s10286_s2 + $0x90] sm:$0xff] }
 0xe4d   :  { %8642 = vrcp.f32 %v4018_v57  ;;  %v4030_v25 = vand.u32 2147483648, %v4018_v57  ;;  %v4028_v63 = vand.u32 2147483647, %v4018_v57  ;;  %vm4024_vm6 = vweird.f32 %v4018_v57  ;;  %4331 = vmatpush.msrb.mxu2 %v8016_v7 }
 0xe4e   :  { %8644 = vrcp.f32 %v4037_v3  ;;  %v4049_v26 = vand.u32 2147483648, %v4037_v3  ;;  %v4047_v28 = vand.u32 2147483647, %v4037_v3  ;;  %vm4043_vm7 = vweird.f32 %v4037_v3 }
 0xe4f   :  { %v4031_v31 = vor.u32 1.1754944e-38, %v4030_v25  ;;  %vm4029_vm14 = vcmp.eq.f32.partialorder %v4028_v63, 8.507059e+37 }
 0xe50   :  { %v4050_v41 = vor.u32 1.1754944e-38, %v4049_v26  ;;  %vm4048_vm15 = vcmp.eq.f32.partialorder %v4047_v28, 8.507059e+37 }
 0xe51   :  { %v8641_v1 = vpop.eup %8640 }
 0xe52   :  { %v4057_v5 = vadd.f32 1.0, %v8641_v1 }
 0xe53   :  { %v8643_v60 = vpop.eup %8642 }
 0xe54   :  { %v8645_v13 = vpop.eup %8644  ;;  %v4020_v8 = vmul.f32 %v8643_v60, %v4018_v57  ;;  %8646 = vrcp.f32 %v4057_v5  ;;  %vm4025_vm4 = vweird.f32 %v8643_v60  ;;  %v4069_v18 = vand.u32 2147483648, %v4057_v5  ;;  %v8017_v57 = vld [vmem:[%s10286_s2 + $0x98] sm:$0xff] }
 0xe55   :  { %v4039_v10 = vmul.f32 %v8645_v13, %v4037_v3  ;;  %8648 = vtanh.f32 %v4013_v6  ;;  %vm4044_vm5 = vweird.f32 %v8645_v13  ;;  %vm4026_vm8 = vmor %vm4024_vm6, %vm4025_vm4  ;;  %vm4063_vm2 = vweird.f32 %v4057_v5  ;;  %v4085_v3 = vld [vmem:[#allocation2 + $0x38] sm:$0xc]  ;;  %4351 = vmatpush.msrb.mxu3 %v8017_v57 }
 0xe56   :  { %v4021_v23 = vsub.f32 1.0, %v4020_v8  ;;  %vm4045_vm9 = vmor %vm4043_vm7, %vm4044_vm5  ;;  %v4067_v61 = vand.u32 2147483647, %v4057_v5  ;;  %v4070_v22 = vor.u32 1.1754944e-38, %v4069_v18 }
 0xe57   :  { %v4040_v24 = vsub.f32 1.0, %v4039_v10 }
 0xe58   :  { %v4022_v17 = vmul.f32 %v8643_v60, %v4021_v23  ;;  %vm4068_vm4 = vcmp.eq.f32.partialorder %v4067_v61, 8.507059e+37  ;;  %v4084_v23 = vld [vmem:[#allocation2 + $0x28] sm:$0xc] }
 0xe59   :  { %v4041_v27 = vmul.f32 %v8645_v13, %v4040_v24 }
 0xe5a   :  { %v8647_v29 = vpop.eup %8646  ;;  %v4023_v30 = vadd.f32 %v8643_v60, %v4022_v17 }
 0xe5b   :  { %v4042_v32 = vadd.f32 %v8645_v13, %v4041_v27  ;;  %v4059_v33 = vmul.f32 %v8647_v29, %v4057_v5  ;;  %v8649_v35 = vpop.eup %8648  ;;  %vm4064_vm1 = vweird.f32 %v8647_v29 }
 0xe5c   :  { %v4027_v42 = vsel %vm4026_vm8, %v8643_v60, %v4023_v30  ;;  %vm4065_vm3 = vmor %vm4063_vm2, %vm4064_vm1 }
 0xe5d   :  { %v4032_v49 = vsel %vm4029_vm14, %v4031_v31, %v4027_v42  ;;  %v4046_v50 = vsel %vm4045_vm9, %v8645_v13, %v4042_v32  ;;  %v4060_v21 = vsub.f32 1.0, %v4059_v33 }
 0xe5e   :  { %v4051_v54 = vsel %vm4048_vm15, %v4050_v41, %v4046_v50  ;;  %v4077_v34 = vmul.f32 %v8649_v35, %v4032_v49 }
 0xe5f   :  { %v4076_v58 = vmul.f32 %v4074_v43, %v4051_v54  ;;  %v4061_v46 = vmul.f32 %v8647_v29, %v4060_v21 }
 0xe61   :  { %v9689_v56 = vadd.f32 %v4077_v34, %v4076_v58  ;;  %v4062_v16 = vadd.f32 %v8647_v29, %v4061_v46 }
 0xe63   :  { %8650 = vtanh.f32 %v9689_v56  ;;  %v4066_v38 = vsel %vm4065_vm3, %v8647_v29, %v4062_v16  ;;  %v4252_v54 = vrot.slane %v9689_v56, 6 }
 0xe64   :  { %v4071_v9 = vsel %vm4068_vm4, %v4070_v22, %v4066_v38 }
 0xe69   :  { %v8651_v62 = vpop.eup %8650 }
 0xe6a   :  { %v4080_v39 = vmul.f32 %v8651_v62, %v4071_v9 }
 0xe6c   :  { %4081 = vst.msk [vmem:[#allocation3 + $0x8] sm:$0x3] %vm318_vm13, %v4080_v39  ;;  %8007 = vmatmul.msk.f32.vlgmr.msra.gmra.mxu0 %vm27_vm0, %v4080_v39  ;;  %8008 = vmatmul.msk.f32.vlgmr.msrb.gmra.mxu1 %vm27_vm0, %v4080_v39 }
 0xe6d   :  { %8009 = vmatmul.msk.f32.vlgmr.msra.gmra.mxu2 %vm27_vm0, %v4080_v39  ;;  %8010 = vmatmul.msk.f32.vlgmr.msra.gmra.mxu3 %vm27_vm0, %v4080_v39 }
 0xe6e   :  { %4469 = vmatpush.msra.mxu0 %v8018_v45  ;;  %4489 = vmatpush.msrb.mxu1 %v8019_v44 }
 0xe6f   :  { %4509 = vmatpush.msra.mxu2 %v8020_v47  ;;  %4529 = vmatpush.msra.mxu3 %v8021_v52 }
 0xe70   :  { %4470 = vmatpush.msra.mxu0 %v8014_v36  ;;  %4490 = vmatpush.msrb.mxu1 %v8015_v55  ;;  %v4260_v36 = vld [vmem:[#allocation2 + $0x8] sm:$0x30] }
 0xe71   :  { %4510 = vmatpush.msra.mxu2 %v8016_v7  ;;  %4530 = vmatpush.msra.mxu3 %v8017_v57 }
 0xee9   :  { %v4114_v2 = vpop.f32.mrf.mxu0  ;;  %v4134_v15 = vpop.f32.mrf.mxu1 }
 0xeea   :  { %v4181_v40 = vrot.slane %v4114_v2, 6  ;;  %v4182_v37 = vrot.slane %v4134_v15, 6 }
 0xeec   :  { %v4189_v12 = vadd.f32 %v4181_v40, %v4082_v14  ;;  %v4190_v53 = vadd.f32 %v4182_v37, %v4083_v51 }
 0xeee   :  { %v8011_v11 = vmul.f32 -1.442695, %v4189_v12  ;;  %v8012_v59 = vmul.f32 -1.442695, %v4190_v53 }
 0xef0   :  { %8652 = vpow2.f32 %v8011_v11  ;;  %v4174_v48 = vpop.f32.mrf.mxu3  ;;  %v4154_v13 = vpop.f32.mrf.mxu2 }
 0xef1   :  { %8654 = vpow2.f32 %v8012_v59  ;;  %v4184_v4 = vrot.slane %v4174_v48, 6  ;;  %v4183_v8 = vrot.slane %v4154_v13, 6  ;;  %v4261_v48 = vld [vmem:[#allocation2 + $0x20] sm:$0x30] }
 0xef3   :  { %v4192_v19 = vadd.f32 %v4184_v4, %v4085_v3  ;;  %v4191_v26 = vadd.f32 %v4183_v8, %v4084_v23  ;;  %v4263_v3 = vld [vmem:[#allocation2 + $0x38] sm:$0x30]  ;;  %v8049_v23 = vld [vmem:[%s10284_s1 + $0xe8] sm:$0xff] }
 0xef5   :  { %v8013_v1 = vmul.f32 -1.442695, %v4192_v19 }
 0xef6   :  { %v8653_v0 = vpop.eup %8652 }
 0xef7   :  { %v8655_v5 = vpop.eup %8654  ;;  %v4196_v60 = vadd.f32 1.0, %v8653_v0  ;;  %8656 = vpow2.f32 %v8013_v1 }
 0xef8   :  { %v4215_v6 = vadd.f32 1.0, %v8655_v5 }
 0xef9   :  { %8658 = vrcp.f32 %v4196_v60  ;;  %v4208_v30 = vand.u32 2147483648, %v4196_v60  ;;  %v4206_v33 = vand.u32 2147483647, %v4196_v60  ;;  %vm4202_vm7 = vweird.f32 %v4196_v60 }
 0xefa   :  { %8660 = vrcp.f32 %v4215_v6  ;;  %v4227_v31 = vand.u32 2147483648, %v4215_v6  ;;  %v4225_v42 = vand.u32 2147483647, %v4215_v6  ;;  %vm4221_vm8 = vweird.f32 %v4215_v6 }
 0xefb   :  { %v4209_v49 = vor.u32 1.1754944e-38, %v4208_v30  ;;  %vm4207_vm15 = vcmp.eq.f32.partialorder %v4206_v33, 8.507059e+37 }
 0xefc   :  { %v4228_v34 = vor.u32 1.1754944e-38, %v4227_v31  ;;  %vm4226_vm1 = vcmp.eq.f32.partialorder %v4225_v42, 8.507059e+37 }
 0xefd   :  { %v8657_v10 = vpop.eup %8656 }
 0xefe   :  { %v4235_v24 = vadd.f32 1.0, %v8657_v10  ;;  %v8048_v10 = vld [vmem:[%s10284_s1 + $0xe0] sm:$0xff] }
 0xeff   :  { %v8659_v25 = vpop.eup %8658 }
 0xf00   :  { %v8661_v17 = vpop.eup %8660  ;;  %v4198_v63 = vmul.f32 %v8659_v25, %v4196_v60  ;;  %8662 = vrcp.f32 %v4235_v24  ;;  %vm4203_vm5 = vweird.f32 %v8659_v25  ;;  %v4247_v56 = vand.u32 2147483648, %v4235_v24 }
 0xf01   :  { %v4217_v27 = vmul.f32 %v8661_v17, %v4215_v6  ;;  %8664 = vtanh.f32 %v4191_v26  ;;  %vm4222_vm6 = vweird.f32 %v8661_v17  ;;  %vm4204_vm9 = vmor %vm4202_vm7, %vm4203_vm5  ;;  %vm4241_vm3 = vweird.f32 %v4235_v24  ;;  %v8044_v26 = vld [vmem:[%s10284_s1 + $0xc0] sm:$0xff] }
 0xf02   :  { %v4199_v28 = vsub.f32 1.0, %v4198_v63  ;;  %vm4223_vm14 = vmor %vm4221_vm8, %vm4222_vm6  ;;  %v4245_v15 = vand.u32 2147483647, %v4235_v24  ;;  %v4248_v37 = vor.u32 1.1754944e-38, %v4247_v56 }
 0xf03   :  { %v4218_v29 = vsub.f32 1.0, %v4217_v27  ;;  %v8046_v27 = vld [vmem:[%s10284_s1 + $0xd0] sm:$0xff] }
 0xf04   :  { %v4200_v32 = vmul.f32 %v8659_v25, %v4199_v28  ;;  %vm4246_vm5 = vcmp.eq.f32.partialorder %v4245_v15, 8.507059e+37  ;;  %v8047_v28 = vld [vmem:[%s10284_s1 + $0xd8] sm:$0xff] }
 0xf05   :  { %v4219_v41 = vmul.f32 %v8661_v17, %v4218_v29  ;;  %v4262_v29 = vld [vmem:[#allocation2 + $0x28] sm:$0x30] }
 0xf06   :  { %v8663_v43 = vpop.eup %8662  ;;  %v4201_v35 = vadd.f32 %v8659_v25, %v4200_v32 }
 0xf07   :  { %v4220_v50 = vadd.f32 %v8661_v17, %v4219_v41  ;;  %v4237_v21 = vmul.f32 %v8663_v43, %v4235_v24  ;;  %v8665_v46 = vpop.eup %8664  ;;  %vm4242_vm2 = vweird.f32 %v8663_v43  ;;  %v8050_v24 = vld [vmem:[%s10284_s1 + $0xf0] sm:$0xff] }
 0xf08   :  { %v4205_v58 = vsel %vm4204_vm9, %v8659_v25, %v4201_v35  ;;  %vm4243_vm4 = vmor %vm4241_vm3, %vm4242_vm2  ;;  %v8051_v25 = vld [vmem:[%s10284_s1 + $0xf8] sm:$0xff] }
 0xf09   :  { %v4210_v16 = vsel %vm4207_vm15, %v4209_v49, %v4205_v58  ;;  %v4224_v18 = vsel %vm4223_vm14, %v8661_v17, %v4220_v50  ;;  %v4238_v61 = vsub.f32 1.0, %v4237_v21  ;;  %v8045_v17 = vld [vmem:[%s10284_s1 + $0xc8] sm:$0xff] }
 0xf0a   :  { %v4229_v38 = vsel %vm4226_vm1, %v4228_v34, %v4224_v18  ;;  %v4255_v22 = vmul.f32 %v8665_v46, %v4210_v16 }
 0xf0b   :  { %v4254_v62 = vmul.f32 %v4252_v54, %v4229_v38  ;;  %v4239_v9 = vmul.f32 %v8663_v43, %v4238_v61 }
 0xf0d   :  { %v9722_v39 = vadd.f32 %v4255_v22, %v4254_v62  ;;  %v4240_v2 = vadd.f32 %v8663_v43, %v4239_v9 }
 0xf0f   :  { %8666 = vtanh.f32 %v9722_v39  ;;  %v4244_v40 = vsel %vm4243_vm4, %v8663_v43, %v4240_v2  ;;  %v4431_v22 = vrot.slane %v9722_v39, 6 }
 0xf10   :  { %v4249_v51 = vsel %vm4246_vm5, %v4248_v37, %v4244_v40 }
 0xf15   :  { %v8667_v14 = vpop.eup %8666 }
 0xf16   :  { %v4258_v12 = vmul.f32 %v8667_v14, %v4249_v51 }
 0xf18   :  { %4259 = vst.msk [vmem:[#allocation3 + $0x8] sm:$0xc] %vm497_vm11, %v4258_v12  ;;  %v4273_v53 = vrot.slane %v4258_v12, 2 }
 0xf1a   :  { %8022 = vmatmul.msk.f32.vlgmr.msrb.gmra.mxu0 %vm27_vm0, %v4273_v53  ;;  %8023 = vmatmul.msk.f32.vlgmr.msra.gmra.mxu1 %vm27_vm0, %v4273_v53 }
 0xf1b   :  { %8024 = vmatmul.msk.f32.vlgmr.msrb.gmra.mxu2 %vm27_vm0, %v4273_v53  ;;  %8025 = vmatmul.msk.f32.vlgmr.msrb.gmra.mxu3 %vm27_vm0, %v4273_v53 }
 0xf1c   :  { %4660 = vmatpush.msrb.mxu0 %v8048_v10  ;;  %4683 = vmatpush.msra.mxu1 %v8049_v23 }
 0xf1d   :  { %4706 = vmatpush.msrb.mxu2 %v8050_v24  ;;  %4729 = vmatpush.msrb.mxu3 %v8051_v25 }
 0xf1e   :  { %4661 = vmatpush.msrb.mxu0 %v8044_v26  ;;  %4684 = vmatpush.msra.mxu1 %v8045_v17 }
 0xf1f   :  { %4707 = vmatpush.msrb.mxu2 %v8046_v27  ;;  %4730 = vmatpush.msrb.mxu3 %v8047_v28 }
 0xf97   :  { %v4293_v11 = vpop.f32.mrf.mxu0  ;;  %v4313_v59 = vpop.f32.mrf.mxu1 }
 0xf98   :  { %v4360_v45 = vrot.slane %v4293_v11, 4  ;;  %v4361_v44 = vrot.slane %v4313_v59, 4 }
 0xf9a   :  { %v4368_v55 = vadd.f32 %v4360_v45, %v4260_v36  ;;  %v4369_v47 = vadd.f32 %v4361_v44, %v4261_v48 }
 0xf9c   :  { %v8026_v52 = vmul.f32 -1.442695, %v4368_v55  ;;  %v8027_v4 = vmul.f32 -1.442695, %v4369_v47 }
 0xf9e   :  { %8668 = vpow2.f32 %v8026_v52  ;;  %v4353_v7 = vpop.f32.mrf.mxu3  ;;  %v4333_v13 = vpop.f32.mrf.mxu2  ;;  %v4618_v52 = vld [vmem:[#allocation3] sm:$0xff] }
 0xf9f   :  { %8670 = vpow2.f32 %v8027_v4  ;;  %v4363_v57 = vrot.slane %v4353_v7, 4  ;;  %v4362_v8 = vrot.slane %v4333_v13, 4 }
 0xfa1   :  { %v4371_v19 = vadd.f32 %v4363_v57, %v4263_v3  ;;  %v4370_v32 = vadd.f32 %v4362_v8, %v4262_v29 }
 0xfa3   :  { %v8028_v1 = vmul.f32 -1.442695, %v4371_v19  ;;  %v4439_v19 = vld [vmem:[#allocation2 + $0x8] sm:$0xc0] }
 0xfa4   :  { %v8669_v0 = vpop.eup %8668 }
 0xfa5   :  { %v8671_v5 = vpop.eup %8670  ;;  %v4375_v60 = vadd.f32 1.0, %v8669_v0  ;;  %8672 = vpow2.f32 %v8028_v1  ;;  %v4440_v1 = vld [vmem:[#allocation2 + $0x20] sm:$0xc0]  ;;  %v9770_v0 = vld [vmem:[%s10287_s3 + $0xc] sm:$0xf] }
 0xfa6   :  { %v4394_v6 = vadd.f32 1.0, %v8671_v5  ;;  %v4632_v8 = vperm.slane %v9770_v0, 0  ;;  %v4633_v10 = vperm.slane %v9770_v0, 1 }
 0xfa7   :  { %8674 = vrcp.f32 %v4375_v60  ;;  %v4387_v49 = vand.u32 2147483648, %v4375_v60  ;;  %v4385_v54 = vand.u32 2147483647, %v4375_v60  ;;  %vm4381_vm8 = vweird.f32 %v4375_v60 }
 0xfa8   :  { %8676 = vrcp.f32 %v4394_v6  ;;  %v4406_v50 = vand.u32 2147483648, %v4394_v6  ;;  %v4404_v58 = vand.u32 2147483647, %v4394_v6  ;;  %vm4400_vm9 = vweird.f32 %v4394_v6 }
 0xfa9   :  { %v4388_v18 = vor.u32 1.1754944e-38, %v4387_v49  ;;  %vm4386_vm1 = vcmp.eq.f32.partialorder %v4385_v54, 8.507059e+37  ;;  %v9797_v54 = vld [vmem:[%s10286_s2 + $0xf8] sm:$0xff] }
 0xfaa   :  { %v4407_v62 = vor.u32 1.1754944e-38, %v4406_v50  ;;  %vm4405_vm2 = vcmp.eq.f32.partialorder %v4404_v58, 8.507059e+37  ;;  %v9787_v50 = vld [vmem:[%s10286_s2 + $0xe0] sm:$0xff] }
 0xfab   :  { %v8673_v63 = vpop.eup %8672 }
 0xfac   :  { %v4414_v30 = vadd.f32 1.0, %v8673_v63  ;;  %v4442_v63 = vld [vmem:[#allocation2 + $0x38] sm:$0xc0] }
 0xfad   :  { %v8675_v31 = vpop.eup %8674 }
 0xfae   :  { %v8677_v33 = vpop.eup %8676  ;;  %v4377_v41 = vmul.f32 %v8675_v31, %v4375_v60  ;;  %8678 = vrcp.f32 %v4414_v30  ;;  %vm4382_vm6 = vweird.f32 %v8675_v31  ;;  %v4426_v39 = vand.u32 2147483648, %v4414_v30 }
 0xfaf   :  { %v4396_v42 = vmul.f32 %v8677_v33, %v4394_v6  ;;  %8680 = vtanh.f32 %v4370_v32  ;;  %vm4401_vm7 = vweird.f32 %v8677_v33  ;;  %vm4383_vm14 = vmor %vm4381_vm8, %vm4382_vm6  ;;  %vm4420_vm4 = vweird.f32 %v4414_v30 }
 0xfb0   :  { %v4378_v43 = vsub.f32 1.0, %v4377_v41  ;;  %vm4402_vm15 = vmor %vm4400_vm9, %vm4401_vm7  ;;  %v4424_v59 = vand.u32 2147483647, %v4414_v30  ;;  %v4427_v44 = vor.u32 1.1754944e-38, %v4426_v39  ;;  %v4634_v41 = vperm.slane %v9770_v0, 2 }
 0xfb1   :  { %v4397_v35 = vsub.f32 1.0, %v4396_v42  ;;  %v4635_v42 = vperm.slane %v9770_v0, 3 }
 0xfb2   :  { %v4379_v21 = vmul.f32 %v8675_v31, %v4378_v43  ;;  %vm4425_vm6 = vcmp.eq.f32.partialorder %v4424_v59, 8.507059e+37 }
 0xfb3   :  { %v4398_v34 = vmul.f32 %v8677_v33, %v4397_v35 }
 0xfb4   :  { %v8679_v46 = vpop.eup %8678  ;;  %v4380_v16 = vadd.f32 %v8675_v31, %v4379_v21  ;;  %v9792_v21 = vld [vmem:[%s10286_s2 + $0xe8] sm:$0xff] }
 0xfb5   :  { %v4399_v61 = vadd.f32 %v8677_v33, %v4398_v34  ;;  %v4416_v38 = vmul.f32 %v8679_v46, %v4414_v30  ;;  %v8681_v2 = vpop.eup %8680  ;;  %vm4421_vm3 = vweird.f32 %v8679_v46 }
 0xfb6   :  { %v4384_v9 = vsel %vm4383_vm14, %v8675_v31, %v4380_v16  ;;  %vm4422_vm5 = vmor %vm4420_vm4, %vm4421_vm3 }
 0xfb7   :  { %v4389_v56 = vsel %vm4386_vm1, %v4388_v18, %v4384_v9  ;;  %v4403_v15 = vsel %vm4402_vm15, %v8677_v33, %v4399_v61  ;;  %v4417_v40 = vsub.f32 1.0, %v4416_v38  ;;  %v4441_v18 = vld [vmem:[#allocation2 + $0x28] sm:$0xc0] }
 0xfb8   :  { %v4408_v37 = vsel %vm4405_vm2, %v4407_v62, %v4403_v15  ;;  %v4434_v14 = vmul.f32 %v8681_v2, %v4389_v56  ;;  %v9816_v56 = vld [vmem:[%s10286_s2 + $0xc0] sm:$0xff]  ;;  %v9821_v15 = vld [vmem:[%s10286_s2 + $0xc8] sm:$0xff] }
 0xfb9   :  { %v4433_v51 = vmul.f32 %v4431_v22, %v4408_v37  ;;  %v4418_v12 = vmul.f32 %v8679_v46, %v4417_v40  ;;  %v9828_v37 = vld [vmem:[%s10286_s2 + $0xf0] sm:$0xff] }
 0xfbb   :  { %v9755_v53 = vadd.f32 %v4434_v14, %v4433_v51  ;;  %v4419_v11 = vadd.f32 %v8679_v46, %v4418_v12  ;;  %v9833_v14 = vld [vmem:[%s10286_s2 + $0xd8] sm:$0xff] }
 0xfbd   :  { %8682 = vtanh.f32 %v9755_v53  ;;  %v4423_v45 = vsel %vm4422_vm5, %v8679_v46, %v4419_v11  ;;  %v9841_v11 = vld [vmem:[%s10286_s2 + $0xd0] sm:$0xff] }
 0xfbe   :  { %v4428_v48 = vsel %vm4425_vm6, %v4427_v44, %v4423_v45 }
 0xfc3   :  { %v8683_v36 = vpop.eup %8682 }
 0xfc4   :  { %v4437_v55 = vmul.f32 %v8683_v36, %v4428_v48 }
 0xfc6   :  { %4438 = vst.msk [vmem:[#allocation3 + $0x8] sm:$0x30] %vm677_vm10, %v4437_v55  ;;  %v4452_v47 = vrot.slane %v4437_v55, 4 }
 0xfc8   :  { %8037 = vmatmul.msk.f32.vlgmr.msra.gmra.mxu0 %vm27_vm0, %v4452_v47  ;;  %8038 = vmatmul.msk.f32.vlgmr.msrb.gmra.mxu1 %vm27_vm0, %v4452_v47 }
 0xfc9   :  { %8039 = vmatmul.msk.f32.vlgmr.msra.gmra.mxu2 %vm27_vm0, %v4452_v47  ;;  %8040 = vmatmul.msk.f32.vlgmr.msra.gmra.mxu3 %vm27_vm0, %v4452_v47 }
 0xfca   :  { %4773 = vmatpush.msra.mxu0 %v9787_v50  ;;  %4793 = vmatpush.msrb.mxu1 %v9792_v21 }
 0xfcb   :  { %4833 = vmatpush.msra.mxu3 %v9797_v54  ;;  %4813 = vmatpush.msra.mxu2 %v9828_v37 }
 0xfcc   :  { %4774 = vmatpush.msra.mxu0 %v9816_v56  ;;  %4794 = vmatpush.msrb.mxu1 %v9821_v15 }
 0xfcd   :  { %4834 = vmatpush.msra.mxu3 %v9833_v14  ;;  %4814 = vmatpush.msra.mxu2 %v9841_v11 }
 0xfd0   :  { %8053 = vmatmul.msk.f32.vlgmr.msrb.gmra.mxu0 %vm27_vm0, %v4618_v52  ;;  %8055 = vmatmul.msk.f32.vlgmr.msra.gmra.mxu1 %vm27_vm0, %v4618_v52 }
 0xfd1   :  { %8057 = vmatmul.msk.f32.vlgmr.msrb.gmra.mxu2 %vm27_vm0, %v4618_v52  ;;  %8059 = vmatmul.msk.f32.vlgmr.msrb.gmra.mxu3 %vm27_vm0, %v4618_v52 }
 0xfd2   :  { %4936 = vmatpush.msrb.mxu0 %v9787_v50  ;;  %4956 = vmatpush.msra.mxu1 %v9792_v21 }
 0xfd3   :  { %4996 = vmatpush.msrb.mxu3 %v9797_v54  ;;  %4976 = vmatpush.msrb.mxu2 %v9828_v37 }
 0xfd4   :  { %4937 = vmatpush.msrb.mxu0 %v9816_v56  ;;  %4957 = vmatpush.msra.mxu1 %v9821_v15 }
 0xfd5   :  { %4997 = vmatpush.msrb.mxu3 %v9833_v14  ;;  %4977 = vmatpush.msrb.mxu2 %v9841_v11 }
0x1045   :  { %v4472_v4 = vpop.f32.mrf.mxu0  ;;  %v4492_v7 = vpop.f32.mrf.mxu1 }
0x1046   :  { %v4539_v57 = vrot.slane %v4472_v4, 2  ;;  %v4540_v3 = vrot.slane %v4492_v7, 2  ;;  %v4610_v7 = vrot.slane %v9755_v53, 6 }
0x1048   :  { %v4547_v5 = vadd.f32 %v4539_v57, %v4439_v19  ;;  %v4548_v60 = vadd.f32 %v4540_v3, %v4440_v1 }
0x104a   :  { %v8041_v6 = vmul.f32 -1.442695, %v4547_v5  ;;  %v8042_v13 = vmul.f32 -1.442695, %v4548_v60 }
0x104c   :  { %8684 = vpow2.f32 %v8041_v6  ;;  %v4512_v23 = vpop.f32.mrf.mxu2  ;;  %v4532_v24 = vpop.f32.mrf.mxu3 }
0x104d   :  { %8686 = vpow2.f32 %v8042_v13  ;;  %v4542_v25 = vrot.slane %v4532_v24, 2  ;;  %v4663_v26 = vpop.f32.mrf.mxu0  ;;  %v4686_v17 = vpop.f32.mrf.mxu1  ;;  %v4541_v34 = vrot.slane %v4512_v23, 2 }
0x104e   :  { %v4664_v27 = vadd.f32 %v4663_v26, %v4632_v8  ;;  %v4687_v28 = vadd.f32 %v4686_v17, %v4633_v10 }
0x104f   :  { %v4550_v29 = vadd.f32 %v4542_v25, %v4442_v63  ;;  %v4549_v22 = vadd.f32 %v4541_v34, %v4441_v18 }
0x1050   :  { %4738 = vst [vmem:[#allocation2 + $0x30] sm:$0xff] %v4664_v27 }
0x1051   :  { %v8043_v30 = vmul.f32 -1.442695, %v4550_v29  ;;  %4739 = vst [vmem:[#allocation2] sm:$0xff] %v4687_v28 }
0x1052   :  { %v8685_v31 = vpop.eup %8684 }
0x1053   :  { %v8687_v32 = vpop.eup %8686  ;;  %v9778_v33 = vadd.f32 1.0, %v8685_v31  ;;  %8688 = vpow2.f32 %v8043_v30 }
0x1054   :  { %v9782_v43 = vadd.f32 1.0, %v8687_v32  ;;  %v4709_v35 = vpop.f32.mrf.mxu2  ;;  %v4732_v49 = vpop.f32.mrf.mxu3 }
0x1055   :  { %8690 = vrcp.f32 %v9778_v33  ;;  %v4710_v58 = vadd.f32 %v4709_v35, %v4634_v41  ;;  %v4733_v46 = vadd.f32 %v4732_v49, %v4635_v42  ;;  %v4566_v12 = vand.u32 2147483648, %v9778_v33 }
0x1056   :  { %8692 = vrcp.f32 %v9782_v43  ;;  %v4585_v39 = vand.u32 2147483648, %v9782_v43  ;;  %v4564_v45 = vand.u32 2147483647, %v9778_v33  ;;  %v4583_v36 = vand.u32 2147483647, %v9782_v43 }
0x1057   :  { %4740 = vst [vmem:[#allocation2 + $0x18] sm:$0xff] %v4710_v58  ;;  %vm4560_vm9 = vweird.f32 %v9778_v33  ;;  %vm4579_vm14 = vweird.f32 %v9782_v43  ;;  %v4567_v47 = vor.u32 1.1754944e-38, %v4566_v12 }
0x1058   :  { %4741 = vst [vmem:[#allocation2 + $0x10] sm:$0xff] %v4733_v46  ;;  %v4586_v57 = vor.u32 1.1754944e-38, %v4585_v39  ;;  %vm4565_vm2 = vcmp.eq.f32.partialorder %v4564_v45, 8.507059e+37  ;;  %vm4584_vm3 = vcmp.eq.f32.partialorder %v4583_v36, 8.507059e+37 }
0x1059   :  { %v8689_v16 = vpop.eup %8688 }
0x105a   :  { %v9808_v61 = vadd.f32 1.0, %v8689_v16  ;;  %v4746_v16 = vld [vmem:[#allocation2 + $0x30] sm:$0x3] }
0x105b   :  { %v8691_v38 = vpop.eup %8690 }
0x105c   :  { %v8693_v62 = vpop.eup %8692  ;;  %v4556_v9 = vmul.f32 %v8691_v38, %v9778_v33  ;;  %8694 = vrcp.f32 %v9808_v61  ;;  %vm4561_vm7 = vweird.f32 %v8691_v38  ;;  %v4605_v53 = vand.u32 2147483648, %v9808_v61 }
0x105d   :  { %v4575_v2 = vmul.f32 %v8693_v62, %v9782_v43  ;;  %8696 = vtanh.f32 %v4549_v22  ;;  %vm4580_vm8 = vweird.f32 %v8693_v62  ;;  %vm4562_vm15 = vmor %vm4560_vm9, %vm4561_vm7  ;;  %vm4599_vm5 = vweird.f32 %v9808_v61 }
0x105e   :  { %v4557_v40 = vsub.f32 1.0, %v4556_v9  ;;  %vm4581_vm1 = vmor %vm4579_vm14, %vm4580_vm8  ;;  %v4603_v17 = vand.u32 2147483647, %v9808_v61  ;;  %v4606_v27 = vor.u32 1.1754944e-38, %v4605_v53  ;;  %v4748_v45 = vld [vmem:[#allocation2 + $0x18] sm:$0x3] }
0x105f   :  { %v4576_v51 = vsub.f32 1.0, %v4575_v2  ;;  %v4749_v9 = vld [vmem:[#allocation2 + $0x10] sm:$0x3] }
0x1060   :  { %v4558_v59 = vmul.f32 %v8691_v38, %v4557_v40  ;;  %vm4604_vm7 = vcmp.eq.f32.partialorder %v4603_v17, 8.507059e+37 }
0x1061   :  { %v4577_v44 = vmul.f32 %v8693_v62, %v4576_v51 }
0x1062   :  { %v8695_v48 = vpop.eup %8694  ;;  %v4559_v55 = vadd.f32 %v8691_v38, %v4558_v59 }
0x1063   :  { %v4578_v52 = vadd.f32 %v8693_v62, %v4577_v44  ;;  %v4595_v4 = vmul.f32 %v8695_v48, %v9808_v61  ;;  %v8697_v19 = vpop.eup %8696  ;;  %vm4600_vm4 = vweird.f32 %v8695_v48  ;;  %v4747_v61 = vld [vmem:[#allocation2] sm:$0x3] }
0x1064   :  { %v4563_v3 = vsel %vm4562_vm15, %v8691_v38, %v4559_v55  ;;  %vm4601_vm6 = vmor %vm4599_vm5, %vm4600_vm4 }
0x1065   :  { %v4568_v1 = vsel %vm4565_vm2, %v4567_v47, %v4563_v3  ;;  %v4582_v5 = vsel %vm4581_vm1, %v8693_v62, %v4578_v52  ;;  %v4596_v60 = vsub.f32 1.0, %v4595_v4 }
0x1066   :  { %v4587_v6 = vsel %vm4584_vm3, %v4586_v57, %v4582_v5  ;;  %v4613_v13 = vmul.f32 %v8697_v19, %v4568_v1 }
0x1067   :  { %v4612_v23 = vmul.f32 %v4610_v7, %v4587_v6  ;;  %v4597_v24 = vmul.f32 %v8695_v48, %v4596_v60 }
0x1069   :  { %v4614_v25 = vadd.f32 %v4613_v13, %v4612_v23  ;;  %v4598_v26 = vadd.f32 %v8695_v48, %v4597_v24 }
0x106b   :  { %8698 = vtanh.f32 %v4614_v25  ;;  %v4602_v63 = vsel %vm4601_vm6, %v8695_v48, %v4598_v26 }
0x106c   :  { %v4607_v29 = vsel %vm4604_vm7, %v4606_v27, %v4602_v63 }
0x1071   :  { %v8699_v28 = vpop.eup %8698 }
0x1072   :  { %v4616_v30 = vmul.f32 %v8699_v28, %v4607_v29 }
0x1074   :  { %4617 = vst.msk [vmem:[#allocation3 + $0x8] sm:$0xc0] %vm857_vm12, %v4616_v30 }
0x107b   :  { %v4619_v31 = vld [vmem:[#allocation3 + $0x8] sm:$0xff] }
0x107c   :  { %8054 = vmatmul.msk.f32.gmra.mxu0 %vm27_vm0, %v4619_v31  ;;  %8056 = vmatmul.msk.f32.gmra.mxu1 %vm27_vm0, %v4619_v31 }
0x107d   :  { %8058 = vmatmul.msk.f32.gmra.mxu2 %vm27_vm0, %v4619_v31  ;;  %8060 = vmatmul.msk.f32.gmra.mxu3 %vm27_vm0, %v4619_v31 }
0x1084   :  { %4775 = vmatmul.f32.vlgmr.msra.gmra.mxu0 %v8956_v20  ;;  %4795 = vmatmul.f32.vlgmr.msrb.gmra.mxu1 %v8956_v20 }
0x1085   :  { %4815 = vmatmul.f32.vlgmr.msra.gmra.mxu2 %v8956_v20  ;;  %4835 = vmatmul.f32.vlgmr.msra.gmra.mxu3 %v8956_v20 }
0x1086   :  { %5115 = vmatpush.msra.mxu0 %v9787_v50  ;;  %5135 = vmatpush.msrb.mxu1 %v9792_v21 }
0x1087   :  { %5155 = vmatpush.msra.mxu2 %v9828_v37  ;;  %5175 = vmatpush.msra.mxu3 %v9797_v54 }
0x1088   :  { %5116 = vmatpush.msra.mxu0 %v9816_v56  ;;  %5136 = vmatpush.msrb.mxu1 %v9821_v15 }
0x1089   :  { %5156 = vmatpush.msra.mxu2 %v9841_v11  ;;  %5176 = vmatpush.msra.mxu3 %v9833_v14 }
0x10f9   :  { %v4666_v32 = vpop.f32.mrf.mxu0  ;;  %v4689_v33 = vpop.f32.mrf.mxu1 }
0x10fa   :  { %v4667_v43 = vadd.f32 %v4666_v32, %v4632_v8  ;;  %v4690_v35 = vadd.f32 %v4689_v33, %v4633_v10 }
0x10fc   :  { %4742 = vst [vmem:[#allocation2 + $0x8] sm:$0xff] %v4667_v43 }
0x10fd   :  { %4743 = vst [vmem:[#allocation2 + $0x20] sm:$0xff] %v4690_v35 }
0x1100   :  { %v4712_v49 = vpop.f32.mrf.mxu2  ;;  %v4735_v34 = vpop.f32.mrf.mxu3 }
0x1101   :  { %v4713_v58 = vadd.f32 %v4712_v49, %v4634_v41  ;;  %v4736_v46 = vadd.f32 %v4735_v34, %v4635_v42  ;;  %v4776_v18 = vpop.f32.mrf.mxu0  ;;  %v4796_v38 = vpop.f32.mrf.mxu1 }
0x1102   :  { %v4839_v22 = vadd.f32 %v4776_v18, %v4746_v16  ;;  %v4840_v62 = vadd.f32 %v4796_v38, %v4747_v61 }
0x1103   :  { %4744 = vst [vmem:[#allocation2 + $0x28] sm:$0xff] %v4713_v58 }
0x1104   :  { %4745 = vst [vmem:[#allocation2 + $0x38] sm:$0xff] %v4736_v46  ;;  %v8069_v8 = vmul.f32 -1.442695, %v4839_v22  ;;  %v8070_v10 = vmul.f32 -1.442695, %v4840_v62 }
0x1106   :  { %8700 = vpow2.f32 %v8069_v8  ;;  %v4907_v8 = vld [vmem:[#allocation2 + $0x30] sm:$0xc] }
0x1107   :  { %8702 = vpow2.f32 %v8070_v10  ;;  %v4908_v10 = vld [vmem:[#allocation2] sm:$0xc] }
0x1108   :  { %v4836_v2 = vpop.f32.mrf.mxu3  ;;  %v4816_v39 = vpop.f32.mrf.mxu2 }
0x1109   :  { %v4842_v40 = vadd.f32 %v4836_v2, %v4749_v9  ;;  %v4841_v48 = vadd.f32 %v4816_v39, %v4748_v45 }
0x110b   :  { %v8071_v51 = vmul.f32 -1.442695, %v4842_v40 }
0x110c   :  { %v8701_v41 = vpop.eup %8700 }
0x110d   :  { %v8703_v12 = vpop.eup %8702  ;;  %v4846_v0 = vadd.f32 1.0, %v8701_v41  ;;  %8704 = vpow2.f32 %v8071_v51 }
0x110e   :  { %v4865_v42 = vadd.f32 1.0, %v8703_v12 }
0x110f   :  { %8706 = vrcp.f32 %v4846_v0  ;;  %v4858_v57 = vand.u32 2147483648, %v4846_v0  ;;  %v4856_v1 = vand.u32 2147483647, %v4846_v0  ;;  %vm4852_vm14 = vweird.f32 %v4846_v0 }
0x1110   :  { %8708 = vrcp.f32 %v4865_v42  ;;  %v4877_v3 = vand.u32 2147483648, %v4865_v42  ;;  %v4875_v60 = vand.u32 2147483647, %v4865_v42  ;;  %vm4871_vm15 = vweird.f32 %v4865_v42 }
0x1111   :  { %v4859_v23 = vor.u32 1.1754944e-38, %v4858_v57  ;;  %vm4857_vm2 = vcmp.eq.f32.partialorder %v4856_v1, 8.507059e+37 }
0x1112   :  { %v4878_v26 = vor.u32 1.1754944e-38, %v4877_v3  ;;  %vm4876_vm4 = vcmp.eq.f32.partialorder %v4875_v60, 8.507059e+37 }
0x1113   :  { %v8705_v59 = vpop.eup %8704 }
0x1114   :  { %v4885_v44 = vadd.f32 1.0, %v8705_v59 }
0x1115   :  { %v8707_v36 = vpop.eup %8706 }
0x1116   :  { %v8709_v55 = vpop.eup %8708  ;;  %v4848_v47 = vmul.f32 %v8707_v36, %v4846_v0  ;;  %8710 = vrcp.f32 %v4885_v44  ;;  %vm4853_vm8 = vweird.f32 %v8707_v36  ;;  %v4897_v35 = vand.u32 2147483648, %v4885_v44  ;;  %v4910_v0 = vld [vmem:[#allocation2 + $0x10] sm:$0xc] }
0x1117   :  { %v4867_v52 = vmul.f32 %v8709_v55, %v4865_v42  ;;  %8712 = vtanh.f32 %v4841_v48  ;;  %vm4872_vm9 = vweird.f32 %v8709_v55  ;;  %vm4854_vm1 = vmor %vm4852_vm14, %vm4853_vm8  ;;  %vm4891_vm6 = vweird.f32 %v4885_v44 }
0x1118   :  { %v4849_v4 = vsub.f32 1.0, %v4848_v47  ;;  %vm4873_vm3 = vmor %vm4871_vm15, %vm4872_vm9  ;;  %v4895_v49 = vand.u32 2147483647, %v4885_v44  ;;  %v4898_v58 = vor.u32 1.1754944e-38, %v4897_v35 }
0x1119   :  { %v4868_v7 = vsub.f32 1.0, %v4867_v52  ;;  %v4909_v52 = vld [vmem:[#allocation2 + $0x18] sm:$0xc] }
0x111a   :  { %v4850_v19 = vmul.f32 %v8707_v36, %v4849_v4  ;;  %vm4896_vm8 = vcmp.eq.f32.partialorder %v4895_v49, 8.507059e+37 }
0x111b   :  { %v4869_v5 = vmul.f32 %v8709_v55, %v4868_v7 }
0x111c   :  { %v8711_v6 = vpop.eup %8710  ;;  %v4851_v13 = vadd.f32 %v8707_v36, %v4850_v19 }
0x111d   :  { %v4870_v24 = vadd.f32 %v8709_v55, %v4869_v5  ;;  %v4887_v25 = vmul.f32 %v8711_v6, %v4885_v44  ;;  %v8713_v17 = vpop.eup %8712  ;;  %vm4892_vm5 = vweird.f32 %v8711_v6 }
0x111e   :  { %v4855_v53 = vsel %vm4854_vm1, %v8707_v36, %v4851_v13  ;;  %vm4893_vm7 = vmor %vm4891_vm6, %vm4892_vm5 }
0x111f   :  { %v4860_v63 = vsel %vm4857_vm2, %v4859_v23, %v4855_v53  ;;  %v4874_v27 = vsel %vm4873_vm3, %v8709_v55, %v4870_v24  ;;  %v4888_v28 = vsub.f32 1.0, %v4887_v25 }
0x1120   :  { %v4879_v29 = vsel %vm4876_vm4, %v4878_v26, %v4874_v27  ;;  %v4902_v30 = vmul.f32 %v8713_v17, %v4860_v63 }
0x1121   :  { %v4901_v31 = vmul.f32 0.0, %v4879_v29  ;;  %v4889_v32 = vmul.f32 %v8711_v6, %v4888_v28 }
0x1123   :  { %v9889_v33 = vadd.f32 %v4902_v30, %v4901_v31  ;;  %v4890_v43 = vadd.f32 %v8711_v6, %v4889_v32 }
0x1125   :  { %8714 = vtanh.f32 %v9889_v33  ;;  %v4894_v34 = vsel %vm4893_vm7, %v8711_v6, %v4890_v43  ;;  %v5077_v29 = vrot.slane %v9889_v33, 6 }
0x1126   :  { %v4899_v16 = vsel %vm4896_vm8, %v4898_v58, %v4894_v34 }
0x112b   :  { %v8715_v46 = vpop.eup %8714 }
0x112c   :  { %v4905_v18 = vmul.f32 %v8715_v46, %v4899_v16 }
0x112e   :  { %4906 = vst.msk [vmem:[#allocation3] sm:$0x3] %vm318_vm13, %v4905_v18  ;;  %8080 = vmatmul.msk.f32.vlgmr.msrb.gmra.mxu0 %vm27_vm0, %v4905_v18  ;;  %8081 = vmatmul.msk.f32.vlgmr.msra.gmra.mxu1 %vm27_vm0, %v4905_v18 }
0x112f   :  { %8082 = vmatmul.msk.f32.vlgmr.msrb.gmra.mxu2 %vm27_vm0, %v4905_v18  ;;  %8083 = vmatmul.msk.f32.vlgmr.msrb.gmra.mxu3 %vm27_vm0, %v4905_v18 }
0x1130   :  { %5294 = vmatpush.msrb.mxu0 %v9787_v50  ;;  %5314 = vmatpush.msra.mxu1 %v9792_v21 }
0x1131   :  { %5334 = vmatpush.msrb.mxu2 %v9828_v37  ;;  %5354 = vmatpush.msrb.mxu3 %v9797_v54 }
0x1132   :  { %5295 = vmatpush.msrb.mxu0 %v9816_v56  ;;  %5315 = vmatpush.msra.mxu1 %v9821_v15 }
0x1133   :  { %5335 = vmatpush.msrb.mxu2 %v9841_v11  ;;  %5355 = vmatpush.msrb.mxu3 %v9833_v14 }
0x11ab   :  { %v4939_v61 = vpop.f32.mrf.mxu0  ;;  %v4959_v38 = vpop.f32.mrf.mxu1 }
0x11ac   :  { %v5006_v22 = vrot.slane %v4939_v61, 6  ;;  %v5007_v62 = vrot.slane %v4959_v38, 6 }
0x11ae   :  { %v5014_v9 = vadd.f32 %v5006_v22, %v4907_v8  ;;  %v5015_v2 = vadd.f32 %v5007_v62, %v4908_v10 }
0x11b0   :  { %v8084_v40 = vmul.f32 -1.442695, %v5014_v9  ;;  %v8085_v51 = vmul.f32 -1.442695, %v5015_v2 }
0x11b2   :  { %8716 = vpow2.f32 %v8084_v40  ;;  %v4999_v41 = vpop.f32.mrf.mxu3  ;;  %v4979_v48 = vpop.f32.mrf.mxu2 }
0x11b3   :  { %8718 = vpow2.f32 %v8085_v51  ;;  %v5009_v12 = vrot.slane %v4999_v41, 6  ;;  %v5008_v55 = vrot.slane %v4979_v48, 6 }
0x11b5   :  { %v5017_v42 = vadd.f32 %v5009_v12, %v4910_v0  ;;  %v5016_v57 = vadd.f32 %v5008_v55, %v4909_v52  ;;  %v5085_v0 = vld [vmem:[#allocation2 + $0x30] sm:$0x30] }
0x11b6   :  { %v5088_v55 = vld [vmem:[#allocation2 + $0x10] sm:$0x30] }
0x11b7   :  { %v8086_v39 = vmul.f32 -1.442695, %v5017_v42  ;;  %v5086_v42 = vld [vmem:[#allocation2] sm:$0x30] }
0x11b8   :  { %v8717_v59 = vpop.eup %8716 }
0x11b9   :  { %v8719_v45 = vpop.eup %8718  ;;  %v5021_v44 = vadd.f32 1.0, %v8717_v59  ;;  %8720 = vpow2.f32 %v8086_v39 }
0x11ba   :  { %v5040_v36 = vadd.f32 1.0, %v8719_v45 }
0x11bb   :  { %8722 = vrcp.f32 %v5021_v44  ;;  %v5033_v6 = vand.u32 2147483648, %v5021_v44  ;;  %v5031_v24 = vand.u32 2147483647, %v5021_v44  ;;  %vm5027_vm15 = vweird.f32 %v5021_v44 }
0x11bc   :  { %8724 = vrcp.f32 %v5040_v36  ;;  %v5052_v13 = vand.u32 2147483648, %v5040_v36  ;;  %v5050_v26 = vand.u32 2147483647, %v5040_v36  ;;  %vm5046_vm1 = vweird.f32 %v5040_v36 }
0x11bd   :  { %v5034_v63 = vor.u32 1.1754944e-38, %v5033_v6  ;;  %vm5032_vm4 = vcmp.eq.f32.partialorder %v5031_v24, 8.507059e+37 }
0x11be   :  { %v5053_v30 = vor.u32 1.1754944e-38, %v5052_v13  ;;  %vm5051_vm5 = vcmp.eq.f32.partialorder %v5050_v26, 8.507059e+37 }
0x11bf   :  { %v8721_v47 = vpop.eup %8720 }
0x11c0   :  { %v5060_v4 = vadd.f32 1.0, %v8721_v47 }
0x11c1   :  { %v8723_v7 = vpop.eup %8722 }
0x11c2   :  { %v8725_v3 = vpop.eup %8724  ;;  %v5023_v19 = vmul.f32 %v8723_v7, %v5021_v44  ;;  %8726 = vrcp.f32 %v5060_v4  ;;  %vm5028_vm9 = vweird.f32 %v8723_v7  ;;  %v5072_v33 = vand.u32 2147483648, %v5060_v4 }
0x11c3   :  { %v5042_v1 = vmul.f32 %v8725_v3, %v5040_v36  ;;  %8728 = vtanh.f32 %v5016_v57  ;;  %vm5047_vm14 = vweird.f32 %v8725_v3  ;;  %vm5029_vm2 = vmor %vm5027_vm15, %vm5028_vm9  ;;  %vm5066_vm7 = vweird.f32 %v5060_v4 }
0x11c4   :  { %v5024_v5 = vsub.f32 1.0, %v5023_v19  ;;  %vm5048_vm3 = vmor %vm5046_vm1, %vm5047_vm14  ;;  %v5070_v38 = vand.u32 2147483647, %v5060_v4  ;;  %v5073_v62 = vor.u32 1.1754944e-38, %v5072_v33 }
0x11c5   :  { %v5043_v60 = vsub.f32 1.0, %v5042_v1 }
0x11c6   :  { %v5025_v23 = vmul.f32 %v8723_v7, %v5024_v5  ;;  %vm5071_vm9 = vcmp.eq.f32.partialorder %v5070_v38, 8.507059e+37 }
0x11c7   :  { %v5044_v25 = vmul.f32 %v8725_v3, %v5043_v60  ;;  %v5087_v60 = vld [vmem:[#allocation2 + $0x18] sm:$0x30] }
0x11c8   :  { %v8727_v53 = vpop.eup %8726  ;;  %v5026_v17 = vadd.f32 %v8723_v7, %v5025_v23 }
0x11c9   :  { %v5045_v27 = vadd.f32 %v8725_v3, %v5044_v25  ;;  %v5062_v28 = vmul.f32 %v8727_v53, %v5060_v4  ;;  %v8729_v32 = vpop.eup %8728  ;;  %vm5067_vm6 = vweird.f32 %v8727_v53 }
0x11ca   :  { %v5030_v31 = vsel %vm5029_vm2, %v8723_v7, %v5026_v17  ;;  %vm5068_vm8 = vmor %vm5066_vm7, %vm5067_vm6 }
0x11cb   :  { %v5035_v43 = vsel %vm5032_vm4, %v5034_v63, %v5030_v31  ;;  %v5049_v35 = vsel %vm5048_vm3, %v8725_v3, %v5045_v27  ;;  %v5063_v49 = vsub.f32 1.0, %v5062_v28 }
0x11cc   :  { %v5054_v34 = vsel %vm5051_vm5, %v5053_v30, %v5049_v35  ;;  %v5080_v58 = vmul.f32 %v8729_v32, %v5035_v43 }
0x11cd   :  { %v5079_v46 = vmul.f32 %v5077_v29, %v5054_v34  ;;  %v5064_v16 = vmul.f32 %v8727_v53, %v5063_v49 }
0x11cf   :  { %v9906_v18 = vadd.f32 %v5080_v58, %v5079_v46  ;;  %v5065_v61 = vadd.f32 %v8727_v53, %v5064_v16 }
0x11d1   :  { %8730 = vtanh.f32 %v9906_v18  ;;  %v5069_v22 = vsel %vm5068_vm8, %v8727_v53, %v5065_v61  ;;  %v5256_v58 = vrot.slane %v9906_v18, 6 }
0x11d2   :  { %v5074_v10 = vsel %vm5071_vm9, %v5073_v62, %v5069_v22 }
0x11d7   :  { %v8731_v8 = vpop.eup %8730 }
0x11d8   :  { %v5083_v9 = vmul.f32 %v8731_v8, %v5074_v10 }
0x11da   :  { %5084 = vst.msk [vmem:[#allocation3] sm:$0xc] %vm497_vm11, %v5083_v9  ;;  %v5098_v2 = vrot.slane %v5083_v9, 2 }
0x11dc   :  { %8095 = vmatmul.msk.f32.vlgmr.msra.gmra.mxu0 %vm27_vm0, %v5098_v2  ;;  %8096 = vmatmul.msk.f32.vlgmr.msrb.gmra.mxu1 %vm27_vm0, %v5098_v2 }
0x11dd   :  { %8097 = vmatmul.msk.f32.vlgmr.msra.gmra.mxu2 %vm27_vm0, %v5098_v2  ;;  %8098 = vmatmul.msk.f32.vlgmr.msra.gmra.mxu3 %vm27_vm0, %v5098_v2 }
0x11de   :  { %5473 = vmatpush.msra.mxu0 %v9787_v50  ;;  %5493 = vmatpush.msrb.mxu1 %v9792_v21 }
0x11df   :  { %5513 = vmatpush.msra.mxu2 %v9828_v37  ;;  %5533 = vmatpush.msra.mxu3 %v9797_v54 }
0x11e0   :  { %5474 = vmatpush.msra.mxu0 %v9816_v56  ;;  %5494 = vmatpush.msrb.mxu1 %v9821_v15 }
0x11e1   :  { %5514 = vmatpush.msra.mxu2 %v9841_v11  ;;  %5534 = vmatpush.msra.mxu3 %v9833_v14 }
0x1259   :  { %v5118_v40 = vpop.f32.mrf.mxu0  ;;  %v5138_v51 = vpop.f32.mrf.mxu1 }
0x125a   :  { %v5185_v41 = vrot.slane %v5118_v40, 4  ;;  %v5186_v12 = vrot.slane %v5138_v51, 4 }
0x125c   :  { %v5193_v39 = vadd.f32 %v5185_v41, %v5085_v0  ;;  %v5194_v59 = vadd.f32 %v5186_v12, %v5086_v42 }
0x125e   :  { %v8099_v45 = vmul.f32 -1.442695, %v5193_v39  ;;  %v8100_v44 = vmul.f32 -1.442695, %v5194_v59 }
0x1260   :  { %8732 = vpow2.f32 %v8099_v45  ;;  %v5178_v36 = vpop.f32.mrf.mxu3  ;;  %v5158_v19 = vpop.f32.mrf.mxu2 }
0x1261   :  { %8734 = vpow2.f32 %v8100_v44  ;;  %v5188_v48 = vrot.slane %v5178_v36, 4  ;;  %v5187_v1 = vrot.slane %v5158_v19, 4 }
0x1263   :  { %v5196_v47 = vadd.f32 %v5188_v48, %v5088_v55  ;;  %v5195_v23 = vadd.f32 %v5187_v1, %v5087_v60  ;;  %v5264_v55 = vld [vmem:[#allocation2 + $0x30] sm:$0xc0]  ;;  %v5266_v60 = vld [vmem:[#allocation2 + $0x18] sm:$0xc0] }
0x1265   :  { %v8101_v52 = vmul.f32 -1.442695, %v5196_v47 }
0x1266   :  { %v8733_v4 = vpop.eup %8732 }
0x1267   :  { %v8735_v7 = vpop.eup %8734  ;;  %v5200_v57 = vadd.f32 1.0, %v8733_v4  ;;  %8736 = vpow2.f32 %v8101_v52  ;;  %v5267_v4 = vld [vmem:[#allocation2 + $0x10] sm:$0xc0] }
0x1268   :  { %v5219_v3 = vadd.f32 1.0, %v8735_v7 }
0x1269   :  { %8738 = vrcp.f32 %v5200_v57  ;;  %v5212_v63 = vand.u32 2147483648, %v5200_v57  ;;  %v5210_v29 = vand.u32 2147483647, %v5200_v57  ;;  %vm5206_vm1 = vweird.f32 %v5200_v57 }
0x126a   :  { %8740 = vrcp.f32 %v5219_v3  ;;  %v5231_v27 = vand.u32 2147483648, %v5219_v3  ;;  %v5229_v31 = vand.u32 2147483647, %v5219_v3  ;;  %vm5225_vm2 = vweird.f32 %v5219_v3 }
0x126b   :  { %v5213_v35 = vor.u32 1.1754944e-38, %v5212_v63  ;;  %vm5211_vm5 = vcmp.eq.f32.partialorder %v5210_v29, 8.507059e+37 }
0x126c   :  { %v5232_v46 = vor.u32 1.1754944e-38, %v5231_v27  ;;  %vm5230_vm6 = vcmp.eq.f32.partialorder %v5229_v31, 8.507059e+37 }
0x126d   :  { %v8737_v5 = vpop.eup %8736 }
0x126e   :  { %v5239_v6 = vadd.f32 1.0, %v8737_v5 }
0x126f   :  { %v8739_v13 = vpop.eup %8738 }
0x1270   :  { %v8741_v24 = vpop.eup %8740  ;;  %v5202_v25 = vmul.f32 %v8739_v13, %v5200_v57  ;;  %8742 = vrcp.f32 %v5239_v6  ;;  %vm5207_vm14 = vweird.f32 %v8739_v13  ;;  %v5251_v18 = vand.u32 2147483648, %v5239_v6 }
0x1271   :  { %v5221_v26 = vmul.f32 %v8741_v24, %v5219_v3  ;;  %8744 = vtanh.f32 %v5195_v23  ;;  %vm5226_vm15 = vweird.f32 %v8741_v24  ;;  %vm5208_vm3 = vmor %vm5206_vm1, %vm5207_vm14  ;;  %vm5245_vm8 = vweird.f32 %v5239_v6 }
0x1272   :  { %v5203_v53 = vsub.f32 1.0, %v5202_v25  ;;  %vm5227_vm4 = vmor %vm5225_vm2, %vm5226_vm15  ;;  %v5249_v51 = vand.u32 2147483647, %v5239_v6  ;;  %v5252_v12 = vor.u32 1.1754944e-38, %v5251_v18 }
0x1273   :  { %v5222_v17 = vsub.f32 1.0, %v5221_v26 }
0x1274   :  { %v5204_v28 = vmul.f32 %v8739_v13, %v5203_v53  ;;  %vm5250_vm14 = vcmp.eq.f32.partialorder %v5249_v51, 8.507059e+37 }
0x1275   :  { %v5223_v30 = vmul.f32 %v8741_v24, %v5222_v17 }
0x1276   :  { %v8743_v32 = vpop.eup %8742  ;;  %v5205_v43 = vadd.f32 %v8739_v13, %v5204_v28 }
0x1277   :  { %v5224_v49 = vadd.f32 %v8741_v24, %v5223_v30  ;;  %v5241_v34 = vmul.f32 %v8743_v32, %v5239_v6  ;;  %v8745_v61 = vpop.eup %8744  ;;  %vm5246_vm7 = vweird.f32 %v8743_v32 }
0x1278   :  { %v5209_v16 = vsel %vm5208_vm3, %v8739_v13, %v5205_v43  ;;  %vm5247_vm9 = vmor %vm5245_vm8, %vm5246_vm7 }
0x1279   :  { %v5214_v33 = vsel %vm5211_vm5, %v5213_v35, %v5209_v16  ;;  %v5228_v38 = vsel %vm5227_vm4, %v8741_v24, %v5224_v49  ;;  %v5242_v22 = vsub.f32 1.0, %v5241_v34 }
0x127a   :  { %v5233_v62 = vsel %vm5230_vm6, %v5232_v46, %v5228_v38  ;;  %v5259_v8 = vmul.f32 %v8745_v61, %v5214_v33 }
0x127b   :  { %v5258_v10 = vmul.f32 %v5256_v58, %v5233_v62  ;;  %v5243_v9 = vmul.f32 %v8743_v32, %v5242_v22 }
0x127d   :  { %v9923_v2 = vadd.f32 %v5259_v8, %v5258_v10  ;;  %v5244_v40 = vadd.f32 %v8743_v32, %v5243_v9 }
0x127f   :  { %8746 = vtanh.f32 %v9923_v2  ;;  %v5248_v41 = vsel %vm5247_vm9, %v8743_v32, %v5244_v40  ;;  %v5435_v58 = vrot.slane %v9923_v2, 6 }
0x1280   :  { %v5253_v42 = vsel %vm5250_vm14, %v5252_v12, %v5248_v41 }
0x1285   :  { %v8747_v0 = vpop.eup %8746 }
0x1286   :  { %v5262_v39 = vmul.f32 %v8747_v0, %v5253_v42 }
0x1288   :  { %5263 = vst.msk [vmem:[#allocation3] sm:$0x30] %vm677_vm10, %v5262_v39  ;;  %v5277_v59 = vrot.slane %v5262_v39, 4 }
0x128a   :  { %8110 = vmatmul.msk.f32.vlgmr.msrb.gmra.mxu0 %vm27_vm0, %v5277_v59  ;;  %8111 = vmatmul.msk.f32.vlgmr.msra.gmra.mxu1 %vm27_vm0, %v5277_v59 }
0x128b   :  { %8112 = vmatmul.msk.f32.vlgmr.msrb.gmra.mxu2 %vm27_vm0, %v5277_v59  ;;  %8113 = vmatmul.msk.f32.vlgmr.msrb.gmra.mxu3 %vm27_vm0, %v5277_v59 }
0x128c   :  { %5639 = vmatpush.msrb.mxu0 %v9787_v50  ;;  %5659 = vmatpush.msra.mxu1 %v9792_v21  ;;  %v5265_v50 = vld [vmem:[#allocation2] sm:$0xc0] }
0x128d   :  { %5679 = vmatpush.msrb.mxu2 %v9828_v37  ;;  %5699 = vmatpush.msrb.mxu3 %v9797_v54 }
0x128e   :  { %5640 = vmatpush.msrb.mxu0 %v9816_v56  ;;  %5660 = vmatpush.msra.mxu1 %v9821_v15 }
0x128f   :  { %5680 = vmatpush.msrb.mxu2 %v9841_v11  ;;  %5700 = vmatpush.msrb.mxu3 %v9833_v14 }
0x1307   :  { %v5297_v45 = vpop.f32.mrf.mxu0  ;;  %v5317_v44 = vpop.f32.mrf.mxu1 }
0x1308   :  { %v5364_v36 = vrot.slane %v5297_v45, 2  ;;  %v5365_v48 = vrot.slane %v5317_v44, 2  ;;  %v5443_v45 = vld [vmem:[#allocation2 + $0x8] sm:$0x3] }
0x130a   :  { %v5372_v47 = vadd.f32 %v5364_v36, %v5264_v55  ;;  %v5373_v21 = vadd.f32 %v5365_v48, %v5265_v50  ;;  %v5444_v36 = vld [vmem:[#allocation2 + $0x20] sm:$0x3] }
0x130c   :  { %v8114_v52 = vmul.f32 -1.442695, %v5372_v47  ;;  %v8115_v37 = vmul.f32 -1.442695, %v5373_v21 }
0x130e   :  { %8748 = vpow2.f32 %v8114_v52  ;;  %v5357_v54 = vpop.f32.mrf.mxu3  ;;  %v5337_v19 = vpop.f32.mrf.mxu2  ;;  %v5446_v52 = vld [vmem:[#allocation2 + $0x38] sm:$0x3] }
0x130f   :  { %8750 = vpow2.f32 %v8115_v37  ;;  %v5367_v56 = vrot.slane %v5357_v54, 2  ;;  %v5366_v1 = vrot.slane %v5337_v19, 2 }
0x1311   :  { %v5375_v15 = vadd.f32 %v5367_v56, %v5267_v4  ;;  %v5374_v23 = vadd.f32 %v5366_v1, %v5266_v60 }
0x1313   :  { %v8116_v7 = vmul.f32 -1.442695, %v5375_v15 }
0x1314   :  { %v8749_v11 = vpop.eup %8748 }
0x1315   :  { %v8751_v57 = vpop.eup %8750  ;;  %v5379_v14 = vadd.f32 1.0, %v8749_v11  ;;  %8752 = vpow2.f32 %v8116_v7 }
0x1316   :  { %v5398_v3 = vadd.f32 1.0, %v8751_v57 }
0x1317   :  { %8754 = vrcp.f32 %v5379_v14  ;;  %v5391_v63 = vand.u32 2147483648, %v5379_v14  ;;  %v5389_v29 = vand.u32 2147483647, %v5379_v14  ;;  %vm5385_vm2 = vweird.f32 %v5379_v14 }
0x1318   :  { %8756 = vrcp.f32 %v5398_v3  ;;  %v5410_v27 = vand.u32 2147483648, %v5398_v3  ;;  %v5408_v31 = vand.u32 2147483647, %v5398_v3  ;;  %vm5404_vm3 = vweird.f32 %v5398_v3 }
0x1319   :  { %v5392_v35 = vor.u32 1.1754944e-38, %v5391_v63  ;;  %vm5390_vm6 = vcmp.eq.f32.partialorder %v5389_v29, 8.507059e+37 }
0x131a   :  { %v5411_v46 = vor.u32 1.1754944e-38, %v5410_v27  ;;  %vm5409_vm7 = vcmp.eq.f32.partialorder %v5408_v31, 8.507059e+37 }
0x131b   :  { %v8753_v5 = vpop.eup %8752 }
0x131c   :  { %v5418_v6 = vadd.f32 1.0, %v8753_v5 }
0x131d   :  { %v8755_v13 = vpop.eup %8754 }
0x131e   :  { %v8757_v24 = vpop.eup %8756  ;;  %v5381_v25 = vmul.f32 %v8755_v13, %v5379_v14  ;;  %8758 = vrcp.f32 %v5418_v6  ;;  %vm5386_vm15 = vweird.f32 %v8755_v13  ;;  %v5430_v2 = vand.u32 2147483648, %v5418_v6 }
0x131f   :  { %v5400_v26 = vmul.f32 %v8757_v24, %v5398_v3  ;;  %8760 = vtanh.f32 %v5374_v23  ;;  %vm5405_vm1 = vweird.f32 %v8757_v24  ;;  %vm5387_vm4 = vmor %vm5385_vm2, %vm5386_vm15  ;;  %vm5424_vm9 = vweird.f32 %v5418_v6  ;;  %v5445_v3 = vld [vmem:[#allocation2 + $0x28] sm:$0x3] }
0x1320   :  { %v5382_v53 = vsub.f32 1.0, %v5381_v25  ;;  %vm5406_vm5 = vmor %vm5404_vm3, %vm5405_vm1  ;;  %v5428_v51 = vand.u32 2147483647, %v5418_v6  ;;  %v5431_v12 = vor.u32 1.1754944e-38, %v5430_v2 }
0x1321   :  { %v5401_v17 = vsub.f32 1.0, %v5400_v26 }
0x1322   :  { %v5383_v28 = vmul.f32 %v8755_v13, %v5382_v53  ;;  %vm5429_vm15 = vcmp.eq.f32.partialorder %v5428_v51, 8.507059e+37 }
0x1323   :  { %v5402_v30 = vmul.f32 %v8757_v24, %v5401_v17 }
0x1324   :  { %v8759_v32 = vpop.eup %8758  ;;  %v5384_v43 = vadd.f32 %v8755_v13, %v5383_v28 }
0x1325   :  { %v5403_v49 = vadd.f32 %v8757_v24, %v5402_v30  ;;  %v5420_v34 = vmul.f32 %v8759_v32, %v5418_v6  ;;  %v8761_v61 = vpop.eup %8760  ;;  %vm5425_vm8 = vweird.f32 %v8759_v32 }
0x1326   :  { %v5388_v16 = vsel %vm5387_vm4, %v8755_v13, %v5384_v43  ;;  %vm5426_vm14 = vmor %vm5424_vm9, %vm5425_vm8 }
0x1327   :  { %v5393_v33 = vsel %vm5390_vm6, %v5392_v35, %v5388_v16  ;;  %v5407_v38 = vsel %vm5406_vm5, %v8757_v24, %v5403_v49  ;;  %v5421_v22 = vsub.f32 1.0, %v5420_v34 }
0x1328   :  { %v5412_v62 = vsel %vm5409_vm7, %v5411_v46, %v5407_v38  ;;  %v5438_v8 = vmul.f32 %v8761_v61, %v5393_v33 }
0x1329   :  { %v5437_v10 = vmul.f32 %v5435_v58, %v5412_v62  ;;  %v5422_v9 = vmul.f32 %v8759_v32, %v5421_v22 }
0x132b   :  { %v9940_v40 = vadd.f32 %v5438_v8, %v5437_v10  ;;  %v5423_v18 = vadd.f32 %v8759_v32, %v5422_v9 }
0x132d   :  { %8762 = vtanh.f32 %v9940_v40  ;;  %v5427_v41 = vsel %vm5426_vm14, %v8759_v32, %v5423_v18  ;;  %v5602_v49 = vrot.slane %v9940_v40, 6 }
0x132e   :  { %v5432_v42 = vsel %vm5429_vm15, %v5431_v12, %v5427_v41 }
0x1333   :  { %v8763_v0 = vpop.eup %8762 }
0x1334   :  { %v5441_v39 = vmul.f32 %v8763_v0, %v5432_v42 }
0x1336   :  { %5442 = vst.msk [vmem:[#allocation3] sm:$0xc0] %vm857_vm12, %v5441_v39  ;;  %v5456_v59 = vrot.slane %v5441_v39, 6 }
0x1338   :  { %8125 = vmatmul.msk.f32.vlgmr.msra.gmra.mxu0 %vm27_vm0, %v5456_v59  ;;  %8126 = vmatmul.msk.f32.vlgmr.msrb.gmra.mxu1 %vm27_vm0, %v5456_v59 }
0x1339   :  { %8127 = vmatmul.msk.f32.vlgmr.msra.gmra.mxu2 %vm27_vm0, %v5456_v59  ;;  %8128 = vmatmul.msk.f32.vlgmr.msra.gmra.mxu3 %vm27_vm0, %v5456_v59  ;;  %v5610_v59 = vld [vmem:[#allocation2 + $0x8] sm:$0xc] }
0x13b5   :  { %v5476_v44 = vpop.f32.mrf.mxu0  ;;  %v5496_v48 = vpop.f32.mrf.mxu1 }
0x13b6   :  { %v5539_v55 = vadd.f32 %v5476_v44, %v5443_v45  ;;  %v5540_v50 = vadd.f32 %v5496_v48, %v5444_v36  ;;  %v5611_v45 = vld [vmem:[#allocation2 + $0x20] sm:$0xc] }
0x13b8   :  { %v8129_v47 = vmul.f32 -1.442695, %v5539_v55  ;;  %v8130_v21 = vmul.f32 -1.442695, %v5540_v50  ;;  %v8151_v50 = vld [vmem:[%s10286_s2 + $0xe0] sm:$0xff] }
0x13b9   :  { %5818 = vmatpush.msra.mxu0 %v8151_v50 }
0x13ba   :  { %8764 = vpow2.f32 %v8129_v47  ;;  %v8152_v47 = vld [vmem:[%s10286_s2 + $0xe8] sm:$0xff] }
0x13bb   :  { %8766 = vpow2.f32 %v8130_v21  ;;  %v8147_v21 = vld [vmem:[%s10286_s2 + $0xc0] sm:$0xff]  ;;  %5838 = vmatpush.msrb.mxu1 %v8152_v47 }
0x13bc   :  { %v5536_v37 = vpop.f32.mrf.mxu3  ;;  %v5516_v57 = vpop.f32.mrf.mxu2  ;;  %5819 = vmatpush.msra.mxu0 %v8147_v21 }
0x13bd   :  { %v5542_v54 = vadd.f32 %v5536_v37, %v5446_v52  ;;  %v5541_v5 = vadd.f32 %v5516_v57, %v5445_v3  ;;  %v8148_v37 = vld [vmem:[%s10286_s2 + $0xc8] sm:$0xff] }
0x13be   :  { %5839 = vmatpush.msrb.mxu1 %v8148_v37 }
0x13bf   :  { %v8131_v56 = vmul.f32 -1.442695, %v5542_v54  ;;  %v8153_v54 = vld [vmem:[%s10286_s2 + $0xf0] sm:$0xff] }
0x13c0   :  { %v8765_v4 = vpop.eup %8764  ;;  %5858 = vmatpush.msra.mxu2 %v8153_v54 }
0x13c1   :  { %v8767_v15 = vpop.eup %8766  ;;  %v5546_v7 = vadd.f32 1.0, %v8765_v4  ;;  %8768 = vpow2.f32 %v8131_v56  ;;  %v8154_v56 = vld [vmem:[%s10286_s2 + $0xf8] sm:$0xff] }
0x13c2   :  { %v5565_v11 = vadd.f32 1.0, %v8767_v15  ;;  %5878 = vmatpush.msra.mxu3 %v8154_v56  ;;  %v8149_v15 = vld [vmem:[%s10286_s2 + $0xd0] sm:$0xff] }
0x13c3   :  { %8770 = vrcp.f32 %v5546_v7  ;;  %v5558_v25 = vand.u32 2147483648, %v5546_v7  ;;  %v5556_v17 = vand.u32 2147483647, %v5546_v7  ;;  %vm5552_vm3 = vweird.f32 %v5546_v7  ;;  %5859 = vmatpush.msra.mxu2 %v8149_v15 }
0x13c4   :  { %8772 = vrcp.f32 %v5565_v11  ;;  %v5577_v26 = vand.u32 2147483648, %v5565_v11  ;;  %v5575_v27 = vand.u32 2147483647, %v5565_v11  ;;  %vm5571_vm4 = vweird.f32 %v5565_v11 }
0x13c5   :  { %v5559_v30 = vor.u32 1.1754944e-38, %v5558_v25  ;;  %vm5557_vm7 = vcmp.eq.f32.partialorder %v5556_v17, 8.507059e+37 }
0x13c6   :  { %v5578_v43 = vor.u32 1.1754944e-38, %v5577_v26  ;;  %vm5576_vm8 = vcmp.eq.f32.partialorder %v5575_v27, 8.507059e+37 }
0x13c7   :  { %v8769_v14 = vpop.eup %8768 }
0x13c8   :  { %v5585_v19 = vadd.f32 1.0, %v8769_v14 }
0x13c9   :  { %v8771_v1 = vpop.eup %8770 }
0x13ca   :  { %v8773_v60 = vpop.eup %8772  ;;  %v5548_v6 = vmul.f32 %v8771_v1, %v5546_v7  ;;  %8774 = vrcp.f32 %v5585_v19  ;;  %vm5553_vm1 = vweird.f32 %v8771_v1  ;;  %v5597_v10 = vand.u32 2147483648, %v5585_v19  ;;  %v8150_v7 = vld [vmem:[%s10286_s2 + $0xd8] sm:$0xff] }
0x13cb   :  { %v5567_v13 = vmul.f32 %v8773_v60, %v5565_v11  ;;  %8776 = vtanh.f32 %v5541_v5  ;;  %vm5572_vm2 = vweird.f32 %v8773_v60  ;;  %vm5554_vm5 = vmor %vm5552_vm3, %vm5553_vm1  ;;  %vm5591_vm14 = vweird.f32 %v5585_v19  ;;  %v5613_v11 = vld [vmem:[#allocation2 + $0x38] sm:$0xc]  ;;  %5879 = vmatpush.msra.mxu3 %v8150_v7 }
0x13cc   :  { %v5549_v23 = vsub.f32 1.0, %v5548_v6  ;;  %vm5573_vm6 = vmor %vm5571_vm4, %vm5572_vm2  ;;  %v5595_v9 = vand.u32 2147483647, %v5585_v19  ;;  %v5598_v18 = vor.u32 1.1754944e-38, %v5597_v10 }
0x13cd   :  { %v5568_v24 = vsub.f32 1.0, %v5567_v13 }
0x13ce   :  { %v5550_v53 = vmul.f32 %v8771_v1, %v5549_v23  ;;  %vm5596_vm1 = vcmp.eq.f32.partialorder %v5595_v9, 8.507059e+37  ;;  %v5612_v23 = vld [vmem:[#allocation2 + $0x28] sm:$0xc] }
0x13cf   :  { %v5569_v63 = vmul.f32 %v8773_v60, %v5568_v24 }
0x13d0   :  { %v8775_v28 = vpop.eup %8774  ;;  %v5551_v29 = vadd.f32 %v8771_v1, %v5550_v53 }
0x13d1   :  { %v5570_v31 = vadd.f32 %v8773_v60, %v5569_v63  ;;  %v5587_v32 = vmul.f32 %v8775_v28, %v5585_v19  ;;  %v8777_v34 = vpop.eup %8776  ;;  %vm5592_vm9 = vweird.f32 %v8775_v28 }
0x13d2   :  { %v5555_v35 = vsel %vm5554_vm5, %v8771_v1, %v5551_v29  ;;  %vm5593_vm15 = vmor %vm5591_vm14, %vm5592_vm9 }
0x13d3   :  { %v5560_v58 = vsel %vm5557_vm7, %v5559_v30, %v5555_v35  ;;  %v5574_v46 = vsel %vm5573_vm6, %v8773_v60, %v5570_v31  ;;  %v5588_v16 = vsub.f32 1.0, %v5587_v32 }
0x13d4   :  { %v5579_v61 = vsel %vm5576_vm8, %v5578_v43, %v5574_v46  ;;  %v5605_v33 = vmul.f32 %v8777_v34, %v5560_v58 }
0x13d5   :  { %v5604_v38 = vmul.f32 %v5602_v49, %v5579_v61  ;;  %v5589_v22 = vmul.f32 %v8775_v28, %v5588_v16 }
0x13d7   :  { %v9949_v62 = vadd.f32 %v5605_v33, %v5604_v38  ;;  %v5590_v8 = vadd.f32 %v8775_v28, %v5589_v22 }
0x13d9   :  { %8778 = vtanh.f32 %v9949_v62  ;;  %v5594_v40 = vsel %vm5593_vm15, %v8775_v28, %v5590_v8  ;;  %v5780_v61 = vrot.slane %v9949_v62, 6 }
0x13da   :  { %v5599_v51 = vsel %vm5596_vm1, %v5598_v18, %v5594_v40 }
0x13df   :  { %v8779_v2 = vpop.eup %8778 }
0x13e0   :  { %v5608_v41 = vmul.f32 %v8779_v2, %v5599_v51 }
0x13e2   :  { %5609 = vst.msk [vmem:[#allocation3 + $0x8] sm:$0x3] %vm318_vm13, %v5608_v41  ;;  %8140 = vmatmul.msk.f32.vlgmr.msrb.gmra.mxu0 %vm27_vm0, %v5608_v41  ;;  %8141 = vmatmul.msk.f32.vlgmr.msra.gmra.mxu1 %vm27_vm0, %v5608_v41 }
0x13e3   :  { %8142 = vmatmul.msk.f32.vlgmr.msrb.gmra.mxu2 %vm27_vm0, %v5608_v41  ;;  %8143 = vmatmul.msk.f32.vlgmr.msrb.gmra.mxu3 %vm27_vm0, %v5608_v41 }
0x13e4   :  { %5997 = vmatpush.msrb.mxu0 %v8151_v50  ;;  %6017 = vmatpush.msra.mxu1 %v8152_v47 }
0x13e5   :  { %6037 = vmatpush.msrb.mxu2 %v8153_v54  ;;  %6057 = vmatpush.msrb.mxu3 %v8154_v56 }
0x13e6   :  { %5998 = vmatpush.msrb.mxu0 %v8147_v21  ;;  %6018 = vmatpush.msra.mxu1 %v8148_v37  ;;  %v5788_v21 = vld [vmem:[#allocation2 + $0x8] sm:$0x30] }
0x13e7   :  { %6038 = vmatpush.msrb.mxu2 %v8149_v15  ;;  %6058 = vmatpush.msrb.mxu3 %v8150_v7 }
0x145f   :  { %v5642_v12 = vpop.f32.mrf.mxu0  ;;  %v5662_v0 = vpop.f32.mrf.mxu1 }
0x1460   :  { %v5709_v42 = vrot.slane %v5642_v12, 6  ;;  %v5710_v39 = vrot.slane %v5662_v0, 6 }
0x1462   :  { %v5717_v44 = vadd.f32 %v5709_v42, %v5610_v59  ;;  %v5718_v36 = vadd.f32 %v5710_v39, %v5611_v45 }
0x1464   :  { %v8144_v48 = vmul.f32 -1.442695, %v5717_v44  ;;  %v8145_v55 = vmul.f32 -1.442695, %v5718_v36 }
0x1466   :  { %8780 = vpow2.f32 %v8144_v48  ;;  %v5702_v52 = vpop.f32.mrf.mxu3  ;;  %v5682_v60 = vpop.f32.mrf.mxu2 }
0x1467   :  { %8782 = vpow2.f32 %v8145_v55  ;;  %v5712_v4 = vrot.slane %v5702_v52, 6  ;;  %v5711_v6 = vrot.slane %v5682_v60, 6  ;;  %v5789_v52 = vld [vmem:[#allocation2 + $0x20] sm:$0x30] }
0x1469   :  { %v5720_v57 = vadd.f32 %v5712_v4, %v5613_v11  ;;  %v5719_v26 = vadd.f32 %v5711_v6, %v5612_v23  ;;  %v5791_v11 = vld [vmem:[#allocation2 + $0x38] sm:$0x30]  ;;  %v8182_v23 = vld [vmem:[%s10284_s1 + $0x128] sm:$0xff] }
0x146b   :  { %v8146_v14 = vmul.f32 -1.442695, %v5720_v57 }
0x146c   :  { %v8781_v3 = vpop.eup %8780 }
0x146d   :  { %v8783_v19 = vpop.eup %8782  ;;  %v5724_v1 = vadd.f32 1.0, %v8781_v3  ;;  %8784 = vpow2.f32 %v8146_v14 }
0x146e   :  { %v5743_v5 = vadd.f32 1.0, %v8783_v19 }
0x146f   :  { %8786 = vrcp.f32 %v5724_v1  ;;  %v5736_v29 = vand.u32 2147483648, %v5724_v1  ;;  %v5734_v32 = vand.u32 2147483647, %v5724_v1  ;;  %vm5730_vm4 = vweird.f32 %v5724_v1 }
0x1470   :  { %8788 = vrcp.f32 %v5743_v5  ;;  %v5755_v30 = vand.u32 2147483648, %v5743_v5  ;;  %v5753_v35 = vand.u32 2147483647, %v5743_v5  ;;  %vm5749_vm5 = vweird.f32 %v5743_v5 }
0x1471   :  { %v5737_v58 = vor.u32 1.1754944e-38, %v5736_v29  ;;  %vm5735_vm8 = vcmp.eq.f32.partialorder %v5734_v32, 8.507059e+37 }
0x1472   :  { %v5756_v33 = vor.u32 1.1754944e-38, %v5755_v30  ;;  %vm5754_vm9 = vcmp.eq.f32.partialorder %v5753_v35, 8.507059e+37 }
0x1473   :  { %v8785_v13 = vpop.eup %8784 }
0x1474   :  { %v5763_v24 = vadd.f32 1.0, %v8785_v13  ;;  %v8181_v13 = vld [vmem:[%s10284_s1 + $0x120] sm:$0xff] }
0x1475   :  { %v8787_v25 = vpop.eup %8786 }
0x1476   :  { %v8789_v53 = vpop.eup %8788  ;;  %v5726_v17 = vmul.f32 %v8787_v25, %v5724_v1  ;;  %8790 = vrcp.f32 %v5763_v24  ;;  %vm5731_vm2 = vweird.f32 %v8787_v25  ;;  %v5775_v62 = vand.u32 2147483648, %v5763_v24 }
0x1477   :  { %v5745_v63 = vmul.f32 %v8789_v53, %v5743_v5  ;;  %8792 = vtanh.f32 %v5719_v26  ;;  %vm5750_vm3 = vweird.f32 %v8789_v53  ;;  %vm5732_vm6 = vmor %vm5730_vm4, %vm5731_vm2  ;;  %vm5769_vm15 = vweird.f32 %v5763_v24  ;;  %v8177_v26 = vld [vmem:[%s10284_s1 + $0x100] sm:$0xff] }
0x1478   :  { %v5727_v27 = vsub.f32 1.0, %v5726_v17  ;;  %vm5751_vm7 = vmor %vm5749_vm5, %vm5750_vm3  ;;  %v5773_v0 = vand.u32 2147483647, %v5763_v24  ;;  %v5776_v39 = vor.u32 1.1754944e-38, %v5775_v62 }
0x1479   :  { %v5746_v28 = vsub.f32 1.0, %v5745_v63  ;;  %v8179_v63 = vld [vmem:[%s10284_s1 + $0x110] sm:$0xff] }
0x147a   :  { %v5728_v31 = vmul.f32 %v8787_v25, %v5727_v27  ;;  %vm5774_vm2 = vcmp.eq.f32.partialorder %v5773_v0, 8.507059e+37  ;;  %v8180_v27 = vld [vmem:[%s10284_s1 + $0x118] sm:$0xff] }
0x147b   :  { %v5747_v43 = vmul.f32 %v8789_v53, %v5746_v28  ;;  %v5790_v28 = vld [vmem:[#allocation2 + $0x28] sm:$0x30] }
0x147c   :  { %v8791_v49 = vpop.eup %8790  ;;  %v5729_v34 = vadd.f32 %v8787_v25, %v5728_v31 }
0x147d   :  { %v5748_v46 = vadd.f32 %v8789_v53, %v5747_v43  ;;  %v5765_v16 = vmul.f32 %v8791_v49, %v5763_v24  ;;  %v8793_v22 = vpop.eup %8792  ;;  %vm5770_vm14 = vweird.f32 %v8791_v49  ;;  %v8183_v24 = vld [vmem:[%s10284_s1 + $0x130] sm:$0xff] }
0x147e   :  { %v5733_v38 = vsel %vm5732_vm6, %v8787_v25, %v5729_v34  ;;  %vm5771_vm1 = vmor %vm5769_vm15, %vm5770_vm14  ;;  %v8184_v25 = vld [vmem:[%s10284_s1 + $0x138] sm:$0xff] }
0x147f   :  { %v5738_v8 = vsel %vm5735_vm8, %v5737_v58, %v5733_v38  ;;  %v5752_v10 = vsel %vm5751_vm7, %v8789_v53, %v5748_v46  ;;  %v5766_v9 = vsub.f32 1.0, %v5765_v16  ;;  %v8178_v53 = vld [vmem:[%s10284_s1 + $0x108] sm:$0xff] }
0x1480   :  { %v5757_v40 = vsel %vm5754_vm9, %v5756_v33, %v5752_v10  ;;  %v5783_v18 = vmul.f32 %v8793_v22, %v5738_v8 }
0x1481   :  { %v5782_v2 = vmul.f32 %v5780_v61, %v5757_v40  ;;  %v5767_v51 = vmul.f32 %v8791_v49, %v5766_v9 }
0x1483   :  { %v9982_v41 = vadd.f32 %v5783_v18, %v5782_v2  ;;  %v5768_v12 = vadd.f32 %v8791_v49, %v5767_v51 }
0x1485   :  { %8794 = vtanh.f32 %v9982_v41  ;;  %v5772_v42 = vsel %vm5771_vm1, %v8791_v49, %v5768_v12  ;;  %v5959_v18 = vrot.slane %v9982_v41, 6 }
0x1486   :  { %v5777_v45 = vsel %vm5774_vm2, %v5776_v39, %v5772_v42 }
0x148b   :  { %v8795_v59 = vpop.eup %8794 }
0x148c   :  { %v5786_v44 = vmul.f32 %v8795_v59, %v5777_v45 }
0x148e   :  { %5787 = vst.msk [vmem:[#allocation3 + $0x8] sm:$0xc] %vm497_vm11, %v5786_v44  ;;  %v5801_v36 = vrot.slane %v5786_v44, 2 }
0x1490   :  { %8155 = vmatmul.msk.f32.vlgmr.msra.gmra.mxu0 %vm27_vm0, %v5801_v36  ;;  %8156 = vmatmul.msk.f32.vlgmr.msrb.gmra.mxu1 %vm27_vm0, %v5801_v36 }
0x1491   :  { %8157 = vmatmul.msk.f32.vlgmr.msra.gmra.mxu2 %vm27_vm0, %v5801_v36  ;;  %8158 = vmatmul.msk.f32.vlgmr.msra.gmra.mxu3 %vm27_vm0, %v5801_v36 }
0x1492   :  { %6188 = vmatpush.msra.mxu0 %v8181_v13  ;;  %6211 = vmatpush.msrb.mxu1 %v8182_v23 }
0x1493   :  { %6234 = vmatpush.msra.mxu2 %v8183_v24  ;;  %6257 = vmatpush.msra.mxu3 %v8184_v25 }
0x1494   :  { %6189 = vmatpush.msra.mxu0 %v8177_v26  ;;  %6212 = vmatpush.msrb.mxu1 %v8178_v53 }
0x1495   :  { %6235 = vmatpush.msra.mxu2 %v8179_v63  ;;  %6258 = vmatpush.msra.mxu3 %v8180_v27 }
0x150d   :  { %v5821_v48 = vpop.f32.mrf.mxu0  ;;  %v5841_v55 = vpop.f32.mrf.mxu1 }
0x150e   :  { %v5888_v50 = vrot.slane %v5821_v48, 4  ;;  %v5889_v47 = vrot.slane %v5841_v55, 4 }
0x1510   :  { %v5896_v37 = vadd.f32 %v5888_v50, %v5788_v21  ;;  %v5897_v54 = vadd.f32 %v5889_v47, %v5789_v52 }
0x1512   :  { %v8159_v56 = vmul.f32 -1.442695, %v5896_v37  ;;  %v8160_v4 = vmul.f32 -1.442695, %v5897_v54 }
0x1514   :  { %8796 = vpow2.f32 %v8159_v56  ;;  %v5881_v15 = vpop.f32.mrf.mxu3  ;;  %v5861_v60 = vpop.f32.mrf.mxu2  ;;  %v6146_v56 = vld [vmem:[#allocation3] sm:$0xff] }
0x1515   :  { %8798 = vpow2.f32 %v8160_v4  ;;  %v5891_v7 = vrot.slane %v5881_v15, 4  ;;  %v5890_v6 = vrot.slane %v5861_v60, 4 }
0x1517   :  { %v5899_v57 = vadd.f32 %v5891_v7, %v5791_v11  ;;  %v5898_v31 = vadd.f32 %v5890_v6, %v5790_v28 }
0x1519   :  { %v8161_v14 = vmul.f32 -1.442695, %v5899_v57  ;;  %v5967_v57 = vld [vmem:[#allocation2 + $0x8] sm:$0xc0] }
0x151a   :  { %v8797_v3 = vpop.eup %8796 }
0x151b   :  { %v8799_v19 = vpop.eup %8798  ;;  %v5903_v1 = vadd.f32 1.0, %v8797_v3  ;;  %8800 = vpow2.f32 %v8161_v14  ;;  %v5968_v14 = vld [vmem:[#allocation2 + $0x20] sm:$0xc0]  ;;  %v10030_v3 = vld [vmem:[%s10287_s3 + $0x10] sm:$0xf] }
0x151c   :  { %v5922_v5 = vadd.f32 1.0, %v8799_v19  ;;  %v6160_v6 = vperm.slane %v10030_v3, 0  ;;  %v6161_v13 = vperm.slane %v10030_v3, 1 }
0x151d   :  { %8802 = vrcp.f32 %v5903_v1  ;;  %v5915_v58 = vand.u32 2147483648, %v5903_v1  ;;  %v5913_v61 = vand.u32 2147483647, %v5903_v1  ;;  %vm5909_vm5 = vweird.f32 %v5903_v1 }
0x151e   :  { %8804 = vrcp.f32 %v5922_v5  ;;  %v5934_v46 = vand.u32 2147483648, %v5922_v5  ;;  %v5932_v38 = vand.u32 2147483647, %v5922_v5  ;;  %vm5928_vm6 = vweird.f32 %v5922_v5 }
0x151f   :  { %v5916_v10 = vor.u32 1.1754944e-38, %v5915_v58  ;;  %vm5914_vm9 = vcmp.eq.f32.partialorder %v5913_v61, 8.507059e+37  ;;  %v10057_v61 = vld [vmem:[%s10286_s2 + $0x138] sm:$0xff] }
0x1520   :  { %v5935_v2 = vor.u32 1.1754944e-38, %v5934_v46  ;;  %vm5933_vm14 = vcmp.eq.f32.partialorder %v5932_v38, 8.507059e+37  ;;  %v10047_v46 = vld [vmem:[%s10286_s2 + $0x120] sm:$0xff] }
0x1521   :  { %v8801_v17 = vpop.eup %8800 }
0x1522   :  { %v5942_v29 = vadd.f32 1.0, %v8801_v17  ;;  %v5970_v17 = vld [vmem:[#allocation2 + $0x38] sm:$0xc0] }
0x1523   :  { %v8803_v30 = vpop.eup %8802 }
0x1524   :  { %v8805_v32 = vpop.eup %8804  ;;  %v5905_v43 = vmul.f32 %v8803_v30, %v5903_v1  ;;  %8806 = vrcp.f32 %v5942_v29  ;;  %vm5910_vm3 = vweird.f32 %v8803_v30  ;;  %v5954_v41 = vand.u32 2147483648, %v5942_v29 }
0x1525   :  { %v5924_v35 = vmul.f32 %v8805_v32, %v5922_v5  ;;  %8808 = vtanh.f32 %v5898_v31  ;;  %vm5929_vm4 = vweird.f32 %v8805_v32  ;;  %vm5911_vm7 = vmor %vm5909_vm5, %vm5910_vm3  ;;  %vm5948_vm1 = vweird.f32 %v5942_v29 }
0x1526   :  { %v5906_v49 = vsub.f32 1.0, %v5905_v43  ;;  %vm5930_vm8 = vmor %vm5928_vm6, %vm5929_vm4  ;;  %v5952_v55 = vand.u32 2147483647, %v5942_v29  ;;  %v5955_v47 = vor.u32 1.1754944e-38, %v5954_v41  ;;  %v6162_v43 = vperm.slane %v10030_v3, 2 }
0x1527   :  { %v5925_v34 = vsub.f32 1.0, %v5924_v35  ;;  %v6163_v35 = vperm.slane %v10030_v3, 3 }
0x1528   :  { %v5907_v16 = vmul.f32 %v8803_v30, %v5906_v49  ;;  %vm5953_vm3 = vcmp.eq.f32.partialorder %v5952_v55, 8.507059e+37 }
0x1529   :  { %v5926_v33 = vmul.f32 %v8805_v32, %v5925_v34 }
0x152a   :  { %v8807_v22 = vpop.eup %8806  ;;  %v5908_v8 = vadd.f32 %v8803_v30, %v5907_v16  ;;  %v10052_v16 = vld [vmem:[%s10286_s2 + $0x128] sm:$0xff] }
0x152b   :  { %v5927_v9 = vadd.f32 %v8805_v32, %v5926_v33  ;;  %v5944_v40 = vmul.f32 %v8807_v22, %v5942_v29  ;;  %v8809_v12 = vpop.eup %8808  ;;  %vm5949_vm15 = vweird.f32 %v8807_v22 }
0x152c   :  { %v5912_v51 = vsel %vm5911_vm7, %v8803_v30, %v5908_v8  ;;  %vm5950_vm2 = vmor %vm5948_vm1, %vm5949_vm15 }
0x152d   :  { %v5917_v62 = vsel %vm5914_vm9, %v5916_v10, %v5912_v51  ;;  %v5931_v0 = vsel %vm5930_vm8, %v8805_v32, %v5927_v9  ;;  %v5945_v42 = vsub.f32 1.0, %v5944_v40  ;;  %v5969_v10 = vld [vmem:[#allocation2 + $0x28] sm:$0xc0] }
0x152e   :  { %v5936_v39 = vsel %vm5933_vm14, %v5935_v2, %v5931_v0  ;;  %v5962_v59 = vmul.f32 %v8809_v12, %v5917_v62  ;;  %v10076_v62 = vld [vmem:[%s10286_s2 + $0x100] sm:$0xff]  ;;  %v10081_v0 = vld [vmem:[%s10286_s2 + $0x108] sm:$0xff] }
0x152f   :  { %v5961_v45 = vmul.f32 %v5959_v18, %v5936_v39  ;;  %v5946_v44 = vmul.f32 %v8807_v22, %v5945_v42  ;;  %v10088_v39 = vld [vmem:[%s10286_s2 + $0x130] sm:$0xff] }
0x1531   :  { %v10015_v36 = vadd.f32 %v5962_v59, %v5961_v45  ;;  %v5947_v48 = vadd.f32 %v8807_v22, %v5946_v44  ;;  %v10093_v59 = vld [vmem:[%s10286_s2 + $0x118] sm:$0xff] }
0x1533   :  { %8810 = vtanh.f32 %v10015_v36  ;;  %v5951_v50 = vsel %vm5950_vm2, %v8807_v22, %v5947_v48  ;;  %v10101_v48 = vld [vmem:[%s10286_s2 + $0x110] sm:$0xff] }
0x1534   :  { %v5956_v52 = vsel %vm5953_vm3, %v5955_v47, %v5951_v50 }
0x1539   :  { %v8811_v21 = vpop.eup %8810 }
0x153a   :  { %v5965_v37 = vmul.f32 %v8811_v21, %v5956_v52 }
0x153c   :  { %5966 = vst.msk [vmem:[#allocation3 + $0x8] sm:$0x30] %vm677_vm10, %v5965_v37  ;;  %v5980_v54 = vrot.slane %v5965_v37, 4 }
0x153e   :  { %8170 = vmatmul.msk.f32.vlgmr.msrb.gmra.mxu0 %vm27_vm0, %v5980_v54  ;;  %8171 = vmatmul.msk.f32.vlgmr.msra.gmra.mxu1 %vm27_vm0, %v5980_v54 }
0x153f   :  { %8172 = vmatmul.msk.f32.vlgmr.msrb.gmra.mxu2 %vm27_vm0, %v5980_v54  ;;  %8173 = vmatmul.msk.f32.vlgmr.msrb.gmra.mxu3 %vm27_vm0, %v5980_v54 }
0x1540   :  { %6301 = vmatpush.msrb.mxu0 %v10047_v46  ;;  %6321 = vmatpush.msra.mxu1 %v10052_v16 }
0x1541   :  { %6361 = vmatpush.msrb.mxu3 %v10057_v61  ;;  %6341 = vmatpush.msrb.mxu2 %v10088_v39 }
0x1542   :  { %6302 = vmatpush.msrb.mxu0 %v10076_v62  ;;  %6322 = vmatpush.msra.mxu1 %v10081_v0 }
0x1543   :  { %6362 = vmatpush.msrb.mxu3 %v10093_v59  ;;  %6342 = vmatpush.msrb.mxu2 %v10101_v48 }
0x1546   :  { %8186 = vmatmul.msk.f32.vlgmr.msra.gmra.mxu0 %vm27_vm0, %v6146_v56  ;;  %8188 = vmatmul.msk.f32.vlgmr.msrb.gmra.mxu1 %vm27_vm0, %v6146_v56 }
0x1547   :  { %8190 = vmatmul.msk.f32.vlgmr.msra.gmra.mxu2 %vm27_vm0, %v6146_v56  ;;  %8192 = vmatmul.msk.f32.vlgmr.msra.gmra.mxu3 %vm27_vm0, %v6146_v56 }
0x1548   :  { %6464 = vmatpush.msra.mxu0 %v10047_v46  ;;  %6484 = vmatpush.msrb.mxu1 %v10052_v16 }
0x1549   :  { %6524 = vmatpush.msra.mxu3 %v10057_v61  ;;  %6504 = vmatpush.msra.mxu2 %v10088_v39 }
0x154a   :  { %6465 = vmatpush.msra.mxu0 %v10076_v62  ;;  %6485 = vmatpush.msrb.mxu1 %v10081_v0 }
0x154b   :  { %6525 = vmatpush.msra.mxu3 %v10093_v59  ;;  %6505 = vmatpush.msra.mxu2 %v10101_v48 }
0x15bb   :  { %v6000_v4 = vpop.f32.mrf.mxu0  ;;  %v6020_v15 = vpop.f32.mrf.mxu1 }
0x15bc   :  { %v6067_v7 = vrot.slane %v6000_v4, 2  ;;  %v6068_v11 = vrot.slane %v6020_v15, 2  ;;  %v6138_v15 = vrot.slane %v10015_v36, 6 }
0x15be   :  { %v6075_v19 = vadd.f32 %v6067_v7, %v5967_v57  ;;  %v6076_v1 = vadd.f32 %v6068_v11, %v5968_v14 }
0x15c0   :  { %v8174_v5 = vmul.f32 -1.442695, %v6075_v19  ;;  %v8175_v60 = vmul.f32 -1.442695, %v6076_v1 }
0x15c2   :  { %8812 = vpow2.f32 %v8174_v5  ;;  %v6040_v23 = vpop.f32.mrf.mxu2  ;;  %v6060_v24 = vpop.f32.mrf.mxu3 }
0x15c3   :  { %8814 = vpow2.f32 %v8175_v60  ;;  %v6070_v25 = vrot.slane %v6060_v24, 2  ;;  %v6191_v26 = vpop.f32.mrf.mxu0  ;;  %v6214_v53 = vpop.f32.mrf.mxu1  ;;  %v6069_v33 = vrot.slane %v6040_v23, 2 }
0x15c4   :  { %v6192_v63 = vadd.f32 %v6191_v26, %v6160_v6  ;;  %v6215_v27 = vadd.f32 %v6214_v53, %v6161_v13 }
0x15c5   :  { %v6078_v28 = vadd.f32 %v6070_v25, %v5970_v17  ;;  %v6077_v18 = vadd.f32 %v6069_v33, %v5969_v10 }
0x15c6   :  { %6266 = vst [vmem:[#allocation2 + $0x30] sm:$0xff] %v6192_v63 }
0x15c7   :  { %v8176_v29 = vmul.f32 -1.442695, %v6078_v28  ;;  %6267 = vst [vmem:[#allocation2] sm:$0xff] %v6215_v27 }
0x15c8   :  { %v8813_v30 = vpop.eup %8812 }
0x15c9   :  { %v8815_v31 = vpop.eup %8814  ;;  %v10038_v32 = vadd.f32 1.0, %v8813_v30  ;;  %8816 = vpow2.f32 %v8176_v29 }
0x15ca   :  { %v10042_v49 = vadd.f32 1.0, %v8815_v31  ;;  %v6237_v34 = vpop.f32.mrf.mxu2  ;;  %v6260_v58 = vpop.f32.mrf.mxu3 }
0x15cb   :  { %8818 = vrcp.f32 %v10038_v32  ;;  %v6238_v38 = vadd.f32 %v6237_v34, %v6162_v43  ;;  %v6261_v22 = vadd.f32 %v6260_v58, %v6163_v35  ;;  %v6094_v44 = vand.u32 2147483648, %v10038_v32 }
0x15cc   :  { %8820 = vrcp.f32 %v10042_v49  ;;  %v6113_v41 = vand.u32 2147483648, %v10042_v49  ;;  %v6092_v50 = vand.u32 2147483647, %v10038_v32  ;;  %v6111_v21 = vand.u32 2147483647, %v10042_v49 }
0x15cd   :  { %6268 = vst [vmem:[#allocation2 + $0x18] sm:$0xff] %v6238_v38  ;;  %vm6088_vm6 = vweird.f32 %v10038_v32  ;;  %vm6107_vm7 = vweird.f32 %v10042_v49  ;;  %v6095_v54 = vor.u32 1.1754944e-38, %v6094_v44 }
0x15ce   :  { %6269 = vst [vmem:[#allocation2 + $0x10] sm:$0xff] %v6261_v22  ;;  %v6114_v7 = vor.u32 1.1754944e-38, %v6113_v41  ;;  %vm6093_vm14 = vcmp.eq.f32.partialorder %v6092_v50, 8.507059e+37  ;;  %vm6112_vm15 = vcmp.eq.f32.partialorder %v6111_v21, 8.507059e+37  ;;  %v6274_v22 = vld [vmem:[#allocation2 + $0x30] sm:$0x3] }
0x15cf   :  { %v8817_v8 = vpop.eup %8816  ;;  %v6275_v10 = vld [vmem:[#allocation2] sm:$0x3] }
0x15d0   :  { %v10068_v9 = vadd.f32 1.0, %v8817_v8 }
0x15d1   :  { %v8819_v40 = vpop.eup %8818 }
0x15d2   :  { %v8821_v2 = vpop.eup %8820  ;;  %v6084_v51 = vmul.f32 %v8819_v40, %v10038_v32  ;;  %8822 = vrcp.f32 %v10068_v9  ;;  %vm6089_vm4 = vweird.f32 %v8819_v40  ;;  %v6133_v36 = vand.u32 2147483648, %v10068_v9 }
0x15d3   :  { %v6103_v12 = vmul.f32 %v8821_v2, %v10042_v49  ;;  %8824 = vtanh.f32 %v6077_v18  ;;  %vm6108_vm5 = vweird.f32 %v8821_v2  ;;  %vm6090_vm8 = vmor %vm6088_vm6, %vm6089_vm4  ;;  %vm6127_vm2 = vweird.f32 %v10068_v9 }
0x15d4   :  { %v6085_v42 = vsub.f32 1.0, %v6084_v51  ;;  %vm6109_vm9 = vmor %vm6107_vm7, %vm6108_vm5  ;;  %v6131_v53 = vand.u32 2147483647, %v10068_v9  ;;  %v6134_v63 = vor.u32 1.1754944e-38, %v6133_v36 }
0x15d5   :  { %v6104_v45 = vsub.f32 1.0, %v6103_v12 }
0x15d6   :  { %v6086_v55 = vmul.f32 %v8819_v40, %v6085_v42  ;;  %vm6132_vm4 = vcmp.eq.f32.partialorder %v6131_v53, 8.507059e+37 }
0x15d7   :  { %v6105_v47 = vmul.f32 %v8821_v2, %v6104_v45 }
0x15d8   :  { %v8823_v52 = vpop.eup %8822  ;;  %v6087_v37 = vadd.f32 %v8819_v40, %v6086_v55  ;;  %v6276_v55 = vld [vmem:[#allocation2 + $0x18] sm:$0x3] }
0x15d9   :  { %v6106_v56 = vadd.f32 %v8821_v2, %v6105_v47  ;;  %v6123_v4 = vmul.f32 %v8823_v52, %v10068_v9  ;;  %v8825_v57 = vpop.eup %8824  ;;  %vm6128_vm1 = vweird.f32 %v8823_v52 }
0x15da   :  { %v6091_v11 = vsel %vm6090_vm8, %v8819_v40, %v6087_v37  ;;  %vm6129_vm3 = vmor %vm6127_vm2, %vm6128_vm1 }
0x15db   :  { %v6096_v14 = vsel %vm6093_vm14, %v6095_v54, %v6091_v11  ;;  %v6110_v19 = vsel %vm6109_vm9, %v8821_v2, %v6106_v56  ;;  %v6124_v1 = vsub.f32 1.0, %v6123_v4  ;;  %v6277_v2 = vld [vmem:[#allocation2 + $0x10] sm:$0x3] }
0x15dc   :  { %v6115_v5 = vsel %vm6112_vm15, %v6114_v7, %v6110_v19  ;;  %v6141_v60 = vmul.f32 %v8825_v57, %v6096_v14 }
0x15dd   :  { %v6140_v23 = vmul.f32 %v6138_v15, %v6115_v5  ;;  %v6125_v24 = vmul.f32 %v8823_v52, %v6124_v1 }
0x15df   :  { %v6142_v25 = vadd.f32 %v6141_v60, %v6140_v23  ;;  %v6126_v26 = vadd.f32 %v8823_v52, %v6125_v24 }
0x15e1   :  { %8826 = vtanh.f32 %v6142_v25  ;;  %v6130_v17 = vsel %vm6129_vm3, %v8823_v52, %v6126_v26 }
0x15e2   :  { %v6135_v28 = vsel %vm6132_vm4, %v6134_v63, %v6130_v17 }
0x15e7   :  { %v8827_v27 = vpop.eup %8826 }
0x15e8   :  { %v6144_v29 = vmul.f32 %v8827_v27, %v6135_v28 }
0x15ea   :  { %6145 = vst.msk [vmem:[#allocation3 + $0x8] sm:$0xc0] %vm857_vm12, %v6144_v29 }
0x15f1   :  { %v6147_v30 = vld [vmem:[#allocation3 + $0x8] sm:$0xff] }
0x15f2   :  { %8187 = vmatmul.msk.f32.gmra.mxu0 %vm27_vm0, %v6147_v30  ;;  %8189 = vmatmul.msk.f32.gmra.mxu1 %vm27_vm0, %v6147_v30 }
0x15f3   :  { %8191 = vmatmul.msk.f32.gmra.mxu2 %vm27_vm0, %v6147_v30  ;;  %8193 = vmatmul.msk.f32.gmra.mxu3 %vm27_vm0, %v6147_v30 }
0x15fa   :  { %6303 = vmatmul.f32.vlgmr.msrb.gmra.mxu0 %v8956_v20  ;;  %6323 = vmatmul.f32.vlgmr.msra.gmra.mxu1 %v8956_v20 }
0x15fb   :  { %6343 = vmatmul.f32.vlgmr.msrb.gmra.mxu2 %v8956_v20  ;;  %6363 = vmatmul.f32.vlgmr.msrb.gmra.mxu3 %v8956_v20 }
0x15fc   :  { %6643 = vmatpush.msrb.mxu0 %v10047_v46  ;;  %6663 = vmatpush.msra.mxu1 %v10052_v16 }
0x15fd   :  { %6683 = vmatpush.msrb.mxu2 %v10088_v39  ;;  %6703 = vmatpush.msrb.mxu3 %v10057_v61 }
0x15fe   :  { %6644 = vmatpush.msrb.mxu0 %v10076_v62  ;;  %6664 = vmatpush.msra.mxu1 %v10081_v0 }
0x15ff   :  { %6684 = vmatpush.msrb.mxu2 %v10101_v48  ;;  %6704 = vmatpush.msrb.mxu3 %v10093_v59 }
0x166f   :  { %v6194_v31 = vpop.f32.mrf.mxu0  ;;  %v6217_v32 = vpop.f32.mrf.mxu1 }
0x1670   :  { %v6195_v20 = vadd.f32 %v6194_v31, %v6160_v6  ;;  %v6218_v49 = vadd.f32 %v6217_v32, %v6161_v13 }
0x1672   :  { %6270 = vst [vmem:[#allocation2 + $0x8] sm:$0xff] %v6195_v20 }
0x1673   :  { %6271 = vst [vmem:[#allocation2 + $0x20] sm:$0xff] %v6218_v49 }
0x1676   :  { %v6240_v34 = vpop.f32.mrf.mxu2  ;;  %v6263_v58 = vpop.f32.mrf.mxu3 }
0x1677   :  { %v6241_v33 = vadd.f32 %v6240_v34, %v6162_v43  ;;  %v6264_v38 = vadd.f32 %v6263_v58, %v6163_v35  ;;  %v6304_v8 = vpop.f32.mrf.mxu0  ;;  %v6324_v9 = vpop.f32.mrf.mxu1 }
0x1678   :  { %v6367_v40 = vadd.f32 %v6304_v8, %v6274_v22  ;;  %v6368_v18 = vadd.f32 %v6324_v9, %v6275_v10 }
0x1679   :  { %6272 = vst [vmem:[#allocation2 + $0x28] sm:$0xff] %v6241_v33 }
0x167a   :  { %6273 = vst [vmem:[#allocation2 + $0x38] sm:$0xff] %v6264_v38  ;;  %v8202_v6 = vmul.f32 -1.442695, %v6367_v40  ;;  %v8203_v13 = vmul.f32 -1.442695, %v6368_v18 }
0x167b   :  { %v6435_v18 = vld [vmem:[#allocation2 + $0x30] sm:$0xc] }
0x167c   :  { %8828 = vpow2.f32 %v8202_v6  ;;  %v6436_v6 = vld [vmem:[#allocation2] sm:$0xc] }
0x167d   :  { %8830 = vpow2.f32 %v8203_v13 }
0x167e   :  { %v6364_v51 = vpop.f32.mrf.mxu3  ;;  %v6344_v44 = vpop.f32.mrf.mxu2 }
0x167f   :  { %v6370_v12 = vadd.f32 %v6364_v51, %v6277_v2  ;;  %v6369_v21 = vadd.f32 %v6344_v44, %v6276_v55 }
0x1681   :  { %v8204_v42 = vmul.f32 -1.442695, %v6370_v12 }
0x1682   :  { %v8829_v43 = vpop.eup %8828 }
0x1683   :  { %v8831_v45 = vpop.eup %8830  ;;  %v6374_v3 = vadd.f32 1.0, %v8829_v43  ;;  %8832 = vpow2.f32 %v8204_v42 }
0x1684   :  { %v6393_v35 = vadd.f32 1.0, %v8831_v45  ;;  %v6438_v45 = vld [vmem:[#allocation2 + $0x10] sm:$0xc] }
0x1685   :  { %8834 = vrcp.f32 %v6374_v3  ;;  %v6386_v15 = vand.u32 2147483648, %v6374_v3  ;;  %v6384_v57 = vand.u32 2147483647, %v6374_v3  ;;  %vm6380_vm7 = vweird.f32 %v6374_v3 }
0x1686   :  { %8836 = vrcp.f32 %v6393_v35  ;;  %v6405_v7 = vand.u32 2147483648, %v6393_v35  ;;  %v6403_v19 = vand.u32 2147483647, %v6393_v35  ;;  %vm6399_vm8 = vweird.f32 %v6393_v35 }
0x1687   :  { %v6387_v60 = vor.u32 1.1754944e-38, %v6386_v15  ;;  %vm6385_vm14 = vcmp.eq.f32.partialorder %v6384_v57, 8.507059e+37 }
0x1688   :  { %v6406_v25 = vor.u32 1.1754944e-38, %v6405_v7  ;;  %vm6404_vm1 = vcmp.eq.f32.partialorder %v6403_v19, 8.507059e+37 }
0x1689   :  { %v8833_v41 = vpop.eup %8832 }
0x168a   :  { %v6413_v50 = vadd.f32 1.0, %v8833_v41 }
0x168b   :  { %v8835_v47 = vpop.eup %8834 }
0x168c   :  { %v8837_v52 = vpop.eup %8836  ;;  %v6376_v37 = vmul.f32 %v8835_v47, %v6374_v3  ;;  %8838 = vrcp.f32 %v6413_v50  ;;  %vm6381_vm5 = vweird.f32 %v8835_v47  ;;  %v6425_v20 = vand.u32 2147483648, %v6413_v50 }
0x168d   :  { %v6395_v54 = vmul.f32 %v8837_v52, %v6393_v35  ;;  %8840 = vtanh.f32 %v6369_v21  ;;  %vm6400_vm6 = vweird.f32 %v8837_v52  ;;  %vm6382_vm9 = vmor %vm6380_vm7, %vm6381_vm5  ;;  %vm6419_vm3 = vweird.f32 %v6413_v50 }
0x168e   :  { %v6377_v56 = vsub.f32 1.0, %v6376_v37  ;;  %vm6401_vm15 = vmor %vm6399_vm8, %vm6400_vm6  ;;  %v6423_v49 = vand.u32 2147483647, %v6413_v50  ;;  %v6426_v58 = vor.u32 1.1754944e-38, %v6425_v20  ;;  %v6437_v37 = vld [vmem:[#allocation2 + $0x18] sm:$0xc] }
0x168f   :  { %v6396_v4 = vsub.f32 1.0, %v6395_v54 }
0x1690   :  { %v6378_v11 = vmul.f32 %v8835_v47, %v6377_v56  ;;  %vm6424_vm5 = vcmp.eq.f32.partialorder %v6423_v49, 8.507059e+37 }
0x1691   :  { %v6397_v14 = vmul.f32 %v8837_v52, %v6396_v4 }
0x1692   :  { %v8839_v1 = vpop.eup %8838  ;;  %v6379_v5 = vadd.f32 %v8835_v47, %v6378_v11 }
0x1693   :  { %v6398_v23 = vadd.f32 %v8837_v52, %v6397_v14  ;;  %v6415_v24 = vmul.f32 %v8839_v1, %v6413_v50  ;;  %v8841_v36 = vpop.eup %8840  ;;  %vm6420_vm2 = vweird.f32 %v8839_v1 }
0x1694   :  { %v6383_v26 = vsel %vm6382_vm9, %v8835_v47, %v6379_v5  ;;  %vm6421_vm4 = vmor %vm6419_vm3, %vm6420_vm2 }
0x1695   :  { %v6388_v53 = vsel %vm6385_vm14, %v6387_v60, %v6383_v26  ;;  %v6402_v17 = vsel %vm6401_vm15, %v8837_v52, %v6398_v23  ;;  %v6416_v63 = vsub.f32 1.0, %v6415_v24 }
0x1696   :  { %v6407_v27 = vsel %vm6404_vm1, %v6406_v25, %v6402_v17  ;;  %v6430_v28 = vmul.f32 %v8841_v36, %v6388_v53 }
0x1697   :  { %v6429_v29 = vmul.f32 0.0, %v6407_v27  ;;  %v6417_v30 = vmul.f32 %v8839_v1, %v6416_v63 }
0x1699   :  { %v10149_v31 = vadd.f32 %v6430_v28, %v6429_v29  ;;  %v6418_v32 = vadd.f32 %v8839_v1, %v6417_v30 }
0x169b   :  { %8842 = vtanh.f32 %v10149_v31  ;;  %v6422_v34 = vsel %vm6421_vm4, %v8839_v1, %v6418_v32  ;;  %v6605_v63 = vrot.slane %v10149_v31, 6 }
0x169c   :  { %v6427_v38 = vsel %vm6424_vm5, %v6426_v58, %v6422_v34 }
0x16a1   :  { %v8843_v33 = vpop.eup %8842 }
0x16a2   :  { %v6433_v22 = vmul.f32 %v8843_v33, %v6427_v38 }
0x16a4   :  { %8213 = vmatmul.msk.f32.vlgmr.msra.gmra.mxu0 %vm27_vm0, %v6433_v22  ;;  %6434 = vst.msk [vmem:[#allocation3] sm:$0x3] %vm318_vm13, %v6433_v22  ;;  %8214 = vmatmul.msk.f32.vlgmr.msrb.gmra.mxu1 %vm27_vm0, %v6433_v22 }
0x16a5   :  { %8215 = vmatmul.msk.f32.vlgmr.msra.gmra.mxu2 %vm27_vm0, %v6433_v22  ;;  %8216 = vmatmul.msk.f32.vlgmr.msra.gmra.mxu3 %vm27_vm0, %v6433_v22 }
0x16a6   :  { %6822 = vmatpush.msra.mxu0 %v10047_v46  ;;  %6842 = vmatpush.msrb.mxu1 %v10052_v16 }
0x16a7   :  { %6862 = vmatpush.msra.mxu2 %v10088_v39  ;;  %6882 = vmatpush.msra.mxu3 %v10057_v61 }
0x16a8   :  { %6823 = vmatpush.msra.mxu0 %v10076_v62  ;;  %6843 = vmatpush.msrb.mxu1 %v10081_v0 }
0x16a9   :  { %6863 = vmatpush.msra.mxu2 %v10101_v48  ;;  %6883 = vmatpush.msra.mxu3 %v10093_v59 }
0x1721   :  { %v6467_v8 = vpop.f32.mrf.mxu0  ;;  %v6487_v10 = vpop.f32.mrf.mxu1 }
0x1722   :  { %v6534_v9 = vrot.slane %v6467_v8, 6  ;;  %v6535_v40 = vrot.slane %v6487_v10, 6 }
0x1724   :  { %v6542_v13 = vadd.f32 %v6534_v9, %v6435_v18  ;;  %v6543_v2 = vadd.f32 %v6535_v40, %v6436_v6 }
0x1726   :  { %v8217_v51 = vmul.f32 -1.442695, %v6542_v13  ;;  %v8218_v12 = vmul.f32 -1.442695, %v6543_v2 }
0x1728   :  { %8844 = vpow2.f32 %v8217_v51  ;;  %v6527_v42 = vpop.f32.mrf.mxu3  ;;  %v6507_v47 = vpop.f32.mrf.mxu2 }
0x1729   :  { %8846 = vpow2.f32 %v8218_v12  ;;  %v6537_v43 = vrot.slane %v6527_v42, 6  ;;  %v6536_v21 = vrot.slane %v6507_v47, 6  ;;  %v6616_v47 = vld [vmem:[#allocation2 + $0x10] sm:$0x30] }
0x172b   :  { %v6545_v3 = vadd.f32 %v6537_v43, %v6438_v45  ;;  %v6544_v4 = vadd.f32 %v6536_v21, %v6437_v37  ;;  %v6613_v43 = vld [vmem:[#allocation2 + $0x30] sm:$0x30]  ;;  %v6614_v45 = vld [vmem:[#allocation2] sm:$0x30] }
0x172d   :  { %v8219_v35 = vmul.f32 -1.442695, %v6545_v3 }
0x172e   :  { %v8845_v44 = vpop.eup %8844 }
0x172f   :  { %v8847_v41 = vpop.eup %8846  ;;  %v6549_v55 = vadd.f32 1.0, %v8845_v44  ;;  %8848 = vpow2.f32 %v8219_v35 }
0x1730   :  { %v6568_v50 = vadd.f32 1.0, %v8847_v41 }
0x1731   :  { %8850 = vrcp.f32 %v6549_v55  ;;  %v6561_v19 = vand.u32 2147483648, %v6549_v55  ;;  %v6559_v60 = vand.u32 2147483647, %v6549_v55  ;;  %vm6555_vm8 = vweird.f32 %v6549_v55 }
0x1732   :  { %8852 = vrcp.f32 %v6568_v50  ;;  %v6580_v1 = vand.u32 2147483648, %v6568_v50  ;;  %v6578_v24 = vand.u32 2147483647, %v6568_v50  ;;  %vm6574_vm9 = vweird.f32 %v6568_v50 }
0x1733   :  { %v6562_v36 = vor.u32 1.1754944e-38, %v6561_v19  ;;  %vm6560_vm1 = vcmp.eq.f32.partialorder %v6559_v60, 8.507059e+37 }
0x1734   :  { %v6581_v27 = vor.u32 1.1754944e-38, %v6580_v1  ;;  %vm6579_vm2 = vcmp.eq.f32.partialorder %v6578_v24, 8.507059e+37 }
0x1735   :  { %v8849_v52 = vpop.eup %8848 }
0x1736   :  { %v6588_v54 = vadd.f32 1.0, %v8849_v52 }
0x1737   :  { %v8851_v56 = vpop.eup %8850 }
0x1738   :  { %v8853_v15 = vpop.eup %8852  ;;  %v6551_v7 = vmul.f32 %v8851_v56, %v6549_v55  ;;  %8854 = vrcp.f32 %v6588_v54  ;;  %vm6556_vm6 = vweird.f32 %v8851_v56  ;;  %v6600_v31 = vand.u32 2147483648, %v6588_v54 }
0x1739   :  { %v6570_v11 = vmul.f32 %v8853_v15, %v6568_v50  ;;  %8856 = vtanh.f32 %v6544_v4  ;;  %vm6575_vm7 = vweird.f32 %v8853_v15  ;;  %vm6557_vm14 = vmor %vm6555_vm8, %vm6556_vm6  ;;  %vm6594_vm4 = vweird.f32 %v6588_v54 }
0x173a   :  { %v6552_v57 = vsub.f32 1.0, %v6551_v7  ;;  %vm6576_vm15 = vmor %vm6574_vm9, %vm6575_vm7  ;;  %v6598_v8 = vand.u32 2147483647, %v6588_v54  ;;  %v6601_v9 = vor.u32 1.1754944e-38, %v6600_v31 }
0x173b   :  { %v6571_v14 = vsub.f32 1.0, %v6570_v11 }
0x173c   :  { %v6553_v5 = vmul.f32 %v8851_v56, %v6552_v57  ;;  %vm6599_vm6 = vcmp.eq.f32.partialorder %v6598_v8, 8.507059e+37  ;;  %v6615_v57 = vld [vmem:[#allocation2 + $0x18] sm:$0x30] }
0x173d   :  { %v6572_v23 = vmul.f32 %v8853_v15, %v6571_v14 }
0x173e   :  { %v8855_v25 = vpop.eup %8854  ;;  %v6554_v26 = vadd.f32 %v8851_v56, %v6553_v5 }
0x173f   :  { %v6573_v53 = vadd.f32 %v8853_v15, %v6572_v23  ;;  %v6590_v17 = vmul.f32 %v8855_v25, %v6588_v54  ;;  %v8857_v29 = vpop.eup %8856  ;;  %vm6595_vm3 = vweird.f32 %v8855_v25 }
0x1740   :  { %v6558_v28 = vsel %vm6557_vm14, %v8851_v56, %v6554_v26  ;;  %vm6596_vm5 = vmor %vm6594_vm4, %vm6595_vm3 }
0x1741   :  { %v6563_v30 = vsel %vm6560_vm1, %v6562_v36, %v6558_v28  ;;  %v6577_v32 = vsel %vm6576_vm15, %v8853_v15, %v6573_v53  ;;  %v6591_v20 = vsub.f32 1.0, %v6590_v17 }
0x1742   :  { %v6582_v49 = vsel %vm6579_vm2, %v6581_v27, %v6577_v32  ;;  %v6608_v34 = vmul.f32 %v8857_v29, %v6563_v30 }
0x1743   :  { %v6607_v58 = vmul.f32 %v6605_v63, %v6582_v49  ;;  %v6592_v33 = vmul.f32 %v8855_v25, %v6591_v20 }
0x1745   :  { %v10166_v38 = vadd.f32 %v6608_v34, %v6607_v58  ;;  %v6593_v22 = vadd.f32 %v8855_v25, %v6592_v33 }
0x1747   :  { %8858 = vtanh.f32 %v10166_v38  ;;  %v6597_v10 = vsel %vm6596_vm5, %v8855_v25, %v6593_v22  ;;  %v6784_v49 = vrot.slane %v10166_v38, 6 }
0x1748   :  { %v6602_v18 = vsel %vm6599_vm6, %v6601_v9, %v6597_v10 }
0x174d   :  { %v8859_v40 = vpop.eup %8858 }
0x174e   :  { %v6611_v6 = vmul.f32 %v8859_v40, %v6602_v18 }
0x1750   :  { %v6626_v13 = vrot.slane %v6611_v6, 2  ;;  %6612 = vst.msk [vmem:[#allocation3] sm:$0xc] %vm497_vm11, %v6611_v6 }
0x1752   :  { %8228 = vmatmul.msk.f32.vlgmr.msrb.gmra.mxu0 %vm27_vm0, %v6626_v13  ;;  %8229 = vmatmul.msk.f32.vlgmr.msra.gmra.mxu1 %vm27_vm0, %v6626_v13 }
0x1753   :  { %8230 = vmatmul.msk.f32.vlgmr.msrb.gmra.mxu2 %vm27_vm0, %v6626_v13  ;;  %8231 = vmatmul.msk.f32.vlgmr.msrb.gmra.mxu3 %vm27_vm0, %v6626_v13 }
0x1754   :  { %7001 = vmatpush.msrb.mxu0 %v10047_v46  ;;  %7021 = vmatpush.msra.mxu1 %v10052_v16 }
0x1755   :  { %7041 = vmatpush.msrb.mxu2 %v10088_v39  ;;  %7061 = vmatpush.msrb.mxu3 %v10057_v61 }
0x1756   :  { %7002 = vmatpush.msrb.mxu0 %v10076_v62  ;;  %7022 = vmatpush.msra.mxu1 %v10081_v0 }
0x1757   :  { %7042 = vmatpush.msrb.mxu2 %v10101_v48  ;;  %7062 = vmatpush.msrb.mxu3 %v10093_v59 }
0x17cf   :  { %v6646_v2 = vpop.f32.mrf.mxu0  ;;  %v6666_v51 = vpop.f32.mrf.mxu1 }
0x17d0   :  { %v6713_v12 = vrot.slane %v6646_v2, 4  ;;  %v6714_v42 = vrot.slane %v6666_v51, 4 }
0x17d2   :  { %v6721_v3 = vadd.f32 %v6713_v12, %v6613_v43  ;;  %v6722_v35 = vadd.f32 %v6714_v42, %v6614_v45 }
0x17d4   :  { %v8232_v44 = vmul.f32 -1.442695, %v6721_v3  ;;  %v8233_v41 = vmul.f32 -1.442695, %v6722_v35 }
0x17d6   :  { %8860 = vpow2.f32 %v8232_v44  ;;  %v6706_v55 = vpop.f32.mrf.mxu3  ;;  %v6686_v15 = vpop.f32.mrf.mxu2 }
0x17d7   :  { %8862 = vpow2.f32 %v8233_v41  ;;  %v6716_v50 = vrot.slane %v6706_v55, 4  ;;  %v6715_v7 = vrot.slane %v6686_v15, 4 }
0x17d9   :  { %v6724_v21 = vadd.f32 %v6716_v50, %v6616_v47  ;;  %v6723_v1 = vadd.f32 %v6715_v7, %v6615_v57  ;;  %v6792_v50 = vld [vmem:[#allocation2 + $0x30] sm:$0xc0] }
0x17db   :  { %v8234_v52 = vmul.f32 -1.442695, %v6724_v21 }
0x17dc   :  { %v8861_v37 = vpop.eup %8860 }
0x17dd   :  { %v8863_v54 = vpop.eup %8862  ;;  %v6728_v56 = vadd.f32 1.0, %v8861_v37  ;;  %8864 = vpow2.f32 %v8234_v52  ;;  %v6795_v52 = vld [vmem:[#allocation2 + $0x10] sm:$0xc0] }
0x17de   :  { %v6747_v4 = vadd.f32 1.0, %v8863_v54 }
0x17df   :  { %8866 = vrcp.f32 %v6728_v56  ;;  %v6740_v26 = vand.u32 2147483648, %v6728_v56  ;;  %v6738_v17 = vand.u32 2147483647, %v6728_v56  ;;  %vm6734_vm9 = vweird.f32 %v6728_v56 }
0x17e0   :  { %8868 = vrcp.f32 %v6747_v4  ;;  %v6759_v36 = vand.u32 2147483648, %v6747_v4  ;;  %v6757_v27 = vand.u32 2147483647, %v6747_v4  ;;  %vm6753_vm14 = vweird.f32 %v6747_v4 }
0x17e1   :  { %v6741_v30 = vor.u32 1.1754944e-38, %v6740_v26  ;;  %vm6739_vm2 = vcmp.eq.f32.partialorder %v6738_v17, 8.507059e+37 }
0x17e2   :  { %v6760_v34 = vor.u32 1.1754944e-38, %v6759_v36  ;;  %vm6758_vm3 = vcmp.eq.f32.partialorder %v6757_v27, 8.507059e+37 }
0x17e3   :  { %v8865_v11 = vpop.eup %8864 }
0x17e4   :  { %v6767_v14 = vadd.f32 1.0, %v8865_v11  ;;  %v6794_v11 = vld [vmem:[#allocation2 + $0x18] sm:$0xc0] }
0x17e5   :  { %v8867_v19 = vpop.eup %8866 }
0x17e6   :  { %v8869_v5 = vpop.eup %8868  ;;  %v6730_v60 = vmul.f32 %v8867_v19, %v6728_v56  ;;  %8870 = vrcp.f32 %v6767_v14  ;;  %vm6735_vm7 = vweird.f32 %v8867_v19  ;;  %v6779_v38 = vand.u32 2147483648, %v6767_v14 }
0x17e7   :  { %v6749_v23 = vmul.f32 %v8869_v5, %v6747_v4  ;;  %8872 = vtanh.f32 %v6723_v1  ;;  %vm6754_vm8 = vweird.f32 %v8869_v5  ;;  %vm6736_vm15 = vmor %vm6734_vm9, %vm6735_vm7  ;;  %vm6773_vm5 = vweird.f32 %v6767_v14 }
0x17e8   :  { %v6731_v24 = vsub.f32 1.0, %v6730_v60  ;;  %vm6755_vm1 = vmor %vm6753_vm14, %vm6754_vm8  ;;  %v6777_v2 = vand.u32 2147483647, %v6767_v14  ;;  %v6780_v12 = vor.u32 1.1754944e-38, %v6779_v38 }
0x17e9   :  { %v6750_v25 = vsub.f32 1.0, %v6749_v23 }
0x17ea   :  { %v6732_v53 = vmul.f32 %v8867_v19, %v6731_v24  ;;  %vm6778_vm7 = vcmp.eq.f32.partialorder %v6777_v2, 8.507059e+37 }
0x17eb   :  { %v6751_v63 = vmul.f32 %v8869_v5, %v6750_v25 }
0x17ec   :  { %v8871_v28 = vpop.eup %8870  ;;  %v6733_v29 = vadd.f32 %v8867_v19, %v6732_v53 }
0x17ed   :  { %v6752_v32 = vadd.f32 %v8869_v5, %v6751_v63  ;;  %v6769_v20 = vmul.f32 %v8871_v28, %v6767_v14  ;;  %v8873_v33 = vpop.eup %8872  ;;  %vm6774_vm4 = vweird.f32 %v8871_v28 }
0x17ee   :  { %v6737_v58 = vsel %vm6736_vm15, %v8867_v19, %v6733_v29  ;;  %vm6775_vm6 = vmor %vm6773_vm5, %vm6774_vm4 }
0x17ef   :  { %v6742_v22 = vsel %vm6739_vm2, %v6741_v30, %v6737_v58  ;;  %v6756_v31 = vsel %vm6755_vm1, %v8869_v5, %v6752_v32  ;;  %v6770_v8 = vsub.f32 1.0, %v6769_v20 }
0x17f0   :  { %v6761_v10 = vsel %vm6758_vm3, %v6760_v34, %v6756_v31  ;;  %v6787_v9 = vmul.f32 %v8873_v33, %v6742_v22 }
0x17f1   :  { %v6786_v40 = vmul.f32 %v6784_v49, %v6761_v10  ;;  %v6771_v18 = vmul.f32 %v8871_v28, %v6770_v8 }
0x17f3   :  { %v10183_v6 = vadd.f32 %v6787_v9, %v6786_v40  ;;  %v6772_v13 = vadd.f32 %v8871_v28, %v6771_v18 }
0x17f5   :  { %8874 = vtanh.f32 %v10183_v6  ;;  %v6776_v51 = vsel %vm6775_vm6, %v8871_v28, %v6772_v13  ;;  %v6963_v20 = vrot.slane %v10183_v6, 6 }
0x17f6   :  { %v6781_v43 = vsel %vm6778_vm7, %v6780_v12, %v6776_v51 }
0x17fb   :  { %v8875_v42 = vpop.eup %8874 }
0x17fc   :  { %v6790_v45 = vmul.f32 %v8875_v42, %v6781_v43 }
0x17fe   :  { %v6805_v3 = vrot.slane %v6790_v45, 4  ;;  %6791 = vst.msk [vmem:[#allocation3] sm:$0x30] %vm677_vm10, %v6790_v45 }
0x1800   :  { %8243 = vmatmul.msk.f32.vlgmr.msra.gmra.mxu0 %vm27_vm0, %v6805_v3  ;;  %8244 = vmatmul.msk.f32.vlgmr.msrb.gmra.mxu1 %vm27_vm0, %v6805_v3 }
0x1801   :  { %8245 = vmatmul.msk.f32.vlgmr.msra.gmra.mxu2 %vm27_vm0, %v6805_v3  ;;  %8246 = vmatmul.msk.f32.vlgmr.msra.gmra.mxu3 %vm27_vm0, %v6805_v3  ;;  %v6971_v3 = vld [vmem:[#allocation2 + $0x8] sm:$0x3] }
0x1802   :  { %7167 = vmatpush.msra.mxu0 %v10047_v46  ;;  %7187 = vmatpush.msrb.mxu1 %v10052_v16  ;;  %v6793_v46 = vld [vmem:[#allocation2] sm:$0xc0] }
0x1803   :  { %7207 = vmatpush.msra.mxu2 %v10088_v39  ;;  %7227 = vmatpush.msra.mxu3 %v10057_v61 }
0x1804   :  { %7168 = vmatpush.msra.mxu0 %v10076_v62  ;;  %7188 = vmatpush.msrb.mxu1 %v10081_v0 }
0x1805   :  { %7208 = vmatpush.msra.mxu2 %v10101_v48  ;;  %7228 = vmatpush.msra.mxu3 %v10093_v59 }
0x187d   :  { %v6825_v35 = vpop.f32.mrf.mxu0  ;;  %v6845_v44 = vpop.f32.mrf.mxu1 }
0x187e   :  { %v6892_v41 = vrot.slane %v6825_v35, 2  ;;  %v6893_v55 = vrot.slane %v6845_v44, 2  ;;  %v6972_v44 = vld [vmem:[#allocation2 + $0x20] sm:$0x3] }
0x1880   :  { %v6900_v47 = vadd.f32 %v6892_v41, %v6792_v50  ;;  %v6901_v16 = vadd.f32 %v6893_v55, %v6793_v46 }
0x1882   :  { %v8247_v21 = vmul.f32 -1.442695, %v6900_v47  ;;  %v8248_v39 = vmul.f32 -1.442695, %v6901_v16  ;;  %v6974_v16 = vld [vmem:[#allocation2 + $0x38] sm:$0x3] }
0x1884   :  { %8876 = vpow2.f32 %v8247_v21  ;;  %v6885_v61 = vpop.f32.mrf.mxu3  ;;  %v6865_v4 = vpop.f32.mrf.mxu2 }
0x1885   :  { %8878 = vpow2.f32 %v8248_v39  ;;  %v6895_v62 = vrot.slane %v6885_v61, 2  ;;  %v6894_v15 = vrot.slane %v6865_v4, 2 }
0x1887   :  { %v6903_v0 = vadd.f32 %v6895_v62, %v6795_v52  ;;  %v6902_v19 = vadd.f32 %v6894_v15, %v6794_v11 }
0x1889   :  { %v8249_v37 = vmul.f32 -1.442695, %v6903_v0 }
0x188a   :  { %v8877_v48 = vpop.eup %8876 }
0x188b   :  { %v8879_v54 = vpop.eup %8878  ;;  %v6907_v59 = vadd.f32 1.0, %v8877_v48  ;;  %8880 = vpow2.f32 %v8249_v37 }
0x188c   :  { %v6926_v56 = vadd.f32 1.0, %v8879_v54 }
0x188d   :  { %8882 = vrcp.f32 %v6907_v59  ;;  %v6919_v25 = vand.u32 2147483648, %v6907_v59  ;;  %v6917_v53 = vand.u32 2147483647, %v6907_v59  ;;  %vm6913_vm14 = vweird.f32 %v6907_v59 }
0x188e   :  { %8884 = vrcp.f32 %v6926_v56  ;;  %v6938_v26 = vand.u32 2147483648, %v6926_v56  ;;  %v6936_v63 = vand.u32 2147483647, %v6926_v56  ;;  %vm6932_vm15 = vweird.f32 %v6926_v56 }
0x188f   :  { %v6920_v29 = vor.u32 1.1754944e-38, %v6919_v25  ;;  %vm6918_vm3 = vcmp.eq.f32.partialorder %v6917_v53, 8.507059e+37 }
0x1890   :  { %v6939_v49 = vor.u32 1.1754944e-38, %v6938_v26  ;;  %vm6937_vm4 = vcmp.eq.f32.partialorder %v6936_v63, 8.507059e+37 }
0x1891   :  { %v8881_v7 = vpop.eup %8880 }
0x1892   :  { %v6946_v57 = vadd.f32 1.0, %v8881_v7 }
0x1893   :  { %v8883_v14 = vpop.eup %8882 }
0x1894   :  { %v8885_v1 = vpop.eup %8884  ;;  %v6909_v5 = vmul.f32 %v8883_v14, %v6907_v59  ;;  %8886 = vrcp.f32 %v6946_v57  ;;  %vm6914_vm8 = vweird.f32 %v8883_v14  ;;  %v6958_v6 = vand.u32 2147483648, %v6946_v57  ;;  %v6973_v59 = vld [vmem:[#allocation2 + $0x28] sm:$0x3] }
0x1895   :  { %v6928_v60 = vmul.f32 %v8885_v1, %v6926_v56  ;;  %8888 = vtanh.f32 %v6902_v19  ;;  %vm6933_vm9 = vweird.f32 %v8885_v1  ;;  %vm6915_vm1 = vmor %vm6913_vm14, %vm6914_vm8  ;;  %vm6952_vm6 = vweird.f32 %v6946_v57 }
0x1896   :  { %v6910_v23 = vsub.f32 1.0, %v6909_v5  ;;  %vm6934_vm2 = vmor %vm6932_vm15, %vm6933_vm9  ;;  %v6956_v38 = vand.u32 2147483647, %v6946_v57  ;;  %v6959_v51 = vor.u32 1.1754944e-38, %v6958_v6 }
0x1897   :  { %v6929_v24 = vsub.f32 1.0, %v6928_v60 }
0x1898   :  { %v6911_v36 = vmul.f32 %v8883_v14, %v6910_v23  ;;  %vm6957_vm8 = vcmp.eq.f32.partialorder %v6956_v38, 8.507059e+37 }
0x1899   :  { %v6930_v17 = vmul.f32 %v8885_v1, %v6929_v24 }
0x189a   :  { %v8887_v27 = vpop.eup %8886  ;;  %v6912_v28 = vadd.f32 %v8883_v14, %v6911_v36 }
0x189b   :  { %v6931_v30 = vadd.f32 %v8885_v1, %v6930_v17  ;;  %v6948_v32 = vmul.f32 %v8887_v27, %v6946_v57  ;;  %v8889_v58 = vpop.eup %8888  ;;  %vm6953_vm5 = vweird.f32 %v8887_v27 }
0x189c   :  { %v6916_v34 = vsel %vm6915_vm1, %v8883_v14, %v6912_v28  ;;  %vm6954_vm7 = vmor %vm6952_vm6, %vm6953_vm5 }
0x189d   :  { %v6921_v33 = vsel %vm6918_vm3, %v6920_v29, %v6916_v34  ;;  %v6935_v22 = vsel %vm6934_vm2, %v8885_v1, %v6931_v30  ;;  %v6949_v31 = vsub.f32 1.0, %v6948_v32 }
0x189e   :  { %v6940_v8 = vsel %vm6937_vm4, %v6939_v49, %v6935_v22  ;;  %v6966_v10 = vmul.f32 %v8889_v58, %v6921_v33 }
0x189f   :  { %v6965_v9 = vmul.f32 %v6963_v20, %v6940_v8  ;;  %v6950_v40 = vmul.f32 %v8887_v27, %v6949_v31 }
0x18a1   :  { %v10200_v18 = vadd.f32 %v6966_v10, %v6965_v9  ;;  %v6951_v13 = vadd.f32 %v8887_v27, %v6950_v40 }
0x18a3   :  { %8890 = vtanh.f32 %v10200_v18  ;;  %v6955_v2 = vsel %vm6954_vm7, %v8887_v27, %v6951_v13  ;;  %v7130_v29 = vrot.slane %v10200_v18, 6 }
0x18a4   :  { %v6960_v42 = vsel %vm6957_vm8, %v6959_v51, %v6955_v2 }
0x18a9   :  { %v8891_v12 = vpop.eup %8890 }
0x18aa   :  { %v6969_v43 = vmul.f32 %v8891_v12, %v6960_v42 }
0x18ac   :  { %v6984_v45 = vrot.slane %v6969_v43, 6  ;;  %6970 = vst.msk [vmem:[#allocation3] sm:$0xc0] %vm857_vm12, %v6969_v43  ;;  %v7138_v43 = vld [vmem:[#allocation2 + $0x8] sm:$0xc] }
0x18ae   :  { %8258 = vmatmul.msk.f32.vlgmr.msrb.gmra.mxu0 %vm27_vm0, %v6984_v45  ;;  %8259 = vmatmul.msk.f32.vlgmr.msra.gmra.mxu1 %vm27_vm0, %v6984_v45 }
0x18af   :  { %8260 = vmatmul.msk.f32.vlgmr.msrb.gmra.mxu2 %vm27_vm0, %v6984_v45  ;;  %8261 = vmatmul.msk.f32.vlgmr.msrb.gmra.mxu3 %vm27_vm0, %v6984_v45  ;;  %v7139_v45 = vld [vmem:[#allocation2 + $0x20] sm:$0xc] }
0x192b   :  { %v7004_v35 = vpop.f32.mrf.mxu0  ;;  %v7024_v41 = vpop.f32.mrf.mxu1 }
0x192c   :  { %v7067_v55 = vadd.f32 %v7004_v35, %v6971_v3  ;;  %v7068_v50 = vadd.f32 %v7024_v41, %v6972_v44 }
0x192e   :  { %v8262_v46 = vmul.f32 -1.442695, %v7067_v55  ;;  %v8263_v47 = vmul.f32 -1.442695, %v7068_v50  ;;  %v8284_v55 = vld [vmem:[%s10286_s2 + $0x120] sm:$0xff]  ;;  %v8285_v50 = vld [vmem:[%s10286_s2 + $0x128] sm:$0xff] }
0x192f   :  { %7346 = vmatpush.msrb.mxu0 %v8284_v55  ;;  %7366 = vmatpush.msra.mxu1 %v8285_v50 }
0x1930   :  { %8892 = vpow2.f32 %v8262_v46  ;;  %v8280_v46 = vld [vmem:[%s10286_s2 + $0x100] sm:$0xff] }
0x1931   :  { %8894 = vpow2.f32 %v8263_v47  ;;  %7347 = vmatpush.msrb.mxu0 %v8280_v46 }
0x1932   :  { %v7064_v21 = vpop.f32.mrf.mxu3  ;;  %v7044_v48 = vpop.f32.mrf.mxu2 }
0x1933   :  { %v7070_v39 = vadd.f32 %v7064_v21, %v6974_v16  ;;  %v7069_v15 = vadd.f32 %v7044_v48, %v6973_v59  ;;  %v8281_v16 = vld [vmem:[%s10286_s2 + $0x108] sm:$0xff]  ;;  %v8286_v21 = vld [vmem:[%s10286_s2 + $0x130] sm:$0xff] }
0x1934   :  { %7386 = vmatpush.msrb.mxu2 %v8286_v21  ;;  %7367 = vmatpush.msra.mxu1 %v8281_v16 }
0x1935   :  { %v8264_v61 = vmul.f32 -1.442695, %v7070_v39  ;;  %v8287_v39 = vld [vmem:[%s10286_s2 + $0x138] sm:$0xff] }
0x1936   :  { %v8893_v62 = vpop.eup %8892  ;;  %7406 = vmatpush.msrb.mxu3 %v8287_v39 }
0x1937   :  { %v8895_v52 = vpop.eup %8894  ;;  %v7074_v0 = vadd.f32 1.0, %v8893_v62  ;;  %8896 = vpow2.f32 %v8264_v61  ;;  %v8282_v62 = vld [vmem:[%s10286_s2 + $0x110] sm:$0xff] }
0x1938   :  { %v7093_v37 = vadd.f32 1.0, %v8895_v52  ;;  %v8283_v52 = vld [vmem:[%s10286_s2 + $0x118] sm:$0xff]  ;;  %7387 = vmatpush.msrb.mxu2 %v8282_v62 }
0x1939   :  { %8898 = vrcp.f32 %v7074_v0  ;;  %v7086_v1 = vand.u32 2147483648, %v7074_v0  ;;  %v7084_v23 = vand.u32 2147483647, %v7074_v0  ;;  %vm7080_vm15 = vweird.f32 %v7074_v0  ;;  %7407 = vmatpush.msrb.mxu3 %v8283_v52 }
0x193a   :  { %8900 = vrcp.f32 %v7093_v37  ;;  %v7105_v5 = vand.u32 2147483648, %v7093_v37  ;;  %v7103_v25 = vand.u32 2147483647, %v7093_v37  ;;  %vm7099_vm1 = vweird.f32 %v7093_v37 }
0x193b   :  { %v7087_v53 = vor.u32 1.1754944e-38, %v7086_v1  ;;  %vm7085_vm4 = vcmp.eq.f32.partialorder %v7084_v23, 8.507059e+37 }
0x193c   :  { %v7106_v27 = vor.u32 1.1754944e-38, %v7105_v5  ;;  %vm7104_vm5 = vcmp.eq.f32.partialorder %v7103_v25, 8.507059e+37 }
0x193d   :  { %v8897_v54 = vpop.eup %8896 }
0x193e   :  { %v7113_v56 = vadd.f32 1.0, %v8897_v54 }
0x193f   :  { %v8899_v4 = vpop.eup %8898 }
0x1940   :  { %v8901_v7 = vpop.eup %8900  ;;  %v7076_v11 = vmul.f32 %v8899_v4, %v7074_v0  ;;  %8902 = vrcp.f32 %v7113_v56  ;;  %vm7081_vm9 = vweird.f32 %v8899_v4  ;;  %v7125_v10 = vand.u32 2147483648, %v7113_v56  ;;  %v7141_v0 = vld [vmem:[#allocation2 + $0x38] sm:$0xc] }
0x1941   :  { %v7095_v57 = vmul.f32 %v8901_v7, %v7093_v37  ;;  %8904 = vtanh.f32 %v7069_v15  ;;  %vm7100_vm14 = vweird.f32 %v8901_v7  ;;  %vm7082_vm2 = vmor %vm7080_vm15, %vm7081_vm9  ;;  %vm7119_vm7 = vweird.f32 %v7113_v56 }
0x1942   :  { %v7077_v14 = vsub.f32 1.0, %v7076_v11  ;;  %vm7101_vm3 = vmor %vm7099_vm1, %vm7100_vm14  ;;  %v7123_v9 = vand.u32 2147483647, %v7113_v56  ;;  %v7126_v18 = vor.u32 1.1754944e-38, %v7125_v10 }
0x1943   :  { %v7096_v19 = vsub.f32 1.0, %v7095_v57  ;;  %v7140_v57 = vld [vmem:[#allocation2 + $0x28] sm:$0xc] }
0x1944   :  { %v7078_v60 = vmul.f32 %v8899_v4, %v7077_v14  ;;  %vm7124_vm9 = vcmp.eq.f32.partialorder %v7123_v9, 8.507059e+37 }
0x1945   :  { %v7097_v24 = vmul.f32 %v8901_v7, %v7096_v19 }
0x1946   :  { %v8903_v26 = vpop.eup %8902  ;;  %v7079_v36 = vadd.f32 %v8899_v4, %v7078_v60 }
0x1947   :  { %v7098_v17 = vadd.f32 %v8901_v7, %v7097_v24  ;;  %v7115_v63 = vmul.f32 %v8903_v26, %v7113_v56  ;;  %v8905_v30 = vpop.eup %8904  ;;  %vm7120_vm6 = vweird.f32 %v8903_v26 }
0x1948   :  { %v7083_v28 = vsel %vm7082_vm2, %v8899_v4, %v7079_v36  ;;  %vm7121_vm8 = vmor %vm7119_vm7, %vm7120_vm6 }
0x1949   :  { %v7088_v32 = vsel %vm7085_vm4, %v7087_v53, %v7083_v28  ;;  %v7102_v20 = vsel %vm7101_vm3, %v8901_v7, %v7098_v17  ;;  %v7116_v49 = vsub.f32 1.0, %v7115_v63 }
0x194a   :  { %v7107_v34 = vsel %vm7104_vm5, %v7106_v27, %v7102_v20  ;;  %v7133_v58 = vmul.f32 %v8905_v30, %v7088_v32 }
0x194b   :  { %v7132_v33 = vmul.f32 %v7130_v29, %v7107_v34  ;;  %v7117_v22 = vmul.f32 %v8903_v26, %v7116_v49 }
0x194d   :  { %v10209_v31 = vadd.f32 %v7133_v58, %v7132_v33  ;;  %v7118_v8 = vadd.f32 %v8903_v26, %v7117_v22 }
0x194f   :  { %8906 = vtanh.f32 %v10209_v31  ;;  %v7122_v40 = vsel %vm7121_vm8, %v8903_v26, %v7118_v8  ;;  %v7308_v49 = vrot.slane %v10209_v31, 6 }
0x1950   :  { %v7127_v6 = vsel %vm7124_vm9, %v7126_v18, %v7122_v40 }
0x1955   :  { %v8907_v13 = vpop.eup %8906 }
0x1956   :  { %v7136_v38 = vmul.f32 %v8907_v13, %v7127_v6 }
0x1958   :  { %8273 = vmatmul.msk.f32.vlgmr.msra.gmra.mxu0 %vm27_vm0, %v7136_v38  ;;  %7137 = vst.msk [vmem:[#allocation3 + $0x8] sm:$0x3] %vm318_vm13, %v7136_v38  ;;  %8274 = vmatmul.msk.f32.vlgmr.msrb.gmra.mxu1 %vm27_vm0, %v7136_v38 }
0x1959   :  { %8275 = vmatmul.msk.f32.vlgmr.msra.gmra.mxu2 %vm27_vm0, %v7136_v38  ;;  %8276 = vmatmul.msk.f32.vlgmr.msra.gmra.mxu3 %vm27_vm0, %v7136_v38 }
0x195a   :  { %7525 = vmatpush.msra.mxu0 %v8284_v55  ;;  %7545 = vmatpush.msrb.mxu1 %v8285_v50  ;;  %v7316_v50 = vld [vmem:[#allocation2 + $0x8] sm:$0x30] }
0x195b   :  { %7565 = vmatpush.msra.mxu2 %v8286_v21  ;;  %7585 = vmatpush.msra.mxu3 %v8287_v39 }
0x195c   :  { %7526 = vmatpush.msra.mxu0 %v8280_v46  ;;  %7546 = vmatpush.msrb.mxu1 %v8281_v16  ;;  %v7317_v46 = vld [vmem:[#allocation2 + $0x20] sm:$0x30] }
0x195d   :  { %7566 = vmatpush.msra.mxu2 %v8282_v62  ;;  %7586 = vmatpush.msra.mxu3 %v8283_v52  ;;  %v7319_v52 = vld [vmem:[#allocation2 + $0x38] sm:$0x30] }
0x19d5   :  { %v7170_v2 = vpop.f32.mrf.mxu0  ;;  %v7190_v51 = vpop.f32.mrf.mxu1 }
0x19d6   :  { %v7237_v12 = vrot.slane %v7170_v2, 6  ;;  %v7238_v42 = vrot.slane %v7190_v51, 6 }
0x19d8   :  { %v7245_v3 = vadd.f32 %v7237_v12, %v7138_v43  ;;  %v7246_v35 = vadd.f32 %v7238_v42, %v7139_v45 }
0x19da   :  { %v8277_v44 = vmul.f32 -1.442695, %v7245_v3  ;;  %v8278_v41 = vmul.f32 -1.442695, %v7246_v35 }
0x19dc   :  { %8908 = vpow2.f32 %v8277_v44  ;;  %v7230_v47 = vpop.f32.mrf.mxu3  ;;  %v7210_v15 = vpop.f32.mrf.mxu2 }
0x19dd   :  { %8910 = vpow2.f32 %v8278_v41  ;;  %v7240_v61 = vrot.slane %v7230_v47, 6  ;;  %v7239_v7 = vrot.slane %v7210_v15, 6 }
0x19df   :  { %v7248_v37 = vadd.f32 %v7240_v61, %v7141_v0  ;;  %v7247_v1 = vadd.f32 %v7239_v7, %v7140_v57  ;;  %v7677_v7 = vld [vmem:[%s10288_s4 + $0x8] sm:$0xff] }
0x19e1   :  { %v8279_v48 = vmul.f32 -1.442695, %v7248_v37 }
0x19e2   :  { %v8909_v54 = vpop.eup %8908 }
0x19e3   :  { %v8911_v59 = vpop.eup %8910  ;;  %v7252_v56 = vadd.f32 1.0, %v8909_v54  ;;  %8912 = vpow2.f32 %v8279_v48 }
0x19e4   :  { %v7271_v4 = vadd.f32 1.0, %v8911_v59 }
0x19e5   :  { %8914 = vrcp.f32 %v7252_v56  ;;  %v7264_v26 = vand.u32 2147483648, %v7252_v56  ;;  %v7262_v17 = vand.u32 2147483647, %v7252_v56  ;;  %vm7258_vm15 = vweird.f32 %v7252_v56 }
0x19e6   :  { %8916 = vrcp.f32 %v7271_v4  ;;  %v7283_v36 = vand.u32 2147483648, %v7271_v4  ;;  %v7281_v27 = vand.u32 2147483647, %v7271_v4  ;;  %vm7277_vm1 = vweird.f32 %v7271_v4 }
0x19e7   :  { %v7265_v30 = vor.u32 1.1754944e-38, %v7264_v26  ;;  %vm7263_vm4 = vcmp.eq.f32.partialorder %v7262_v17, 8.507059e+37 }
0x19e8   :  { %v7284_v34 = vor.u32 1.1754944e-38, %v7283_v36  ;;  %vm7282_vm5 = vcmp.eq.f32.partialorder %v7281_v27, 8.507059e+37 }
0x19e9   :  { %v8913_v11 = vpop.eup %8912 }
0x19ea   :  { %v7291_v14 = vadd.f32 1.0, %v8913_v11  ;;  %v7676_v11 = vld [vmem:[%s10288_s4] sm:$0xff] }
0x19eb   :  { %v8915_v19 = vpop.eup %8914 }
0x19ec   :  { %v8917_v5 = vpop.eup %8916  ;;  %v7254_v60 = vmul.f32 %v8915_v19, %v7252_v56  ;;  %8918 = vrcp.f32 %v7291_v14  ;;  %vm7259_vm13 = vweird.f32 %v8915_v19  ;;  %v7303_v31 = vand.u32 2147483648, %v7291_v14 }
0x19ed   :  { %v7273_v23 = vmul.f32 %v8917_v5, %v7271_v4  ;;  %8920 = vtanh.f32 %v7247_v1  ;;  %vm7278_vm14 = vweird.f32 %v8917_v5  ;;  %vm7260_vm2 = vmor %vm7258_vm15, %vm7259_vm13  ;;  %vm7297_vm7 = vweird.f32 %v7291_v14 }
0x19ee   :  { %v7255_v24 = vsub.f32 1.0, %v7254_v60  ;;  %vm7279_vm3 = vmor %vm7277_vm1, %vm7278_vm14  ;;  %v7301_v2 = vand.u32 2147483647, %v7291_v14  ;;  %v7304_v12 = vor.u32 1.1754944e-38, %v7303_v31 }
0x19ef   :  { %v7274_v25 = vsub.f32 1.0, %v7273_v23 }
0x19f0   :  { %v7256_v53 = vmul.f32 %v8915_v19, %v7255_v24  ;;  %vm7302_vm9 = vcmp.eq.f32.partialorder %v7301_v2, 8.507059e+37 }
0x19f1   :  { %v7275_v63 = vmul.f32 %v8917_v5, %v7274_v25 }
0x19f2   :  { %v8919_v28 = vpop.eup %8918  ;;  %v7257_v29 = vadd.f32 %v8915_v19, %v7256_v53 }
0x19f3   :  { %v7276_v32 = vadd.f32 %v8917_v5, %v7275_v63  ;;  %v7293_v20 = vmul.f32 %v8919_v28, %v7291_v14  ;;  %v8921_v33 = vpop.eup %8920  ;;  %vm7298_vm6 = vweird.f32 %v8919_v28  ;;  %v7318_v14 = vld [vmem:[#allocation2 + $0x28] sm:$0x30] }
0x19f4   :  { %v7261_v58 = vsel %vm7260_vm2, %v8915_v19, %v7257_v29  ;;  %vm7299_vm8 = vmor %vm7297_vm7, %vm7298_vm6 }
0x19f5   :  { %v7266_v22 = vsel %vm7263_vm4, %v7265_v30, %v7261_v58  ;;  %v7280_v8 = vsel %vm7279_vm3, %v8917_v5, %v7276_v32  ;;  %v7294_v10 = vsub.f32 1.0, %v7293_v20 }
0x19f6   :  { %v7285_v9 = vsel %vm7282_vm5, %v7284_v34, %v7280_v8  ;;  %v7311_v40 = vmul.f32 %v8921_v33, %v7266_v22 }
0x19f7   :  { %v7310_v18 = vmul.f32 %v7308_v49, %v7285_v9  ;;  %v7295_v13 = vmul.f32 %v8919_v28, %v7294_v10 }
0x19f9   :  { %v10242_v6 = vadd.f32 %v7311_v40, %v7310_v18  ;;  %v7296_v38 = vadd.f32 %v8919_v28, %v7295_v13 }
0x19fb   :  { %8922 = vtanh.f32 %v10242_v6  ;;  %v7300_v51 = vsel %vm7299_vm8, %v8919_v28, %v7296_v38  ;;  %v7487_v34 = vrot.slane %v10242_v6, 6 }
0x19fc   :  { %v7305_v43 = vsel %vm7302_vm9, %v7304_v12, %v7300_v51 }
0x1a01   :  { %v8923_v42 = vpop.eup %8922 }
0x1a02   :  { %v7314_v45 = vmul.f32 %v8923_v42, %v7305_v43 }
0x1a04   :  { %v7329_v3 = vrot.slane %v7314_v45, 2  ;;  %7315 = vst.msk [vmem:[#allocation3 + $0x8] sm:$0xc] %vm497_vm11, %v7314_v45 }
0x1a06   :  { %8288 = vmatmul.msk.f32.vlgmr.msrb.gmra.mxu0 %vm27_vm0, %v7329_v3  ;;  %8289 = vmatmul.msk.f32.vlgmr.msra.gmra.mxu1 %vm27_vm0, %v7329_v3 }
0x1a07   :  { %8290 = vmatmul.msk.f32.vlgmr.msrb.gmra.mxu2 %vm27_vm0, %v7329_v3  ;;  %8291 = vmatmul.msk.f32.vlgmr.msrb.gmra.mxu3 %vm27_vm0, %v7329_v3 }
0x1a08   :  { %7702 = vmatpush.msrb.mxu0 %v7677_v7 }
0x1a0a   :  { %7703 = vmatpush.msrb.mxu0 %v7676_v11 }
0x1a83   :  { %v7349_v35 = vpop.f32.mrf.mxu0  ;;  %v7369_v44 = vpop.f32.mrf.mxu1 }
0x1a84   :  { %v7416_v41 = vrot.slane %v7349_v35, 4  ;;  %v7417_v55 = vrot.slane %v7369_v44, 4  ;;  %v7674_v44 = vld [vmem:[#allocation3] sm:$0xff] }
0x1a86   :  { %v7424_v47 = vadd.f32 %v7416_v41, %v7316_v50  ;;  %v7425_v16 = vadd.f32 %v7417_v55, %v7317_v46  ;;  %v11_v41 = vstv %s10289_s5 }
0x1a87   :  { %12 = vst [vmem:[#allocation4] sm:$0x1] %v11_v41 }
0x1a88   :  { %v8292_v21 = vmul.f32 -1.442695, %v7424_v47  ;;  %v8293_v39 = vmul.f32 -1.442695, %v7425_v16  ;;  %v7495_v16 = vld [vmem:[#allocation2 + $0x8] sm:$0xc0] }
0x1a8a   :  { %8924 = vpow2.f32 %v8292_v21  ;;  %v7409_v61 = vpop.f32.mrf.mxu3  ;;  %v7389_v4 = vpop.f32.mrf.mxu2  ;;  %v7496_v21 = vld [vmem:[#allocation2 + $0x20] sm:$0xc0] }
0x1a8b   :  { %8926 = vpow2.f32 %v8293_v39  ;;  %v7419_v62 = vrot.slane %v7409_v61, 4  ;;  %v7418_v15 = vrot.slane %v7389_v4, 4 }
0x1a8d   :  { %v7427_v0 = vadd.f32 %v7419_v62, %v7319_v52  ;;  %v7426_v5 = vadd.f32 %v7418_v15, %v7318_v14 }
0x1a8f   :  { %v8294_v37 = vmul.f32 -1.442695, %v7427_v0  ;;  %v10269_v0 = vld [vmem:[#allocation4] ss:$0 sm:$0xff] }
0x1a90   :  { %v8925_v48 = vpop.eup %8924 }
0x1a91   :  { %v8927_v54 = vpop.eup %8926  ;;  %v7431_v59 = vadd.f32 1.0, %v8925_v48  ;;  %8928 = vpow2.f32 %v8294_v37 }
0x1a92   :  { %v7450_v56 = vadd.f32 1.0, %v8927_v54 }
0x1a93   :  { %8930 = vrcp.f32 %v7431_v59  ;;  %v7443_v36 = vand.u32 2147483648, %v7431_v59  ;;  %v7441_v63 = vand.u32 2147483647, %v7431_v59  ;;  %vm7437_vm14 = vweird.f32 %v7431_v59 }
0x1a94   :  { %8932 = vrcp.f32 %v7450_v56  ;;  %v7462_v53 = vand.u32 2147483648, %v7450_v56  ;;  %v7460_v28 = vand.u32 2147483647, %v7450_v56  ;;  %vm7456_vm15 = vweird.f32 %v7450_v56 }
0x1a95   :  { %v7444_v32 = vor.u32 1.1754944e-38, %v7443_v36  ;;  %vm7442_vm3 = vcmp.eq.f32.partialorder %v7441_v63, 8.507059e+37 }
0x1a96   :  { %v7463_v58 = vor.u32 1.1754944e-38, %v7462_v53  ;;  %vm7461_vm4 = vcmp.eq.f32.partialorder %v7460_v28, 8.507059e+37 }
0x1a97   :  { %v8929_v57 = vpop.eup %8928 }
0x1a98   :  { %v7470_v19 = vadd.f32 1.0, %v8929_v57 }
0x1a99   :  { %v8931_v1 = vpop.eup %8930 }
0x1a9a   :  { %v8933_v60 = vpop.eup %8932  ;;  %v7433_v23 = vmul.f32 %v8931_v1, %v7431_v59  ;;  %8934 = vrcp.f32 %v7470_v19  ;;  %vm7438_vm11 = vweird.f32 %v8931_v1  ;;  %v7482_v6 = vand.u32 2147483648, %v7470_v19  ;;  %v7498_v59 = vld [vmem:[#allocation2 + $0x38] sm:$0xc0] }
0x1a9b   :  { %v7452_v24 = vmul.f32 %v8933_v60, %v7450_v56  ;;  %8936 = vtanh.f32 %v7426_v5  ;;  %vm7457_vm13 = vweird.f32 %v8933_v60  ;;  %vm7439_vm1 = vmor %vm7437_vm14, %vm7438_vm11  ;;  %vm7476_vm6 = vweird.f32 %v7470_v19 }
0x1a9c   :  { %v7434_v25 = vsub.f32 1.0, %v7433_v23  ;;  %vm7458_vm2 = vmor %vm7456_vm15, %vm7457_vm13  ;;  %v7480_v51 = vand.u32 2147483647, %v7470_v19  ;;  %v7483_v42 = vor.u32 1.1754944e-38, %v7482_v6 }
0x1a9d   :  { %v7453_v26 = vsub.f32 1.0, %v7452_v24 }
0x1a9e   :  { %v7435_v17 = vmul.f32 %v8931_v1, %v7434_v25  ;;  %vm7481_vm8 = vcmp.eq.f32.partialorder %v7480_v51, 8.507059e+37 }
0x1a9f   :  { %v7454_v27 = vmul.f32 %v8933_v60, %v7453_v26 }
0x1aa0   :  { %v8935_v29 = vpop.eup %8934  ;;  %v7436_v30 = vadd.f32 %v8931_v1, %v7435_v17 }
0x1aa1   :  { %v7455_v20 = vadd.f32 %v8933_v60, %v7454_v27  ;;  %v7472_v49 = vmul.f32 %v8935_v29, %v7470_v19  ;;  %v8937_v22 = vpop.eup %8936  ;;  %vm7477_vm5 = vweird.f32 %v8935_v29 }
0x1aa2   :  { %v7440_v33 = vsel %vm7439_vm1, %v8931_v1, %v7436_v30  ;;  %vm7478_vm7 = vmor %vm7476_vm6, %vm7477_vm5 }
0x1aa3   :  { %v7445_v8 = vsel %vm7442_vm3, %v7444_v32, %v7440_v33  ;;  %v7459_v10 = vsel %vm7458_vm2, %v8933_v60, %v7455_v20  ;;  %v7473_v9 = vsub.f32 1.0, %v7472_v49  ;;  %v7497_v60 = vld [vmem:[#allocation2 + $0x28] sm:$0xc0] }
0x1aa4   :  { %v7464_v40 = vsel %vm7461_vm4, %v7463_v58, %v7459_v10  ;;  %v7490_v18 = vmul.f32 %v8937_v22, %v7445_v8 }
0x1aa5   :  { %v7489_v13 = vmul.f32 %v7487_v34, %v7464_v40  ;;  %v7474_v38 = vmul.f32 %v8935_v29, %v7473_v9 }
0x1aa7   :  { %v10257_v31 = vadd.f32 %v7490_v18, %v7489_v13  ;;  %v7475_v2 = vadd.f32 %v8935_v29, %v7474_v38 }
0x1aa9   :  { %8938 = vtanh.f32 %v10257_v31  ;;  %v7479_v12 = vsel %vm7478_vm7, %v8935_v29, %v7475_v2  ;;  %v7666_v8 = vrot.slane %v10257_v31, 6 }
0x1aaa   :  { %v7484_v45 = vsel %vm7481_vm8, %v7483_v42, %v7479_v12 }
0x1aaf   :  { %v8939_v43 = vpop.eup %8938 }
0x1ab0   :  { %v7493_v3 = vmul.f32 %v8939_v43, %v7484_v45 }
0x1ab2   :  { %v7508_v35 = vrot.slane %v7493_v3, 4  ;;  %7494 = vst.msk [vmem:[#allocation3 + $0x8] sm:$0x30] %vm677_vm10, %v7493_v3  ;;  %vm7711_vm10 = vcmask 7168  }
0x1ab4   :  { %8303 = vmatmul.msk.f32.vlgmr.msra.gmra.mxu0 %vm27_vm0, %v7508_v35  ;;  %8304 = vmatmul.msk.f32.vlgmr.msrb.gmra.mxu1 %vm27_vm0, %v7508_v35 }
0x1ab5   :  { %8305 = vmatmul.msk.f32.vlgmr.msra.gmra.mxu2 %vm27_vm0, %v7508_v35  ;;  %8306 = vmatmul.msk.f32.vlgmr.msra.gmra.mxu3 %vm27_vm0, %v7508_v35 }
0x1abc   :  { %8310 = vmatmul.msk.f32.vlgmr.msrb.gmra.mxu0 %vm27_vm0, %v7674_v44 }
0x1b31   :  { %v7528_v55 = vpop.f32.mrf.mxu0  ;;  %v7548_v50 = vpop.f32.mrf.mxu1 }
0x1b32   :  { %v7595_v46 = vrot.slane %v7528_v55, 2  ;;  %v7596_v47 = vrot.slane %v7548_v50, 2 }
0x1b34   :  { %v7603_v39 = vadd.f32 %v7595_v46, %v7495_v16  ;;  %v7604_v61 = vadd.f32 %v7596_v47, %v7496_v21 }
0x1b36   :  { %v8307_v62 = vmul.f32 -1.442695, %v7603_v39  ;;  %v8308_v52 = vmul.f32 -1.442695, %v7604_v61 }
0x1b38   :  { %8940 = vpow2.f32 %v8307_v62  ;;  %v7588_v37 = vpop.f32.mrf.mxu3  ;;  %v7568_v19 = vpop.f32.mrf.mxu2 }
0x1b39   :  { %8942 = vpow2.f32 %v8308_v52  ;;  %v7598_v48 = vrot.slane %v7588_v37, 2  ;;  %v7705_v54 = vpop.f32.mrf.mxu0  ;;  %v7597_v1 = vrot.slane %v7568_v19, 2 }
0x1b3a   :  { %v7706_v56 = vadd.f32 %v10269_v0, %v7705_v54 }
0x1b3b   :  { %v7606_v4 = vadd.f32 %v7598_v48, %v7498_v59  ;;  %v7605_v25 = vadd.f32 %v7597_v1, %v7497_v60 }
0x1b3c   :  { %7712 = vst.msk [vmem:[%s10290_s6] sm:$0xff] %vm7711_vm10, %v7706_v56 }
0x1b3d   :  { %v8309_v15 = vmul.f32 -1.442695, %v7606_v4 }
0x1b3e   :  { %v8941_v7 = vpop.eup %8940 }
0x1b3f   :  { %v8943_v11 = vpop.eup %8942  ;;  %v7610_v57 = vadd.f32 1.0, %v8941_v7  ;;  %8944 = vpow2.f32 %v8309_v15 }
0x1b40   :  { %v7629_v14 = vadd.f32 1.0, %v8943_v11 }
0x1b41   :  { %8946 = vrcp.f32 %v7610_v57  ;;  %v7622_v27 = vand.u32 2147483648, %v7610_v57  ;;  %v7620_v30 = vand.u32 2147483647, %v7610_v57  ;;  %vm7616_vm13 = vweird.f32 %v7610_v57 }
0x1b42   :  { %8948 = vrcp.f32 %v7629_v14  ;;  %v7641_v28 = vand.u32 2147483648, %v7629_v14  ;;  %v7639_v20 = vand.u32 2147483647, %v7629_v14  ;;  %vm7635_vm14 = vweird.f32 %v7629_v14 }
0x1b43   :  { %v7623_v58 = vor.u32 1.1754944e-38, %v7622_v27  ;;  %vm7621_vm2 = vcmp.eq.f32.partialorder %v7620_v30, 8.507059e+37 }
0x1b44   :  { %v7642_v10 = vor.u32 1.1754944e-38, %v7641_v28  ;;  %vm7640_vm3 = vcmp.eq.f32.partialorder %v7639_v20, 8.507059e+37 }
0x1b45   :  { %v8945_v5 = vpop.eup %8944 }
0x1b46   :  { %v7649_v23 = vadd.f32 1.0, %v8945_v5 }
0x1b47   :  { %v8947_v24 = vpop.eup %8946 }
0x1b48   :  { %v8949_v26 = vpop.eup %8948  ;;  %v7612_v36 = vmul.f32 %v8947_v24, %v7610_v57  ;;  %8950 = vrcp.f32 %v7649_v23  ;;  %vm7617_vm9 = vweird.f32 %v8947_v24  ;;  %v7661_v45 = vand.u32 2147483648, %v7649_v23 }
0x1b49   :  { %v7631_v53 = vmul.f32 %v8949_v26, %v7629_v14  ;;  %8952 = vtanh.f32 %v7605_v25  ;;  %vm7636_vm11 = vweird.f32 %v8949_v26  ;;  %vm7618_vm15 = vmor %vm7616_vm13, %vm7617_vm9  ;;  %vm7655_vm5 = vweird.f32 %v7649_v23 }
0x1b4a   :  { %v7613_v17 = vsub.f32 1.0, %v7612_v36  ;;  %vm7637_vm1 = vmor %vm7635_vm14, %vm7636_vm11  ;;  %v7659_v31 = vand.u32 2147483647, %v7649_v23  ;;  %v7662_v35 = vor.u32 1.1754944e-38, %v7661_v45 }
0x1b4b   :  { %v7632_v63 = vsub.f32 1.0, %v7631_v53 }
0x1b4c   :  { %v7614_v29 = vmul.f32 %v8947_v24, %v7613_v17  ;;  %vm7660_vm7 = vcmp.eq.f32.partialorder %v7659_v31, 8.507059e+37 }
0x1b4d   :  { %v7633_v32 = vmul.f32 %v8949_v26, %v7632_v63 }
0x1b4e   :  { %v8951_v49 = vpop.eup %8950  ;;  %v7615_v34 = vadd.f32 %v8947_v24, %v7614_v29 }
0x1b4f   :  { %v7634_v33 = vadd.f32 %v8949_v26, %v7633_v32  ;;  %v7651_v22 = vmul.f32 %v8951_v49, %v7649_v23  ;;  %v8953_v40 = vpop.eup %8952  ;;  %vm7656_vm4 = vweird.f32 %v8951_v49 }
0x1b50   :  { %v7619_v9 = vsel %vm7618_vm15, %v8947_v24, %v7615_v34  ;;  %vm7657_vm6 = vmor %vm7655_vm5, %vm7656_vm4 }
0x1b51   :  { %v7624_v18 = vsel %vm7621_vm2, %v7623_v58, %v7619_v9  ;;  %v7638_v13 = vsel %vm7637_vm1, %v8949_v26, %v7634_v33  ;;  %v7652_v38 = vsub.f32 1.0, %v7651_v22 }
0x1b52   :  { %v7643_v2 = vsel %vm7640_vm3, %v7642_v10, %v7638_v13  ;;  %v7669_v6 = vmul.f32 %v8953_v40, %v7624_v18 }
0x1b53   :  { %v7668_v51 = vmul.f32 %v7666_v8, %v7643_v2  ;;  %v7653_v12 = vmul.f32 %v8951_v49, %v7652_v38 }
0x1b55   :  { %v7670_v42 = vadd.f32 %v7669_v6, %v7668_v51  ;;  %v7654_v43 = vadd.f32 %v8951_v49, %v7653_v12 }
0x1b57   :  { %8954 = vtanh.f32 %v7670_v42  ;;  %v7658_v3 = vsel %vm7657_vm6, %v8951_v49, %v7654_v43 }
0x1b58   :  { %v7663_v41 = vsel %vm7660_vm7, %v7662_v35, %v7658_v3 }
0x1b5d   :  { %v8955_v44 = vpop.eup %8954 }
0x1b5e   :  { %v7672_v55 = vmul.f32 %v8955_v44, %v7663_v41 }
0x1b60   :  { %7673 = vst.msk [vmem:[#allocation3 + $0x8] sm:$0xc0] %vm857_vm12, %v7672_v55 }
0x1b67   :  { %v7675_v50 = vld [vmem:[#allocation3 + $0x8] sm:$0xff] }
0x1b68   :  { %8311 = vmatmul.msk.f32.gmra.mxu0 %vm27_vm0, %v7675_v50 }
0x1be5   :  { %v7708_v46 = vpop.f32.mrf.mxu0 }
0x1be6   :  { %v7709_v47 = vadd.f32 %v10269_v0, %v7708_v46 }
0x1be8   :  { %7713 = vst.msk [vmem:[%s10290_s6 + $0x8] sm:$0xff] %vm7711_vm10, %v7709_v47 }

</bundles_post_ra>
